<compile_context>
chip_gen: v7x
topology: tpu7x:2x2x1
jax: 0.10.0
libtpu: 0.0.40
codegen_flags: <defaults>
</compile_context>

<pallas_src>
import jax
import jax.numpy as jnp
from jax.experimental import pallas as pl
from jax.experimental.pallas import tpu as pltpu

EPS = 1e-5
LANE = 128
COMPUTE_DTYPE = jnp.bfloat16


def _round_up(x, m):
    return (x + m - 1) // m * m


def _pick_row_tile(H, W, row_budget=1024):
    """Largest TH dividing H with TH*W a multiple of 8 and TH*W <= row_budget."""
    cands = [th for th in range(1, H + 1) if H % th == 0 and (th * W) % 8 == 0]
    if not cands:
        return 1
    small = [th for th in cands if th * W <= row_budget]
    return max(small) if small else min(cands)


def _pick_m_tile(M, target=2048):
    """Largest multiple-of-8 divisor of M <= target, preferring >= 2 grid steps."""
    cands = [d for d in range(8, min(M, target) + 1, 8) if M % d == 0]
    multi = [d for d in cands if M // d >= 2]
    if multi:
        return max(multi)
    if cands:
        return max(cands)
    return M


# ----------------------------- Pallas kernels ------------------------------

def _conv3x3_stats_call(xp, w4, TH):
    """Fused 3x3 conv + BN-statistics pass.

    xp: (N, H+2, W+2, Cin)  bf16 spatially padded input (resident per image).
    w4: (3, 3, Cin, Cpad)   bf16 weights, Cout zero-padded to Cpad (lane-dense).
    Returns:
      y   (N*H*W, Cpad) bf16   pre-BN conv output
      ps  (N*HT, 8, Cpad) f32  per-grid-step partial channel sums
      ps2 (N*HT, 8, Cpad) f32  per-grid-step partial channel sums of squares
    """
    N, Hp, Wp, Cin = xp.shape
    H, W = Hp - 2, Wp - 2
    Cpad = w4.shape[-1]
    HT = H // TH
    MB = TH * W                      # output rows (pixels) per grid step
    M = N * H * W

    def kernel(x_ref, w_ref, y_ref, ps_ref, ps2_ref):
        t = pl.program_id(1)
        row0 = t * TH
        acc = jnp.zeros((MB, Cpad), jnp.float32)
        # 9 taps, fully unrolled: shifted in-VMEM slices -> matmul, no im2col in HBM.
        for dy in range(3):
            for dx in range(3):
                xs = x_ref[pl.ds(row0 + dy, TH), pl.ds(dx, W), :]   # (TH, W, Cin)
                xs = xs.reshape(MB, Cin)       # collapse leading dims (W % 8 == 0)
                acc = acc + jnp.dot(xs, w_ref[dy, dx],
                                    preferred_element_type=jnp.float32)
        y_ref[...] = acc.astype(y_ref.dtype)
        # Partial BN statistics from the f32 accumulator (sublane-tile aligned).
        accr = acc.reshape(MB // 8, 8, Cpad)
        ps_ref[...] = jnp.sum(accr, axis=0)            # (8, Cpad)
        ps2_ref[...] = jnp.sum(accr * accr, axis=0)    # (8, Cpad)

    y, ps, ps2 = pl.pallas_call(
        kernel,
        out_shape=(
            jax.ShapeDtypeStruct((M, Cpad), COMPUTE_DTYPE),
            jax.ShapeDtypeStruct((N * HT, 8, Cpad), jnp.float32),
            jax.ShapeDtypeStruct((N * HT, 8, Cpad), jnp.float32),
        ),
        grid=(N, HT),
        in_specs=[
            # padded image resident per image n (re-used across the row-tile axis)
            pl.BlockSpec((None, Hp, Wp, Cin), lambda n, t: (n, 0, 0, 0)),
            # full weight tensor resident across the whole grid
            pl.BlockSpec((3, 3, Cin, Cpad), lambda n, t: (0, 0, 0, 0)),
        ],
        out_specs=(
            pl.BlockSpec((MB, Cpad), lambda n, t: (n * HT + t, 0)),
            pl.BlockSpec((None, 8, Cpad), lambda n, t: (n * HT + t, 0, 0)),
            pl.BlockSpec((None, 8, Cpad), lambda n, t: (n * HT + t, 0, 0)),
        ),
        compiler_params=pltpu.CompilerParams(
            dimension_semantics=("parallel", "parallel")),
    )(xp, w4)
    return y, ps, ps2


def _bn_relu_kernel(y_ref, sc_ref, sh_ref, o_ref):
    # y_ref: (TM, Cpad) bf16; sc/sh: (1, Cpad) f32 folded BN affine.
    y = y_ref[...].astype(jnp.float32)
    o_ref[...] = jnp.maximum(y * sc_ref[...] + sh_ref[...], 0.0).astype(o_ref.dtype)


def _bn_relu_call(y, scale, shift):
    """Tiled normalize + ReLU: o = max(y*scale + shift, 0), per-channel affine."""
    M, C = y.shape
    TM = _pick_m_tile(M)
    return pl.pallas_call(
        _bn_relu_kernel,
        out_shape=jax.ShapeDtypeStruct((M, C), COMPUTE_DTYPE),
        grid=(M // TM,),
        in_specs=[
            pl.BlockSpec((TM, C), lambda i: (i, 0)),
            pl.BlockSpec((1, C), lambda i: (0, 0)),
            pl.BlockSpec((1, C), lambda i: (0, 0)),
        ],
        out_specs=pl.BlockSpec((TM, C), lambda i: (i, 0)),
        compiler_params=pltpu.CompilerParams(dimension_semantics=("parallel",)),
    )(y, scale.reshape(1, C).astype(jnp.float32),
      shift.reshape(1, C).astype(jnp.float32))


# ------------------------------ JAX wrappers --------------------------------

def _conv_bn_relu_layer(x_nhwc, w_oihw, gamma, beta):
    """Conv3x3(SAME) -> BatchNorm(batch stats) -> ReLU. NHWC in, (N,H,W,Cpad) bf16 out.

    Channels >= Cout of the output are exact zeros (padded lanes)."""
    N, H, W, Cin = x_nhwc.shape
    Cout, Cin_w = int(w_oihw.shape[0]), int(w_oihw.shape[1])
    assert Cin >= Cin_w, (Cin, Cin_w)
    Cpad = _round_up(Cout, LANE)

    # (Cout, Cin_w, 3, 3) -> (3, 3, Cin_w, Cout), zero-pad to (3, 3, Cin, Cpad), bf16.
    w4 = jnp.transpose(w_oihw, (2, 3, 1, 0))
    w4 = jnp.pad(w4, ((0, 0), (0, 0), (0, Cin - Cin_w), (0, Cpad - Cout)))
    w4 = w4.astype(COMPUTE_DTYPE)

    # Spatial SAME-pad (single cheap pass) + bf16 cast. The conv bias is dropped on
    # purpose: BatchNorm's mean subtraction cancels a per-channel bias exactly.
    xp = jnp.pad(x_nhwc, ((0, 0), (1, 1), (1, 1), (0, 0))).astype(COMPUTE_DTYPE)

    TH = _pick_row_tile(H, W)
    y, ps, ps2 = _conv3x3_stats_call(xp, w4, TH)

    # Finalize batch statistics (tiny reduction) and fold BN into one affine.
    M = N * H * W
    ch_sum = jnp.sum(ps, axis=(0, 1))
    ch_sqs = jnp.sum(ps2, axis=(0, 1))
    mean = ch_sum / M
    var = jnp.maximum(ch_sqs / M - mean * mean, 0.0)   # biased variance (PyTorch default)
    g = jnp.pad(gamma.astype(jnp.float32), (0, Cpad - Cout))
    b = jnp.pad(beta.astype(jnp.float32), (0, Cpad - Cout))
    scale = g * jax.lax.rsqrt(var + EPS)
    shift = b - mean * scale

    a = _bn_relu_call(y, scale, shift)                 # (M, Cpad) bf16
    return a.reshape(N, H, W, Cpad)


def double_conv_forward_nhwc(x_nhwc, params):
    a1 = _conv_bn_relu_layer(x_nhwc, params["w1"], params["g1"], params["be1"])
    a2 = _conv_bn_relu_layer(a1, params["w2"], params["g2"], params["be2"])
    Cout = int(params["w2"].shape[0])
    return a2[..., :Cout]


@jax.jit
def double_conv_forward(x_nchw, params):
    """NCHW boundary to match the PyTorch module; the core runs NHWC/bf16/Cpad=128."""
    # TODO(synk): in a full ResNetUNet keep NHWC end-to-end and drop these transposes.
    x = jnp.transpose(x_nchw, (0, 2, 3, 1))
    out = double_conv_forward_nhwc(x, params)
    return jnp.transpose(out.astype(jnp.float32), (0, 3, 1, 2))


# --------------------------- pure-JAX reference ------------------------------

def double_conv_reference(x_nchw, params):
    def conv(x, w, b):
        y = jax.lax.conv_general_dilated(
            x, w, window_strides=(1, 1), padding="SAME",
            dimension_numbers=("NCHW", "OIHW", "NCHW"))
        return y + b[None, :, None, None]

    def bn_relu(y, g, be):
        mean = jnp.mean(y, axis=(0, 2, 3), keepdims=True)
        var = jnp.mean(jnp.square(y - mean), axis=(0, 2, 3), keepdims=True)
        xhat = (y - mean) * jax.lax.rsqrt(var + EPS)
        return jnp.maximum(xhat * g[None, :, None, None] + be[None, :, None, None], 0.0)

    h = bn_relu(conv(x_nchw, params["w1"], params["b1"]), params["g1"], params["be1"])
    return bn_relu(conv(h, params["w2"], params["b2"]), params["g2"], params["be2"])


# ---------------------------------- main -------------------------------------

if __name__ == "__main__":
    N, C_IN, C_OUT, H, W = 2, 4, 8, 16, 16

    key = jax.random.PRNGKey(0)
    ks = jax.random.split(key, 9)
    params = {
        "w1": 0.1 * jax.random.normal(ks[0], (C_OUT, C_IN, 3, 3), jnp.float32),
        "b1": 0.1 * jax.random.normal(ks[1], (C_OUT,), jnp.float32),
        "g1": 1.0 + 0.1 * jax.random.normal(ks[2], (C_OUT,), jnp.float32),
        "be1": 0.1 * jax.random.normal(ks[3], (C_OUT,), jnp.float32),
        "w2": 0.1 * jax.random.normal(ks[4], (C_OUT, C_OUT, 3, 3), jnp.float32),
        "b2": 0.1 * jax.random.normal(ks[5], (C_OUT,), jnp.float32),
        "g2": 1.0 + 0.1 * jax.random.normal(ks[6], (C_OUT,), jnp.float32),
        "be2": 0.1 * jax.random.normal(ks[7], (C_OUT,), jnp.float32),
    }
    x = jax.random.normal(ks[8], (N, C_IN, H, W), jnp.float32)

    out = jax.block_until_ready(double_conv_forward(x, params))
    ref = jax.block_until_ready(double_conv_reference(x, params))

    assert out.shape == (N, C_OUT, H, W), out.shape
    # bf16 MXU path (f32 accumulation) vs pure-f32 reference: allow bf16-level error.
    # (The conv bias in the reference is mathematically cancelled by BN, so dropping it
    #  in the Pallas path does not change the result.)
    max_err = float(jnp.max(jnp.abs(out - ref)))
    assert max_err < 0.2, max_err
    print("KERNEL_OK")
</pallas_src>

<mosaic_0001>
module attributes {stable_mosaic.version = 11 : i64} {
  func.func @kernel(%arg0: i32, %arg1: i32, %arg2: memref<1x18x18x4xbf16, #tpu.memory_space<vmem>>, %arg3: memref<3x3x4x128xbf16, #tpu.memory_space<vmem>>, %arg4: memref<256x128xbf16, #tpu.memory_space<vmem>>, %arg5: memref<1x8x128xf32, #tpu.memory_space<vmem>>, %arg6: memref<1x8x128xf32, #tpu.memory_space<vmem>>) attributes {dimension_semantics = [#tpu.dimension_semantics<parallel>, #tpu.dimension_semantics<parallel>], iteration_bounds = array<i64: 2, 1>, scalar_prefetch = 0 : i64, scratch_operands = 0 : i64, tpu.core_type = #tpu.core_type<tc>, window_params = [{transform_indices = @transform_0, window_bounds = array<i64: 1, 18, 18, 4>}, {pipeline_mode = #tpu.pipeline_mode<synchronous>, transform_indices = @transform_1, window_bounds = array<i64: 3, 3, 4, 128>}, {transform_indices = @transform_2, window_bounds = array<i64: 256, 128>}, {transform_indices = @transform_3, window_bounds = array<i64: 1, 8, 128>}, {transform_indices = @transform_4, window_bounds = array<i64: 1, 8, 128>}]} {
    %c16_i32 = arith.constant 16 : i32
    %0 = arith.muli %arg1, %c16_i32 : i32
    %cst = arith.constant 0.000000e+00 : f32
    %1 = vector.broadcast %cst : f32 to vector<256x128xf32>
    %c0_i32 = arith.constant 0 : i32
    %2 = arith.addi %0, %c0_i32 : i32
    %c0 = arith.constant 0 : index
    %3 = arith.index_cast %2 : i32 to index
    %c0_0 = arith.constant 0 : index
    %c0_1 = arith.constant 0 : index
    %4 = vector.load %arg2[%c0, %3, %c0_0, %c0_1] : memref<1x18x18x4xbf16, #tpu.memory_space<vmem>>, vector<1x16x16x4xbf16>
    %5 = vector.shape_cast %4 : vector<1x16x16x4xbf16> to vector<16x16x4xbf16>
    %6 = vector.shape_cast %5 : vector<16x16x4xbf16> to vector<256x4xbf16>
    %c0_2 = arith.constant 0 : index
    %c0_3 = arith.constant 0 : index
    %c0_4 = arith.constant 0 : index
    %c0_5 = arith.constant 0 : index
    %7 = vector.load %arg3[%c0_2, %c0_3, %c0_4, %c0_5] : memref<3x3x4x128xbf16, #tpu.memory_space<vmem>>, vector<1x1x4x128xbf16>
    %8 = vector.shape_cast %7 : vector<1x1x4x128xbf16> to vector<4x128xbf16>
    %cst_6 = arith.constant dense<0.000000e+00> : vector<256x128xf32>
    %9 = tpu.matmul %6, %8, %cst_6 {dimension_numbers = #tpu.dot_dimension_numbers<[1], [0], [0], [1], [0, 0, 1, 1], [], []>} : vector<256x4xbf16>, vector<4x128xbf16>, vector<256x128xf32> -> vector<256x128xf32>
    %10 = arith.addf %1, %9 : vector<256x128xf32>
    %c0_i32_7 = arith.constant 0 : i32
    %11 = arith.addi %0, %c0_i32_7 : i32
    %c0_8 = arith.constant 0 : index
    %12 = arith.index_cast %11 : i32 to index
    %c1 = arith.constant 1 : index
    %c0_9 = arith.constant 0 : index
    %13 = vector.load %arg2[%c0_8, %12, %c1, %c0_9] : memref<1x18x18x4xbf16, #tpu.memory_space<vmem>>, vector<1x16x16x4xbf16>
    %14 = vector.shape_cast %13 : vector<1x16x16x4xbf16> to vector<16x16x4xbf16>
    %15 = vector.shape_cast %14 : vector<16x16x4xbf16> to vector<256x4xbf16>
    %c0_10 = arith.constant 0 : index
    %c1_11 = arith.constant 1 : index
    %c0_12 = arith.constant 0 : index
    %c0_13 = arith.constant 0 : index
    %16 = vector.load %arg3[%c0_10, %c1_11, %c0_12, %c0_13] : memref<3x3x4x128xbf16, #tpu.memory_space<vmem>>, vector<1x1x4x128xbf16>
    %17 = vector.shape_cast %16 : vector<1x1x4x128xbf16> to vector<4x128xbf16>
    %cst_14 = arith.constant dense<0.000000e+00> : vector<256x128xf32>
    %18 = tpu.matmul %15, %17, %cst_14 {dimension_numbers = #tpu.dot_dimension_numbers<[1], [0], [0], [1], [0, 0, 1, 1], [], []>} : vector<256x4xbf16>, vector<4x128xbf16>, vector<256x128xf32> -> vector<256x128xf32>
    %19 = arith.addf %10, %18 : vector<256x128xf32>
    %c0_i32_15 = arith.constant 0 : i32
    %20 = arith.addi %0, %c0_i32_15 : i32
    %c0_16 = arith.constant 0 : index
    %21 = arith.index_cast %20 : i32 to index
    %c2 = arith.constant 2 : index
    %c0_17 = arith.constant 0 : index
    %22 = vector.load %arg2[%c0_16, %21, %c2, %c0_17] : memref<1x18x18x4xbf16, #tpu.memory_space<vmem>>, vector<1x16x16x4xbf16>
    %23 = vector.shape_cast %22 : vector<1x16x16x4xbf16> to vector<16x16x4xbf16>
    %24 = vector.shape_cast %23 : vector<16x16x4xbf16> to vector<256x4xbf16>
    %c0_18 = arith.constant 0 : index
    %c2_19 = arith.constant 2 : index
    %c0_20 = arith.constant 0 : index
    %c0_21 = arith.constant 0 : index
    %25 = vector.load %arg3[%c0_18, %c2_19, %c0_20, %c0_21] : memref<3x3x4x128xbf16, #tpu.memory_space<vmem>>, vector<1x1x4x128xbf16>
    %26 = vector.shape_cast %25 : vector<1x1x4x128xbf16> to vector<4x128xbf16>
    %cst_22 = arith.constant dense<0.000000e+00> : vector<256x128xf32>
    %27 = tpu.matmul %24, %26, %cst_22 {dimension_numbers = #tpu.dot_dimension_numbers<[1], [0], [0], [1], [0, 0, 1, 1], [], []>} : vector<256x4xbf16>, vector<4x128xbf16>, vector<256x128xf32> -> vector<256x128xf32>
    %28 = arith.addf %19, %27 : vector<256x128xf32>
    %c1_i32 = arith.constant 1 : i32
    %29 = arith.addi %0, %c1_i32 : i32
    %c0_23 = arith.constant 0 : index
    %30 = arith.index_cast %29 : i32 to index
    %c0_24 = arith.constant 0 : index
    %c0_25 = arith.constant 0 : index
    %31 = vector.load %arg2[%c0_23, %30, %c0_24, %c0_25] : memref<1x18x18x4xbf16, #tpu.memory_space<vmem>>, vector<1x16x16x4xbf16>
    %32 = vector.shape_cast %31 : vector<1x16x16x4xbf16> to vector<16x16x4xbf16>
    %33 = vector.shape_cast %32 : vector<16x16x4xbf16> to vector<256x4xbf16>
    %c1_26 = arith.constant 1 : index
    %c0_27 = arith.constant 0 : index
    %c0_28 = arith.constant 0 : index
    %c0_29 = arith.constant 0 : index
    %34 = vector.load %arg3[%c1_26, %c0_27, %c0_28, %c0_29] : memref<3x3x4x128xbf16, #tpu.memory_space<vmem>>, vector<1x1x4x128xbf16>
    %35 = vector.shape_cast %34 : vector<1x1x4x128xbf16> to vector<4x128xbf16>
    %cst_30 = arith.constant dense<0.000000e+00> : vector<256x128xf32>
    %36 = tpu.matmul %33, %35, %cst_30 {dimension_numbers = #tpu.dot_dimension_numbers<[1], [0], [0], [1], [0, 0, 1, 1], [], []>} : vector<256x4xbf16>, vector<4x128xbf16>, vector<256x128xf32> -> vector<256x128xf32>
    %37 = arith.addf %28, %36 : vector<256x128xf32>
    %c1_i32_31 = arith.constant 1 : i32
    %38 = arith.addi %0, %c1_i32_31 : i32
    %c0_32 = arith.constant 0 : index
    %39 = arith.index_cast %38 : i32 to index
    %c1_33 = arith.constant 1 : index
    %c0_34 = arith.constant 0 : index
    %40 = vector.load %arg2[%c0_32, %39, %c1_33, %c0_34] : memref<1x18x18x4xbf16, #tpu.memory_space<vmem>>, vector<1x16x16x4xbf16>
    %41 = vector.shape_cast %40 : vector<1x16x16x4xbf16> to vector<16x16x4xbf16>
    %42 = vector.shape_cast %41 : vector<16x16x4xbf16> to vector<256x4xbf16>
    %c1_35 = arith.constant 1 : index
    %c1_36 = arith.constant 1 : index
    %c0_37 = arith.constant 0 : index
    %c0_38 = arith.constant 0 : index
    %43 = vector.load %arg3[%c1_35, %c1_36, %c0_37, %c0_38] : memref<3x3x4x128xbf16, #tpu.memory_space<vmem>>, vector<1x1x4x128xbf16>
    %44 = vector.shape_cast %43 : vector<1x1x4x128xbf16> to vector<4x128xbf16>
    %cst_39 = arith.constant dense<0.000000e+00> : vector<256x128xf32>
    %45 = tpu.matmul %42, %44, %cst_39 {dimension_numbers = #tpu.dot_dimension_numbers<[1], [0], [0], [1], [0, 0, 1, 1], [], []>} : vector<256x4xbf16>, vector<4x128xbf16>, vector<256x128xf32> -> vector<256x128xf32>
    %46 = arith.addf %37, %45 : vector<256x128xf32>
    %c1_i32_40 = arith.constant 1 : i32
    %47 = arith.addi %0, %c1_i32_40 : i32
    %c0_41 = arith.constant 0 : index
    %48 = arith.index_cast %47 : i32 to index
    %c2_42 = arith.constant 2 : index
    %c0_43 = arith.constant 0 : index
    %49 = vector.load %arg2[%c0_41, %48, %c2_42, %c0_43] : memref<1x18x18x4xbf16, #tpu.memory_space<vmem>>, vector<1x16x16x4xbf16>
    %50 = vector.shape_cast %49 : vector<1x16x16x4xbf16> to vector<16x16x4xbf16>
    %51 = vector.shape_cast %50 : vector<16x16x4xbf16> to vector<256x4xbf16>
    %c1_44 = arith.constant 1 : index
    %c2_45 = arith.constant 2 : index
    %c0_46 = arith.constant 0 : index
    %c0_47 = arith.constant 0 : index
    %52 = vector.load %arg3[%c1_44, %c2_45, %c0_46, %c0_47] : memref<3x3x4x128xbf16, #tpu.memory_space<vmem>>, vector<1x1x4x128xbf16>
    %53 = vector.shape_cast %52 : vector<1x1x4x128xbf16> to vector<4x128xbf16>
    %cst_48 = arith.constant dense<0.000000e+00> : vector<256x128xf32>
    %54 = tpu.matmul %51, %53, %cst_48 {dimension_numbers = #tpu.dot_dimension_numbers<[1], [0], [0], [1], [0, 0, 1, 1], [], []>} : vector<256x4xbf16>, vector<4x128xbf16>, vector<256x128xf32> -> vector<256x128xf32>
    %55 = arith.addf %46, %54 : vector<256x128xf32>
    %c2_i32 = arith.constant 2 : i32
    %56 = arith.addi %0, %c2_i32 : i32
    %c0_49 = arith.constant 0 : index
    %57 = arith.index_cast %56 : i32 to index
    %c0_50 = arith.constant 0 : index
    %c0_51 = arith.constant 0 : index
    %58 = vector.load %arg2[%c0_49, %57, %c0_50, %c0_51] : memref<1x18x18x4xbf16, #tpu.memory_space<vmem>>, vector<1x16x16x4xbf16>
    %59 = vector.shape_cast %58 : vector<1x16x16x4xbf16> to vector<16x16x4xbf16>
    %60 = vector.shape_cast %59 : vector<16x16x4xbf16> to vector<256x4xbf16>
    %c2_52 = arith.constant 2 : index
    %c0_53 = arith.constant 0 : index
    %c0_54 = arith.constant 0 : index
    %c0_55 = arith.constant 0 : index
    %61 = vector.load %arg3[%c2_52, %c0_53, %c0_54, %c0_55] : memref<3x3x4x128xbf16, #tpu.memory_space<vmem>>, vector<1x1x4x128xbf16>
    %62 = vector.shape_cast %61 : vector<1x1x4x128xbf16> to vector<4x128xbf16>
    %cst_56 = arith.constant dense<0.000000e+00> : vector<256x128xf32>
    %63 = tpu.matmul %60, %62, %cst_56 {dimension_numbers = #tpu.dot_dimension_numbers<[1], [0], [0], [1], [0, 0, 1, 1], [], []>} : vector<256x4xbf16>, vector<4x128xbf16>, vector<256x128xf32> -> vector<256x128xf32>
    %64 = arith.addf %55, %63 : vector<256x128xf32>
    %c2_i32_57 = arith.constant 2 : i32
    %65 = arith.addi %0, %c2_i32_57 : i32
    %c0_58 = arith.constant 0 : index
    %66 = arith.index_cast %65 : i32 to index
    %c1_59 = arith.constant 1 : index
    %c0_60 = arith.constant 0 : index
    %67 = vector.load %arg2[%c0_58, %66, %c1_59, %c0_60] : memref<1x18x18x4xbf16, #tpu.memory_space<vmem>>, vector<1x16x16x4xbf16>
    %68 = vector.shape_cast %67 : vector<1x16x16x4xbf16> to vector<16x16x4xbf16>
    %69 = vector.shape_cast %68 : vector<16x16x4xbf16> to vector<256x4xbf16>
    %c2_61 = arith.constant 2 : index
    %c1_62 = arith.constant 1 : index
    %c0_63 = arith.constant 0 : index
    %c0_64 = arith.constant 0 : index
    %70 = vector.load %arg3[%c2_61, %c1_62, %c0_63, %c0_64] : memref<3x3x4x128xbf16, #tpu.memory_space<vmem>>, vector<1x1x4x128xbf16>
    %71 = vector.shape_cast %70 : vector<1x1x4x128xbf16> to vector<4x128xbf16>
    %cst_65 = arith.constant dense<0.000000e+00> : vector<256x128xf32>
    %72 = tpu.matmul %69, %71, %cst_65 {dimension_numbers = #tpu.dot_dimension_numbers<[1], [0], [0], [1], [0, 0, 1, 1], [], []>} : vector<256x4xbf16>, vector<4x128xbf16>, vector<256x128xf32> -> vector<256x128xf32>
    %73 = arith.addf %64, %72 : vector<256x128xf32>
    %c2_i32_66 = arith.constant 2 : i32
    %74 = arith.addi %0, %c2_i32_66 : i32
    %c0_67 = arith.constant 0 : index
    %75 = arith.index_cast %74 : i32 to index
    %c2_68 = arith.constant 2 : index
    %c0_69 = arith.constant 0 : index
    %76 = vector.load %arg2[%c0_67, %75, %c2_68, %c0_69] : memref<1x18x18x4xbf16, #tpu.memory_space<vmem>>, vector<1x16x16x4xbf16>
    %77 = vector.shape_cast %76 : vector<1x16x16x4xbf16> to vector<16x16x4xbf16>
    %78 = vector.shape_cast %77 : vector<16x16x4xbf16> to vector<256x4xbf16>
    %c2_70 = arith.constant 2 : index
    %c2_71 = arith.constant 2 : index
    %c0_72 = arith.constant 0 : index
    %c0_73 = arith.constant 0 : index
    %79 = vector.load %arg3[%c2_70, %c2_71, %c0_72, %c0_73] : memref<3x3x4x128xbf16, #tpu.memory_space<vmem>>, vector<1x1x4x128xbf16>
    %80 = vector.shape_cast %79 : vector<1x1x4x128xbf16> to vector<4x128xbf16>
    %cst_74 = arith.constant dense<0.000000e+00> : vector<256x128xf32>
    %81 = tpu.matmul %78, %80, %cst_74 {dimension_numbers = #tpu.dot_dimension_numbers<[1], [0], [0], [1], [0, 0, 1, 1], [], []>} : vector<256x4xbf16>, vector<4x128xbf16>, vector<256x128xf32> -> vector<256x128xf32>
    %82 = arith.addf %73, %81 : vector<256x128xf32>
    %83 = arith.truncf %82 : vector<256x128xf32> to vector<256x128xbf16>
    %c0_75 = arith.constant 0 : index
    %c0_76 = arith.constant 0 : index
    %84 = vector.load %arg4[%c0_75, %c0_76] : memref<256x128xbf16, #tpu.memory_space<vmem>>, vector<256x128xbf16>
    tpu.vector_store %arg4[%c0_75, %c0_76], %83 {strides = array<i32>} : memref<256x128xbf16, #tpu.memory_space<vmem>>, vector<256x128xbf16>,
    %85 = vector.shape_cast %82 : vector<256x128xf32> to vector<32x8x128xf32>
    %cst_77 = arith.constant dense<0.000000e+00> : vector<8x128xf32>
    %86 = vector.multi_reduction <add>, %85, %cst_77 [0] : vector<32x8x128xf32> to vector<8x128xf32>
    %c0_78 = arith.constant 0 : index
    %c0_79 = arith.constant 0 : index
    %c0_80 = arith.constant 0 : index
    %87 = vector.load %arg5[%c0_78, %c0_79, %c0_80] : memref<1x8x128xf32, #tpu.memory_space<vmem>>, vector<1x8x128xf32>
    %88 = vector.shape_cast %87 : vector<1x8x128xf32> to vector<8x128xf32>
    %89 = vector.shape_cast %86 : vector<8x128xf32> to vector<1x8x128xf32>
    tpu.vector_store %arg5[%c0_78, %c0_79, %c0_80], %89 {strides = array<i32>} : memref<1x8x128xf32, #tpu.memory_space<vmem>>, vector<1x8x128xf32>,
    %90 = arith.mulf %85, %85 : vector<32x8x128xf32>
    %cst_81 = arith.constant dense<0.000000e+00> : vector<8x128xf32>
    %91 = vector.multi_reduction <add>, %90, %cst_81 [0] : vector<32x8x128xf32> to vector<8x128xf32>
    %c0_82 = arith.constant 0 : index
    %c0_83 = arith.constant 0 : index
    %c0_84 = arith.constant 0 : index
    %92 = vector.load %arg6[%c0_82, %c0_83, %c0_84] : memref<1x8x128xf32, #tpu.memory_space<vmem>>, vector<1x8x128xf32>
    %93 = vector.shape_cast %92 : vector<1x8x128xf32> to vector<8x128xf32>
    %94 = vector.shape_cast %91 : vector<8x128xf32> to vector<1x8x128xf32>
    tpu.vector_store %arg6[%c0_82, %c0_83, %c0_84], %94 {strides = array<i32>} : memref<1x8x128xf32, #tpu.memory_space<vmem>>, vector<1x8x128xf32>,
    return
  }
  func.func @transform_0(%arg0: i32, %arg1: i32) -> (i32, i32, i32, i32) {
    %c0_i32 = arith.constant 0 : i32
    %c0_i32_0 = arith.constant 0 : i32
    %c0_i32_1 = arith.constant 0 : i32
    %c0_i32_2 = arith.constant 0 : i32
    return %arg0, %c0_i32, %c0_i32_0, %c0_i32_1 : i32, i32, i32, i32
  }
  func.func @transform_1(%arg0: i32, %arg1: i32) -> (i32, i32, i32, i32) {
    %c0_i32 = arith.constant 0 : i32
    %c0_i32_0 = arith.constant 0 : i32
    %c0_i32_1 = arith.constant 0 : i32
    %c0_i32_2 = arith.constant 0 : i32
    %c0_i32_3 = arith.constant 0 : i32
    return %c0_i32, %c0_i32_0, %c0_i32_1, %c0_i32_2 : i32, i32, i32, i32
  }
  func.func @transform_2(%arg0: i32, %arg1: i32) -> (i32, i32) {
    %c1_i32 = arith.constant 1 : i32
    %0 = arith.muli %arg0, %c1_i32 : i32
    %1 = arith.addi %0, %arg1 : i32
    %c0_i32 = arith.constant 0 : i32
    %c0_i32_0 = arith.constant 0 : i32
    return %1, %c0_i32 : i32, i32
  }
  func.func @transform_3(%arg0: i32, %arg1: i32) -> (i32, i32, i32) {
    %c1_i32 = arith.constant 1 : i32
    %0 = arith.muli %arg0, %c1_i32 : i32
    %1 = arith.addi %0, %arg1 : i32
    %c0_i32 = arith.constant 0 : i32
    %c0_i32_0 = arith.constant 0 : i32
    %c0_i32_1 = arith.constant 0 : i32
    return %1, %c0_i32, %c0_i32_0 : i32, i32, i32
  }
  func.func @transform_4(%arg0: i32, %arg1: i32) -> (i32, i32, i32) {
    %c1_i32 = arith.constant 1 : i32
    %0 = arith.muli %arg0, %c1_i32 : i32
    %1 = arith.addi %0, %arg1 : i32
    %c0_i32 = arith.constant 0 : i32
    %c0_i32_0 = arith.constant 0 : i32
    %c0_i32_1 = arith.constant 0 : i32
    return %1, %c0_i32, %c0_i32_0 : i32, i32, i32
  }
}

module attributes {stable_mosaic.version = 11 : i64} {
  func.func @_bn_relu_kernel(%arg0: i32, %arg1: memref<256x128xbf16, #tpu.memory_space<vmem>>, %arg2: memref<1x128xf32, #tpu.memory_space<vmem>>, %arg3: memref<1x128xf32, #tpu.memory_space<vmem>>, %arg4: memref<256x128xbf16, #tpu.memory_space<vmem>>) attributes {dimension_semantics = [#tpu.dimension_semantics<parallel>], iteration_bounds = array<i64: 2>, scalar_prefetch = 0 : i64, scratch_operands = 0 : i64, tpu.core_type = #tpu.core_type<tc>, window_params = [{transform_indices = @transform_0, window_bounds = array<i64: 256, 128>}, {pipeline_mode = #tpu.pipeline_mode<synchronous>, transform_indices = @transform_1, window_bounds = array<i64: 1, 128>}, {pipeline_mode = #tpu.pipeline_mode<synchronous>, transform_indices = @transform_2, window_bounds = array<i64: 1, 128>}, {transform_indices = @transform_3, window_bounds = array<i64: 256, 128>}]} {
    %c0 = arith.constant 0 : index
    %c0_0 = arith.constant 0 : index
    %0 = vector.load %arg1[%c0, %c0_0] : memref<256x128xbf16, #tpu.memory_space<vmem>>, vector<256x128xbf16>
    %1 = arith.extf %0 : vector<256x128xbf16> to vector<256x128xf32>
    %c0_1 = arith.constant 0 : index
    %c0_2 = arith.constant 0 : index
    %2 = vector.load %arg2[%c0_1, %c0_2] : memref<1x128xf32, #tpu.memory_space<vmem>>, vector<1x128xf32>
    %3 = vector.broadcast %2 : vector<1x128xf32> to vector<256x128xf32>
    %4 = arith.mulf %1, %3 : vector<256x128xf32>
    %c0_3 = arith.constant 0 : index
    %c0_4 = arith.constant 0 : index
    %5 = vector.load %arg3[%c0_3, %c0_4] : memref<1x128xf32, #tpu.memory_space<vmem>>, vector<1x128xf32>
    %6 = vector.broadcast %5 : vector<1x128xf32> to vector<256x128xf32>
    %7 = arith.addf %4, %6 : vector<256x128xf32>
    %cst = arith.constant 0.000000e+00 : f32
    %8 = vector.broadcast %cst : f32 to vector<256x128xf32>
    %9 = arith.maximumf %7, %8 : vector<256x128xf32>
    %10 = arith.truncf %9 : vector<256x128xf32> to vector<256x128xbf16>
    %c0_5 = arith.constant 0 : index
    %c0_6 = arith.constant 0 : index
    %11 = vector.load %arg4[%c0_5, %c0_6] : memref<256x128xbf16, #tpu.memory_space<vmem>>, vector<256x128xbf16>
    tpu.vector_store %arg4[%c0_5, %c0_6], %10 {strides = array<i32>} : memref<256x128xbf16, #tpu.memory_space<vmem>>, vector<256x128xbf16>,
    return
  }
  func.func @transform_0(%arg0: i32) -> (i32, i32) {
    %c0_i32 = arith.constant 0 : i32
    %c0_i32_0 = arith.constant 0 : i32
    return %arg0, %c0_i32 : i32, i32
  }
  func.func @transform_1(%arg0: i32) -> (i32, i32) {
    %c0_i32 = arith.constant 0 : i32
    %c0_i32_0 = arith.constant 0 : i32
    %c0_i32_1 = arith.constant 0 : i32
    return %c0_i32, %c0_i32_0 : i32, i32
  }
  func.func @transform_2(%arg0: i32) -> (i32, i32) {
    %c0_i32 = arith.constant 0 : i32
    %c0_i32_0 = arith.constant 0 : i32
    %c0_i32_1 = arith.constant 0 : i32
    return %c0_i32, %c0_i32_0 : i32, i32
  }
  func.func @transform_3(%arg0: i32) -> (i32, i32) {
    %c0_i32 = arith.constant 0 : i32
    %c0_i32_0 = arith.constant 0 : i32
    return %arg0, %c0_i32 : i32, i32
  }
}

module attributes {stable_mosaic.version = 11 : i64} {
  func.func @kernel(%arg0: i32, %arg1: i32, %arg2: memref<1x18x18x128xbf16, #tpu.memory_space<vmem>>, %arg3: memref<3x3x128x128xbf16, #tpu.memory_space<vmem>>, %arg4: memref<256x128xbf16, #tpu.memory_space<vmem>>, %arg5: memref<1x8x128xf32, #tpu.memory_space<vmem>>, %arg6: memref<1x8x128xf32, #tpu.memory_space<vmem>>) attributes {dimension_semantics = [#tpu.dimension_semantics<parallel>, #tpu.dimension_semantics<parallel>], iteration_bounds = array<i64: 2, 1>, scalar_prefetch = 0 : i64, scratch_operands = 0 : i64, tpu.core_type = #tpu.core_type<tc>, window_params = [{transform_indices = @transform_0, window_bounds = array<i64: 1, 18, 18, 128>}, {pipeline_mode = #tpu.pipeline_mode<synchronous>, transform_indices = @transform_1, window_bounds = array<i64: 3, 3, 128, 128>}, {transform_indices = @transform_2, window_bounds = array<i64: 256, 128>}, {transform_indices = @transform_3, window_bounds = array<i64: 1, 8, 128>}, {transform_indices = @transform_4, window_bounds = array<i64: 1, 8, 128>}]} {
    %c16_i32 = arith.constant 16 : i32
    %0 = arith.muli %arg1, %c16_i32 : i32
    %cst = arith.constant 0.000000e+00 : f32
    %1 = vector.broadcast %cst : f32 to vector<256x128xf32>
    %c0_i32 = arith.constant 0 : i32
    %2 = arith.addi %0, %c0_i32 : i32
    %c0 = arith.constant 0 : index
    %3 = arith.index_cast %2 : i32 to index
    %c0_0 = arith.constant 0 : index
    %c0_1 = arith.constant 0 : index
    %4 = vector.load %arg2[%c0, %3, %c0_0, %c0_1] : memref<1x18x18x128xbf16, #tpu.memory_space<vmem>>, vector<1x16x16x128xbf16>
    %5 = vector.shape_cast %4 : vector<1x16x16x128xbf16> to vector<16x16x128xbf16>
    %6 = vector.shape_cast %5 : vector<16x16x128xbf16> to vector<256x128xbf16>
    %c0_2 = arith.constant 0 : index
    %c0_3 = arith.constant 0 : index
    %c0_4 = arith.constant 0 : index
    %c0_5 = arith.constant 0 : index
    %7 = vector.load %arg3[%c0_2, %c0_3, %c0_4, %c0_5] : memref<3x3x128x128xbf16, #tpu.memory_space<vmem>>, vector<1x1x128x128xbf16>
    %8 = vector.shape_cast %7 : vector<1x1x128x128xbf16> to vector<128x128xbf16>
    %cst_6 = arith.constant dense<0.000000e+00> : vector<256x128xf32>
    %9 = tpu.matmul %6, %8, %cst_6 {dimension_numbers = #tpu.dot_dimension_numbers<[1], [0], [0], [1], [0, 0, 1, 1], [], []>} : vector<256x128xbf16>, vector<128x128xbf16>, vector<256x128xf32> -> vector<256x128xf32>
    %10 = arith.addf %1, %9 : vector<256x128xf32>
    %c0_i32_7 = arith.constant 0 : i32
    %11 = arith.addi %0, %c0_i32_7 : i32
    %c0_8 = arith.constant 0 : index
    %12 = arith.index_cast %11 : i32 to index
    %c1 = arith.constant 1 : index
    %c0_9 = arith.constant 0 : index
    %13 = vector.load %arg2[%c0_8, %12, %c1, %c0_9] : memref<1x18x18x128xbf16, #tpu.memory_space<vmem>>, vector<1x16x16x128xbf16>
    %14 = vector.shape_cast %13 : vector<1x16x16x128xbf16> to vector<16x16x128xbf16>
    %15 = vector.shape_cast %14 : vector<16x16x128xbf16> to vector<256x128xbf16>
    %c0_10 = arith.constant 0 : index
    %c1_11 = arith.constant 1 : index
    %c0_12 = arith.constant 0 : index
    %c0_13 = arith.constant 0 : index
    %16 = vector.load %arg3[%c0_10, %c1_11, %c0_12, %c0_13] : memref<3x3x128x128xbf16, #tpu.memory_space<vmem>>, vector<1x1x128x128xbf16>
    %17 = vector.shape_cast %16 : vector<1x1x128x128xbf16> to vector<128x128xbf16>
    %cst_14 = arith.constant dense<0.000000e+00> : vector<256x128xf32>
    %18 = tpu.matmul %15, %17, %cst_14 {dimension_numbers = #tpu.dot_dimension_numbers<[1], [0], [0], [1], [0, 0, 1, 1], [], []>} : vector<256x128xbf16>, vector<128x128xbf16>, vector<256x128xf32> -> vector<256x128xf32>
    %19 = arith.addf %10, %18 : vector<256x128xf32>
    %c0_i32_15 = arith.constant 0 : i32
    %20 = arith.addi %0, %c0_i32_15 : i32
    %c0_16 = arith.constant 0 : index
    %21 = arith.index_cast %20 : i32 to index
    %c2 = arith.constant 2 : index
    %c0_17 = arith.constant 0 : index
    %22 = vector.load %arg2[%c0_16, %21, %c2, %c0_17] : memref<1x18x18x128xbf16, #tpu.memory_space<vmem>>, vector<1x16x16x128xbf16>
    %23 = vector.shape_cast %22 : vector<1x16x16x128xbf16> to vector<16x16x128xbf16>
    %24 = vector.shape_cast %23 : vector<16x16x128xbf16> to vector<256x128xbf16>
    %c0_18 = arith.constant 0 : index
    %c2_19 = arith.constant 2 : index
    %c0_20 = arith.constant 0 : index
    %c0_21 = arith.constant 0 : index
    %25 = vector.load %arg3[%c0_18, %c2_19, %c0_20, %c0_21] : memref<3x3x128x128xbf16, #tpu.memory_space<vmem>>, vector<1x1x128x128xbf16>
    %26 = vector.shape_cast %25 : vector<1x1x128x128xbf16> to vector<128x128xbf16>
    %cst_22 = arith.constant dense<0.000000e+00> : vector<256x128xf32>
    %27 = tpu.matmul %24, %26, %cst_22 {dimension_numbers = #tpu.dot_dimension_numbers<[1], [0], [0], [1], [0, 0, 1, 1], [], []>} : vector<256x128xbf16>, vector<128x128xbf16>, vector<256x128xf32> -> vector<256x128xf32>
    %28 = arith.addf %19, %27 : vector<256x128xf32>
    %c1_i32 = arith.constant 1 : i32
    %29 = arith.addi %0, %c1_i32 : i32
    %c0_23 = arith.constant 0 : index
    %30 = arith.index_cast %29 : i32 to index
    %c0_24 = arith.constant 0 : index
    %c0_25 = arith.constant 0 : index
    %31 = vector.load %arg2[%c0_23, %30, %c0_24, %c0_25] : memref<1x18x18x128xbf16, #tpu.memory_space<vmem>>, vector<1x16x16x128xbf16>
    %32 = vector.shape_cast %31 : vector<1x16x16x128xbf16> to vector<16x16x128xbf16>
    %33 = vector.shape_cast %32 : vector<16x16x128xbf16> to vector<256x128xbf16>
    %c1_26 = arith.constant 1 : index
    %c0_27 = arith.constant 0 : index
    %c0_28 = arith.constant 0 : index
    %c0_29 = arith.constant 0 : index
    %34 = vector.load %arg3[%c1_26, %c0_27, %c0_28, %c0_29] : memref<3x3x128x128xbf16, #tpu.memory_space<vmem>>, vector<1x1x128x128xbf16>
    %35 = vector.shape_cast %34 : vector<1x1x128x128xbf16> to vector<128x128xbf16>
    %cst_30 = arith.constant dense<0.000000e+00> : vector<256x128xf32>
    %36 = tpu.matmul %33, %35, %cst_30 {dimension_numbers = #tpu.dot_dimension_numbers<[1], [0], [0], [1], [0, 0, 1, 1], [], []>} : vector<256x128xbf16>, vector<128x128xbf16>, vector<256x128xf32> -> vector<256x128xf32>
    %37 = arith.addf %28, %36 : vector<256x128xf32>
    %c1_i32_31 = arith.constant 1 : i32
    %38 = arith.addi %0, %c1_i32_31 : i32
    %c0_32 = arith.constant 0 : index
    %39 = arith.index_cast %38 : i32 to index
    %c1_33 = arith.constant 1 : index
    %c0_34 = arith.constant 0 : index
    %40 = vector.load %arg2[%c0_32, %39, %c1_33, %c0_34] : memref<1x18x18x128xbf16, #tpu.memory_space<vmem>>, vector<1x16x16x128xbf16>
    %41 = vector.shape_cast %40 : vector<1x16x16x128xbf16> to vector<16x16x128xbf16>
    %42 = vector.shape_cast %41 : vector<16x16x128xbf16> to vector<256x128xbf16>
    %c1_35 = arith.constant 1 : index
    %c1_36 = arith.constant 1 : index
    %c0_37 = arith.constant 0 : index
    %c0_38 = arith.constant 0 : index
    %43 = vector.load %arg3[%c1_35, %c1_36, %c0_37, %c0_38] : memref<3x3x128x128xbf16, #tpu.memory_space<vmem>>, vector<1x1x128x128xbf16>
    %44 = vector.shape_cast %43 : vector<1x1x128x128xbf16> to vector<128x128xbf16>
    %cst_39 = arith.constant dense<0.000000e+00> : vector<256x128xf32>
    %45 = tpu.matmul %42, %44, %cst_39 {dimension_numbers = #tpu.dot_dimension_numbers<[1], [0], [0], [1], [0, 0, 1, 1], [], []>} : vector<256x128xbf16>, vector<128x128xbf16>, vector<256x128xf32> -> vector<256x128xf32>
    %46 = arith.addf %37, %45 : vector<256x128xf32>
    %c1_i32_40 = arith.constant 1 : i32
    %47 = arith.addi %0, %c1_i32_40 : i32
    %c0_41 = arith.constant 0 : index
    %48 = arith.index_cast %47 : i32 to index
    %c2_42 = arith.constant 2 : index
    %c0_43 = arith.constant 0 : index
    %49 = vector.load %arg2[%c0_41, %48, %c2_42, %c0_43] : memref<1x18x18x128xbf16, #tpu.memory_space<vmem>>, vector<1x16x16x128xbf16>
    %50 = vector.shape_cast %49 : vector<1x16x16x128xbf16> to vector<16x16x128xbf16>
    %51 = vector.shape_cast %50 : vector<16x16x128xbf16> to vector<256x128xbf16>
    %c1_44 = arith.constant 1 : index
    %c2_45 = arith.constant 2 : index
    %c0_46 = arith.constant 0 : index
    %c0_47 = arith.constant 0 : index
    %52 = vector.load %arg3[%c1_44, %c2_45, %c0_46, %c0_47] : memref<3x3x128x128xbf16, #tpu.memory_space<vmem>>, vector<1x1x128x128xbf16>
    %53 = vector.shape_cast %52 : vector<1x1x128x128xbf16> to vector<128x128xbf16>
    %cst_48 = arith.constant dense<0.000000e+00> : vector<256x128xf32>
    %54 = tpu.matmul %51, %53, %cst_48 {dimension_numbers = #tpu.dot_dimension_numbers<[1], [0], [0], [1], [0, 0, 1, 1], [], []>} : vector<256x128xbf16>, vector<128x128xbf16>, vector<256x128xf32> -> vector<256x128xf32>
    %55 = arith.addf %46, %54 : vector<256x128xf32>
    %c2_i32 = arith.constant 2 : i32
    %56 = arith.addi %0, %c2_i32 : i32
    %c0_49 = arith.constant 0 : index
    %57 = arith.index_cast %56 : i32 to index
    %c0_50 = arith.constant 0 : index
    %c0_51 = arith.constant 0 : index
    %58 = vector.load %arg2[%c0_49, %57, %c0_50, %c0_51] : memref<1x18x18x128xbf16, #tpu.memory_space<vmem>>, vector<1x16x16x128xbf16>
    %59 = vector.shape_cast %58 : vector<1x16x16x128xbf16> to vector<16x16x128xbf16>
    %60 = vector.shape_cast %59 : vector<16x16x128xbf16> to vector<256x128xbf16>
    %c2_52 = arith.constant 2 : index
    %c0_53 = arith.constant 0 : index
    %c0_54 = arith.constant 0 : index
    %c0_55 = arith.constant 0 : index
    %61 = vector.load %arg3[%c2_52, %c0_53, %c0_54, %c0_55] : memref<3x3x128x128xbf16, #tpu.memory_space<vmem>>, vector<1x1x128x128xbf16>
    %62 = vector.shape_cast %61 : vector<1x1x128x128xbf16> to vector<128x128xbf16>
    %cst_56 = arith.constant dense<0.000000e+00> : vector<256x128xf32>
    %63 = tpu.matmul %60, %62, %cst_56 {dimension_numbers = #tpu.dot_dimension_numbers<[1], [0], [0], [1], [0, 0, 1, 1], [], []>} : vector<256x128xbf16>, vector<128x128xbf16>, vector<256x128xf32> -> vector<256x128xf32>
    %64 = arith.addf %55, %63 : vector<256x128xf32>
    %c2_i32_57 = arith.constant 2 : i32
    %65 = arith.addi %0, %c2_i32_57 : i32
    %c0_58 = arith.constant 0 : index
    %66 = arith.index_cast %65 : i32 to index
    %c1_59 = arith.constant 1 : index
    %c0_60 = arith.constant 0 : index
    %67 = vector.load %arg2[%c0_58, %66, %c1_59, %c0_60] : memref<1x18x18x128xbf16, #tpu.memory_space<vmem>>, vector<1x16x16x128xbf16>
    %68 = vector.shape_cast %67 : vector<1x16x16x128xbf16> to vector<16x16x128xbf16>
    %69 = vector.shape_cast %68 : vector<16x16x128xbf16> to vector<256x128xbf16>
    %c2_61 = arith.constant 2 : index
    %c1_62 = arith.constant 1 : index
    %c0_63 = arith.constant 0 : index
    %c0_64 = arith.constant 0 : index
    %70 = vector.load %arg3[%c2_61, %c1_62, %c0_63, %c0_64] : memref<3x3x128x128xbf16, #tpu.memory_space<vmem>>, vector<1x1x128x128xbf16>
    %71 = vector.shape_cast %70 : vector<1x1x128x128xbf16> to vector<128x128xbf16>
    %cst_65 = arith.constant dense<0.000000e+00> : vector<256x128xf32>
    %72 = tpu.matmul %69, %71, %cst_65 {dimension_numbers = #tpu.dot_dimension_numbers<[1], [0], [0], [1], [0, 0, 1, 1], [], []>} : vector<256x128xbf16>, vector<128x128xbf16>, vector<256x128xf32> -> vector<256x128xf32>
    %73 = arith.addf %64, %72 : vector<256x128xf32>
    %c2_i32_66 = arith.constant 2 : i32
    %74 = arith.addi %0, %c2_i32_66 : i32
    %c0_67 = arith.constant 0 : index
    %75 = arith.index_cast %74 : i32 to index
    %c2_68 = arith.constant 2 : index
    %c0_69 = arith.constant 0 : index
    %76 = vector.load %arg2[%c0_67, %75, %c2_68, %c0_69] : memref<1x18x18x128xbf16, #tpu.memory_space<vmem>>, vector<1x16x16x128xbf16>
    %77 = vector.shape_cast %76 : vector<1x16x16x128xbf16> to vector<16x16x128xbf16>
    %78 = vector.shape_cast %77 : vector<16x16x128xbf16> to vector<256x128xbf16>
    %c2_70 = arith.constant 2 : index
    %c2_71 = arith.constant 2 : index
    %c0_72 = arith.constant 0 : index
    %c0_73 = arith.constant 0 : index
    %79 = vector.load %arg3[%c2_70, %c2_71, %c0_72, %c0_73] : memref<3x3x128x128xbf16, #tpu.memory_space<vmem>>, vector<1x1x128x128xbf16>
    %80 = vector.shape_cast %79 : vector<1x1x128x128xbf16> to vector<128x128xbf16>
    %cst_74 = arith.constant dense<0.000000e+00> : vector<256x128xf32>
    %81 = tpu.matmul %78, %80, %cst_74 {dimension_numbers = #tpu.dot_dimension_numbers<[1], [0], [0], [1], [0, 0, 1, 1], [], []>} : vector<256x128xbf16>, vector<128x128xbf16>, vector<256x128xf32> -> vector<256x128xf32>
    %82 = arith.addf %73, %81 : vector<256x128xf32>
    %83 = arith.truncf %82 : vector<256x128xf32> to vector<256x128xbf16>
    %c0_75 = arith.constant 0 : index
    %c0_76 = arith.constant 0 : index
    %84 = vector.load %arg4[%c0_75, %c0_76] : memref<256x128xbf16, #tpu.memory_space<vmem>>, vector<256x128xbf16>
    tpu.vector_store %arg4[%c0_75, %c0_76], %83 {strides = array<i32>} : memref<256x128xbf16, #tpu.memory_space<vmem>>, vector<256x128xbf16>,
    %85 = vector.shape_cast %82 : vector<256x128xf32> to vector<32x8x128xf32>
    %cst_77 = arith.constant dense<0.000000e+00> : vector<8x128xf32>
    %86 = vector.multi_reduction <add>, %85, %cst_77 [0] : vector<32x8x128xf32> to vector<8x128xf32>
    %c0_78 = arith.constant 0 : index
    %c0_79 = arith.constant 0 : index
    %c0_80 = arith.constant 0 : index
    %87 = vector.load %arg5[%c0_78, %c0_79, %c0_80] : memref<1x8x128xf32, #tpu.memory_space<vmem>>, vector<1x8x128xf32>
    %88 = vector.shape_cast %87 : vector<1x8x128xf32> to vector<8x128xf32>
    %89 = vector.shape_cast %86 : vector<8x128xf32> to vector<1x8x128xf32>
    tpu.vector_store %arg5[%c0_78, %c0_79, %c0_80], %89 {strides = array<i32>} : memref<1x8x128xf32, #tpu.memory_space<vmem>>, vector<1x8x128xf32>,
    %90 = arith.mulf %85, %85 : vector<32x8x128xf32>
    %cst_81 = arith.constant dense<0.000000e+00> : vector<8x128xf32>
    %91 = vector.multi_reduction <add>, %90, %cst_81 [0] : vector<32x8x128xf32> to vector<8x128xf32>
    %c0_82 = arith.constant 0 : index
    %c0_83 = arith.constant 0 : index
    %c0_84 = arith.constant 0 : index
    %92 = vector.load %arg6[%c0_82, %c0_83, %c0_84] : memref<1x8x128xf32, #tpu.memory_space<vmem>>, vector<1x8x128xf32>
    %93 = vector.shape_cast %92 : vector<1x8x128xf32> to vector<8x128xf32>
    %94 = vector.shape_cast %91 : vector<8x128xf32> to vector<1x8x128xf32>
    tpu.vector_store %arg6[%c0_82, %c0_83, %c0_84], %94 {strides = array<i32>} : memref<1x8x128xf32, #tpu.memory_space<vmem>>, vector<1x8x128xf32>,
    return
  }
  func.func @transform_0(%arg0: i32, %arg1: i32) -> (i32, i32, i32, i32) {
    %c0_i32 = arith.constant 0 : i32
    %c0_i32_0 = arith.constant 0 : i32
    %c0_i32_1 = arith.constant 0 : i32
    %c0_i32_2 = arith.constant 0 : i32
    return %arg0, %c0_i32, %c0_i32_0, %c0_i32_1 : i32, i32, i32, i32
  }
  func.func @transform_1(%arg0: i32, %arg1: i32) -> (i32, i32, i32, i32) {
    %c0_i32 = arith.constant 0 : i32
    %c0_i32_0 = arith.constant 0 : i32
    %c0_i32_1 = arith.constant 0 : i32
    %c0_i32_2 = arith.constant 0 : i32
    %c0_i32_3 = arith.constant 0 : i32
    return %c0_i32, %c0_i32_0, %c0_i32_1, %c0_i32_2 : i32, i32, i32, i32
  }
  func.func @transform_2(%arg0: i32, %arg1: i32) -> (i32, i32) {
    %c1_i32 = arith.constant 1 : i32
    %0 = arith.muli %arg0, %c1_i32 : i32
    %1 = arith.addi %0, %arg1 : i32
    %c0_i32 = arith.constant 0 : i32
    %c0_i32_0 = arith.constant 0 : i32
    return %1, %c0_i32 : i32, i32
  }
  func.func @transform_3(%arg0: i32, %arg1: i32) -> (i32, i32, i32) {
    %c1_i32 = arith.constant 1 : i32
    %0 = arith.muli %arg0, %c1_i32 : i32
    %1 = arith.addi %0, %arg1 : i32
    %c0_i32 = arith.constant 0 : i32
    %c0_i32_0 = arith.constant 0 : i32
    %c0_i32_1 = arith.constant 0 : i32
    return %1, %c0_i32, %c0_i32_0 : i32, i32, i32
  }
  func.func @transform_4(%arg0: i32, %arg1: i32) -> (i32, i32, i32) {
    %c1_i32 = arith.constant 1 : i32
    %0 = arith.muli %arg0, %c1_i32 : i32
    %1 = arith.addi %0, %arg1 : i32
    %c0_i32 = arith.constant 0 : i32
    %c0_i32_0 = arith.constant 0 : i32
    %c0_i32_1 = arith.constant 0 : i32
    return %1, %c0_i32, %c0_i32_0 : i32, i32, i32
  }
}

</mosaic_0001>

<bundles_post_ra>
// kernel: double_conv_forward.5
= control target key start
LH: loop header
LB: loop body
LE: loop exit
PB: predicated region body
PF: predicated region fallthrough
CT: control target
= control target key end

     0   :  { %s851_s12 = smov 0   ;;  %s985_s0 = inlined_call_operand.vmem [shape: bf16[512,128], index: 0, kind: input, shape index: {}]   ;;  %s986_s1 = inlined_call_operand.vmem [shape: f32[1,128], index: 1, kind: input, shape index: {}]   ;;  %s987_s2 = inlined_call_operand.vmem [shape: f32[1,128], index: 2, kind: input, shape index: {}]   ;;  %s988_s3 = inlined_call_operand.vmem [shape: bf16[512,128], index: 3, kind: output, shape index: {}]  }
   0x1 LB: > { %s564_s13 = sadd.s32 4294967295, %s829_s12   ;;  %p568_p0 = scmp.ge.s32.totalorder %s829_s12, 1  ;;  %s829_s12 = sphi %s851_s12, %s13_s12  }
   0x2   : > { %p138_p1 = scmp.lt.s32.totalorder %s829_s12, 3 }
   0x4   : > { %p139_p2 = pnand %p568_p0, %p138_p1 }
   0x5   : > { %s569_s14 = sshll.u32 (!%p139_p2), %s564_s13, 5  ;;  %v872_v0 = vld [vmem:[%s986_s1] ss:$0 sm:$0xff] (!%p139_p2) }
   0x6   : > { %142 = sbr.rel (%p139_p2) target bundleno = 59 (0x3b), region = 32  ;;  %p163_p3 = scmp.lt.s32.totalorder (!%p139_p2), %s569_s14, 63  ;;  %v881_v9 = vld [vmem:[%s987_s2] ss:$0 sm:$0xff] (!%p139_p2) }
   0xd   : > { %s990_s14 = smov (!%p163_p3, %s569_s14), 63 }
   0xe   : > { %s570_s15 = sshll.u32 %s990_s14, 2 }
   0xf   : > { %s867_s18 = scalar_lea.vmem %s985_s0, %s570_s15  ;;  %s906_s25 = scalar_lea.vmem %s988_s3, %s570_s15 }
  0x10   : > { %v642_v1 = vld [vmem:[%s867_s18] sm:$0xff]   ;;  %v785_v2 = vld [vmem:[%s867_s18 + $0x8] sm:$0xff]   ;;  %v786_v3 = vld [vmem:[%s867_s18 + $0x10] sm:$0xff]  }
  0x11   : > { %v643_v4 = vunpack.c.l.bf16 %v642_v1  ;;  %v644_v5 = vunpack.c.h.bf16 %v642_v1  ;;  %v647_v6 = vunpack.c.l.bf16 %v785_v2  ;;  %v648_v7 = vunpack.c.h.bf16 %v785_v2  ;;  %v787_v8 = vld [vmem:[%s867_s18 + $0x18] sm:$0xff]   ;;  %v788_v30 = vld [vmem:[%s867_s18 + $0x20] sm:$0xff]   ;;  %v789_v35 = vld [vmem:[%s867_s18 + $0x28] sm:$0xff]  }
  0x12   : > { %v651_v10 = vunpack.c.l.bf16 %v786_v3  ;;  %v652_v11 = vunpack.c.h.bf16 %v786_v3  ;;  %v655_v12 = vunpack.c.l.bf16 %v787_v8  ;;  %v656_v13 = vunpack.c.h.bf16 %v787_v8  ;;  %v790_v40 = vld [vmem:[%s867_s18 + $0x30] sm:$0xff]   ;;  %v791_v45 = vld [vmem:[%s867_s18 + $0x38] sm:$0xff]   ;;  %v792_v3 = vld [vmem:[%s867_s18 + $0x40] sm:$0xff]  }
  0x13   : > { %v245_v14 = vmul.f32 %v643_v4, %v872_v0  ;;  %v246_v15 = vmul.f32 %v644_v5, %v872_v0  ;;  %v247_v16 = vmul.f32 %v647_v6, %v872_v0  ;;  %v248_v17 = vmul.f32 %v648_v7, %v872_v0 }
  0x14   : > { %v249_v18 = vmul.f32 %v651_v10, %v872_v0  ;;  %v250_v19 = vmul.f32 %v652_v11, %v872_v0  ;;  %v251_v20 = vmul.f32 %v655_v12, %v872_v0  ;;  %v252_v21 = vmul.f32 %v656_v13, %v872_v0  ;;  %v793_v13 = vld [vmem:[%s867_s18 + $0x48] sm:$0xff]  }
  0x15   : > { %v284_v22 = vadd.f32 %v881_v9, %v245_v14  ;;  %v285_v23 = vadd.f32 %v881_v9, %v246_v15  ;;  %v286_v24 = vadd.f32 %v881_v9, %v247_v16  ;;  %v287_v25 = vadd.f32 %v881_v9, %v248_v17 }
  0x16   : > { %v288_v26 = vadd.f32 %v881_v9, %v249_v18  ;;  %v289_v27 = vadd.f32 %v881_v9, %v250_v19  ;;  %v290_v28 = vadd.f32 %v881_v9, %v251_v20  ;;  %v291_v29 = vadd.f32 %v881_v9, %v252_v21  ;;  %v794_v18 = vld [vmem:[%s867_s18 + $0x50] sm:$0xff]  }
  0x17   : > { %v316_v31 = vmax.f32 %v284_v22, 0.0  ;;  %v317_v32 = vmax.f32 %v285_v23, 0.0  ;;  %v318_v33 = vmax.f32 %v286_v24, 0.0  ;;  %v319_v34 = vmax.f32 %v287_v25, 0.0  ;;  %v795_v23 = vld [vmem:[%s867_s18 + $0x58] sm:$0xff]  }
  0x18   : > { %v320_v36 = vmax.f32 %v288_v26, 0.0  ;;  %v321_v37 = vmax.f32 %v289_v27, 0.0  ;;  %v322_v38 = vmax.f32 %v290_v28, 0.0  ;;  %v323_v39 = vmax.f32 %v291_v29, 0.0 }
  0x19   : > { %v708_v41 = vpack.c.bf16 %v317_v32, %v316_v31  ;;  %v713_v42 = vpack.c.bf16 %v319_v34, %v318_v33  ;;  %v659_v43 = vunpack.c.l.bf16 %v788_v30  ;;  %v660_v44 = vunpack.c.h.bf16 %v788_v30 }
  0x1a   : > { %v718_v46 = vpack.c.bf16 %v321_v37, %v320_v36  ;;  %v723_v47 = vpack.c.bf16 %v323_v39, %v322_v38  ;;  %v663_v48 = vunpack.c.l.bf16 %v789_v35  ;;  %v664_v49 = vunpack.c.h.bf16 %v789_v35 }
  0x1b   : > { %709 = vst [vmem:[%s906_s25] sm:$0xff] %v708_v41   ;;  %800 = vst [vmem:[%s906_s25 + $0x8] sm:$0xff] %v713_v42   ;;  %v253_v50 = vmul.f32 %v659_v43, %v872_v0  ;;  %v254_v51 = vmul.f32 %v660_v44, %v872_v0  ;;  %v667_v52 = vunpack.c.l.bf16 %v790_v40  ;;  %v668_v53 = vunpack.c.h.bf16 %v790_v40  ;;  %v796_v40 = vld [vmem:[%s867_s18 + $0x60] sm:$0xff]  }
  0x1c   : > { %801 = vst [vmem:[%s906_s25 + $0x10] sm:$0xff] %v718_v46   ;;  %802 = vst [vmem:[%s906_s25 + $0x18] sm:$0xff] %v723_v47   ;;  %v255_v54 = vmul.f32 %v663_v48, %v872_v0  ;;  %v256_v55 = vmul.f32 %v664_v49, %v872_v0  ;;  %v671_v56 = vunpack.c.l.bf16 %v791_v45  ;;  %v672_v57 = vunpack.c.h.bf16 %v791_v45 }
  0x1d   : > { %v292_v58 = vadd.f32 %v881_v9, %v253_v50  ;;  %v293_v59 = vadd.f32 %v881_v9, %v254_v51  ;;  %v257_v60 = vmul.f32 %v667_v52, %v872_v0  ;;  %v258_v61 = vmul.f32 %v668_v53, %v872_v0  ;;  %v797_v53 = vld [vmem:[%s867_s18 + $0x68] sm:$0xff]  }
  0x1e   : > { %v294_v62 = vadd.f32 %v881_v9, %v255_v54  ;;  %v295_v63 = vadd.f32 %v881_v9, %v256_v55  ;;  %v259_v1 = vmul.f32 %v671_v56, %v872_v0  ;;  %v260_v2 = vmul.f32 %v672_v57, %v872_v0 }
  0x1f   : > { %v324_v4 = vmax.f32 %v292_v58, 0.0  ;;  %v325_v5 = vmax.f32 %v293_v59, 0.0  ;;  %v296_v6 = vadd.f32 %v881_v9, %v257_v60  ;;  %v297_v7 = vadd.f32 %v881_v9, %v258_v61  ;;  %v798_v58 = vld [vmem:[%s867_s18 + $0x70] sm:$0xff]  }
  0x20   : > { %v326_v8 = vmax.f32 %v294_v62, 0.0  ;;  %v327_v10 = vmax.f32 %v295_v63, 0.0  ;;  %v298_v11 = vadd.f32 %v881_v9, %v259_v1  ;;  %v299_v12 = vadd.f32 %v881_v9, %v260_v2  ;;  %v799_v63 = vld [vmem:[%s867_s18 + $0x78] sm:$0xff]  }
  0x21   : > { %v728_v14 = vpack.c.bf16 %v325_v5, %v324_v4  ;;  %v328_v15 = vmax.f32 %v296_v6, 0.0  ;;  %v329_v16 = vmax.f32 %v297_v7, 0.0  ;;  %v675_v17 = vunpack.c.l.bf16 %v792_v3 }
  0x22   : > { %v733_v19 = vpack.c.bf16 %v327_v10, %v326_v8  ;;  %v330_v20 = vmax.f32 %v298_v11, 0.0  ;;  %v331_v21 = vmax.f32 %v299_v12, 0.0  ;;  %v676_v22 = vunpack.c.h.bf16 %v792_v3 }
  0x23   : > { %803 = vst [vmem:[%s906_s25 + $0x20] sm:$0xff] %v728_v14   ;;  %v738_v24 = vpack.c.bf16 %v329_v16, %v328_v15  ;;  %v261_v25 = vmul.f32 %v675_v17, %v872_v0  ;;  %v679_v26 = vunpack.c.l.bf16 %v793_v13  ;;  %v680_v27 = vunpack.c.h.bf16 %v793_v13 }
  0x24   : > { %804 = vst [vmem:[%s906_s25 + $0x28] sm:$0xff] %v733_v19   ;;  %v743_v28 = vpack.c.bf16 %v331_v21, %v330_v20  ;;  %v262_v29 = vmul.f32 %v676_v22, %v872_v0  ;;  %v683_v30 = vunpack.c.l.bf16 %v794_v18  ;;  %v684_v31 = vunpack.c.h.bf16 %v794_v18 }
  0x25   : > { %805 = vst [vmem:[%s906_s25 + $0x30] sm:$0xff] %v738_v24   ;;  %v300_v32 = vadd.f32 %v881_v9, %v261_v25  ;;  %v263_v33 = vmul.f32 %v679_v26, %v872_v0  ;;  %v264_v34 = vmul.f32 %v680_v27, %v872_v0  ;;  %v687_v35 = vunpack.c.l.bf16 %v795_v23 }
  0x26   : > { %806 = vst [vmem:[%s906_s25 + $0x38] sm:$0xff] %v743_v28   ;;  %v301_v36 = vadd.f32 %v881_v9, %v262_v29  ;;  %v265_v37 = vmul.f32 %v683_v30, %v872_v0  ;;  %v266_v38 = vmul.f32 %v684_v31, %v872_v0  ;;  %v688_v39 = vunpack.c.h.bf16 %v795_v23 }
  0x27   : > { %v332_v41 = vmax.f32 %v300_v32, 0.0  ;;  %v302_v42 = vadd.f32 %v881_v9, %v263_v33  ;;  %v303_v43 = vadd.f32 %v881_v9, %v264_v34  ;;  %v267_v44 = vmul.f32 %v687_v35, %v872_v0 }
  0x28   : > { %v333_v45 = vmax.f32 %v301_v36, 0.0  ;;  %v304_v46 = vadd.f32 %v881_v9, %v265_v37  ;;  %v305_v47 = vadd.f32 %v881_v9, %v266_v38  ;;  %v268_v48 = vmul.f32 %v688_v39, %v872_v0 }
  0x29   : > { %v334_v49 = vmax.f32 %v302_v42, 0.0  ;;  %v335_v50 = vmax.f32 %v303_v43, 0.0  ;;  %v306_v51 = vadd.f32 %v881_v9, %v267_v44  ;;  %v691_v52 = vunpack.c.l.bf16 %v796_v40 }
  0x2a   : > { %v748_v54 = vpack.c.bf16 %v333_v45, %v332_v41  ;;  %v336_v55 = vmax.f32 %v304_v46, 0.0  ;;  %v337_v56 = vmax.f32 %v305_v47, 0.0  ;;  %v307_v57 = vadd.f32 %v881_v9, %v268_v48 }
  0x2b   : > { %v753_v59 = vpack.c.bf16 %v335_v50, %v334_v49  ;;  %v338_v60 = vmax.f32 %v306_v51, 0.0  ;;  %v692_v61 = vunpack.c.h.bf16 %v796_v40  ;;  %v269_v62 = vmul.f32 %v691_v52, %v872_v0 }
  0x2c   : > { %807 = vst [vmem:[%s906_s25 + $0x40] sm:$0xff] %v748_v54   ;;  %v758_v1 = vpack.c.bf16 %v337_v56, %v336_v55  ;;  %v339_v2 = vmax.f32 %v307_v57, 0.0  ;;  %v695_v3 = vunpack.c.l.bf16 %v797_v53  ;;  %v696_v4 = vunpack.c.h.bf16 %v797_v53 }
  0x2d   : > { %808 = vst [vmem:[%s906_s25 + $0x48] sm:$0xff] %v753_v59   ;;  %v270_v5 = vmul.f32 %v692_v61, %v872_v0  ;;  %v308_v6 = vadd.f32 %v881_v9, %v269_v62  ;;  %v699_v7 = vunpack.c.l.bf16 %v798_v58  ;;  %v700_v8 = vunpack.c.h.bf16 %v798_v58 }
  0x2e   : > { %809 = vst [vmem:[%s906_s25 + $0x50] sm:$0xff] %v758_v1   ;;  %v763_v10 = vpack.c.bf16 %v339_v2, %v338_v60  ;;  %v271_v11 = vmul.f32 %v695_v3, %v872_v0  ;;  %v272_v12 = vmul.f32 %v696_v4, %v872_v0  ;;  %v703_v13 = vunpack.c.l.bf16 %v799_v63 }
  0x2f   : > { %v309_v14 = vadd.f32 %v881_v9, %v270_v5  ;;  %v340_v15 = vmax.f32 %v308_v6, 0.0  ;;  %v273_v16 = vmul.f32 %v699_v7, %v872_v0  ;;  %v274_v17 = vmul.f32 %v700_v8, %v872_v0 }
  0x30   : > { %810 = vst [vmem:[%s906_s25 + $0x58] sm:$0xff] %v763_v10   ;;  %v310_v18 = vadd.f32 %v881_v9, %v271_v11  ;;  %v311_v19 = vadd.f32 %v881_v9, %v272_v12  ;;  %v704_v20 = vunpack.c.h.bf16 %v799_v63  ;;  %v275_v21 = vmul.f32 %v703_v13, %v872_v0 }
  0x31   : > { %v341_v22 = vmax.f32 %v309_v14, 0.0  ;;  %v312_v23 = vadd.f32 %v881_v9, %v273_v16  ;;  %v313_v24 = vadd.f32 %v881_v9, %v274_v17 }
  0x32   : > { %v342_v25 = vmax.f32 %v310_v18, 0.0  ;;  %v343_v26 = vmax.f32 %v311_v19, 0.0  ;;  %v276_v27 = vmul.f32 %v704_v20, %v872_v0  ;;  %v314_v28 = vadd.f32 %v881_v9, %v275_v21 }
  0x33   : > { %v768_v29 = vpack.c.bf16 %v341_v22, %v340_v15  ;;  %v344_v30 = vmax.f32 %v312_v23, 0.0  ;;  %v345_v31 = vmax.f32 %v313_v24, 0.0 }
  0x34   : > { %v773_v32 = vpack.c.bf16 %v343_v26, %v342_v25  ;;  %v315_v33 = vadd.f32 %v881_v9, %v276_v27  ;;  %v346_v34 = vmax.f32 %v314_v28, 0.0 }
  0x35   : > { %811 = vst [vmem:[%s906_s25 + $0x60] sm:$0xff] %v768_v29   ;;  %v778_v35 = vpack.c.bf16 %v345_v31, %v344_v30 }
  0x36   : > { %812 = vst [vmem:[%s906_s25 + $0x68] sm:$0xff] %v773_v32   ;;  %v347_v36 = vmax.f32 %v315_v33, 0.0 }
  0x37   : > { %813 = vst [vmem:[%s906_s25 + $0x70] sm:$0xff] %v778_v35  }
  0x38   : > { %v783_v37 = vpack.c.bf16 %v347_v36, %v346_v34 }
  0x3a   : > { %814 = vst [vmem:[%s906_s25 + $0x78] sm:$0xff] %v783_v37  }
  0x3b PF: > { %s13_s12 = sadd.s32 1, %s829_s12  }
  0x3c   : > { %p10_p4 = scmp.ge.s32.totalorder %s13_s12, 4  }
  0x3e   :  { %12 = sbr.rel (!%p10_p4) target bundleno = 1 (0x1), region = 62 }

// kernel: double_conv_forward.4
= control target key start
LH: loop header
LB: loop body
LE: loop exit
PB: predicated region body
PF: predicated region fallthrough
CT: control target
= control target key end

     0   :  { %s6832_s15 = smov 0   ;;  %s6834_s16 = smov 0   ;;  %s8610_s0 = inlined_call_operand.vmem [shape: bf16[2,18,18,4], index: 0, kind: input, shape index: {}]   ;;  %s8611_s1 = inlined_call_operand.vmem [shape: bf16[3,3,4,128], index: 1, kind: input, shape index: {}]   ;;  %s8612_s2 = inlined_call_operand.vmem [shape: bf16[512,128], index: 2, kind: output, shape index: {0}]   ;;  %s8613_s3 = inlined_call_operand.vmem [shape: f32[2,8,128], index: 3, kind: output, shape index: {1}]   ;;  %s8614_s4 = inlined_call_operand.vmem [shape: f32[2,8,128], index: 4, kind: output, shape index: {2}]  }
   0x1   :  { %s6836_s17 = smov 0  }
   0x2 LB: > { %s27_s18 = sadd.s32 1, %s6801_s16  ;;  %p5223_p0 = scmp.ge.s32.totalorder %s6805_s17, 1  ;;  %s6805_s17 = sphi %s6836_s17, %s15_s17   ;;  %s6801_s16 = sphi %s6834_s16, %s8683_s16   ;;  %s6797_s15 = sphi %s6832_s15, %s8682_s15  }
   0x3   : > { %p29_p1 = scmp.ge.s32.totalorder %s27_s18, 2  ;;  %p185_p2 = scmp.lt.s32.totalorder %s6805_s17, 3 }
   0x5   : > { %s8685_s18 = smov (%p29_p1, %s27_s18), 0  ;;  %p186_p3 = pnand %p5223_p0, %p185_p2 }
   0x7   : > { %189 = sbr.rel (%p186_p3) target bundleno = 593 (0x251), region = 28 }
   0xe   : > { %v5229_v0 = vld [vmem:[%s8611_s1 + $0x2] sm:$0x3]  ;;  %vm787_vm0 = vcmask 1041408   ;;  %v5456_v1 = vld [vmem:[%s8611_s1 + $0x8] sm:$0x3]  ;;  %p222_p4 = scmp.lt.s32.totalorder %s6797_s15, 1 }
   0xf   : > { %6643 = vmatprep.subr.msk.bf16.mxu1 %vm787_vm0, %v5229_v0  ;;  %6647 = vmatprep.subr.msk.bf16.mxu0 %vm787_vm0, %v5456_v1  ;;  %v789_v2 = vsel %vm787_vm0, %v5229_v0, 0  ;;  %v6863_v3 = vsel %vm787_vm0, %v5456_v1, 0  ;;  %v284_v4 = vld [vmem:[%s8611_s1] sm:$0x3]  ;;  %v5521_v5 = vld [vmem:[%s8611_s1 + $0xa] sm:$0x3] }
  0x10   : > { %8628 = vst [vmem:[#allocation2_spill] sm:$0xff] %v6863_v3  ;;  %6080 = vmatpush3.bf16.msra.mxu1 %v789_v2  ;;  %6216 = vmatpush3.bf16.msra.mxu0 %v6863_v3  ;;  %s6867_s23 = scalar_select %p222_p4, %s6797_s15, 1  ;;  %vm301_vm1 = vsmask.f32 3328  ;;  %vm302_vm2 = vsmask.f32 7440 }
  0x11   : > { %6644 = vmatprep.subr.msk.bf16.mxu1 %vm787_vm0, %v284_v4  ;;  %6649 = vmatprep.subr.msk.bf16.mxu0 %vm787_vm0, %v5521_v5  ;;  %vm738_vm3 = vcmask 31744   ;;  %v6894_v17 = vsel %vm787_vm0, %v284_v4, 0  ;;  %v6900_v26 = vld [vmem:[%s8611_s1 + $0xc] sm:$0x3]  ;;  %vm6907_vm4 = vmor %vm301_vm1, %vm302_vm2  ;;  %v6913_v37 = vsel %vm787_vm0, %v5521_v5, 0  ;;  %vm1292_vm5 = vcmask 1042432  }
  0x12   : > { %s6653_s28 = smul.u32 216, %s6867_s23  ;;  %v6917_v41 = vsel %vm787_vm0, %v6900_v26, 0  ;;  %vm1293_vm6 = vcmask 1046532   ;;  %s5225_s25 = sshll.u32 %s6797_s15, 5 }
  0x13   : > { %vm7133_vm7 = vmor %vm1292_vm5, %vm1293_vm6  ;;  %p229_p5 = scmp.lt.s32.totalorder %s5225_s25, 63  ;;  %s5227_s29 = sshll.u32 %s6867_s23, 3 }
  0x14   : > { %s6881_s5 = scalar_lea.vmem %s8610_s0, %s6653_s28  ;;  %s239_s6 = scalar_lea.vmem %s8613_s3, %s5227_s29 }
  0x15   : > { %v252_v6 = vld [vmem:[%s6881_s5] sm:$0xf]  ;;  %v253_v7 = vld [vmem:[%s6881_s5 + $0x4] sm:$0xf]  ;;  %v285_v8 = vld [vmem:[%s6881_s5 + $0x8] sm:$0x1]  ;;  %s245_s9 = scalar_lea.vmem %s8614_s4, %s5227_s29 }
  0x16   : > { %v305_v9 = vshrl.u32 %v252_v6, 16  ;;  %v308_v10 = vshll.u32 %v252_v6, 16  ;;  %v314_v11 = vshll.u32 %v253_v7, 16  ;;  %v318_v12 = vshrl.u32 %v253_v7, 16  ;;  %v5408_v13 = vld [vmem:[%s6881_s5 + $0xc] sm:$0xf] }
  0x17   : > { %v324_v14 = vshll.u32 %v285_v8, 16  ;;  %v6888_v15 = vld [vmem:[%s6881_s5 + $0x10] sm:$0xf]  ;;  %v6891_v16 = vld [vmem:[%s6881_s5 + $0x14] sm:$0x1]  ;;  %v2112_v23 = vshrl.u32 %v5408_v13, 16 }
  0x18   : > { %v307_v18 = vrot.slane %v305_v9, 4  ;;  %v310_v19 = vrot.slane %v308_v10, 5  ;;  %v316_v20 = vrot.slane %v314_v11, 5  ;;  %v320_v21 = vrot.slane %v318_v12, 4  ;;  %v254_v31 = vld [vmem:[%s6881_s5 + $0xc] sm:$0xf] }
  0x19   : > { %v326_v22 = vrot.slane %v324_v14, 5  ;;  %v2115_v24 = vshll.u32 %v5408_v13, 16  ;;  %v2121_v25 = vshll.u32 %v6888_v15, 16  ;;  %v2125_v29 = vshrl.u32 %v6888_v15, 16  ;;  %v255_v36 = vld [vmem:[%s6881_s5 + $0x10] sm:$0xf] }
  0x1a   : > { %v311_v27 = vor.u32 %v310_v19, %v307_v18  ;;  %v321_v28 = vor.u32 %v320_v21, %v316_v20  ;;  %v2131_v30 = vshll.u32 %v6891_v16, 16  ;;  %v2114_v33 = vrot.slane %v2112_v23, 4  ;;  %v286_v44 = vld [vmem:[%s6881_s5 + $0x14] sm:$0x1]  ;;  %v5411_v55 = vld [vmem:[%s6881_s5 + $0x18] sm:$0xf] }
  0x1b   : > { %v2117_v34 = vrot.slane %v2115_v24, 5  ;;  %v2123_v35 = vrot.slane %v2121_v25, 5  ;;  %v2127_v40 = vrot.slane %v2125_v29, 4  ;;  %v329_v45 = vshrl.u32 %v254_v31, 16  ;;  %v6926_v60 = vld [vmem:[%s6881_s5 + $0x1c] sm:$0xf] }
  0x1c   : > { %v312_v38 = vrot.slane %v311_v27, 4  ;;  %v322_v39 = vrot.slane %v321_v28, 4  ;;  %v2133_v43 = vrot.slane %v2131_v30, 5  ;;  %v332_v46 = vshll.u32 %v254_v31, 16  ;;  %v6934_v1 = vld [vmem:[%s6881_s5 + $0x20] sm:$0x1] }
  0x1d   : > { %v2118_v42 = vor.u32 %v2117_v34, %v2114_v33  ;;  %v2128_v49 = vor.u32 %v2127_v40, %v2123_v35  ;;  %v338_v50 = vshll.u32 %v255_v36, 16  ;;  %v331_v53 = vrot.slane %v329_v45, 4  ;;  %v256_v18 = vld [vmem:[%s6881_s5 + $0x18] sm:$0xf]  ;;  %v257_v23 = vld [vmem:[%s6881_s5 + $0x1c] sm:$0xf] }
  0x1e   : > { %v317_v47 = vsel %vm6907_vm4, %v312_v38, %v316_v20  ;;  %v327_v48 = vsel %vm6907_vm4, %v322_v39, %v326_v22  ;;  %v334_v54 = vrot.slane %v332_v46, 5  ;;  %v342_v58 = vshrl.u32 %v255_v36, 16  ;;  %v287_v31 = vld [vmem:[%s6881_s5 + $0x20] sm:$0x1]  ;;  %v5414_v40 = vld [vmem:[%s6881_s5 + $0x24] sm:$0xf] }
  0x1f   : > { %v5230_v51 = vcombine.low %v317_v47, %v327_v48  ;;  %v2119_v52 = vrot.slane %v2118_v42, 4  ;;  %v2129_v56 = vrot.slane %v2128_v49, 4  ;;  %v340_v57 = vrot.slane %v338_v50, 5  ;;  %v6957_v46 = vld [vmem:[%s6881_s5 + $0x28] sm:$0xf]  ;;  %s8687_s25 = smov (!%p229_p5, %s5225_s25), 63 }
  0x20   : > { %v348_v59 = vshll.u32 %v286_v44, 16  ;;  %v2855_v62 = vrot.slane %v6888_v15, 5  ;;  %v2858_v63 = vrot.slane %v6891_v16, 5  ;;  %v335_v0 = vor.u32 %v334_v54, %v331_v53  ;;  %v6966_v54 = vld [vmem:[%s6881_s5 + $0x2c] sm:$0x1]  ;;  %s5226_s26 = sshll.u32 %s8687_s25, 2 }
  0x21   : > { %6081 = vmatprep.mubr.msk.bf16.mxu1 %vm738_vm3, %v5230_v51  ;;  %v2124_v61 = vsel %vm6907_vm4, %v2119_v52, %v2123_v35  ;;  %v2134_v2 = vsel %vm6907_vm4, %v2129_v56, %v2133_v43  ;;  %v344_v4 = vrot.slane %v342_v58, 4  ;;  %v2136_v6 = vshrl.u32 %v5411_v55, 16  ;;  %v5310_v51 = vld [vmem:[%s8611_s1 + $0x4] sm:$0x3]  ;;  %v7166_v16 = vld [vmem:[%s6881_s5 + $0x7c] sm:$0xf]  ;;  %s8571_s28 = scalar_lea.vmem %s8612_s2, %s5226_s26 }
  0x22   : > { %v350_v5 = vrot.slane %v348_v59, 5  ;;  %v5457_v7 = vcombine.low %v2124_v61, %v2134_v2  ;;  %v336_v8 = vrot.slane %v335_v0, 4  ;;  %v2139_v9 = vshll.u32 %v5411_v55, 16  ;;  %v258_v0 = vld [vmem:[%s6881_s5 + $0x24] sm:$0xf] }
  0x23   : > { %v2145_v10 = vshll.u32 %v6926_v60, 16  ;;  %v345_v11 = vor.u32 %v344_v4, %v340_v57  ;;  %v2138_v12 = vrot.slane %v2136_v6, 4  ;;  %v2149_v13 = vshrl.u32 %v6926_v60, 16 }
  0x24   : > { %v2155_v14 = vshll.u32 %v6934_v1, 16  ;;  %6217 = vmatprep.mubr.msk.bf16.mxu0 %vm738_vm3, %v5457_v7  ;;  %v341_v19 = vsel %vm6907_vm4, %v336_v8, %v340_v57  ;;  %v2141_v20 = vrot.slane %v2139_v9, 5  ;;  %v2862_v22 = vrot.slane %v6926_v60, 5  ;;  %v259_v7 = vld [vmem:[%s6881_s5 + $0x28] sm:$0xf] }
  0x25   : > { %v2147_v21 = vrot.slane %v2145_v10, 5  ;;  %v346_v24 = vrot.slane %v345_v11, 4  ;;  %v2151_v25 = vrot.slane %v2149_v13, 4  ;;  %v2865_v28 = vrot.slane %v6934_v1, 5  ;;  %v288_v13 = vld [vmem:[%s6881_s5 + $0x2c] sm:$0x1] }
  0x26   : > { %v2157_v27 = vrot.slane %v2155_v14, 5  ;;  %v2142_v29 = vor.u32 %v2141_v20, %v2138_v12  ;;  %v6950_v30 = vrot.slane %v2862_v22, 4  ;;  %v353_v33 = vshrl.u32 %v256_v18, 16 }
  0x27   : > { %v356_v34 = vshll.u32 %v256_v18, 16  ;;  %v351_v35 = vsel %vm6907_vm4, %v346_v24, %v350_v5  ;;  %v2152_v36 = vor.u32 %v2151_v25, %v2147_v21  ;;  %v362_v38 = vshll.u32 %v257_v23, 16  ;;  %v5417_v24 = vld [vmem:[%s6881_s5 + $0x30] sm:$0xf] }
  0x28   : > { %v366_v39 = vshrl.u32 %v257_v23, 16  ;;  %v5231_v42 = vcombine.low %v341_v19, %v351_v35  ;;  %v2143_v43 = vrot.slane %v2142_v29, 4  ;;  %v355_v44 = vrot.slane %v353_v33, 4  ;;  %v6986_v33 = vld [vmem:[%s6881_s5 + $0x34] sm:$0xf] }
  0x29   : > { %v358_v45 = vrot.slane %v356_v34, 5  ;;  %v2153_v47 = vrot.slane %v2152_v36, 4  ;;  %v364_v48 = vrot.slane %v362_v38, 5  ;;  %v372_v50 = vshll.u32 %v287_v31, 16 }
  0x2a   : > { %v368_v49 = vrot.slane %v366_v39, 4  ;;  %6082 = vmatmul.mubr.msk.bf16.vlgmr.msra.gmra.mrb[0].mxu1 %vm738_vm3, %v5231_v42  ;;  %v2148_v52 = vsel %vm6907_vm4, %v2143_v43, %v2147_v21  ;;  %v2160_v55 = vshrl.u32 %v5414_v40, 16  ;;  %v2163_v56 = vshll.u32 %v5414_v40, 16  ;;  %v6994_v40 = vld [vmem:[%s6881_s5 + $0x38] sm:$0x1] }
  0x2b   : > { %v359_v53 = vor.u32 %v358_v45, %v355_v44  ;;  %6114 = vmatpush3.bf16.msra.mxu1 %v6894_v17  ;;  %v2158_v57 = vsel %vm6907_vm4, %v2153_v47, %v2157_v27  ;;  %v374_v59 = vrot.slane %v372_v50, 5  ;;  %v2169_v61 = vshll.u32 %v6957_v46, 16 }
  0x2c   : > { %v369_v58 = vor.u32 %v368_v49, %v364_v48  ;;  %v5458_v2 = vcombine.low %v2148_v52, %v2158_v57  ;;  %v2162_v5 = vrot.slane %v2160_v55, 4  ;;  %v2165_v6 = vrot.slane %v2163_v56, 5  ;;  %6645 = vmatprep.subr.msk.bf16.mxu1 %vm787_vm0, %v5310_v51  ;;  %v260_v52 = vld [vmem:[%s6881_s5 + $0x30] sm:$0xf] }
  0x2d   : > { %v360_v4 = vrot.slane %v359_v53, 4  ;;  %v2171_v9 = vrot.slane %v2169_v61, 5  ;;  %v2173_v17 = vshrl.u32 %v6957_v46, 16  ;;  %v2179_v10 = vshll.u32 %v6966_v54, 16 }
  0x2e   : > { %v370_v8 = vrot.slane %v369_v58, 4  ;;  %6218 = vmatmul.mubr.msk.bf16.vlgmr.msra.gmra.mrb[0].mxu0 %vm738_vm3, %v5458_v2  ;;  %v2166_v12 = vor.u32 %v2165_v6, %v2162_v5  ;;  %v377_v14 = vshrl.u32 %v258_v0, 16  ;;  %v380_v18 = vshll.u32 %v258_v0, 16  ;;  %v261_v58 = vld [vmem:[%s6881_s5 + $0x34] sm:$0xf] }
  0x2f   : > { %v365_v11 = vsel %vm6907_vm4, %v360_v4, %v364_v48  ;;  %6250 = vmatpush3.bf16.msra.mxu0 %v6913_v37  ;;  %v2175_v20 = vrot.slane %v2173_v17, 4  ;;  %v2181_v21 = vrot.slane %v2179_v10, 5  ;;  %v386_v23 = vshll.u32 %v259_v7, 16  ;;  %v289_v4 = vld [vmem:[%s6881_s5 + $0x38] sm:$0x1] }
  0x30   : > { %v375_v19 = vsel %vm6907_vm4, %v370_v8, %v374_v59  ;;  %v2167_v27 = vrot.slane %v2166_v12, 4  ;;  %v379_v29 = vrot.slane %v377_v14, 4  ;;  %v382_v31 = vrot.slane %v380_v18, 5  ;;  %6650 = vmatprep.subr.msk.bf16.mxu0 %vm787_vm0, %v6900_v26  ;;  %v5420_v12 = vld [vmem:[%s6881_s5 + $0x3c] sm:$0xf] }
  0x31   : > { %v5232_v25 = vcombine.low %v365_v11, %v375_v19  ;;  %v2176_v34 = vor.u32 %v2175_v20, %v2171_v9  ;;  %v388_v35 = vrot.slane %v386_v23, 5  ;;  %v390_v37 = vshrl.u32 %v259_v7, 16  ;;  %v7011_v20 = vld [vmem:[%s6881_s5 + $0x40] sm:$0xf] }
  0x32   : > { %v396_v36 = vshll.u32 %v288_v13, 16  ;;  %v2172_v38 = vsel %vm6907_vm4, %v2167_v27, %v2171_v9  ;;  %v383_v39 = vor.u32 %v382_v31, %v379_v29  ;;  %v2184_v42 = vshrl.u32 %v5417_v24, 16 }
  0x33   : > { %6085 = vmatprep.mubr.msk.bf16.mxu1 %vm738_vm3, %v5232_v25  ;;  %v2187_v43 = vshll.u32 %v5417_v24, 16  ;;  %v2177_v44 = vrot.slane %v2176_v34, 4  ;;  %v392_v45 = vrot.slane %v390_v37, 4  ;;  %v2193_v26 = vshll.u32 %v6986_v33, 16  ;;  %v7016_v34 = vld [vmem:[%s6881_s5 + $0x44] sm:$0x1] }
  0x34   : > { %v398_v47 = vrot.slane %v396_v36, 5  ;;  %v384_v48 = vrot.slane %v383_v39, 4  ;;  %v2186_v49 = vrot.slane %v2184_v42, 4  ;;  %v2197_v51 = vshrl.u32 %v6986_v33, 16  ;;  %v262_v42 = vld [vmem:[%s6881_s5 + $0x3c] sm:$0xf] }
  0x35   : > { %v2189_v50 = vrot.slane %v2187_v43, 5  ;;  %v2182_v53 = vsel %vm6907_vm4, %v2177_v44, %v2181_v21  ;;  %v393_v55 = vor.u32 %v392_v45, %v388_v35  ;;  %v2195_v56 = vrot.slane %v2193_v26, 5  ;;  %v263_v26 = vld [vmem:[%s6881_s5 + $0x40] sm:$0xf] }
  0x36   : > { %v2203_v57 = vshll.u32 %v6994_v40, 16  ;;  %v5459_v59 = vcombine.low %v2172_v38, %v2182_v53  ;;  %v389_v61 = vsel %vm6907_vm4, %v384_v48, %v388_v35  ;;  %v2199_v2 = vrot.slane %v2197_v51, 4 }
  0x37   : > { %v2190_v0 = vor.u32 %v2189_v50, %v2186_v49  ;;  %v394_v5 = vrot.slane %v393_v55, 4  ;;  %v401_v7 = vshrl.u32 %v260_v52, 16  ;;  %v404_v8 = vshll.u32 %v260_v52, 16 }
  0x38   : > { %v2205_v6 = vrot.slane %v2203_v57, 5  ;;  %6221 = vmatprep.mubr.msk.bf16.mxu0 %vm738_vm3, %v5459_v59  ;;  %v2200_v17 = vor.u32 %v2199_v2, %v2195_v56  ;;  %v410_v10 = vshll.u32 %v261_v58, 16  ;;  %v414_v11 = vshrl.u32 %v261_v58, 16  ;;  %v5423_v2 = vld [vmem:[%s6881_s5 + $0x48] sm:$0xf] }
  0x39   : > { %v2191_v9 = vrot.slane %v2190_v0, 4  ;;  %v399_v13 = vsel %vm6907_vm4, %v394_v5, %v398_v47  ;;  %v403_v14 = vrot.slane %v401_v7, 4  ;;  %v406_v18 = vrot.slane %v404_v8, 5  ;;  %v7034_v8 = vld [vmem:[%s6881_s5 + $0x4c] sm:$0xf] }
  0x3a   : > { %v420_v19 = vshll.u32 %v289_v4, 16  ;;  %v5233_v21 = vcombine.low %v389_v61, %v399_v13  ;;  %v2201_v24 = vrot.slane %v2200_v17, 4  ;;  %v412_v25 = vrot.slane %v410_v10, 5  ;;  %v290_v61 = vld [vmem:[%s6881_s5 + $0x44] sm:$0x1] }
  0x3b   : > { %v2196_v23 = vsel %vm6907_vm4, %v2191_v9, %v2195_v56  ;;  %v407_v27 = vor.u32 %v406_v18, %v403_v14  ;;  %v416_v29 = vrot.slane %v414_v11, 4  ;;  %v2208_v35 = vshrl.u32 %v5420_v12, 16 }
  0x3c   : > { %v422_v31 = vrot.slane %v420_v19, 5  ;;  %6086 = vmatmul.mubr.msk.bf16.gmra.mrb[4].mxu1 %vm738_vm3, %v5233_v21  ;;  %v2206_v37 = vsel %vm6907_vm4, %v2201_v24, %v2205_v6  ;;  %v2211_v36 = vshll.u32 %v5420_v12, 16  ;;  %v2217_v38 = vshll.u32 %v7011_v20, 16 }
  0x3d   : > { %v2221_v39 = vshrl.u32 %v7011_v20, 16  ;;  %v5460_v43 = vcombine.low %v2196_v23, %v2206_v37  ;;  %v408_v44 = vrot.slane %v407_v27, 4  ;;  %v417_v45 = vor.u32 %v416_v29, %v412_v25  ;;  %v7042_v23 = vld [vmem:[%s6881_s5 + $0x50] sm:$0x1]  ;;  %v7046_v27 = vld [vmem:[%s6881_s5 + $0x48] sm:$0xf] }
  0x3e   : > { %v2210_v47 = vrot.slane %v2208_v35, 4  ;;  %v2213_v48 = vrot.slane %v2211_v36, 5  ;;  %v2219_v49 = vrot.slane %v2217_v38, 5  ;;  %v2227_v51 = vshll.u32 %v7016_v34, 16  ;;  %v7049_v36 = vld [vmem:[%s6881_s5 + $0x4c] sm:$0xf] }
  0x3f   : > { %v2223_v50 = vrot.slane %v2221_v39, 4  ;;  %6222 = vmatmul.mubr.msk.bf16.gmra.mrb[4].mxu0 %vm738_vm3, %v5460_v43  ;;  %v413_v52 = vsel %vm6907_vm4, %v408_v44, %v412_v25  ;;  %v418_v53 = vrot.slane %v417_v45, 4  ;;  %v425_v55 = vshrl.u32 %v262_v42, 16 }
  0x40   : > { %v428_v56 = vshll.u32 %v262_v42, 16  ;;  %v2214_v57 = vor.u32 %v2213_v48, %v2210_v47  ;;  %v2229_v59 = vrot.slane %v2227_v51, 5  ;;  %v434_v0 = vshll.u32 %v263_v26, 16 }
  0x41   : > { %v2224_v58 = vor.u32 %v2223_v50, %v2219_v49  ;;  %v423_v4 = vsel %vm6907_vm4, %v418_v53, %v422_v31  ;;  %v427_v5 = vrot.slane %v425_v55, 4  ;;  %v438_v7 = vshrl.u32 %v263_v26, 16  ;;  %v291_v26 = vld [vmem:[%s6881_s5 + $0x50] sm:$0x1]  ;;  %v5426_v53 = vld [vmem:[%s6881_s5 + $0x54] sm:$0xf] }
  0x42   : > { %v430_v6 = vrot.slane %v428_v56, 5  ;;  %v5234_v9 = vcombine.low %v413_v52, %v423_v4  ;;  %v2215_v17 = vrot.slane %v2214_v57, 4  ;;  %v436_v11 = vrot.slane %v434_v0, 5  ;;  %v7065_v4 = vld [vmem:[%s6881_s5 + $0x58] sm:$0xf] }
  0x43   : > { %v2225_v10 = vrot.slane %v2224_v58, 4  ;;  %v440_v13 = vrot.slane %v438_v7, 4  ;;  %v444_v14 = vshll.u32 %v290_v61, 16  ;;  %v2232_v18 = vshrl.u32 %v5423_v2, 16 }
  0x44   : > { %v431_v12 = vor.u32 %v430_v6, %v427_v5  ;;  %6089 = vmatprep.mubr.msk.bf16.mxu1 %vm738_vm3, %v5234_v9  ;;  %v2220_v19 = vsel %vm6907_vm4, %v2215_v17, %v2219_v49  ;;  %v2235_v24 = vshll.u32 %v5423_v2, 16  ;;  %v2241_v25 = vshll.u32 %v7034_v8, 16 }
  0x45   : > { %v2230_v21 = vsel %vm6907_vm4, %v2225_v10, %v2229_v59  ;;  %v441_v35 = vor.u32 %v440_v13, %v436_v11  ;;  %v446_v37 = vrot.slane %v444_v14, 5  ;;  %v2234_v38 = vrot.slane %v2232_v18, 4 }
  0x46   : > { %v5461_v29 = vcombine.low %v2220_v19, %v2230_v21  ;;  %v432_v31 = vrot.slane %v431_v12, 4  ;;  %v2237_v39 = vrot.slane %v2235_v24, 5  ;;  %v2243_v42 = vrot.slane %v2241_v25, 5  ;;  %v7071_v12 = vld [vmem:[%s6881_s5 + $0x5c] sm:$0x1] }
  0x47   : > { %v2245_v43 = vshrl.u32 %v7034_v8, 16  ;;  %v442_v45 = vrot.slane %v441_v35, 4  ;;  %v2251_v47 = vshll.u32 %v7042_v23, 16  ;;  %v449_v48 = vshrl.u32 %v7046_v27, 16  ;;  %v7075_v24 = vld [vmem:[%s6881_s5 + $0x54] sm:$0xf] }
  0x48   : > { %6225 = vmatprep.mubr.msk.bf16.mxu0 %vm738_vm3, %v5461_v29  ;;  %v437_v44 = vsel %vm6907_vm4, %v432_v31, %v436_v11  ;;  %v2238_v49 = vor.u32 %v2237_v39, %v2234_v38  ;;  %v452_v51 = vshll.u32 %v7046_v27, 16  ;;  %v458_v52 = vshll.u32 %v7049_v36, 16 }
  0x49   : > { %v2247_v50 = vrot.slane %v2245_v43, 4  ;;  %v447_v55 = vsel %vm6907_vm4, %v442_v45, %v446_v37  ;;  %v2253_v56 = vrot.slane %v2251_v47, 5  ;;  %v451_v57 = vrot.slane %v449_v48, 4  ;;  %v7081_v37 = vld [vmem:[%s6881_s5 + $0x58] sm:$0xf] }
  0x4a   : > { %v462_v58 = vshrl.u32 %v7049_v36, 16  ;;  %v5235_v59 = vcombine.low %v437_v44, %v447_v55  ;;  %v2239_v61 = vrot.slane %v2238_v49, 4  ;;  %v454_v2 = vrot.slane %v452_v51, 5 }
  0x4b   : > { %v2248_v0 = vor.u32 %v2247_v50, %v2243_v42  ;;  %v460_v5 = vrot.slane %v458_v52, 5  ;;  %v468_v7 = vshll.u32 %v291_v26, 16  ;;  %v2256_v9 = vshrl.u32 %v5426_v53, 16  ;;  %v292_v26 = vld [vmem:[%s6881_s5 + $0x5c] sm:$0x1] }
  0x4c   : > { %v464_v6 = vrot.slane %v462_v58, 4  ;;  %6090 = vmatmul.mubr.msk.bf16.gmra.mrb[8].mxu1 %vm738_vm3, %v5235_v59  ;;  %v2244_v17 = vsel %vm6907_vm4, %v2239_v61, %v2243_v42  ;;  %v455_v11 = vor.u32 %v454_v2, %v451_v57  ;;  %v2259_v13 = vshll.u32 %v5426_v53, 16  ;;  %v5429_v53 = vld [vmem:[%s6881_s5 + $0x60] sm:$0xf]  ;;  %v7095_v59 = vld [vmem:[%s6881_s5 + $0x64] sm:$0xf] }
  0x4d   : > { %v2249_v10 = vrot.slane %v2248_v0, 4  ;;  %v470_v18 = vrot.slane %v468_v7, 5  ;;  %v2258_v19 = vrot.slane %v2256_v9, 4  ;;  %v2265_v21 = vshll.u32 %v7065_v4, 16  ;;  %v7102_v9 = vld [vmem:[%s6881_s5 + $0x68] sm:$0x1] }
  0x4e   : > { %v465_v14 = vor.u32 %v464_v6, %v460_v5  ;;  %v456_v29 = vrot.slane %v455_v11, 4  ;;  %v2261_v31 = vrot.slane %v2259_v13, 5  ;;  %v2269_v35 = vshrl.u32 %v7065_v4, 16 }
  0x4f   : > { %v2254_v25 = vsel %vm6907_vm4, %v2249_v10, %v2253_v56  ;;  %v2267_v42 = vrot.slane %v2265_v21, 5  ;;  %v2275_v43 = vshll.u32 %v7071_v12, 16  ;;  %v473_v48 = vshrl.u32 %v7075_v24, 16 }
  0x50   : > { %v5462_v38 = vcombine.low %v2244_v17, %v2254_v25  ;;  %v466_v39 = vrot.slane %v465_v14, 4  ;;  %v461_v44 = vsel %vm6907_vm4, %v456_v29, %v460_v5  ;;  %v2262_v45 = vor.u32 %v2261_v31, %v2258_v19  ;;  %v7106_v19 = vld [vmem:[%s6881_s5 + $0x60] sm:$0xf] }
  0x51   : > { %v2271_v47 = vrot.slane %v2269_v35, 4  ;;  %v2277_v50 = vrot.slane %v2275_v43, 5  ;;  %v476_v51 = vshll.u32 %v7075_v24, 16  ;;  %v482_v52 = vshll.u32 %v7081_v37, 16  ;;  %v7112_v35 = vld [vmem:[%s6881_s5 + $0x64] sm:$0xf] }
  0x52   : > { %6226 = vmatmul.mubr.msk.bf16.gmra.mrb[8].mxu0 %vm738_vm3, %v5462_v38  ;;  %v471_v49 = vsel %vm6907_vm4, %v466_v39, %v470_v18  ;;  %v2263_v56 = vrot.slane %v2262_v45, 4  ;;  %v475_v58 = vrot.slane %v473_v48, 4  ;;  %v486_v2 = vshrl.u32 %v7081_v37, 16 }
  0x53   : > { %v5236_v55 = vcombine.low %v461_v44, %v471_v49  ;;  %v2272_v57 = vor.u32 %v2271_v47, %v2267_v42  ;;  %v478_v61 = vrot.slane %v476_v51, 5  ;;  %v484_v0 = vrot.slane %v482_v52, 5 }
  0x54   : > { %v492_v5 = vshll.u32 %v292_v26, 16  ;;  %v2268_v6 = vsel %vm6907_vm4, %v2263_v56, %v2267_v42  ;;  %v2280_v17 = vshrl.u32 %v5429_v53, 16  ;;  %v2283_v10 = vshll.u32 %v5429_v53, 16 }
  0x55   : > { %6093 = vmatprep.mubr.msk.bf16.mxu1 %vm738_vm3, %v5236_v55  ;;  %v2273_v7 = vrot.slane %v2272_v57, 4  ;;  %v479_v11 = vor.u32 %v478_v61, %v475_v58  ;;  %v488_v13 = vrot.slane %v486_v2, 4  ;;  %v2289_v18 = vshll.u32 %v7095_v59, 16  ;;  %v5489_v58 = vld [vmem:[%s6881_s5 + $0xc] sm:$0xe] }
  0x56   : > { %v494_v14 = vrot.slane %v492_v5, 5  ;;  %v2282_v25 = vrot.slane %v2280_v17, 4  ;;  %v2285_v29 = vrot.slane %v2283_v10, 5  ;;  %v2293_v31 = vshrl.u32 %v7095_v59, 16 }
  0x57   : > { %v2278_v21 = vsel %vm6907_vm4, %v2273_v7, %v2277_v50  ;;  %v480_v39 = vrot.slane %v479_v11, 4  ;;  %v489_v42 = vor.u32 %v488_v13, %v484_v0  ;;  %v2291_v43 = vrot.slane %v2289_v18, 5  ;;  %v293_v50 = vld [vmem:[%s6881_s5 + $0x68] sm:$0x1] }
  0x58   : > { %v5463_v38 = vcombine.low %v2268_v6, %v2278_v21  ;;  %v2286_v44 = vor.u32 %v2285_v29, %v2282_v25  ;;  %v2295_v45 = vrot.slane %v2293_v31, 4  ;;  %v2299_v47 = vshll.u32 %v7102_v9, 16  ;;  %v7140_v29 = vld [vmem:[%s6881_s5 + $0x70] sm:$0xf] }
  0x59   : > { %v497_v26 = vshrl.u32 %v7106_v19, 16  ;;  %v485_v48 = vsel %vm6907_vm4, %v480_v39, %v484_v0  ;;  %v490_v49 = vrot.slane %v489_v42, 4  ;;  %v500_v51 = vshll.u32 %v7106_v19, 16  ;;  %v7127_v0 = vld [vmem:[%s6881_s5 + $0x6c] sm:$0xf] }
  0x5a   : > { %6229 = vmatprep.mubr.msk.bf16.mxu0 %vm738_vm3, %v5463_v38  ;;  %v506_v52 = vshll.u32 %v7112_v35, 16  ;;  %v2287_v53 = vrot.slane %v2286_v44, 4  ;;  %v2296_v55 = vor.u32 %v2295_v45, %v2291_v43  ;;  %v2301_v56 = vrot.slane %v2299_v47, 5 }
  0x5b   : > { %v499_v57 = vrot.slane %v497_v26, 4  ;;  %v495_v61 = vsel %vm6907_vm4, %v490_v49, %v494_v14  ;;  %v502_v2 = vrot.slane %v500_v51, 5  ;;  %v510_v6 = vshrl.u32 %v7112_v35, 16  ;;  %v294_v26 = vld [vmem:[%s6881_s5 + $0x74] sm:$0x1] }
  0x5c   : > { %v508_v5 = vrot.slane %v506_v52, 5  ;;  %v5237_v7 = vcombine.low %v485_v48, %v495_v61  ;;  %v2292_v17 = vsel %vm6907_vm4, %v2287_v53, %v2291_v43  ;;  %v2297_v10 = vrot.slane %v2296_v55, 4  ;;  %v5490_v48 = vld [vmem:[%s6881_s5 + $0x18] sm:$0xe] }
  0x5d   : > { %v516_v11 = vshll.u32 %v293_v50, 16  ;;  %v503_v14 = vor.u32 %v502_v2, %v499_v57  ;;  %v512_v18 = vrot.slane %v510_v6, 4  ;;  %v5505_v21 = vrot.slane %v5489_v58, 9  ;;  %v7159_v53 = vld [vmem:[%s6881_s5 + $0x78] sm:$0xf] }
  0x5e   : > { %v2857_v25 = vrot.slane %v2855_v62, 4  ;;  %6094 = vmatmul.mubr.msk.bf16.gmra.mrb[12].mxu1 %vm738_vm3, %v5237_v7  ;;  %v2302_v31 = vsel %vm6907_vm4, %v2297_v10, %v2301_v56  ;;  %v521_v39 = vshrl.u32 %v7127_v0, 16  ;;  %v524_v42 = vshll.u32 %v7127_v0, 16  ;;  %v295_v57 = vld [vmem:[%s6881_s5 + $0x80] sm:$0x1] }
  0x5f   : > { %v518_v38 = vrot.slane %v516_v11, 5  ;;  %v5464_v43 = vcombine.low %v2292_v17, %v2302_v31  ;;  %v504_v44 = vrot.slane %v503_v14, 4  ;;  %v513_v45 = vor.u32 %v512_v18, %v508_v5  ;;  %v5491_v10 = vld [vmem:[%s6881_s5 + $0x24] sm:$0xe] }
  0x60   : > { %v2856_v47 = vsel %vm7133_vm7, %v5505_v21, %v2855_v62  ;;  %v2859_v49 = vsel %vm7133_vm7, %v2857_v25, %v2858_v63  ;;  %v523_v50 = vrot.slane %v521_v39, 4  ;;  %v526_v51 = vrot.slane %v524_v42, 5  ;;  %v7185_v39 = vld [vmem:[%s6881_s5 + $0x84] sm:$0xf] }
  0x61   : > { %v530_v52 = vshll.u32 %v7140_v29, 16  ;;  %6230 = vmatmul.mubr.msk.bf16.gmra.mrb[12].mxu0 %vm738_vm3, %v5464_v43  ;;  %v509_v15 = vsel %vm6907_vm4, %v504_v44, %v508_v5  ;;  %v514_v62 = vrot.slane %v513_v45, 4  ;;  %v5522_v55 = vcombine.low %v2856_v47, %v2859_v49  ;;  %v7193_v43 = vld [vmem:[%s6881_s5 + $0x88] sm:$0xf] }
  0x62   : > { %v534_v56 = vshrl.u32 %v7140_v29, 16  ;;  %v527_v63 = vor.u32 %v526_v51, %v523_v50  ;;  %v540_v61 = vshll.u32 %v294_v26, 16  ;;  %v5506_v2 = vrot.slane %v5490_v48, 9 }
  0x63   : > { %v532_v58 = vrot.slane %v530_v52, 5  ;;  %v519_v6 = vsel %vm6907_vm4, %v514_v62, %v518_v38  ;;  %6251 = vmatprep.mubr.msk.bf16.mxu0 %vm738_vm3, %v5522_v55  ;;  %v2866_v5 = vsel %vm7133_vm7, %v6950_v30, %v2865_v28  ;;  %v545_v17 = vshrl.u32 %v7159_v53, 16  ;;  %v296_v52 = vld [vmem:[%s6881_s5 + $0x8c] sm:$0x1] }
  0x64   : > { %v536_v7 = vrot.slane %v534_v56, 4  ;;  %v5238_v11 = vcombine.low %v509_v15, %v519_v6  ;;  %v528_v14 = vrot.slane %v527_v63, 4  ;;  %v542_v18 = vrot.slane %v540_v61, 5 }
  0x65   : > { %v2863_v21 = vsel %vm7133_vm7, %v5506_v2, %v2862_v22  ;;  %v547_v38 = vrot.slane %v545_v17, 4  ;;  %v548_v1 = vshll.u32 %v7159_v53, 16  ;;  %v554_v30 = vshll.u32 %v7166_v16, 16  ;;  %v7198_v22 = vld [vmem:[%s8611_s1 + $0xe] sm:$0x3] }
  0x66   : > { %v537_v25 = vor.u32 %v536_v7, %v532_v58  ;;  %v5523_v31 = vcombine.low %v2863_v21, %v2866_v5  ;;  %6097 = vmatprep.mubr.msk.bf16.mxu1 %vm738_vm3, %v5238_v11  ;;  %v533_v28 = vsel %vm6907_vm4, %v528_v14, %v532_v58  ;;  %v558_v60 = vshrl.u32 %v7166_v16, 16  ;;  %v7217_v5 = vld [vmem:[%s6881_s5 + $0x90] sm:$0xf] }
  0x67   : > { %v564_v42 = vshll.u32 %v295_v57, 16  ;;  %v550_v45 = vrot.slane %v548_v1, 5  ;;  %v5507_v47 = vrot.slane %v5491_v10, 9  ;;  %v2869_v26 = vrot.slane %v6957_v46, 5  ;;  %v5492_v57 = vld [vmem:[%s6881_s5 + $0x30] sm:$0xe] }
  0x68   : > { %v538_v44 = vrot.slane %v537_v25, 4  ;;  %v556_v48 = vrot.slane %v554_v30, 5  ;;  %v560_v49 = vrot.slane %v558_v60, 4  ;;  %v2872_v51 = vrot.slane %v6966_v54, 5  ;;  %v7229_v30 = vld [vmem:[%s6881_s5 + $0x94] sm:$0xf] }
  0x69   : > { %v566_v50 = vrot.slane %v564_v42, 5  ;;  %6252 = vmatmul.mubr.msk.bf16.vlgmr.msra.gmra.mrb[0].mxu0 %vm738_vm3, %v5523_v31  ;;  %v551_v62 = vor.u32 %v550_v45, %v547_v38  ;;  %v2870_v55 = vsel %vm7133_vm7, %v5507_v47, %v2869_v26  ;;  %v2871_v56 = vrot.slane %v2869_v26, 4  ;;  %v297_v60 = vld [vmem:[%s6881_s5 + $0x98] sm:$0x1]  ;;  %v5493_v26 = vld [vmem:[%s6881_s5 + $0x3c] sm:$0xe] }
  0x6a   : > { %v543_v15 = vsel %vm6907_vm4, %v538_v44, %v542_v18  ;;  %6284 = vmatpush3.bf16.msra.mxu0 %v6917_v41  ;;  %v561_v46 = vor.u32 %v560_v49, %v556_v48  ;;  %v569_v58 = vshrl.u32 %v7185_v39, 16  ;;  %v572_v54 = vshll.u32 %v7185_v39, 16 }
  0x6b   : > { %v5239_v63 = vcombine.low %v533_v28, %v543_v15  ;;  %v552_v61 = vrot.slane %v551_v62, 4  ;;  %v2873_v2 = vsel %vm7133_vm7, %v2871_v56, %v2872_v51  ;;  %v578_v6 = vshll.u32 %v7193_v43, 16  ;;  %6651 = vmatprep.subr.msk.bf16.mxu0 %vm787_vm0, %v7198_v22 }
  0x6c   : > { %v582_v7 = vshrl.u32 %v7193_v43, 16  ;;  %v562_v41 = vrot.slane %v561_v46, 4  ;;  %v5524_v17 = vcombine.low %v2870_v55, %v2873_v2  ;;  %v571_v10 = vrot.slane %v569_v58, 4  ;;  %v7249_v46 = vld [vmem:[%s6881_s5 + $0xa0] sm:$0xf] }
  0x6d   : > { %6098 = vmatmul.mubr.msk.bf16.gmra.mrb[16].mxu1 %vm738_vm3, %v5239_v63  ;;  %v574_v11 = vrot.slane %v572_v54, 5  ;;  %v557_v14 = vsel %vm6907_vm4, %v552_v61, %v556_v48  ;;  %v580_v18 = vrot.slane %v578_v6, 5  ;;  %v588_v25 = vshll.u32 %v296_v52, 16  ;;  %v7238_v52 = vld [vmem:[%s6881_s5 + $0x9c] sm:$0xf] }
  0x6e   : > { %v584_v21 = vrot.slane %v582_v7, 4  ;;  %v567_v31 = vsel %vm6907_vm4, %v562_v41, %v566_v50  ;;  %6255 = vmatprep.mubr.msk.bf16.mxu0 %vm738_vm3, %v5524_v17  ;;  %v5508_v1 = vrot.slane %v5492_v57, 9  ;;  %v2876_v28 = vrot.slane %v6986_v33, 5 }
  0x6f   : > { %v575_v38 = vor.u32 %v574_v11, %v571_v10  ;;  %v5240_v42 = vcombine.low %v557_v14, %v567_v31  ;;  %v590_v45 = vrot.slane %v588_v25, 5  ;;  %v2879_v47 = vrot.slane %v6994_v40, 5  ;;  %v298_v10 = vld [vmem:[%s6881_s5 + $0xa4] sm:$0x1]  ;;  %v5494_v11 = vld [vmem:[%s6881_s5 + $0x48] sm:$0xe] }
  0x70   : > { %v585_v44 = vor.u32 %v584_v21, %v580_v18  ;;  %v2877_v49 = vsel %vm7133_vm7, %v5508_v1, %v2876_v28  ;;  %v2878_v50 = vrot.slane %v2876_v28, 4  ;;  %v593_v51 = vshrl.u32 %v7217_v5, 16 }
  0x71   : > { %v576_v48 = vrot.slane %v575_v38, 4  ;;  %6101 = vmatprep.mubr.msk.bf16.mxu1 %vm738_vm3, %v5240_v42  ;;  %v596_v15 = vshll.u32 %v7217_v5, 16  ;;  %v602_v62 = vshll.u32 %v7229_v30, 16  ;;  %v606_v40 = vshrl.u32 %v7229_v30, 16 }
  0x72   : > { %v586_v33 = vrot.slane %v585_v44, 4  ;;  %v2880_v56 = vsel %vm7133_vm7, %v2878_v50, %v2879_v47  ;;  %v595_v57 = vrot.slane %v593_v51, 4  ;;  %v612_v63 = vshll.u32 %v297_v60, 16 }
  0x73   : > { %v581_v55 = vsel %vm6907_vm4, %v576_v48, %v580_v18  ;;  %v5525_v54 = vcombine.low %v2877_v49, %v2880_v56  ;;  %v598_v61 = vrot.slane %v596_v15, 5  ;;  %v604_v2 = vrot.slane %v602_v62, 5  ;;  %v7275_v56 = vld [vmem:[%s6881_s5 + $0xac] sm:$0xf] }
  0x74   : > { %v591_v58 = vsel %vm6907_vm4, %v586_v33, %v590_v45  ;;  %v608_v7 = vrot.slane %v606_v40, 4  ;;  %v614_v41 = vrot.slane %v612_v63, 5  ;;  %v5509_v17 = vrot.slane %v5493_v26, 9  ;;  %v7270_v33 = vld [vmem:[%s6881_s5 + $0xa8] sm:$0xf] }
  0x75   : > { %v5241_v6 = vcombine.low %v581_v55, %v591_v58  ;;  %6256 = vmatmul.mubr.msk.bf16.gmra.mrb[4].mxu0 %vm738_vm3, %v5525_v54  ;;  %v599_v14 = vor.u32 %v598_v61, %v595_v57  ;;  %v2883_v18 = vrot.slane %v7011_v20, 5  ;;  %v2886_v21 = vrot.slane %v7016_v34, 5  ;;  %v299_v61 = vld [vmem:[%s6881_s5 + $0xb0] sm:$0x1] }
  0x76   : > { %v617_v25 = vshrl.u32 %v7238_v52, 16  ;;  %v609_v31 = vor.u32 %v608_v7, %v604_v2  ;;  %v620_v38 = vshll.u32 %v7238_v52, 16  ;;  %v626_v1 = vshll.u32 %v7249_v46, 16 }
  0x77   : > { %6102 = vmatmul.mubr.msk.bf16.gmra.mrb[20].mxu1 %vm738_vm3, %v5241_v6  ;;  %v630_v28 = vshrl.u32 %v7249_v46, 16  ;;  %v600_v60 = vrot.slane %v599_v14, 4  ;;  %v2884_v42 = vsel %vm7133_vm7, %v5509_v17, %v2883_v18  ;;  %v2885_v20 = vrot.slane %v2883_v18, 4  ;;  %v7290_v14 = vld [vmem:[%s6881_s5 + $0xb4] sm:$0xf] }
  0x78   : > { %v619_v44 = vrot.slane %v617_v25, 4  ;;  %v610_v34 = vrot.slane %v609_v31, 4  ;;  %v622_v45 = vrot.slane %v620_v38, 5  ;;  %v628_v47 = vrot.slane %v626_v1, 5 }
  0x79   : > { %v632_v26 = vrot.slane %v630_v28, 4  ;;  %v605_v48 = vsel %vm6907_vm4, %v600_v60, %v604_v2  ;;  %v2887_v49 = vsel %vm7133_vm7, %v2885_v20, %v2886_v21  ;;  %v636_v50 = vshll.u32 %v298_v10, 16  ;;  %v5495_v2 = vld [vmem:[%s6881_s5 + $0x54] sm:$0xe] }
  0x7a   : > { %v5510_v51 = vrot.slane %v5494_v11, 9  ;;  %v615_v15 = vsel %vm6907_vm4, %v610_v34, %v614_v41  ;;  %v5526_v62 = vcombine.low %v2884_v42, %v2887_v49  ;;  %v623_v40 = vor.u32 %v622_v45, %v619_v44  ;;  %v7299_v42 = vld [vmem:[%s6881_s5 + $0xb8] sm:$0xf]  ;;  %v300_v49 = vld [vmem:[%s6881_s5 + $0xbc] sm:$0x1] }
  0x7b   : > { %v633_v55 = vor.u32 %v632_v26, %v628_v47  ;;  %v5242_v57 = vcombine.low %v605_v48, %v615_v15  ;;  %v638_v63 = vrot.slane %v636_v50, 5  ;;  %v2890_v58 = vrot.slane %v7034_v8, 5 }
  0x7c   : > { %v2893_v54 = vrot.slane %v7042_v23, 5  ;;  %6259 = vmatprep.mubr.msk.bf16.mxu0 %vm738_vm3, %v5526_v62  ;;  %v624_v6 = vrot.slane %v623_v40, 4  ;;  %v641_v41 = vshrl.u32 %v7270_v33, 16  ;;  %v644_v17 = vshll.u32 %v7270_v33, 16 }
  0x7d   : > { %v634_v7 = vrot.slane %v633_v55, 4  ;;  %6105 = vmatprep.mubr.msk.bf16.mxu1 %vm738_vm3, %v5242_v57  ;;  %v2891_v10 = vsel %vm7133_vm7, %v5510_v51, %v2890_v58  ;;  %v2892_v11 = vrot.slane %v2890_v58, 4  ;;  %v650_v8 = vshll.u32 %v7275_v56, 16  ;;  %v5496_v55 = vld [vmem:[%s6881_s5 + $0x60] sm:$0xe] }
  0x7e   : > { %v654_v23 = vshrl.u32 %v7275_v56, 16  ;;  %v629_v18 = vsel %vm6907_vm4, %v624_v6, %v628_v47  ;;  %v643_v25 = vrot.slane %v641_v41, 4  ;;  %v646_v31 = vrot.slane %v644_v17, 5  ;;  %v5497_v6 = vld [vmem:[%s6881_s5 + $0x6c] sm:$0xe] }
  0x7f   : > { %v639_v21 = vsel %vm6907_vm4, %v634_v7, %v638_v63  ;;  %v2894_v1 = vsel %vm7133_vm7, %v2892_v11, %v2893_v54  ;;  %v652_v28 = vrot.slane %v650_v8, 5  ;;  %v660_v34 = vshll.u32 %v299_v61, 16  ;;  %v5433_v11 = vld [vmem:[%s6881_s5 + $0x70] sm:$0xf]  ;;  %v5434_v8 = vld [vmem:[%s6881_s5 + $0x74] sm:$0x1] }
  0x80   : > { %v5243_v38 = vcombine.low %v629_v18, %v639_v21  ;;  %v656_v60 = vrot.slane %v654_v23, 4  ;;  %v5527_v20 = vcombine.low %v2891_v10, %v2894_v1  ;;  %v647_v44 = vor.u32 %v646_v31, %v643_v25 }
  0x81   : > { %v5511_v45 = vrot.slane %v5495_v2, 9  ;;  %v2897_v26 = vrot.slane %v7065_v4, 5  ;;  %v2900_v48 = vrot.slane %v7071_v12, 5  ;;  %v665_v50 = vshrl.u32 %v7290_v14, 16 }
  0x82   : > { %6106 = vmatmul.mubr.msk.bf16.gmra.mrb[24].mxu1 %vm738_vm3, %v5243_v38  ;;  %v657_v47 = vor.u32 %v656_v60, %v652_v28  ;;  %6260 = vmatmul.mubr.msk.bf16.gmra.mrb[8].mxu0 %vm738_vm3, %v5527_v20  ;;  %v648_v51 = vrot.slane %v647_v44, 4  ;;  %v662_v15 = vrot.slane %v660_v34, 5  ;;  %v668_v62 = vshll.u32 %v7290_v14, 16 }
  0x83   : > { %v674_v40 = vshll.u32 %v7299_v42, 16  ;;  %v2898_v4 = vsel %vm7133_vm7, %v5511_v45, %v2897_v26  ;;  %v2899_v12 = vrot.slane %v2897_v26, 4  ;;  %v667_v63 = vrot.slane %v665_v50, 4 }
  0x84   : > { %v658_v57 = vrot.slane %v657_v47, 4  ;;  %v653_v58 = vsel %vm6907_vm4, %v648_v51, %v652_v28  ;;  %v670_v54 = vrot.slane %v668_v62, 5  ;;  %v678_v2 = vshrl.u32 %v7299_v42, 16  ;;  %v5498_v47 = vld [vmem:[%s6881_s5 + $0x78] sm:$0xe] }
  0x85   : > { %v676_v61 = vrot.slane %v674_v40, 5  ;;  %v2901_v41 = vsel %vm7133_vm7, %v2899_v12, %v2900_v48  ;;  %v684_v17 = vshll.u32 %v300_v49, 16  ;;  %v5512_v10 = vrot.slane %v5496_v55, 9  ;;  %v6726_v51 = vld [vmem:[%s6881_s5] sm:$0xf] }
  0x86   : > { %v663_v7 = vsel %vm6907_vm4, %v658_v57, %v662_v15  ;;  %v5528_v18 = vcombine.low %v2898_v4, %v2901_v41  ;;  %v671_v21 = vor.u32 %v670_v54, %v667_v63  ;;  %v680_v25 = vrot.slane %v678_v2, 4  ;;  %v7337_v15 = vld [vmem:[%s6881_s5 + $0x4] sm:$0xf]  ;;  %v7341_v40 = vld [vmem:[%s6881_s5 + $0x7c] sm:$0xf] }
  0x87   : > { %v5244_v23 = vcombine.low %v653_v58, %v663_v7  ;;  %v686_v31 = vrot.slane %v684_v17, 5  ;;  %v2904_v38 = vrot.slane %v7095_v59, 5  ;;  %v2907_v1 = vrot.slane %v7102_v9, 5  ;;  %v7344_v55 = vld [vmem:[%s6881_s5 + $0x80] sm:$0x1] }
  0x88   : > { %v5513_v28 = vrot.slane %v5497_v6, 9  ;;  %6263 = vmatprep.mubr.msk.bf16.mxu0 %vm738_vm3, %v5528_v18  ;;  %v672_v60 = vrot.slane %v671_v21, 4  ;;  %v681_v20 = vor.u32 %v680_v25, %v676_v61  ;;  %v2911_v44 = vrot.slane %v5433_v11, 5  ;;  %v5439_v57 = vld [vmem:[%s6881_s5 + $0x88] sm:$0xf] }
  0x89   : > { %6109 = vmatprep.mubr.msk.bf16.mxu1 %vm738_vm3, %v5244_v23  ;;  %v2914_v34 = vrot.slane %v5434_v8, 5  ;;  %v2905_v45 = vsel %vm7133_vm7, %v5512_v10, %v2904_v38  ;;  %v2906_v59 = vrot.slane %v2904_v38, 4  ;;  %v5262_v62 = vcombine.low %v6726_v51, %v7337_v15  ;;  %v5440_v54 = vld [vmem:[%s6881_s5 + $0x8c] sm:$0x1]  ;;  %v5442_v17 = vld [vmem:[%s6881_s5 + $0x94] sm:$0xf] }
  0x8a   : > { %v677_v9 = vsel %vm6907_vm4, %v672_v60, %v676_v61  ;;  %v682_v26 = vrot.slane %v681_v20, 4  ;;  %v2912_v48 = vsel %vm7133_vm7, %v5513_v28, %v2911_v44  ;;  %v2913_v49 = vrot.slane %v2911_v44, 4  ;;  %v5499_v61 = vld [vmem:[%s6881_s5 + $0x84] sm:$0xe]  ;;  %v5500_v23 = vld [vmem:[%s6881_s5 + $0x90] sm:$0xe] }
  0x8b   : > { %v2908_v50 = vsel %vm7133_vm7, %v2906_v59, %v2907_v1  ;;  %v5514_v58 = vrot.slane %v5498_v47, 9  ;;  %v2918_v7 = vrot.slane %v7341_v40, 5  ;;  %v2921_v41 = vrot.slane %v7344_v55, 5  ;;  %v5443_v25 = vld [vmem:[%s6881_s5 + $0x98] sm:$0x1] }
  0x8c   : > { %v687_v4 = vsel %vm6907_vm4, %v682_v26, %v686_v31  ;;  %v5529_v12 = vcombine.low %v2905_v45, %v2908_v50  ;;  %v2915_v63 = vsel %vm7133_vm7, %v2913_v49, %v2914_v34  ;;  %v5515_v10 = vrot.slane %v5499_v61, 9  ;;  %v5445_v31 = vld [vmem:[%s6881_s5 + $0xa0] sm:$0xf]  ;;  %v5446_v60 = vld [vmem:[%s6881_s5 + $0xa4] sm:$0x1] }
  0x8d   : > { %v5245_v2 = vcombine.low %v677_v9, %v687_v4  ;;  %v5530_v6 = vcombine.low %v2912_v48, %v2915_v63  ;;  %v2925_v11 = vrot.slane %v5439_v57, 5  ;;  %v2928_v8 = vrot.slane %v5440_v54, 5  ;;  %v5501_v20 = vld [vmem:[%s6881_s5 + $0x9c] sm:$0xe]  ;;  %v6728_v44 = vld [vmem:[%s6881_s5 + $0xc] sm:$0xf] }
  0x8e   : > { %6264 = vmatmul.mubr.msk.bf16.gmra.mrb[12].mxu0 %vm738_vm3, %v5529_v12  ;;  %v2919_v18 = vsel %vm7133_vm7, %v5514_v58, %v2918_v7  ;;  %v2920_v21 = vrot.slane %v2918_v7, 4  ;;  %v2932_v28 = vrot.slane %v5442_v17, 5  ;;  %v7371_v34 = vld [vmem:[%s6881_s5 + $0x10] sm:$0xf]  ;;  %v6730_v47 = vld [vmem:[%s6881_s5 + $0x18] sm:$0xf] }
  0x8f   : > { %6110 = vmatmul.mubr.msk.bf16.gmra.mrb[28].mxu1 %vm738_vm3, %v5245_v2  ;;  %6267 = vmatprep.mubr.msk.bf16.mxu0 %vm738_vm3, %v5530_v6  ;;  %v2926_v38 = vsel %vm7133_vm7, %v5515_v10, %v2925_v11  ;;  %v2927_v1 = vrot.slane %v2925_v11, 4  ;;  %v5263_v45 = vcombine.low %v6728_v44, %v7371_v34  ;;  %v7378_v9 = vld [vmem:[%s6881_s5 + $0x1c] sm:$0xf]  ;;  %v5516_v48 = vrot.slane %v5500_v23, 9  ;;  %v5448_v57 = vld [vmem:[%s6881_s5 + $0xac] sm:$0xf] }
  0x90   : > { %6115 = vmatprep.mubr.msk.bf16.mxu1 %vm738_vm3, %v5262_v62  ;;  %v2922_v59 = vsel %vm7133_vm7, %v2920_v21, %v2921_v41  ;;  %v5264_v26 = vcombine.low %v6730_v47, %v7378_v9  ;;  %v2934_v51 = vrot.slane %v2932_v28, 4  ;;  %v2935_v62 = vrot.slane %v5443_v25, 5  ;;  %v6732_v54 = vld [vmem:[%s8611_s1 + $0x4] sm:$0x3]  ;;  %v5451_v2 = vld [vmem:[%s6881_s5 + $0xb8] sm:$0xf] }
  0x91   : > { %v5531_v49 = vcombine.low %v2919_v18, %v2922_v59  ;;  %v2929_v50 = vsel %vm7133_vm7, %v2927_v1, %v2928_v8  ;;  %v5517_v12 = vrot.slane %v5501_v20, 9  ;;  %v2939_v63 = vrot.slane %v5445_v31, 5  ;;  %v7393_v7 = vld [vmem:[%s8611_s1 + $0x6] sm:$0x3]  ;;  %v5449_v10 = vld [vmem:[%s6881_s5 + $0xb0] sm:$0x1] }
  0x92   : > { %v5532_v4 = vcombine.low %v2926_v38, %v2929_v50  ;;  %v2942_v58 = vrot.slane %v5446_v60, 5  ;;  %v1506_v61 = vsel %vm787_vm0, %v6732_v54, 0  ;;  %v2933_v41 = vsel %vm7133_vm7, %v5516_v48, %v2932_v28  ;;  %v5502_v11 = vld [vmem:[%s6881_s5 + $0xa8] sm:$0xe]  ;;  %v5452_v25 = vld [vmem:[%s6881_s5 + $0xbc] sm:$0x1] }
  0x93   : > { %v2941_v6 = vrot.slane %v2939_v63, 4  ;;  %v2936_v17 = vsel %vm7133_vm7, %v2934_v51, %v2935_v62  ;;  %v2946_v8 = vrot.slane %v5448_v57, 5  ;;  %v2940_v23 = vsel %vm7133_vm7, %v5517_v12, %v2939_v63  ;;  %v5503_v31 = vld [vmem:[%s6881_s5 + $0xb4] sm:$0xe]  ;;  %v6733_v38 = vld [vmem:[%s6881_s5 + $0x24] sm:$0xf] }
  0x94   : > { %v2953_v21 = vrot.slane %v5451_v2, 5  ;;  %v7414_v1 = vld [vmem:[%s6881_s5 + $0x28] sm:$0xf]  ;;  %v5533_v60 = vcombine.low %v2933_v41, %v2936_v17  ;;  %v5518_v44 = vrot.slane %v5502_v11, 9  ;;  %v2949_v59 = vrot.slane %v5449_v10, 5 }
  0x95   : > { %v2943_v18 = vsel %vm7133_vm7, %v2941_v6, %v2942_v58  ;;  %v5265_v28 = vcombine.low %v6733_v38, %v7414_v1  ;;  %v6735_v47 = vld [vmem:[%s6881_s5 + $0x30] sm:$0xf]  ;;  %v2956_v51 = vrot.slane %v5452_v25, 5  ;;  %v5454_v62 = vld [vmem:[%s6881_s5 + $0xc4] sm:$0xf]  ;;  %v2341_v25 = vshrl.u32 %v7341_v40, 16 }
  0x96   : > { %6268 = vmatmul.mubr.msk.bf16.gmra.mrb[16].mxu0 %vm738_vm3, %v5531_v49  ;;  %v5534_v20 = vcombine.low %v2940_v23, %v2943_v18  ;;  %v5519_v49 = vrot.slane %v5503_v31, 9  ;;  %v2955_v50 = vrot.slane %v2953_v21, 4  ;;  %v2947_v57 = vsel %vm7133_vm7, %v5518_v44, %v2946_v8  ;;  %v5504_v12 = vld [vmem:[%s6881_s5 + $0xc0] sm:$0xe]  ;;  %v6737_v41 = vld [vmem:[%s6881_s5 + $0x3c] sm:$0xf] }
  0x97   : > { %6116 = vmatmul.mubr.msk.bf16.vlgmr.msra.gmra.mrb[0].mxu1 %vm738_vm3, %v5263_v45  ;;  %6271 = vmatprep.mubr.msk.bf16.mxu0 %vm738_vm3, %v5532_v4  ;;  %v2948_v45 = vrot.slane %v2946_v8, 4  ;;  %v2960_v63 = vrot.slane %v5454_v62, 5  ;;  %v5520_v6 = vrot.slane %v5504_v12, 9  ;;  %v7439_v17 = vld [vmem:[%s6881_s5 + $0x40] sm:$0xf]  ;;  %v5268_v18 = vcombine.low %v7046_v27, %v7049_v36  ;;  %v6689_v62 = vld [vmem:[%s6881_s5 + $0x24] sm:$0xff]  }
  0x98   : > { %6148 = vmatpush3.bf16.msra.mxu1 %v1506_v61  ;;  %6119 = vmatprep.mubr.msk.bf16.mxu1 %vm738_vm3, %v5264_v26  ;;  %v7419_v26 = vld [vmem:[%s6881_s5 + $0x34] sm:$0xf]  ;;  %v2954_v58 = vsel %vm7133_vm7, %v5519_v49, %v2953_v21  ;;  %v2957_v54 = vsel %vm7133_vm7, %v2955_v50, %v2956_v51  ;;  %v5455_v61 = vld [vmem:[%s6881_s5 + $0xc8] sm:$0x1]  ;;  %v5267_v10 = vcombine.low %v6737_v41, %v7439_v17  ;;  %v2337_v21 = vshll.u32 %v7341_v40, 16 }
  0x99   : > { %6646 = vmatprep.subr.msk.bf16.mxu1 %vm787_vm0, %v7393_v7  ;;  %v5266_v48 = vcombine.low %v6735_v47, %v7419_v26  ;;  %v2950_v4 = vsel %vm7133_vm7, %v2948_v45, %v2949_v59  ;;  %v5536_v11 = vcombine.low %v2954_v58, %v2957_v54  ;;  %v2962_v8 = vrot.slane %v2960_v63, 4  ;;  %v1244_v45 = vld [vmem:[%s6881_s5] sm:$0xe]  ;;  %v1245_v59 = vld [vmem:[%s6881_s5 + $0xc] sm:$0xe] }
  0x9a   : > { %v5535_v2 = vcombine.low %v2947_v57, %v2950_v4  ;;  %v2963_v23 = vrot.slane %v5455_v61, 5  ;;  %v2961_v31 = vsel %vm7133_vm7, %v5520_v6, %v2960_v63  ;;  %v7454_v27 = vrot.slane %v2337_v21, 5  ;;  %v1248_v41 = vld [vmem:[%s6881_s5 + $0x30] sm:$0xe] }
  0x9b   : > { %v2343_v36 = vrot.slane %v2341_v25, 4  ;;  %v5270_v44 = vcombine.low %v7106_v19, %v7112_v35  ;;  %v2347_v47 = vshll.u32 %v7344_v55, 16  ;;  %v5294_v19 = vrot.slane %v1244_v45, 9 }
  0x9c   : > { %v2964_v38 = vsel %vm7133_vm7, %v2962_v8, %v2963_v23  ;;  %8633 = vst [vmem:[#allocation3_spill] sm:$0xff] %v7454_v27  ;;  %v5295_v35 = vrot.slane %v1245_v59, 9  ;;  %v1311_v4 = vrot.slane %v7378_v9, 5  ;;  %v1318_v12 = vrot.slane %v7414_v1, 5  ;;  %v1249_v8 = vld [vmem:[%s6881_s5 + $0x3c] sm:$0xe] }
  0x9d   : > { %v5537_v40 = vcombine.low %v2961_v31, %v2964_v38  ;;  %v2344_v49 = vor.u32 %v2343_v36, %v7454_v27  ;;  %v7474_v51 = vrot.slane %v2347_v47, 5  ;;  %v5271_v58 = vcombine.low %v7127_v0, %v7140_v29  ;;  %v1250_v31 = vld [vmem:[%s6881_s5 + $0x48] sm:$0xe]  ;;  %v6743_v59 = vld [vmem:[%s6881_s5 + $0x38] sm:$0x1] }
  0x9e   : > { %6272 = vmatmul.mubr.msk.bf16.gmra.mrb[20].mxu0 %vm738_vm3, %v5533_v60  ;;  %v5269_v60 = vcombine.low %v7075_v24, %v7081_v37  ;;  %v6740_v24 = vld [vmem:[%s6881_s5 + $0x14] sm:$0x1]  ;;  %v4152_v54 = vsel %vm787_vm0, %v7198_v22, 0  ;;  %v5272_v61 = vcombine.low %v7159_v53, %v7166_v16  ;;  %v5273_v6 = vcombine.low %v7185_v39, %v7193_v43  ;;  %v6741_v16 = vld [vmem:[%s6881_s5 + $0x20] sm:$0x1] }
  0x9f   : > { %6120 = vmatmul.mubr.msk.bf16.gmra.mrb[4].mxu1 %vm738_vm3, %v5265_v28  ;;  %6275 = vmatprep.mubr.msk.bf16.mxu0 %vm738_vm3, %v5534_v20  ;;  %v1304_v28 = vrot.slane %v7371_v34, 5  ;;  %v6687_v20 = vld [vmem:[%s6881_s5 + $0x18] sm:$0xff]   ;;  %v6739_v34 = vld [vmem:[%s6881_s5 + $0x8] sm:$0x1]  ;;  %v1307_v37 = vrot.slane %v6740_v24, 5  ;;  %8634 = vst [vmem:[#allocation4_spill] sm:$0xff] %v7474_v51  ;;  %v5274_v9 = vcombine.low %v7217_v5, %v7229_v30 }
  0xa0   : > { %6123 = vmatprep.mubr.msk.bf16.mxu1 %vm738_vm3, %v5266_v48  ;;  %v1297_v48 = vrot.slane %v7337_v15, 5  ;;  %v1300_v50 = vrot.slane %v6739_v34, 5  ;;  %v1246_v15 = vld [vmem:[%s6881_s5 + $0x18] sm:$0xe]  ;;  %v7479_v63 = vrot.slane %v2344_v49, 4  ;;  %v1314_v22 = vrot.slane %v6741_v16, 5 }
  0xa1   : > { %v1306_v55 = vrot.slane %v1304_v28, 4  ;;  %v5296_v1 = vrot.slane %v1246_v15, 9  ;;  %v7501_v29 = vsel %vm7133_vm7, %v5295_v35, %v1304_v28  ;;  %v1320_v25 = vrot.slane %v1318_v12, 4  ;;  %v5619_v24 = vld [vmem:[%s6881_s5 + $0x18] sm:$0xf] }
  0xa2   : > { %v1299_v57 = vrot.slane %v1297_v48, 4  ;;  %8635 = vst [vmem:[#allocation5_spill] sm:$0xff] %v7479_v63  ;;  %v7497_v0 = vsel %vm7133_vm7, %v5294_v19, %v1297_v48  ;;  %v1328_v47 = vrot.slane %v6743_v59, 5  ;;  %v7538_v49 = vsel %vm787_vm0, %v7393_v7, 0  ;;  %v5620_v7 = vld [vmem:[%s6881_s5 + $0x1c] sm:$0xf] }
  0xa3   : > { %v7505_v53 = vsel %vm7133_vm7, %v1306_v55, %v1307_v37  ;;  %v7542_v34 = vsel %vm7133_vm7, %v5296_v1, %v1311_v4  ;;  %v6693_v37 = vld [vmem:[%s6881_s5 + $0x3c] sm:$0xff]   ;;  %v5299_v35 = vrot.slane %v1249_v8, 9  ;;  %v6744_v55 = vld [vmem:[%s6881_s5 + $0x44] sm:$0x1]  ;;  %v3673_v8 = vshll.u32 %v5619_v24, 16 }
  0xa4   : > { %v7516_v23 = vsel %vm7133_vm7, %v1299_v57, %v1300_v50  ;;  %v1251_v50 = vld [vmem:[%s6881_s5 + $0x54] sm:$0xe]  ;;  %v1335_v15 = vrot.slane %v6744_v55, 5  ;;  %v5623_v39 = vld [vmem:[%s6881_s5 + $0x28] sm:$0xf] }
  0xa5   : > { %v6751_v5 = vld [vmem:[%s6881_s5 + $0x70] sm:$0xf] }
  0xa6   : > { %6276 = vmatmul.mubr.msk.bf16.gmra.mrb[24].mxu0 %vm738_vm3, %v5535_v2  ;;  %v1247_v2 = vld [vmem:[%s6881_s5 + $0x24] sm:$0xe]  ;;  %v1360_v30 = vrot.slane %v6751_v5, 5 }
  0xa7   : > { %6124 = vmatmul.mubr.msk.bf16.gmra.mrb[8].mxu1 %vm738_vm3, %v5267_v10  ;;  %6279 = vmatprep.mubr.msk.bf16.mxu0 %vm738_vm3, %v5536_v11  ;;  %v1325_v10 = vrot.slane %v7419_v26, 5  ;;  %v6691_v11 = vld [vmem:[%s6881_s5 + $0x30] sm:$0xff]   ;;  %v5297_v21 = vrot.slane %v1247_v2, 9 }
  0xa8   : > { %6127 = vmatprep.mubr.msk.bf16.mxu1 %vm738_vm3, %v5268_v18  ;;  %v7512_v26 = vld [vmem:[%s8611_s1 + $0x10] sm:$0x3]  ;;  %v1313_v18 = vrot.slane %v1311_v4, 4  ;;  %v1362_v48 = vrot.slane %v1360_v30, 4 }
  0xa9   : > { %v1327_v45 = vrot.slane %v1325_v10, 4  ;;  %v7549_v19 = vsel %vm7133_vm7, %v5297_v21, %v1318_v12  ;;  %v3683_v21 = vshrl.u32 %v5620_v7, 16 }
  0xaa   : > { %v7558_v4 = vsel %vm7133_vm7, %v1313_v18, %v1314_v22  ;;  %v3670_v22 = vshrl.u32 %v5619_v24, 16  ;;  %v3679_v18 = vshll.u32 %v5620_v7, 16  ;;  %v5622_v24 = vld [vmem:[%s6881_s5 + $0x24] sm:$0xf] }
  0xab   : > { %v7571_v1 = vsel %vm7133_vm7, %v1327_v45, %v1328_v47 }
  0xac   : > { %v3672_v43 = vrot.slane %v3670_v22, 4  ;;  %v7613_v7 = vrot.slane %v3679_v18, 5  ;;  %v3697_v22 = vshll.u32 %v5622_v24, 16  ;;  %v3707_v18 = vshrl.u32 %v5623_v39, 16 }
  0xae   : > { %6280 = vmatmul.mubr.msk.bf16.gmra.mrb[28].mxu0 %vm738_vm3, %v5537_v40  ;;  %v6742_v40 = vld [vmem:[%s6881_s5 + $0x2c] sm:$0x1]  ;;  %v3699_v27 = vrot.slane %v3697_v22, 5 }
  0xaf   : > { %6128 = vmatmul.mubr.msk.bf16.gmra.mrb[12].mxu1 %vm738_vm3, %v5269_v60  ;;  %6285 = vmatprep.mubr.msk.bf16.mxu0 %vm738_vm3, %v6687_v20  ;;  %v1321_v28 = vrot.slane %v6742_v40, 5  ;;  %v1332_v60 = vrot.slane %v7439_v17, 5  ;;  %v6747_v40 = vld [vmem:[%s6881_s5 + $0x50] sm:$0x1]  ;;  %v6752_v17 = vld [vmem:[%s6881_s5 + $0x74] sm:$0x1] }
  0xb0   : > { %6131 = vmatprep.mubr.msk.bf16.mxu1 %vm738_vm3, %v5270_v44  ;;  %v5298_v44 = vrot.slane %v1248_v41, 9  ;;  %v5301_v41 = vrot.slane %v1251_v50, 9  ;;  %v1252_v50 = vld [vmem:[%s6881_s5 + $0x60] sm:$0xe]  ;;  %v5624_v20 = vld [vmem:[%s6881_s5 + $0x2c] sm:$0x1] }
  0xb1   : > { %v1334_v12 = vrot.slane %v1332_v60, 4  ;;  %v7584_v45 = vsel %vm7133_vm7, %v5299_v35, %v1332_v60  ;;  %v6748_v35 = vld [vmem:[%s6881_s5 + $0x5c] sm:$0x1] }
  0xb2   : > { %v7567_v2 = vsel %vm7133_vm7, %v5298_v44, %v1325_v10  ;;  %v1349_v55 = vrot.slane %v6748_v35, 5  ;;  %v1253_v35 = vld [vmem:[%s6881_s5 + $0x6c] sm:$0xe] }
  0xb3   : > { %v7588_v59 = vsel %vm7133_vm7, %v1334_v12, %v1335_v15  ;;  %v6749_v15 = vld [vmem:[%s6881_s5 + $0x64] sm:$0xf]  ;;  %v3685_v12 = vrot.slane %v3683_v21, 4  ;;  %v5303_v5 = vrot.slane %v1253_v35, 9 }
  0xb4   : > { %v6699_v21 = vld [vmem:[%s6881_s5 + $0x60] sm:$0xff]  }
  0xb6   : > { %6286 = vmatmul.mubr.msk.bf16.vlgmr.msra.gmra.mrb[0].mxu0 %vm738_vm3, %v6689_v62  ;;  %v6745_v62 = vld [vmem:[%s6881_s5 + $0x4c] sm:$0xf] }
  0xb7   : > { %6132 = vmatmul.mubr.msk.bf16.gmra.mrb[16].mxu1 %vm738_vm3, %v5271_v58  ;;  %6318 = vmatpush3.bf16.msra.mxu0 %v4152_v54  ;;  %v1339_v57 = vrot.slane %v6745_v62, 5  ;;  %v7562_v58 = vsel %vm7133_vm7, %v1320_v25, %v1321_v28  ;;  %v5300_v54 = vrot.slane %v1250_v31, 9  ;;  %v1342_v28 = vrot.slane %v6747_v40, 5 }
  0xb8   : > { %6135 = vmatprep.mubr.msk.bf16.mxu1 %vm738_vm3, %v5272_v61  ;;  %6289 = vmatprep.mubr.msk.bf16.mxu0 %vm738_vm3, %v6691_v11  ;;  %v6695_v61 = vld [vmem:[%s6881_s5 + $0x48] sm:$0xff]   ;;  %v6746_v11 = vld [vmem:[%s6881_s5 + $0x58] sm:$0xf]  ;;  %v1353_v62 = vrot.slane %v6749_v15, 5  ;;  %v5626_v15 = vld [vmem:[%s6881_s5 + $0x34] sm:$0xf] }
  0xb9   : > { %6652 = vmatprep.subr.msk.bf16.mxu0 %vm787_vm0, %v7512_v26  ;;  %v1346_v16 = vrot.slane %v6746_v11, 5  ;;  %v1341_v31 = vrot.slane %v1339_v57, 4  ;;  %v7592_v47 = vsel %vm7133_vm7, %v5300_v54, %v1339_v57  ;;  %v5621_v57 = vld [vmem:[%s6881_s5 + $0x20] sm:$0x1]  ;;  %v5625_v54 = vld [vmem:[%s6881_s5 + $0x30] sm:$0xf] }
  0xba   : > { %v5302_v11 = vrot.slane %v1252_v50, 9  ;;  %v3721_v50 = vshll.u32 %v5625_v54, 16  ;;  %v3689_v25 = vshll.u32 %v5621_v57, 16  ;;  %v3727_v36 = vshll.u32 %v5626_v15, 16 }
  0xbb   : > { %v7603_v60 = vsel %vm7133_vm7, %v5301_v41, %v1346_v16  ;;  %v7619_v41 = vsel %vm7133_vm7, %v1341_v31, %v1342_v28  ;;  %v1355_v31 = vrot.slane %v1353_v62, 4  ;;  %v3718_v28 = vshrl.u32 %v5625_v54, 16 }
  0xbc   : > { %v7661_v35 = vrot.slane %v3727_v36, 5 }
  0xbe   : > { %6290 = vmatmul.mubr.msk.bf16.gmra.mrb[4].mxu0 %vm738_vm3, %v6693_v37  ;;  %v1348_v37 = vrot.slane %v1346_v16, 4  ;;  %v6750_v16 = vld [vmem:[%s6881_s5 + $0x68] sm:$0x1] }
  0xbf   : > { %6136 = vmatmul.mubr.msk.bf16.gmra.mrb[20].mxu1 %vm738_vm3, %v5273_v6  ;;  %6293 = vmatprep.mubr.msk.bf16.mxu0 %vm738_vm3, %v6695_v61  ;;  %v3675_v6 = vrot.slane %v3673_v8, 5  ;;  %v6697_v61 = vld [vmem:[%s6881_s5 + $0x54] sm:$0xff]   ;;  %v1356_v40 = vrot.slane %v6750_v16, 5  ;;  %v3703_v8 = vshll.u32 %v5623_v39, 16  ;;  %v3686_v16 = vor.u32 %v3685_v12, %v7613_v7 }
  0xc0   : > { %6139 = vmatprep.mubr.msk.bf16.mxu1 %vm738_vm3, %v5274_v9  ;;  %v3694_v9 = vshrl.u32 %v5622_v24, 16  ;;  %v7628_v44 = vsel %vm7133_vm7, %v1348_v37, %v1349_v55  ;;  %v1363_v24 = vrot.slane %v6752_v17, 5  ;;  %v3731_v39 = vshrl.u32 %v5626_v15, 16 }
  0xc1   : > { %v3676_v10 = vor.u32 %v3675_v6, %v3672_v43  ;;  %v7634_v37 = vrot.slane %v3703_v8, 5  ;;  %v3709_v55 = vrot.slane %v3707_v18, 4  ;;  %v8636_v43 = vcombine.low %v7238_v52, %v7249_v46  ;;  %v6753_v8 = vld [vmem:[%s6881_s5 + $0x7c] sm:$0xf]  ;;  %v7670_v18 = vld [vmem:[%s6881_s5 + $0x38] sm:$0x1] }
  0xc2   : > { %v3696_v38 = vrot.slane %v3694_v9, 4  ;;  %v7643_v17 = vsel %vm7133_vm7, %v5302_v11, %v1353_v62  ;;  %v7647_v57 = vsel %vm7133_vm7, %v1355_v31, %v1356_v40  ;;  %v3720_v6 = vrot.slane %v3718_v28, 4  ;;  %8638 = vst [vmem:[#allocation6_spill] sm:$0xff] %v7670_v18 }
  0xc3   : > { %v3723_v12 = vrot.slane %v3721_v50, 5  ;;  %v8637_v52 = vcombine.low %v7270_v33, %v7275_v56  ;;  %v3677_v46 = vrot.slane %v3676_v10, 4  ;;  %v3687_v54 = vrot.slane %v3686_v16, 4  ;;  %v6701_v33 = vld [vmem:[%s6881_s5 + $0x6c] sm:$0xff]   ;;  %v1255_v16 = vld [vmem:[%s6881_s5 + $0x84] sm:$0xe] }
  0xc4   : > { %v3713_v62 = vshll.u32 %v5624_v20, 16  ;;  %v7655_v11 = vsel %vm7133_vm7, %v5303_v5, %v1360_v30  ;;  %v7659_v40 = vsel %vm7133_vm7, %v1362_v48, %v1363_v24  ;;  %v3733_v9 = vrot.slane %v3731_v39, 4  ;;  %v6702_v48 = vld [vmem:[%s6881_s5 + $0x78] sm:$0xff]  }
  0xc5   : > { %v3700_v10 = vor.u32 %v3699_v27, %v3696_v38  ;;  %v3710_v20 = vor.u32 %v3709_v55, %v7634_v37  ;;  %v1367_v30 = vrot.slane %v6753_v8, 5  ;;  %v3724_v38 = vor.u32 %v3723_v12, %v3720_v6  ;;  %v5628_v5 = vld [vmem:[%s6881_s5 + $0x3c] sm:$0xf] }
  0xc6   : > { %6294 = vmatmul.mubr.msk.bf16.gmra.mrb[8].mxu0 %vm738_vm3, %v6697_v61  ;;  %v3691_v61 = vrot.slane %v3689_v25, 5  ;;  %v1254_v25 = vld [vmem:[%s6881_s5 + $0x78] sm:$0xe]  ;;  %v7686_v50 = vrot.slane %v3713_v62, 5  ;;  %v3734_v39 = vor.u32 %v3733_v9, %v7661_v35  ;;  %v3737_v55 = vshll.u32 %v7670_v18, 16 }
  0xc7   : > { %6140 = vmatmul.mubr.msk.bf16.gmra.mrb[24].mxu1 %vm738_vm3, %v8636_v43  ;;  %6297 = vmatprep.mubr.msk.bf16.mxu0 %vm738_vm3, %v6699_v21  ;;  %v3682_v21 = vsel %vm6907_vm4, %v3677_v46, %v7613_v7  ;;  %v5304_v24 = vrot.slane %v1254_v25, 9  ;;  %v6754_v43 = vld [vmem:[%s6881_s5 + $0x88] sm:$0xf]  ;;  %v7694_v7 = vld [vmem:[%s6881_s5 + $0x40] sm:$0xf]  ;;  %v3701_v12 = vrot.slane %v3700_v10, 4  ;;  %v8640_v62 = vcombine.low %v7290_v14, %v7299_v42 }
  0xc8   : > { %6143 = vmatprep.mubr.msk.bf16.mxu1 %vm738_vm3, %v8637_v52  ;;  %v3692_v31 = vsel %vm6907_vm4, %v3687_v54, %v3691_v61  ;;  %v1374_v6 = vrot.slane %v6754_v43, 5  ;;  %8639 = vst [vmem:[#allocation7_spill] sm:$0xff] %v7694_v7  ;;  %v3711_v52 = vrot.slane %v3710_v20, 4  ;;  %v1369_v46 = vrot.slane %v1367_v30, 4  ;;  %v6755_v54 = vld [vmem:[%s6881_s5 + $0x80] sm:$0x1] }
  0xc9   : > { %v1370_v61 = vrot.slane %v6755_v54, 5  ;;  %v3725_v9 = vrot.slane %v3724_v38, 4  ;;  %v5305_v25 = vrot.slane %v1255_v16, 9  ;;  %v3742_v8 = vshrl.u32 %v5628_v5, 16  ;;  %v6703_v10 = vld [vmem:[%s6881_s5 + $0x84] sm:$0xff]  }
  0xca   : > { %v3745_v43 = vshll.u32 %v5628_v5, 16  ;;  %v7708_v20 = vcombine.low %v3682_v21, %v3692_v31  ;;  %v7712_v14 = vsel %vm787_vm0, %v7512_v26, 0  ;;  %v3755_v38 = vshrl.u32 %v7694_v7, 16  ;;  %v6704_v21 = vld [vmem:[%s6881_s5 + $0x90] sm:$0xff]   ;;  %v6760_v18 = vld [vmem:[%s6881_s5 + $0xa0] sm:$0xf] }
  0xcb   : > { %v3735_v16 = vrot.slane %v3734_v39, 4  ;;  %v3739_v5 = vrot.slane %v3737_v55, 5  ;;  %v1376_v54 = vrot.slane %v1374_v6, 4  ;;  %v3706_v31 = vsel %vm6907_vm4, %v3701_v12, %v7634_v37 }
  0xcc   : > { %v3716_v26 = vsel %vm6907_vm4, %v3711_v52, %v7686_v50  ;;  %v7727_v39 = vsel %vm7133_vm7, %v5304_v24, %v1367_v30  ;;  %v7731_v55 = vsel %vm7133_vm7, %v1369_v46, %v1370_v61  ;;  %v3730_v37 = vsel %vm6907_vm4, %v3725_v9, %v7661_v35  ;;  %v5634_v30 = vld [vmem:[%s6881_s5 + $0x54] sm:$0xf]  ;;  %v7748_v24 = vld [vmem:[%s6881_s5 + $0x58] sm:$0xf]  ;;  %v7753_v61 = vld [vmem:[%s6881_s5 + $0x90] sm:$0xe] }
  0xcd   : > { %v7744_v12 = vsel %vm7133_vm7, %v5305_v25, %v1374_v6  ;;  %v3744_v50 = vrot.slane %v3742_v8, 4  ;;  %v3747_v52 = vrot.slane %v3745_v43, 5  ;;  %v3757_v46 = vrot.slane %v3755_v38, 4 }
  0xce   : > { %6298 = vmatmul.mubr.msk.bf16.gmra.mrb[12].mxu0 %vm738_vm3, %v6701_v33  ;;  %v8641_v33 = vcombine.low %v7497_v0, %v7516_v23  ;;  %v6756_v0 = vld [vmem:[%s6881_s5 + $0x8c] sm:$0x1]  ;;  %v3740_v36 = vsel %vm6907_vm4, %v3735_v16, %v3739_v5  ;;  %v3790_v25 = vshrl.u32 %v5634_v30, 16  ;;  %v3793_v8 = vshll.u32 %v5634_v30, 16 }
  0xcf   : > { %6144 = vmatmul.mubr.msk.bf16.gmra.mrb[28].mxu1 %vm738_vm3, %v8640_v62  ;;  %6301 = vmatprep.mubr.msk.bf16.mxu0 %vm738_vm3, %v6702_v48  ;;  %v3751_v48 = vshll.u32 %v7694_v7, 16  ;;  %v1377_v23 = vrot.slane %v6756_v0, 5  ;;  %v5631_v62 = vld [vmem:[%s6881_s5 + $0x48] sm:$0xf]  ;;  %v7737_v0 = vld [vmem:[%s6881_s5 + $0x4c] sm:$0xf]  ;;  %v8643_v38 = vcombine.low %v7501_v29, %v7505_v53  ;;  %v7771_v16 = vcombine.low %v3706_v31, %v3716_v26 }
  0xd0   : > { %6149 = vmatprep.mubr.msk.bf16.mxu1 %vm738_vm3, %v8641_v33  ;;  %v7734_v33 = vld [vmem:[%s6881_s5 + $0x44] sm:$0x1]  ;;  %v3766_v27 = vshrl.u32 %v5631_v62, 16  ;;  %v3769_v15 = vshll.u32 %v5631_v62, 16  ;;  %v3775_v6 = vshll.u32 %v7737_v0, 16  ;;  %v3779_v9 = vshrl.u32 %v7737_v0, 16 }
  0xd1   : > { %8642 = vst [vmem:[#allocation8_spill] sm:$0xff] %v7734_v33  ;;  %v7750_v28 = vrot.slane %v3751_v48, 5  ;;  %v7759_v35 = vsel %vm7133_vm7, %v1376_v54, %v1377_v23  ;;  %v3799_v43 = vshll.u32 %v7748_v24, 16  ;;  %v3803_v48 = vshrl.u32 %v7748_v24, 16  ;;  %v5637_v31 = vld [vmem:[%s6881_s5 + $0x60] sm:$0xf] }
  0xd2   : > { %v3761_v5 = vshll.u32 %v7734_v33, 16  ;;  %v5306_v54 = vrot.slane %v7753_v61, 9  ;;  %v8644_v23 = vcombine.low %v7542_v34, %v7558_v4  ;;  %v7782_v29 = vcombine.low %v3730_v37, %v3740_v36  ;;  %v6705_v26 = vld [vmem:[%s6881_s5 + $0x9c] sm:$0xff]   ;;  %v6706_v30 = vld [vmem:[%s6881_s5 + $0xa8] sm:$0xff]  }
  0xd3   : > { %v3748_v53 = vor.u32 %v3747_v52, %v3744_v50  ;;  %v3768_v62 = vrot.slane %v3766_v27, 4  ;;  %v7793_v34 = vrot.slane %v3775_v6, 5  ;;  %v3781_v4 = vrot.slane %v3779_v9, 4  ;;  %v6757_v36 = vld [vmem:[%s8611_s1 + $0x8] sm:$0x3] }
  0xd4   : > { %v3792_v27 = vrot.slane %v3790_v25, 4  ;;  %v3795_v37 = vrot.slane %v3793_v8, 5  ;;  %v7802_v50 = vrot.slane %v3799_v43, 5  ;;  %v3805_v52 = vrot.slane %v3803_v48, 4  ;;  %v6758_v6 = vld [vmem:[%s6881_s5 + $0x94] sm:$0xf] }
  0xd5   : > { %v7808_v9 = vld [vmem:[%s6881_s5 + $0x64] sm:$0xf]  ;;  %v3814_v61 = vshrl.u32 %v5637_v31, 16  ;;  %v7810_v22 = vrot.slane %v3748_v53, 4  ;;  %v1388_v25 = vrot.slane %v6760_v18, 5  ;;  %v3782_v43 = vor.u32 %v3781_v4, %v7793_v34 }
  0xd6   : > { %6302 = vmatmul.mubr.msk.bf16.gmra.mrb[16].mxu0 %vm738_vm3, %v6703_v10  ;;  %8645 = vst [vmem:[#allocation9_spill] sm:$0xff] %v7808_v9  ;;  %v3817_v10 = vshll.u32 %v5637_v31, 16  ;;  %v3796_v31 = vor.u32 %v3795_v37, %v3792_v27  ;;  %v3806_v53 = vor.u32 %v3805_v52, %v7802_v50  ;;  %v8646_v18 = vcombine.low %v7549_v19, %v7562_v58  ;;  %v6707_v37 = vld [vmem:[%s6881_s5 + $0xb4] sm:$0xff]  }
  0xd7   : > { %6150 = vmatmul.mubr.msk.bf16.vlgmr.msra.gmra.mrb[0].mxu1 %vm738_vm3, %v8643_v38  ;;  %6305 = vmatprep.mubr.msk.bf16.mxu0 %vm738_vm3, %v6704_v21  ;;  %v3771_v21 = vrot.slane %v3769_v15, 5  ;;  %v7791_v38 = vld [vmem:[%s6881_s5 + $0x50] sm:$0x1]  ;;  %v7800_v15 = vld [vmem:[%s6881_s5 + $0x5c] sm:$0x1]  ;;  %v8647_v27 = vcombine.low %v7567_v2, %v7571_v1  ;;  %v1390_v52 = vrot.slane %v1388_v25, 4 }
  0xd8   : > { %6182 = vmatpush3.bf16.msra.mxu1 %v7538_v49  ;;  %6153 = vmatprep.mubr.msk.bf16.mxu1 %vm738_vm3, %v8644_v23  ;;  %v3758_v49 = vor.u32 %v3757_v46, %v7750_v28  ;;  %v7804_v46 = vrot.slane %v3761_v5, 5  ;;  %v1381_v23 = vrot.slane %v6758_v6, 5  ;;  %v3785_v48 = vshll.u32 %v7791_v38, 16  ;;  %v1257_v5 = vld [vmem:[%s6881_s5 + $0x9c] sm:$0xe] }
  0xd9   : > { %6648 = vmatprep.subr.msk.bf16.mxu1 %vm787_vm0, %v6757_v36  ;;  %v6759_v36 = vld [vmem:[%s6881_s5 + $0x98] sm:$0x1]  ;;  %v3772_v7 = vor.u32 %v3771_v21, %v3768_v62  ;;  %v3809_v6 = vshll.u32 %v7800_v15, 16  ;;  %v3827_v62 = vshrl.u32 %v7808_v9, 16  ;;  %v3819_v4 = vrot.slane %v3817_v10, 5 }
  0xda   : > { %v1384_v33 = vrot.slane %v6759_v36, 5  ;;  %v3759_v8 = vrot.slane %v3758_v49, 4  ;;  %v3823_v36 = vshll.u32 %v7808_v9, 16  ;;  %v7829_v21 = vsel %vm7133_vm7, %v5306_v54, %v1381_v23  ;;  %v7840_v2 = vld [vmem:[%s6881_s5 + $0x68] sm:$0x1] }
  0xdb   : > { %v3816_v49 = vrot.slane %v3814_v61, 4  ;;  %v3773_v19 = vrot.slane %v3772_v7, 4  ;;  %v5307_v58 = vrot.slane %v1257_v5, 9  ;;  %v3783_v3 = vrot.slane %v3782_v43, 4  ;;  %8648 = vst [vmem:[#allocation10_spill] sm:$0xff] %v7840_v2  ;;  %v6708_v5 = vld [vmem:[%s6881_s5 + $0xc0] sm:$0xff]  }
  0xdc   : > { %v3787_v54 = vrot.slane %v3785_v48, 5  ;;  %v3811_v63 = vrot.slane %v3809_v6, 5  ;;  %v1395_v61 = vrot.slane %v7275_v56, 5  ;;  %v3797_v10 = vrot.slane %v3796_v31, 4  ;;  %v1259_v31 = vld [vmem:[%s6881_s5 + $0xb4] sm:$0xe] }
  0xdd   : > { %v3807_v51 = vrot.slane %v3806_v53, 4  ;;  %v7842_v1 = vrot.slane %v3823_v36, 5  ;;  %v3829_v7 = vrot.slane %v3827_v62, 4  ;;  %v3754_v43 = vsel %vm6907_vm4, %v7810_v22, %v7750_v28  ;;  %v6762_v62 = vld [vmem:[%s6881_s5 + $0xb0] sm:$0x1] }
  0xde   : > { %6306 = vmatmul.mubr.msk.bf16.gmra.mrb[20].mxu0 %vm738_vm3, %v6705_v26  ;;  %v1383_v26 = vrot.slane %v1381_v23, 4  ;;  %v1258_v23 = vld [vmem:[%s6881_s5 + $0xa8] sm:$0xe]  ;;  %v3764_v48 = vsel %vm6907_vm4, %v3759_v8, %v7804_v46  ;;  %v3820_v6 = vor.u32 %v3819_v4, %v3816_v49  ;;  %v3778_v53 = vsel %vm6907_vm4, %v3773_v19, %v7793_v34  ;;  %v5640_v46 = vld [vmem:[%s6881_s5 + $0x6c] sm:$0xf] }
  0xdf   : > { %6154 = vmatmul.mubr.msk.bf16.gmra.mrb[4].mxu1 %vm738_vm3, %v8646_v18  ;;  %6309 = vmatprep.mubr.msk.bf16.mxu0 %vm738_vm3, %v6706_v30  ;;  %v6761_v18 = vld [vmem:[%s6881_s5 + $0xa4] sm:$0x1]  ;;  %v7862_v36 = vsel %vm7133_vm7, %v5307_v58, %v1388_v25  ;;  %v5308_v28 = vrot.slane %v1258_v23, 9  ;;  %v1397_v8 = vrot.slane %v1395_v61, 4  ;;  %v3833_v49 = vshll.u32 %v7840_v2, 16 }
  0xe0   : > { %6157 = vmatprep.mubr.msk.bf16.mxu1 %vm738_vm3, %v8647_v27  ;;  %v1391_v30 = vrot.slane %v6761_v18, 5  ;;  %v7854_v56 = vsel %vm7133_vm7, %v1383_v26, %v1384_v33  ;;  %v3788_v33 = vsel %vm6907_vm4, %v3783_v3, %v3787_v54  ;;  %v1398_v26 = vrot.slane %v6762_v62, 5  ;;  %v5643_v18 = vld [vmem:[%s6881_s5 + $0x78] sm:$0xf]  ;;  %v7917_v54 = vld [vmem:[%s6881_s5 + $0xbc] sm:$0x1] }
  0xe1   : > { %v3802_v34 = vsel %vm6907_vm4, %v3797_v10, %v7802_v50  ;;  %v3812_v25 = vsel %vm6907_vm4, %v3807_v51, %v3811_v63  ;;  %v3830_v4 = vor.u32 %v3829_v7, %v7842_v1  ;;  %v5309_v27 = vrot.slane %v1259_v31, 9  ;;  %v7891_v51 = vld [vmem:[%s6881_s5 + $0x70] sm:$0xf]  ;;  %v7921_v10 = vld [vmem:[%s6881_s5 + $0x7c] sm:$0xf] }
  0xe2   : > { %v7866_v22 = vsel %vm7133_vm7, %v1390_v52, %v1391_v30  ;;  %v8650_v3 = vcombine.low %v7584_v45, %v7588_v59  ;;  %v7887_v19 = vrot.slane %v3820_v6, 4  ;;  %v1402_v50 = vrot.slane %v7299_v42, 5  ;;  %8651 = vst [vmem:[#allocation12_spill] sm:$0xff] %v7891_v51  ;;  %8653 = vst [vmem:[#allocation13_spill] sm:$0xff] %v7921_v10  ;;  %v5646_v7 = vld [vmem:[%s6881_s5 + $0x84] sm:$0xf] }
  0xe3   : > { %8649 = vst [vmem:[#allocation11_spill] sm:$0xff] %v7866_v22  ;;  %v3838_v63 = vshrl.u32 %v5640_v46, 16  ;;  %v8652_v45 = vcombine.low %v7592_v47, %v7619_v41  ;;  %v7899_v58 = vcombine.low %v3778_v53, %v3788_v33  ;;  %v7905_v42 = vsel %vm7133_vm7, %v5308_v28, %v1395_v61  ;;  %v6709_v61 = vld [vmem:[%s6881_s5 + $0xcc] sm:$0xff]   ;;  %v7933_v31 = vld [vmem:[%s6881_s5 + $0x88] sm:$0xf] }
  0xe4   : > { %v7908_v30 = vcombine.low %v3802_v34, %v3812_v25  ;;  %v7912_v47 = vsel %vm7133_vm7, %v1397_v8, %v1398_v26  ;;  %v7914_v41 = vrot.slane %v3833_v49, 5  ;;  %v3847_v6 = vshll.u32 %v7891_v51, 16  ;;  %8654 = vst [vmem:[#allocation14_spill] sm:$0xff] %v7933_v31  ;;  %v5649_v62 = vld [vmem:[%s6881_s5 + $0x90] sm:$0xf] }
  0xe5   : > { %v7939_v28 = vrot.slane %v1402_v50, 4  ;;  %v7941_v33 = vrot.slane %v3838_v63, 4  ;;  %v3851_v8 = vshrl.u32 %v7891_v51, 16  ;;  %v3862_v26 = vshrl.u32 %v5643_v18, 16  ;;  %v7948_v25 = vld [vmem:[%s6881_s5 + $0x94] sm:$0xf] }
  0xe6   : > { %6310 = vmatmul.mubr.msk.bf16.gmra.mrb[24].mxu0 %vm738_vm3, %v6707_v37  ;;  %v7885_v37 = vcombine.low %v3754_v43, %v3764_v48  ;;  %v7929_v43 = vsel %vm7133_vm7, %v5309_v27, %v1402_v50  ;;  %v3841_v48 = vshll.u32 %v5640_v46, 16  ;;  %v3865_v49 = vshll.u32 %v5643_v18, 16  ;;  %8655 = vst [vmem:[#allocation15_spill] sm:$0xff] %v7948_v25  ;;  %v7986_v2 = vld [vmem:[%s6881_s5 + $0x8c] sm:$0x1] }
  0xe7   : > { %6158 = vmatmul.mubr.msk.bf16.gmra.mrb[8].mxu1 %vm738_vm3, %v8650_v3  ;;  %6313 = vmatprep.mubr.msk.bf16.mxu0 %vm738_vm3, %v6708_v5  ;;  %v7925_v5 = vrot.slane %v3830_v4, 4  ;;  %v3871_v46 = vshll.u32 %v7921_v10, 16  ;;  %v3875_v34 = vshrl.u32 %v7921_v10, 16  ;;  %v3886_v4 = vshrl.u32 %v5646_v7, 16 }
  0xe8   : > { %6161 = vmatprep.mubr.msk.bf16.mxu1 %vm738_vm3, %v8652_v45  ;;  %v3889_v27 = vshll.u32 %v5646_v7, 16  ;;  %v3895_v3 = vshll.u32 %v7933_v31, 16  ;;  %v3899_v50 = vshrl.u32 %v7933_v31, 16  ;;  %v7958_v45 = vld [vmem:[%s6881_s5 + $0x74] sm:$0x1]  ;;  %v3843_v18 = vrot.slane %v3841_v48, 5 }
  0xe9   : > { %v3910_v52 = vshrl.u32 %v5649_v62, 16  ;;  %v3913_v53 = vshll.u32 %v5649_v62, 16  ;;  %v8656_v7 = vcombine.low %v7603_v60, %v7628_v44  ;;  %v3853_v59 = vrot.slane %v3851_v8, 4  ;;  %v5652_v48 = vld [vmem:[%s6881_s5 + $0x9c] sm:$0xf] }
  0xea   : > { %v3919_v63 = vshll.u32 %v7948_v25, 16  ;;  %v3923_v23 = vshrl.u32 %v7948_v25, 16  ;;  %v8657_v62 = vcombine.low %v7643_v17, %v7647_v57  ;;  %v7976_v44 = vld [vmem:[%s6881_s5 + $0x80] sm:$0x1]  ;;  %v3864_v60 = vrot.slane %v3862_v26, 4 }
  0xeb   : > { %8658 = vst [vmem:[#allocation16_spill] sm:$0xff] %v7976_v44  ;;  %v3888_v31 = vrot.slane %v3886_v4, 4  ;;  %v3891_v8 = vrot.slane %v3889_v27, 5  ;;  %v7980_v10 = vrot.slane %v3895_v3, 5  ;;  %v3901_v51 = vrot.slane %v3899_v50, 4 }
  0xec   : > { %v7983_v25 = vld [vmem:[%s6881_s5 + $0xa0] sm:$0xf]  ;;  %v3912_v17 = vrot.slane %v3910_v52, 4  ;;  %v3915_v57 = vrot.slane %v3913_v53, 5  ;;  %v3937_v9 = vshll.u32 %v5652_v48, 16  ;;  %v3844_v26 = vor.u32 %v3843_v18, %v7941_v33 }
  0xed   : > { %v3881_v27 = vshll.u32 %v7976_v44, 16  ;;  %v7995_v3 = vld [vmem:[%s6881_s5 + $0x98] sm:$0x1]  ;;  %v3943_v50 = vshll.u32 %v7983_v25, 16  ;;  %v3947_v52 = vshrl.u32 %v7983_v25, 16  ;;  %v3892_v22 = vor.u32 %v3891_v8, %v3888_v31 }
  0xee   : > { %6314 = vmatmul.mubr.msk.bf16.gmra.mrb[28].mxu0 %vm738_vm3, %v6709_v61  ;;  %v7966_v61 = vrot.slane %v3847_v6, 5  ;;  %v3877_v6 = vrot.slane %v3875_v34, 4  ;;  %v3925_v34 = vrot.slane %v3923_v23, 4  ;;  %v3905_v33 = vshll.u32 %v7986_v2, 16 }
  0xef   : > { %6162 = vmatmul.mubr.msk.bf16.gmra.mrb[12].mxu1 %vm738_vm3, %v8656_v7  ;;  %6319 = vmatprep.mubr.msk.bf16.mxu0 %vm738_vm3, %v7708_v20  ;;  %v3867_v7 = vrot.slane %v3865_v49, 5  ;;  %v7978_v20 = vrot.slane %v3871_v46, 5  ;;  %v3857_v49 = vshll.u32 %v7958_v45, 16  ;;  %v7990_v46 = vrot.slane %v3919_v63, 5 }
  0xf0   : > { %6165 = vmatprep.mubr.msk.bf16.mxu1 %vm738_vm3, %v8657_v62  ;;  %v3934_v62 = vshrl.u32 %v5652_v48, 16  ;;  %v3854_v4 = vor.u32 %v3853_v59, %v7966_v61  ;;  %v3902_v23 = vor.u32 %v3901_v51, %v7980_v10  ;;  %v3916_v59 = vor.u32 %v3915_v57, %v3912_v17  ;;  %v8028_v57 = vld [vmem:[%s6881_s5 + $0xa4] sm:$0x1] }
  0xf1   : > { %v3868_v53 = vor.u32 %v3867_v7, %v3864_v60  ;;  %v3878_v48 = vor.u32 %v3877_v6, %v7978_v20  ;;  %v3939_v18 = vrot.slane %v3937_v9, 5  ;;  %v8659_v44 = vcombine.low %v7655_v11, %v7659_v40 }
  0xf2   : > { %v3936_v63 = vrot.slane %v3934_v62, 4  ;;  %v8660_v31 = vrot.slane %v7917_v54, 5  ;;  %v3859_v51 = vrot.slane %v3857_v49, 5  ;;  %v3926_v60 = vor.u32 %v3925_v34, %v7990_v46  ;;  %v8031_v34 = vld [vmem:[%s6881_s5 + $0xac] sm:$0xf] }
  0xf3   : > { %v3929_v9 = vshll.u32 %v7995_v3, 16  ;;  %v8661_v11 = vcombine.low %v7727_v39, %v7731_v55  ;;  %v3845_v40 = vrot.slane %v3844_v26, 4  ;;  %v8024_v54 = vrot.slane %v3943_v50, 5 }
  0xf4   : > { %v3869_v7 = vrot.slane %v3868_v53, 4  ;;  %v3879_v6 = vrot.slane %v3878_v48, 4  ;;  %v3883_v8 = vrot.slane %v3881_v27, 5  ;;  %v3907_v17 = vrot.slane %v3905_v33, 5  ;;  %v8041_v48 = vld [vmem:[%s6881_s5 + $0xb0] sm:$0x1] }
  0xf5   : > { %v3893_v39 = vrot.slane %v3892_v22, 4  ;;  %v3903_v55 = vrot.slane %v3902_v23, 4  ;;  %v3917_v62 = vrot.slane %v3916_v59, 4  ;;  %v3940_v49 = vor.u32 %v3939_v18, %v3936_v63 }
  0xf6   : > { %6320 = vmatmul.mubr.msk.bf16.vlgmr.msra.gmra.mrb[0].mxu0 %vm738_vm3, %v7771_v16  ;;  %v8014_v16 = vsel %vm7133_vm7, %v7939_v28, %v8660_v31  ;;  %v3949_v28 = vrot.slane %v3947_v52, 4  ;;  %v3931_v26 = vrot.slane %v3929_v9, 5  ;;  %v3850_v52 = vsel %vm6907_vm4, %v3845_v40, %v7966_v61 }
  0xf7   : > { %6166 = vmatmul.mubr.msk.bf16.gmra.mrb[16].mxu1 %vm738_vm3, %v8659_v44  ;;  %6352 = vmatpush3.bf16.msra.mxu0 %v7712_v14  ;;  %v3855_v14 = vrot.slane %v3854_v4, 4  ;;  %v5655_v44 = vld [vmem:[%s6881_s5 + $0xa8] sm:$0xf]  ;;  %v3953_v22 = vshll.u32 %v8028_v57, 16  ;;  %v3874_v33 = vsel %vm6907_vm4, %v3869_v7, %v7978_v20  ;;  %v3884_v23 = vsel %vm6907_vm4, %v3879_v6, %v3883_v8 }
  0xf8   : > { %6169 = vmatprep.mubr.msk.bf16.mxu1 %vm738_vm3, %v8661_v11  ;;  %6323 = vmatprep.mubr.msk.bf16.mxu0 %vm738_vm3, %v7782_v29  ;;  %v3927_v29 = vrot.slane %v3926_v60, 4  ;;  %v3958_v4 = vshrl.u32 %v5655_v44, 16  ;;  %v3961_v50 = vshll.u32 %v5655_v44, 16  ;;  %v3950_v53 = vor.u32 %v3949_v28, %v8024_v54  ;;  %v5704_v11 = vld [vmem:[%s6881_s5 + $0x48] sm:$0xe] }
  0xf9   : > { %v3860_v27 = vsel %vm6907_vm4, %v3855_v14, %v3859_v51  ;;  %v3967_v59 = vshll.u32 %v8031_v34, 16  ;;  %v3971_v61 = vshrl.u32 %v8031_v34, 16  ;;  %v3898_v63 = vsel %vm6907_vm4, %v3893_v39, %v7980_v10  ;;  %v8106_v39 = vld [vmem:[%s6881_s5 + $0xb8] sm:$0xf] }
  0xfa   : > { %v3908_v18 = vsel %vm6907_vm4, %v3903_v55, %v3907_v17  ;;  %v3922_v20 = vsel %vm6907_vm4, %v3917_v62, %v7990_v46  ;;  %v3941_v31 = vrot.slane %v3940_v49, 4  ;;  %v8662_v51 = vcombine.low %v7744_v12, %v7759_v35 }
  0xfb   : > { %v3960_v10 = vrot.slane %v3958_v4, 4  ;;  %v3963_v60 = vrot.slane %v3961_v50, 5  ;;  %v3977_v9 = vshll.u32 %v8041_v48, 16  ;;  %v8663_v46 = vcombine.low %v7829_v21, %v7854_v56  ;;  %v5658_v21 = vld [vmem:[%s6881_s5 + $0xb4] sm:$0xf] }
  0xfc   : > { %v5325_v12 = vcombine.low %v7905_v42, %v7912_v47  ;;  %v8664_v35 = vsel %vm6907_vm4, %v7925_v5, %v7914_v41  ;;  %v3951_v14 = vrot.slane %v3950_v53, 4  ;;  %v3955_v28 = vrot.slane %v3953_v22, 5  ;;  %v5706_v4 = vld [vmem:[%s6881_s5 + $0x60] sm:$0xe]  ;;  %v5707_v53 = vld [vmem:[%s6881_s5 + $0x6c] sm:$0xe] }
  0xfd   : > { %v5326_v56 = vcombine.low %v7929_v43, %v8014_v16  ;;  %v8089_v44 = vcombine.low %v3850_v52, %v3860_v27  ;;  %v8091_v42 = vrot.slane %v3967_v59, 5  ;;  %v3973_v47 = vrot.slane %v3971_v61, 4  ;;  %v8673_v16 = vld [vmem:[#allocation4_spill] sm:$0xff] }
  0xfe   : > { %6324 = vmatmul.mubr.msk.bf16.gmra.mrb[4].mxu0 %vm738_vm3, %v7885_v37  ;;  %v3932_v37 = vsel %vm6907_vm4, %v3927_v29, %v3931_v26  ;;  %v8093_v41 = vcombine.low %v3874_v33, %v3884_v23  ;;  %v8095_v5 = vcombine.low %v3898_v63, %v3908_v18  ;;  %v3946_v6 = vsel %vm6907_vm4, %v3941_v31, %v8024_v54  ;;  %v8666_v23 = vld [vmem:[#allocation11_spill] sm:$0xff]  ;;  %v5661_v63 = vld [vmem:[%s6881_s5 + $0xc0] sm:$0xf]  ;;  %v8668_v18 = vld [vmem:[#allocation9_spill] sm:$0xff] }
  0xff   : > { %6170 = vmatmul.mubr.msk.bf16.gmra.mrb[20].mxu1 %vm738_vm3, %v8662_v51  ;;  %6327 = vmatprep.mubr.msk.bf16.mxu0 %vm738_vm3, %v7899_v58  ;;  %v8665_v58 = vsel %vm6907_vm4, %v7887_v19, %v7842_v1  ;;  %v8097_v7 = vcombine.low %v3922_v20, %v3932_v37  ;;  %v5720_v1 = vrot.slane %v5704_v11, 9  ;;  %v5705_v19 = vld [vmem:[%s6881_s5 + $0x54] sm:$0xe]  ;;  %v3964_v8 = vor.u32 %v3963_v60, %v3960_v10  ;;  %v8669_v31 = vld [vmem:[#allocation10_spill] sm:$0xff] }
 0x100   : > { %6173 = vmatprep.mubr.msk.bf16.mxu1 %vm738_vm3, %v8663_v46  ;;  %v5674_v40 = vcombine.low %v8665_v58, %v8664_v35  ;;  %v8103_v17 = vrot.slane %v3977_v9, 5  ;;  %v3982_v55 = vshrl.u32 %v5658_v21, 16  ;;  %v3956_v62 = vsel %vm6907_vm4, %v3951_v14, %v3955_v28  ;;  %v8670_v9 = vld [vmem:[#allocation12_spill] sm:$0xff]  ;;  %v8155_v35 = vld [vmem:[%s6881_s5 + $0xbc] sm:$0x1] }
 0x101   : > { %v3985_v49 = vshll.u32 %v5658_v21, 16  ;;  %v4441_v29 = vrot.slane %v7737_v0, 5  ;;  %v4444_v26 = vrot.slane %v7791_v38, 5  ;;  %v3974_v50 = vor.u32 %v3973_v47, %v8091_v42  ;;  %v8158_v58 = vld [vmem:[%s6881_s5 + $0xc4] sm:$0xf] }
 0x102   : > { %v5721_v52 = vrot.slane %v5705_v19, 9  ;;  %v4448_v54 = vrot.slane %v7748_v24, 5  ;;  %v4451_v27 = vrot.slane %v7800_v15, 5  ;;  %v3991_v22 = vshll.u32 %v8106_v39, 16  ;;  %v5708_v19 = vld [vmem:[%s6881_s5 + $0x78] sm:$0xe] }
 0x103   : > { %v3995_v33 = vshrl.u32 %v8106_v39, 16  ;;  %v8123_v0 = vsel %vm7133_vm7, %v5720_v1, %v4441_v29  ;;  %v4443_v38 = vrot.slane %v4441_v29, 4  ;;  %v8667_v59 = vcombine.low %v7862_v36, %v8666_v23  ;;  %v8671_v23 = vld [vmem:[#allocation13_spill] sm:$0xff] }
 0x104   : > { %v8130_v24 = vcombine.low %v3946_v6, %v3956_v62  ;;  %v8134_v15 = vsel %vm7133_vm7, %v5721_v52, %v4448_v54  ;;  %v5722_v61 = vrot.slane %v5706_v4, 9  ;;  %v4455_v20 = vrot.slane %v8668_v18, 5  ;;  %v6710_v6 = vld [vmem:[%s6881_s5 + $0xc] sm:$0xff]  }
 0x105   : > { %v8140_v36 = vsel %vm7133_vm7, %v4443_v38, %v4444_v26  ;;  %v4458_v51 = vrot.slane %v8669_v31, 5  ;;  %v5723_v37 = vrot.slane %v5707_v53, 9  ;;  %v4462_v11 = vrot.slane %v8670_v9, 5 }
 0x106   : > { %6328 = vmatmul.mubr.msk.bf16.gmra.mrb[8].mxu0 %vm738_vm3, %v7908_v30  ;;  %v4450_v30 = vrot.slane %v4448_v54, 4  ;;  %v5737_v10 = vcombine.low %v8123_v0, %v8140_v36  ;;  %v4465_v46 = vrot.slane %v7958_v45, 5  ;;  %v8164_v14 = vsel %vm7133_vm7, %v5722_v61, %v4455_v20 }
 0x107   : > { %6174 = vmatmul.mubr.msk.bf16.gmra.mrb[24].mxu1 %vm738_vm3, %v8667_v59  ;;  %6331 = vmatprep.mubr.msk.bf16.mxu0 %vm738_vm3, %v5674_v40  ;;  %v4457_v28 = vrot.slane %v4455_v20, 4  ;;  %v8166_v21 = vrot.slane %v3982_v55, 4  ;;  %v4006_v47 = vshrl.u32 %v5661_v63, 16  ;;  %v8170_v45 = vsel %vm7133_vm7, %v5723_v37, %v4462_v11  ;;  %v5435_v55 = vld [vmem:[%s6881_s5 + $0x78] sm:$0xf]  ;;  %v8672_v59 = vld [vmem:[#allocation16_spill] sm:$0xff] }
 0x108   : > { %6177 = vmatprep.mubr.msk.bf16.mxu1 %vm738_vm3, %v5325_v12  ;;  %v8148_v60 = vsel %vm7133_vm7, %v4450_v30, %v4451_v27  ;;  %v8152_v12 = vrot.slane %v3964_v8, 4  ;;  %v4464_v1 = vrot.slane %v4462_v11, 4  ;;  %v8174_v8 = vrot.slane %v3974_v50, 4 }
 0x109   : > { %v5738_v40 = vcombine.low %v8134_v15, %v8148_v60  ;;  %v8176_v62 = vrot.slane %v3985_v49, 5  ;;  %v4009_v29 = vshll.u32 %v5661_v63, 16  ;;  %v8180_v26 = vsel %vm7133_vm7, %v4457_v28, %v4458_v51  ;;  %v8675_v28 = vld [vmem:[#allocation14_spill] sm:$0xff] }
 0x10a   : > { %v8183_v4 = vrot.slane %v3991_v22, 5  ;;  %v8185_v52 = vrot.slane %v3995_v33, 4  ;;  %v5739_v54 = vcombine.low %v8164_v14, %v8180_v26  ;;  %v8191_v27 = vsel %vm7133_vm7, %v4464_v1, %v4465_v46  ;;  %v5709_v33 = vld [vmem:[%s6881_s5 + $0x84] sm:$0xe]  ;;  %v6711_v1 = vld [vmem:[%s6881_s5 + $0x18] sm:$0xff]  }
 0x10b   : > { %v4001_v49 = vshll.u32 %v8155_v35, 16  ;;  %v4015_v50 = vshll.u32 %v8158_v58, 16  ;;  %v5740_v53 = vcombine.low %v8170_v45, %v8191_v27  ;;  %v5724_v22 = vrot.slane %v5708_v19, 9  ;;  %v6773_v60 = vld [vmem:[%s6881_s5 + $0xa0] sm:$0xf] }
 0x10c   : > { %v4008_v38 = vrot.slane %v4006_v47, 4  ;;  %v4472_v30 = vrot.slane %v8672_v59, 5  ;;  %v2328_v61 = vshrl.u32 %v5435_v55, 16  ;;  %v4011_v63 = vrot.slane %v4009_v29, 5  ;;  %v5664_v29 = vld [vmem:[%s6881_s5 + $0xcc] sm:$0xf] }
 0x10d   : > { %v4019_v18 = vshrl.u32 %v8158_v58, 16  ;;  %v2331_v43 = vshll.u32 %v5435_v55, 16  ;;  %v5725_v37 = vrot.slane %v5709_v33, 9  ;;  %v3970_v9 = vsel %vm6907_vm4, %v8152_v12, %v8091_v42  ;;  %v8234_v55 = vld [vmem:[%s6881_s5 + $0xd0] sm:$0xf] }
 0x10e   : > { %6332 = vmatmul.mubr.msk.bf16.gmra.mrb[12].mxu0 %vm738_vm3, %v8089_v44  ;;  %v4469_v44 = vrot.slane %v8671_v23, 5  ;;  %v2330_v51 = vrot.slane %v2328_v61, 4  ;;  %v3988_v11 = vor.u32 %v8176_v62, %v8166_v21  ;;  %v4476_v47 = vrot.slane %v8675_v28, 5  ;;  %v6712_v21 = vld [vmem:[%s6881_s5 + $0x24] sm:$0xff]   ;;  %v6777_v27 = vld [vmem:[%s6881_s5 + $0xac] sm:$0xf] }
 0x10f   : > { %6178 = vmatmul.mubr.msk.bf16.gmra.mrb[28].mxu1 %vm738_vm3, %v5326_v56  ;;  %6335 = vmatprep.mubr.msk.bf16.mxu0 %vm738_vm3, %v8093_v41  ;;  %v8674_v56 = vld [vmem:[#allocation5_spill] sm:$0xff]  ;;  %v2333_v46 = vrot.slane %v2331_v43, 5  ;;  %v3980_v19 = vsel %vm6907_vm4, %v8174_v8, %v8103_v17  ;;  %v4479_v12 = vrot.slane %v7986_v2, 5  ;;  %v8242_v62 = vrot.slane %v4015_v50, 5  ;;  %v5710_v8 = vld [vmem:[%s6881_s5 + $0x90] sm:$0xe] }
 0x110   : > { %6183 = vmatprep.mubr.msk.bf16.mxu1 %vm738_vm3, %v6710_v6  ;;  %v2350_v41 = vsel %vm6907_vm4, %v8674_v56, %v8673_v16  ;;  %v8216_v20 = vsel %vm7133_vm7, %v5724_v22, %v4469_v44  ;;  %v4471_v31 = vrot.slane %v4469_v44, 4  ;;  %v3998_v6 = vor.u32 %v8185_v52, %v8183_v4  ;;  %v8248_v52 = vld [vmem:[%s6881_s5 + $0xc8] sm:$0x1]  ;;  %v8677_v16 = vld [vmem:[#allocation2_spill] sm:$0xff] }
 0x111   : > { %v4021_v22 = vrot.slane %v4019_v18, 4  ;;  %v2334_v17 = vor.u32 %v2333_v46, %v2330_v51  ;;  %v4003_v23 = vrot.slane %v4001_v49, 5  ;;  %v4012_v44 = vor.u32 %v4011_v63, %v4008_v38  ;;  %v8678_v51 = vld [vmem:[#allocation3_spill] sm:$0xff] }
 0x112   : > { %v8238_v42 = vsel %vm7133_vm7, %v4471_v31, %v4472_v30  ;;  %v8252_v59 = vsel %vm7133_vm7, %v5725_v37, %v4476_v47  ;;  %v4478_v30 = vrot.slane %v4476_v47, 4  ;;  %v4030_v2 = vshrl.u32 %v5664_v29, 16 }
 0x113   : > { %v5741_v33 = vcombine.low %v8216_v20, %v8238_v42  ;;  %v4033_v50 = vshll.u32 %v5664_v29, 16  ;;  %v4039_v61 = vshll.u32 %v8234_v55, 16  ;;  %v2335_v18 = vrot.slane %v2334_v17, 4  ;;  %v6713_v29 = vld [vmem:[%s6881_s5 + $0x30] sm:$0xff]  }
 0x114   : > { %v4043_v49 = vshrl.u32 %v8234_v55, 16  ;;  %v8263_v38 = vsel %vm7133_vm7, %v4478_v30, %v4479_v12  ;;  %v5726_v63 = vrot.slane %v5710_v8, 9  ;;  %v4022_v56 = vor.u32 %v4021_v22, %v8242_v62 }
 0x115   : > { %v4025_v31 = vshll.u32 %v8248_v52, 16  ;;  %v5742_v37 = vcombine.low %v8252_v59, %v8263_v38  ;;  %v5680_v46 = vcombine.low %v3970_v9, %v3980_v19  ;;  %v3989_v28 = vrot.slane %v3988_v11, 4  ;;  %v5711_v11 = vld [vmem:[%s6881_s5 + $0x9c] sm:$0xe] }
 0x116   : > { %6336 = vmatmul.mubr.msk.bf16.gmra.mrb[16].mxu0 %vm738_vm3, %v8095_v5  ;;  %v8676_v5 = vld [vmem:[#allocation15_spill] sm:$0xff]  ;;  %v3999_v47 = vrot.slane %v3998_v6, 4  ;;  %v4013_v12 = vrot.slane %v4012_v44, 4  ;;  %v4486_v8 = vrot.slane %v7995_v3, 5  ;;  %v4032_v30 = vrot.slane %v4030_v2, 4  ;;  %v6714_v19 = vld [vmem:[%s6881_s5 + $0x3c] sm:$0xff]  }
 0x117   : > { %6184 = vmatmul.mubr.msk.bf16.vlgmr.msra.gmra.mrb[0].mxu1 %vm738_vm3, %v6711_v1  ;;  %6339 = vmatprep.mubr.msk.bf16.mxu0 %vm738_vm3, %v8097_v7  ;;  %v4483_v43 = vrot.slane %v8676_v5, 5  ;;  %v2340_v7 = vsel %vm6907_vm4, %v2335_v18, %v8678_v51  ;;  %v4035_v18 = vrot.slane %v4033_v50, 5  ;;  %v8286_v5 = vrot.slane %v4039_v61, 5 }
 0x118   : > { %6386 = vmatpush3.bf16.msra.mxu1 %v8677_v16  ;;  %6187 = vmatprep.mubr.msk.bf16.mxu1 %vm738_vm3, %v6712_v21  ;;  %v8275_v1 = vcombine.low %v2340_v7, %v2350_v41  ;;  %v8279_v21 = vld [vmem:[%s6881_s5 + $0xd4] sm:$0x1]  ;;  %v4045_v9 = vrot.slane %v4043_v49, 4  ;;  %v4023_v41 = vrot.slane %v4022_v56, 4  ;;  %v4027_v6 = vrot.slane %v4025_v31, 5 }
 0x119   : > { %v8283_v22 = vsel %vm7133_vm7, %v5726_v63, %v4483_v43  ;;  %v4485_v17 = vrot.slane %v4483_v43, 4  ;;  %v3994_v63 = vsel %vm6907_vm4, %v3989_v28, %v8183_v4  ;;  %v4004_v2 = vsel %vm6907_vm4, %v3999_v47, %v4003_v23  ;;  %v6764_v16 = vld [vmem:[%s6881_s5 + $0x1c] sm:$0xf]  ;;  %v5712_v28 = vld [vmem:[%s6881_s5 + $0xa8] sm:$0xe] }
 0x11a   : > { %v4049_v50 = vshll.u32 %v8279_v21, 16  ;;  %v5727_v61 = vrot.slane %v5711_v11, 9  ;;  %v4490_v49 = vrot.slane %v7983_v25, 5  ;;  %v4018_v4 = vsel %vm6907_vm4, %v4013_v12, %v8242_v62  ;;  %v5700_v62 = vld [vmem:[%s6881_s5 + $0x18] sm:$0xe]  ;;  %v6715_v47 = vld [vmem:[%s6881_s5 + $0x48] sm:$0xff]  }
 0x11b   : > { %v8292_v44 = vsel %vm7133_vm7, %v4485_v17, %v4486_v8  ;;  %v4046_v43 = vor.u32 %v4045_v9, %v8286_v5  ;;  %v4493_v23 = vrot.slane %v8028_v57, 5  ;;  %v4028_v25 = vsel %vm6907_vm4, %v4023_v41, %v4027_v6  ;;  %v6765_v11 = vld [vmem:[%s6881_s5 + $0x20] sm:$0x1] }
 0x11c   : > { %v5743_v3 = vcombine.low %v8283_v22, %v8292_v44  ;;  %v4413_v56 = vrot.slane %v6764_v16, 5  ;;  %v8318_v31 = vsel %vm7133_vm7, %v5727_v61, %v4490_v49  ;;  %v4492_v51 = vrot.slane %v4490_v49, 4  ;;  %v5713_v49 = vld [vmem:[%s6881_s5 + $0xb4] sm:$0xe] }
 0x11d   : > { %v5681_v7 = vcombine.low %v3994_v63, %v4004_v2  ;;  %v4047_v17 = vrot.slane %v4046_v43, 4  ;;  %v5728_v41 = vrot.slane %v5712_v28, 9  ;;  %v4497_v6 = vrot.slane %v8031_v34, 5  ;;  %v5701_v2 = vld [vmem:[%s6881_s5 + $0x24] sm:$0xe] }
 0x11e   : > { %6340 = vmatmul.mubr.msk.bf16.gmra.mrb[20].mxu0 %vm738_vm3, %v8130_v24  ;;  %v4036_v24 = vor.u32 %v4035_v18, %v4032_v30  ;;  %v8323_v57 = vsel %vm7133_vm7, %v4492_v51, %v4493_v23  ;;  %v6716_v30 = vld [vmem:[%s6881_s5 + $0x54] sm:$0xff]   ;;  %v5716_v18 = vrot.slane %v5700_v62, 9  ;;  %v4415_v9 = vrot.slane %v4413_v56, 4  ;;  %v6768_v28 = vld [vmem:[%s6881_s5 + $0x2c] sm:$0x1] }
 0x11f   : > { %6188 = vmatmul.mubr.msk.bf16.gmra.mrb[4].mxu1 %vm738_vm3, %v6713_v29  ;;  %6343 = vmatprep.mubr.msk.bf16.mxu0 %vm738_vm3, %v5680_v46  ;;  %v4051_v46 = vrot.slane %v4049_v50, 5  ;;  %v5682_v29 = vcombine.low %v4018_v4, %v4028_v25  ;;  %v5744_v8 = vcombine.low %v8318_v31, %v8323_v57  ;;  %v4500_v63 = vrot.slane %v8041_v48, 5  ;;  %v6766_v50 = vld [vmem:[%s6881_s5 + $0x28] sm:$0xf]  ;;  %v5702_v25 = vld [vmem:[%s6881_s5 + $0x30] sm:$0xe] }
 0x120   : > { %6191 = vmatprep.mubr.msk.bf16.mxu1 %vm738_vm3, %v6714_v19  ;;  %v4037_v12 = vrot.slane %v4036_v24, 4  ;;  %v4416_v19 = vrot.slane %v6765_v11, 5  ;;  %v4420_v61 = vrot.slane %v6766_v50, 5  ;;  %v8346_v48 = vsel %vm7133_vm7, %v5728_v41, %v4497_v6  ;;  %v6718_v11 = vld [vmem:[%s6881_s5 + $0x6c] sm:$0xff]   ;;  %v8679_v41 = vld [vmem:[#allocation6_spill] sm:$0xff] }
 0x121   : > { %v4052_v34 = vsel %vm6907_vm4, %v4047_v17, %v4051_v46  ;;  %v4499_v24 = vrot.slane %v4497_v6, 4  ;;  %v4414_v43 = vsel %vm7133_vm7, %v5716_v18, %v4413_v56  ;;  %v5717_v51 = vrot.slane %v5701_v2, 9  ;;  %v5714_v50 = vld [vmem:[%s6881_s5 + $0xc0] sm:$0xe]  ;;  %v6782_v31 = vld [vmem:[%s6881_s5 + $0xc8] sm:$0x1] }
 0x122   : > { %v4042_v4 = vsel %vm6907_vm4, %v4037_v12, %v8286_v5  ;;  %v4417_v23 = vsel %vm7133_vm7, %v4415_v9, %v4416_v19  ;;  %v6767_v5 = vld [vmem:[%s6881_s5 + $0x34] sm:$0xf]  ;;  %v6717_v12 = vld [vmem:[%s6881_s5 + $0x60] sm:$0xff]   ;;  %v5718_v18 = vrot.slane %v5702_v25, 9  ;;  %v4507_v9 = vrot.slane %v8155_v35, 5 }
 0x123   : > { %v4427_v16 = vrot.slane %v6767_v5, 5  ;;  %v8357_v62 = vsel %vm7133_vm7, %v4499_v24, %v4500_v63  ;;  %v5683_v46 = vcombine.low %v4042_v4, %v4052_v34  ;;  %v5733_v17 = vcombine.low %v4414_v43, %v4417_v23  ;;  %v5703_v24 = vld [vmem:[%s6881_s5 + $0x3c] sm:$0xe] }
 0x124   : > { %v5745_v56 = vcombine.low %v8346_v48, %v8357_v62  ;;  %v4430_v6 = vrot.slane %v8679_v41, 5  ;;  %v4421_v35 = vsel %vm7133_vm7, %v5717_v51, %v4420_v61  ;;  %v5730_v5 = vrot.slane %v5714_v50, 9 }
 0x125   : > { %v4429_v19 = vrot.slane %v4427_v16, 4  ;;  %v4428_v23 = vsel %vm7133_vm7, %v5718_v18, %v4427_v16  ;;  %v4514_v51 = vrot.slane %v8248_v52, 5  ;;  %v2491_v57 = vshll.u32 %v6782_v31, 16 }
 0x126   : > { %6344 = vmatmul.mubr.msk.bf16.gmra.mrb[24].mxu0 %vm738_vm3, %v5681_v7  ;;  %v5729_v7 = vrot.slane %v5713_v49, 9 }
 0x127   : > { %6192 = vmatmul.mubr.msk.bf16.gmra.mrb[8].mxu1 %vm738_vm3, %v6715_v47  ;;  %6347 = vmatprep.mubr.msk.bf16.mxu0 %vm738_vm3, %v5682_v29  ;;  %v4423_v47 = vrot.slane %v6768_v28, 5  ;;  %v4504_v29 = vrot.slane %v8106_v39, 5  ;;  %v8680_v39 = vld [vmem:[#allocation7_spill] sm:$0xff]  ;;  %v4431_v25 = vsel %vm7133_vm7, %v4429_v19, %v4430_v6  ;;  %v5719_v28 = vrot.slane %v5703_v24, 9 }
 0x128   : > { %6195 = vmatprep.mubr.msk.bf16.mxu1 %vm738_vm3, %v6716_v30  ;;  %v4422_v30 = vrot.slane %v4420_v61, 4  ;;  %v4434_v49 = vrot.slane %v8680_v39, 5  ;;  %v4511_v61 = vrot.slane %v8158_v58, 5  ;;  %v6769_v39 = vld [vmem:[%s6881_s5 + $0x70] sm:$0xf]  ;;  %v4518_v24 = vrot.slane %v8234_v55, 5 }
 0x129   : > { %v8369_v63 = vsel %vm7133_vm7, %v5729_v7, %v4504_v29  ;;  %v4506_v2 = vrot.slane %v4504_v29, 4  ;;  %v5432_v7 = vld [vmem:[%s6881_s5 + $0x6c] sm:$0xf]  ;;  %v8681_v29 = vld [vmem:[#allocation8_spill] sm:$0xff] }
 0x12a   : > { %v4424_v34 = vsel %vm7133_vm7, %v4422_v30, %v4423_v47  ;;  %v4436_v47 = vrot.slane %v4434_v49, 4  ;;  %v6719_v30 = vld [vmem:[%s6881_s5 + $0x78] sm:$0xff]   ;;  %v8400_v16 = vsel %vm7133_vm7, %v5730_v5, %v4511_v61  ;;  %v4513_v18 = vrot.slane %v4511_v61, 4 }
 0x12b   : > { %v8376_v4 = vsel %vm7133_vm7, %v4506_v2, %v4507_v9  ;;  %v5735_v9 = vcombine.low %v4428_v23, %v4431_v25  ;;  %v2304_v19 = vshrl.u32 %v5432_v7, 16  ;;  %v2307_v41 = vshll.u32 %v5432_v7, 16 }
 0x12c   : > { %v5746_v43 = vcombine.low %v8369_v63, %v8376_v4  ;;  %v8405_v58 = vsel %vm7133_vm7, %v4513_v18, %v4514_v51  ;;  %v4435_v6 = vsel %vm7133_vm7, %v5719_v28, %v4434_v49  ;;  %v4521_v49 = vrot.slane %v8279_v21, 5  ;;  %v6721_v51 = vld [vmem:[%s6881_s5 + $0x90] sm:$0xff]   ;;  %v6722_v21 = vld [vmem:[%s6881_s5 + $0x9c] sm:$0xff]  }
 0x12d   : > { %v5747_v50 = vcombine.low %v8400_v16, %v8405_v58  ;;  %v2306_v23 = vrot.slane %v2304_v19, 4  ;;  %v2309_v25 = vrot.slane %v2307_v41, 5  ;;  %v4520_v7 = vrot.slane %v4518_v24, 4 }
 0x12e   : > { %6348 = vmatmul.mubr.msk.bf16.gmra.mrb[28].mxu0 %vm738_vm3, %v5683_v46  ;;  %v5734_v46 = vcombine.low %v4421_v35, %v4424_v34  ;;  %v2313_v35 = vshll.u32 %v6769_v39, 16  ;;  %v2317_v34 = vshrl.u32 %v6769_v39, 16 }
 0x12f   : > { %6196 = vmatmul.mubr.msk.bf16.gmra.mrb[12].mxu1 %vm738_vm3, %v6717_v12  ;;  %6353 = vmatprep.mubr.msk.bf16.mxu0 %vm738_vm3, %v5733_v17  ;;  %v4437_v12 = vrot.slane %v8681_v29, 5  ;;  %v5715_v17 = vld [vmem:[%s6881_s5 + $0xcc] sm:$0xe]  ;;  %v8427_v55 = vsel %vm7133_vm7, %v4520_v7, %v4521_v49 }
 0x130   : > { %6199 = vmatprep.mubr.msk.bf16.mxu1 %vm738_vm3, %v6718_v11  ;;  %v6720_v11 = vld [vmem:[%s6881_s5 + $0x84] sm:$0xff]   ;;  %v5731_v52 = vrot.slane %v5715_v17, 9  ;;  %v2319_v28 = vrot.slane %v2317_v34, 4  ;;  %v6770_v17 = vld [vmem:[%s6881_s5 + $0x74] sm:$0x1] }
 0x131   : > { %v4438_v2 = vsel %vm7133_vm7, %v4436_v47, %v4437_v12  ;;  %v5438_v47 = vld [vmem:[%s6881_s5 + $0x84] sm:$0xf]  ;;  %v2310_v12 = vor.u32 %v2309_v25, %v2306_v23  ;;  %v6724_v34 = vld [vmem:[%s6881_s5 + $0xb4] sm:$0xff]  }
 0x132   : > { %v8422_v5 = vsel %vm7133_vm7, %v5731_v52, %v4518_v24  ;;  %v5736_v61 = vcombine.low %v4435_v6, %v4438_v2  ;;  %v2355_v18 = vshll.u32 %v5438_v47, 16  ;;  %v5441_v6 = vld [vmem:[%s6881_s5 + $0x90] sm:$0xf]  ;;  %v6723_v2 = vld [vmem:[%s6881_s5 + $0xa8] sm:$0xff]  }
 0x133   : > { %v5748_v29 = vcombine.low %v8422_v5, %v8427_v55  ;;  %v2311_v52 = vrot.slane %v2310_v12, 4  ;;  %v2376_v23 = vshrl.u32 %v5441_v6, 16  ;;  %v2379_v25 = vshll.u32 %v5441_v6, 16 }
 0x134   : > { %v2409_v12 = vshll.u32 %v6773_v60, 16 }
 0x135   : > { %v2381_v14 = vrot.slane %v2379_v25, 5  ;;  %v6776_v25 = vld [vmem:[%s6881_s5 + $0xa4] sm:$0x1] }
 0x136   : > { %6354 = vmatmul.mubr.msk.bf16.vlgmr.msra.gmra.mrb[0].mxu0 %vm738_vm3, %v5734_v46  ;;  %v2315_v46 = vrot.slane %v2313_v35, 5  ;;  %v5444_v35 = vld [vmem:[%s6881_s5 + $0x9c] sm:$0xf]  ;;  %v8469_v6 = vrot.slane %v2409_v12, 5 }
 0x137   : > { %6200 = vmatmul.mubr.msk.bf16.gmra.mrb[16].mxu1 %vm738_vm3, %v6719_v30  ;;  %6357 = vmatprep.mubr.msk.bf16.mxu0 %vm738_vm3, %v5735_v9  ;;  %v2323_v30 = vshll.u32 %v6770_v17, 16  ;;  %v2352_v9 = vshrl.u32 %v5438_v47, 16  ;;  %v2403_v47 = vshll.u32 %v5444_v35, 16  ;;  %v6774_v17 = vld [vmem:[%s6881_s5 + $0x8c] sm:$0x1] }
 0x138   : > { %6203 = vmatprep.mubr.msk.bf16.mxu1 %vm738_vm3, %v6720_v11  ;;  %v2320_v13 = vor.u32 %v2319_v28, %v2315_v46  ;;  %v6771_v11 = vld [vmem:[%s6881_s5 + $0x88] sm:$0xf]  ;;  %v2316_v7 = vsel %vm6907_vm4, %v2311_v52, %v2315_v46 }
 0x139   : > { %v2361_v19 = vshll.u32 %v6771_v11, 16  ;;  %v2365_v41 = vshrl.u32 %v6771_v11, 16  ;;  %v2325_v0 = vrot.slane %v2323_v30, 5  ;;  %v2354_v36 = vrot.slane %v2352_v9, 4 }
 0x13a   : > { %v2321_v39 = vrot.slane %v2320_v13, 4  ;;  %v2371_v30 = vshll.u32 %v6774_v17, 16  ;;  %v2378_v9 = vrot.slane %v2376_v23, 4  ;;  %v2405_v11 = vrot.slane %v2403_v47, 5 }
 0x13b   : > { %v8446_v24 = vrot.slane %v2361_v19, 5  ;;  %v2367_v49 = vrot.slane %v2365_v41, 4  ;;  %v6725_v19 = vld [vmem:[%s6881_s5 + $0xc0] sm:$0xff]  }
 0x13c   : > { %v2326_v46 = vsel %vm6907_vm4, %v2321_v39, %v2325_v0  ;;  %v5447_v39 = vld [vmem:[%s6881_s5 + $0xa8] sm:$0xf] }
 0x13d   : > { %v2368_v13 = vor.u32 %v2367_v49, %v8446_v24  ;;  %v5465_v41 = vcombine.low %v2316_v7, %v2326_v46  ;;  %v2419_v7 = vshll.u32 %v6776_v25, 16  ;;  %v2427_v45 = vshll.u32 %v5447_v39, 16 }
 0x13e   : > { %6358 = vmatmul.mubr.msk.bf16.gmra.mrb[4].mxu0 %vm738_vm3, %v5736_v61  ;;  %v6772_v61 = vld [vmem:[%s6881_s5 + $0x94] sm:$0xf] }
 0x13f   : > { %6204 = vmatmul.mubr.msk.bf16.gmra.mrb[20].mxu1 %vm738_vm3, %v6721_v51  ;;  %6361 = vmatprep.mubr.msk.bf16.mxu0 %vm738_vm3, %v5737_v10  ;;  %v2357_v10 = vrot.slane %v2355_v18, 5  ;;  %v2385_v51 = vshll.u32 %v6772_v61, 16  ;;  %v2389_v28 = vshrl.u32 %v6772_v61, 16  ;;  %v2369_v0 = vrot.slane %v2368_v13, 4 }
 0x140   : > { %6207 = vmatprep.mubr.msk.bf16.mxu1 %vm738_vm3, %v6722_v21  ;;  %v2400_v21 = vshrl.u32 %v5444_v35, 16  ;;  %v6775_v35 = vld [vmem:[%s6881_s5 + $0x98] sm:$0x1]  ;;  %v2424_v61 = vshrl.u32 %v5447_v39, 16  ;;  %v5453_v39 = vld [vmem:[%s6881_s5 + $0xc0] sm:$0xf] }
 0x141   : > { %v2358_v15 = vor.u32 %v2357_v10, %v2354_v36  ;;  %v8466_v26 = vrot.slane %v2385_v51, 5  ;;  %v2373_v36 = vrot.slane %v2371_v30, 5  ;;  %v2382_v10 = vor.u32 %v2381_v14, %v2378_v9  ;;  %v5450_v51 = vld [vmem:[%s6881_s5 + $0xb4] sm:$0xf] }
 0x142   : > { %v2402_v18 = vrot.slane %v2400_v21, 4  ;;  %v2437_v21 = vshrl.u32 %v6777_v27, 16  ;;  %v2448_v20 = vshrl.u32 %v5450_v51, 16  ;;  %v2451_v42 = vshll.u32 %v5450_v51, 16 }
 0x143   : > { %v2359_v52 = vrot.slane %v2358_v15, 4  ;;  %v2374_v46 = vsel %vm6907_vm4, %v2369_v0, %v2373_v36  ;;  %v2383_v15 = vrot.slane %v2382_v10, 4  ;;  %v2421_v30 = vrot.slane %v2419_v7, 5 }
 0x144   : > { %v2406_v23 = vor.u32 %v2405_v11, %v2402_v18  ;;  %v2426_v9 = vrot.slane %v2424_v61, 4  ;;  %v2439_v11 = vrot.slane %v2437_v21, 4  ;;  %v6781_v61 = vld [vmem:[%s6881_s5 + $0xbc] sm:$0x1] }
 0x145   : > { %v2364_v47 = vsel %vm6907_vm4, %v2359_v52, %v8446_v24  ;;  %v2388_v0 = vsel %vm6907_vm4, %v2383_v15, %v8466_v26  ;;  %v2467_v22 = vshll.u32 %v6781_v61, 16 }
 0x146   : > { %6362 = vmatmul.mubr.msk.bf16.gmra.mrb[8].mxu0 %vm738_vm3, %v5738_v40  ;;  %v2413_v40 = vshrl.u32 %v6773_v60, 16  ;;  %v2407_v17 = vrot.slane %v2406_v23, 4  ;;  %v5467_v24 = vcombine.low %v2364_v47, %v2374_v46 }
 0x147   : > { %6208 = vmatmul.mubr.msk.bf16.gmra.mrb[24].mxu1 %vm738_vm3, %v6723_v2  ;;  %6365 = vmatprep.mubr.msk.bf16.mxu0 %vm738_vm3, %v5739_v54  ;;  %v2391_v54 = vrot.slane %v2389_v28, 4 }
 0x148   : > { %6211 = vmatprep.mubr.msk.bf16.mxu1 %vm738_vm3, %v6724_v34  ;;  %v2415_v2 = vrot.slane %v2413_v40, 4  ;;  %v2395_v34 = vshll.u32 %v6775_v35, 16  ;;  %v2412_v10 = vsel %vm6907_vm4, %v2407_v17, %v8469_v6  ;;  %v2493_v17 = vrot.slane %v2491_v57, 5 }
 0x149   : > { %v2392_v49 = vor.u32 %v2391_v54, %v8466_v26  ;;  %v2429_v54 = vrot.slane %v2427_v45, 5  ;;  %v6779_v26 = vld [vmem:[%s6881_s5 + $0xb0] sm:$0x1] }
 0x14a   : > { %v2416_v28 = vor.u32 %v2415_v2, %v8469_v6  ;;  %v2397_v60 = vrot.slane %v2395_v34, 5  ;;  %v2443_v35 = vshll.u32 %v6779_v26, 16  ;;  %v2472_v34 = vshrl.u32 %v5453_v39, 16 }
 0x14b   : > { %v2393_v13 = vrot.slane %v2392_v49, 4  ;;  %v2430_v38 = vor.u32 %v2429_v54, %v2426_v9  ;;  %v2475_v6 = vshll.u32 %v5453_v39, 16  ;;  %v6780_v49 = vld [vmem:[%s6881_s5 + $0xc4] sm:$0xf] }
 0x14c   : > { %v2417_v14 = vrot.slane %v2416_v28, 4  ;;  %v2481_v23 = vshll.u32 %v6780_v49, 16  ;;  %v2485_v25 = vshrl.u32 %v6780_v49, 16  ;;  %v2445_v45 = vrot.slane %v2443_v35, 5 }
 0x14d   : > { %v2398_v36 = vsel %vm6907_vm4, %v2393_v13, %v2397_v60  ;;  %v2431_v51 = vrot.slane %v2430_v38, 4  ;;  %v2469_v60 = vrot.slane %v2467_v22, 5 }
 0x14e   : > { %6366 = vmatmul.mubr.msk.bf16.gmra.mrb[12].mxu0 %vm738_vm3, %v5740_v53  ;;  %v2433_v53 = vshll.u32 %v6777_v27, 16  ;;  %v2422_v59 = vsel %vm6907_vm4, %v2417_v14, %v2421_v30  ;;  %v5468_v44 = vcombine.low %v2388_v0, %v2398_v36  ;;  %v2474_v27 = vrot.slane %v2472_v34, 4 }
 0x14f   : > { %6212 = vmatmul.mubr.msk.bf16.gmra.mrb[28].mxu1 %vm738_vm3, %v6725_v19  ;;  %6369 = vmatprep.mubr.msk.bf16.mxu0 %vm738_vm3, %v5741_v33  ;;  %v6778_v33 = vld [vmem:[%s6881_s5 + $0xb8] sm:$0xf]  ;;  %v2450_v19 = vrot.slane %v2448_v20, 4  ;;  %v2483_v21 = vrot.slane %v2481_v23, 5  ;;  %v2487_v47 = vrot.slane %v2485_v25, 4 }
 0x150   : > { %6233 = vmatprep.mubr.msk.bf16.mxu1 %vm738_vm3, %v5465_v41  ;;  %v2457_v12 = vshll.u32 %v6778_v33, 16  ;;  %v2461_v40 = vshrl.u32 %v6778_v33, 16  ;;  %v2435_v18 = vrot.slane %v2433_v53, 5  ;;  %v2453_v41 = vrot.slane %v2451_v42, 5 }
 0x151   : > { %v2477_v53 = vrot.slane %v2475_v6, 5 }
 0x152   : > { %v2459_v52 = vrot.slane %v2457_v12, 5  ;;  %v2463_v2 = vrot.slane %v2461_v40, 4  ;;  %v2436_v20 = vsel %vm6907_vm4, %v2431_v51, %v2435_v18  ;;  %v2488_v12 = vor.u32 %v2487_v47, %v2483_v21 }
 0x153   : > { %v2478_v33 = vor.u32 %v2477_v53, %v2474_v27 }
 0x154   : > { %v2464_v7 = vor.u32 %v2463_v2, %v2459_v52  ;;  %v2489_v13 = vrot.slane %v2488_v12, 4 }
 0x155   : > { %v2479_v40 = vrot.slane %v2478_v33, 4 }
 0x156   : > { %6370 = vmatmul.mubr.msk.bf16.gmra.mrb[16].mxu0 %vm738_vm3, %v5742_v37  ;;  %v2440_v37 = vor.u32 %v2439_v11, %v2435_v18  ;;  %v2465_v15 = vrot.slane %v2464_v7, 4  ;;  %v2494_v9 = vsel %vm6907_vm4, %v2489_v13, %v2493_v17 }
 0x157   : > { %6234 = vmatmul.mubr.msk.bf16.vlgmr.msra.gmra.mrb[16].mxu1 %vm738_vm3, %v8275_v1  ;;  %6373 = vmatprep.mubr.msk.bf16.mxu0 %vm738_vm3, %v5743_v3  ;;  %v2454_v1 = vor.u32 %v2453_v41, %v2450_v19  ;;  %v5469_v3 = vcombine.low %v2412_v10, %v2422_v59  ;;  %v2484_v30 = vsel %vm6907_vm4, %v2479_v40, %v2483_v21 }
 0x158   : > { %6237 = vmatprep.mubr.msk.bf16.mxu1 %vm738_vm3, %v5467_v24  ;;  %v2441_v28 = vrot.slane %v2440_v37, 4  ;;  %v2470_v48 = vsel %vm6907_vm4, %v2465_v15, %v2469_v60  ;;  %v5472_v14 = vcombine.low %v2484_v30, %v2494_v9 }
 0x159   : > { %v2455_v46 = vrot.slane %v2454_v1, 4 }
 0x15a   : > { %v2446_v42 = vsel %vm6907_vm4, %v2441_v28, %v2445_v45 }
 0x15b   : > { %v5470_v62 = vcombine.low %v2436_v20, %v2446_v42 }
 0x15e   : > { %6374 = vmatmul.mubr.msk.bf16.gmra.mrb[20].mxu0 %vm738_vm3, %v5744_v8  ;;  %v2460_v8 = vsel %vm6907_vm4, %v2455_v46, %v2459_v52 }
 0x15f   : > { %6238 = vmatmul.mubr.msk.bf16.gmra.mrb[20].mxu1 %vm738_vm3, %v5468_v44  ;;  %6377 = vmatprep.mubr.msk.bf16.mxu0 %vm738_vm3, %v5745_v56  ;;  %v5471_v56 = vcombine.low %v2460_v8, %v2470_v48 }
 0x160   : > { %6241 = vmatprep.mubr.msk.bf16.mxu1 %vm738_vm3, %v5469_v3 }
 0x166   : > { %6378 = vmatmul.mubr.msk.bf16.gmra.mrb[24].mxu0 %vm738_vm3, %v5746_v43 }
 0x167   : > { %6242 = vmatmul.mubr.msk.bf16.gmra.mrb[24].mxu1 %vm738_vm3, %v5470_v62  ;;  %6381 = vmatprep.mubr.msk.bf16.mxu0 %vm738_vm3, %v5747_v50 }
 0x168   : > { %6245 = vmatprep.mubr.msk.bf16.mxu1 %vm738_vm3, %v5471_v56 }
 0x16e   : > { %6382 = vmatmul.mubr.msk.bf16.gmra.mrb[28].mxu0 %vm738_vm3, %v5748_v29 }
 0x16f   : > { %6246 = vmatmul.mubr.msk.bf16.gmra.mrb[28].mxu1 %vm738_vm3, %v5472_v14 }
 0x1ea   : > { %v6185_v63 = vpop.f32.mrb[0].mxu1 }
 0x1eb   : > { %v1904_v4 = vpop.f32.mrb[1].mxu1 }
 0x1ec   : > { %v6186_v43 = vpop.f32.mrb[2].mxu1 }
 0x1ed   : > { %v1907_v16 = vpop.f32.mrb[3].mxu1 }
 0x1f2   : > { %v6189_v58 = vpop.f32.mrb[4].mxu1 }
 0x1f3   : > { %v1920_v50 = vpop.f32.mrb[5].mxu1 }
 0x1f4   : > { %v6190_v54 = vpop.f32.mrb[6].mxu1 }
 0x1f5   : > { %v1923_v18 = vpop.f32.mrb[7].mxu1 }
 0x1fa   : > { %v6193_v11 = vpop.f32.mrb[8].mxu1 }
 0x1fb   : > { %v1936_v32 = vpop.f32.mrb[9].mxu1 }
 0x1fc   : > { %v6194_v24 = vpop.f32.mrb[10].mxu1 }
 0x1fd   : > { %v8557_v19 = vpop.f32.mrb[11].mxu1 }
 0x202   : > { %v8560_v41 = vpop.f32.mrb[12].mxu1 }
 0x203   : > { %v8562_v5 = vpop.f32.mrb[13].mxu1 }
 0x204   : > { %v8564_v55 = vpop.f32.mrb[14].mxu1 }
 0x205   : > { %v8566_v29 = vpop.f32.mrb[15].mxu1 }
 0x209   : > { %v6355_v52 = vpop.f32.mrb[0].mxu0 }
 0x20a   : > { %v6387_v2 = vadd.f32 %v6355_v52, %v6185_v63  ;;  %v4658_v39 = vpop.f32.mrb[1].mxu0 }
 0x20b   : > { %v6388_v0 = vadd.f32 %v4658_v39, %v1904_v4  ;;  %v6356_v36 = vpop.f32.mrb[2].mxu0 }
 0x20c   : > { %v6389_v10 = vadd.f32 %v6356_v36, %v6186_v43  ;;  %v4661_v59 = vpop.f32.mrb[3].mxu0  ;;  %v5011_v49 = vmul.f32 %v6387_v2, %v6387_v2 }
 0x20d   : > { %v6390_v38 = vadd.f32 %v4661_v59, %v1907_v16  ;;  %v5009_v26 = vmul.f32 %v6388_v0, %v6388_v0 }
 0x20e   : > { %v5839_v37 = vpack.c.bf16 %v6389_v10, %v6387_v2  ;;  %v5012_v22 = vmul.f32 %v6389_v10, %v6389_v10 }
 0x20f   : > { %v5834_v35 = vpack.c.bf16 %v6390_v38, %v6388_v0  ;;  %v4977_v34 = vadd.f32 %v6390_v38, %v6388_v0  ;;  %v5010_v6 = vmul.f32 %v6390_v38, %v6390_v38 }
 0x210   : > { %5911 = vst [vmem:[%s8571_s28 + $0x8] sm:$0xff] %v5839_v37  }
 0x211   : > { %5835 = vst [vmem:[%s8571_s28] sm:$0xff] %v5834_v35   ;;  %v4978_v23 = vadd.f32 %v6387_v2, %v4977_v34  ;;  %v5041_v25 = vadd.f32 %v5010_v6, %v5009_v26  ;;  %v6359_v1 = vpop.f32.mrb[4].mxu0 }
 0x212   : > { %v6391_v7 = vadd.f32 %v6359_v1, %v6189_v58  ;;  %v4674_v61 = vpop.f32.mrb[5].mxu0 }
 0x213   : > { %v5042_v44 = vadd.f32 %v5041_v25, %v5011_v49  ;;  %v6392_v3 = vadd.f32 %v4674_v61, %v1920_v50  ;;  %v4979_v51 = vadd.f32 %v6389_v10, %v4978_v23  ;;  %v6360_v28 = vpop.f32.mrb[6].mxu0 }
 0x214   : > { %v6393_v45 = vadd.f32 %v6360_v28, %v6190_v54  ;;  %v4677_v27 = vpop.f32.mrb[7].mxu0  ;;  %v5015_v12 = vmul.f32 %v6391_v7, %v6391_v7 }
 0x215   : > { %v4980_v53 = vadd.f32 %v6392_v3, %v4979_v51  ;;  %v5013_v21 = vmul.f32 %v6392_v3, %v6392_v3  ;;  %v5043_v47 = vadd.f32 %v5042_v44, %v5012_v22  ;;  %v6394_v46 = vadd.f32 %v4677_v27, %v1923_v18 }
 0x216   : > { %v5849_v15 = vpack.c.bf16 %v6393_v45, %v6391_v7  ;;  %v5016_v56 = vmul.f32 %v6393_v45, %v6393_v45 }
 0x217   : > { %v5044_v60 = vadd.f32 %v5043_v47, %v5013_v21  ;;  %v5844_v20 = vpack.c.bf16 %v6394_v46, %v6392_v3  ;;  %v4981_v42 = vadd.f32 %v6394_v46, %v4980_v53  ;;  %v5014_v33 = vmul.f32 %v6394_v46, %v6394_v46 }
 0x218   : > { %5913 = vst [vmem:[%s8571_s28 + $0x18] sm:$0xff] %v5849_v15  }
 0x219   : > { %5912 = vst [vmem:[%s8571_s28 + $0x10] sm:$0xff] %v5844_v20   ;;  %v4982_v31 = vadd.f32 %v6391_v7, %v4981_v42  ;;  %v5045_v57 = vadd.f32 %v5044_v60, %v5014_v33  ;;  %v6363_v8 = vpop.f32.mrb[8].mxu0 }
 0x21a   : > { %v6395_v48 = vadd.f32 %v6363_v8, %v6193_v11  ;;  %v4690_v62 = vpop.f32.mrb[9].mxu0 }
 0x21b   : > { %v5046_v40 = vadd.f32 %v5045_v57, %v5015_v12  ;;  %v6396_v13 = vadd.f32 %v4690_v62, %v1936_v32  ;;  %v4983_v17 = vadd.f32 %v6393_v45, %v4982_v31  ;;  %v6364_v30 = vpop.f32.mrb[10].mxu0 }
 0x21c   : > { %v6397_v9 = vadd.f32 %v6364_v30, %v6194_v24  ;;  %v4693_v14 = vpop.f32.mrb[11].mxu0  ;;  %v5019_v52 = vmul.f32 %v6395_v48, %v6395_v48 }
 0x21d   : > { %v4984_v63 = vadd.f32 %v6396_v13, %v4983_v17  ;;  %v5017_v4 = vmul.f32 %v6396_v13, %v6396_v13  ;;  %v5047_v43 = vadd.f32 %v5046_v40, %v5016_v56  ;;  %v6398_v16 = vadd.f32 %v4693_v14, %v8557_v19 }
 0x21e   : > { %v5859_v58 = vpack.c.bf16 %v6397_v9, %v6395_v48  ;;  %v5020_v36 = vmul.f32 %v6397_v9, %v6397_v9 }
 0x21f   : > { %v5048_v50 = vadd.f32 %v5047_v43, %v5017_v4  ;;  %v5854_v54 = vpack.c.bf16 %v6398_v16, %v6396_v13  ;;  %v4985_v18 = vadd.f32 %v6398_v16, %v4984_v63  ;;  %v5018_v11 = vmul.f32 %v6398_v16, %v6398_v16 }
 0x220   : > { %5915 = vst [vmem:[%s8571_s28 + $0x28] sm:$0xff] %v5859_v58  }
 0x221   : > { %5914 = vst [vmem:[%s8571_s28 + $0x20] sm:$0xff] %v5854_v54   ;;  %v4986_v2 = vadd.f32 %v6395_v48, %v4985_v18  ;;  %v5049_v32 = vadd.f32 %v5048_v50, %v5018_v11  ;;  %v6367_v39 = vpop.f32.mrb[12].mxu0 }
 0x222   : > { %v6399_v0 = vadd.f32 %v6367_v39, %v8560_v41  ;;  %v4706_v24 = vpop.f32.mrb[13].mxu0 }
 0x223   : > { %v5050_v10 = vadd.f32 %v5049_v32, %v5019_v52  ;;  %v6400_v59 = vadd.f32 %v4706_v24, %v8562_v5  ;;  %v4987_v19 = vadd.f32 %v6397_v9, %v4986_v2  ;;  %v6368_v38 = vpop.f32.mrb[14].mxu0 }
 0x224   : > { %v6401_v37 = vadd.f32 %v6368_v38, %v8564_v55  ;;  %v4709_v26 = vpop.f32.mrb[15].mxu0  ;;  %v5023_v61 = vmul.f32 %v6399_v0, %v6399_v0 }
 0x225   : > { %v4988_v35 = vadd.f32 %v6400_v59, %v4987_v19  ;;  %v5021_v34 = vmul.f32 %v6400_v59, %v6400_v59  ;;  %v5051_v6 = vadd.f32 %v5050_v10, %v5020_v36  ;;  %v6402_v49 = vadd.f32 %v4709_v26, %v8566_v29 }
 0x226   : > { %v5869_v23 = vpack.c.bf16 %v6401_v37, %v6399_v0  ;;  %v5024_v55 = vmul.f32 %v6401_v37, %v6401_v37 }
 0x227   : > { %v5052_v25 = vadd.f32 %v5051_v6, %v5021_v34  ;;  %v5864_v41 = vpack.c.bf16 %v6402_v49, %v6400_v59  ;;  %v4989_v1 = vadd.f32 %v6402_v49, %v4988_v35  ;;  %v5022_v7 = vmul.f32 %v6402_v49, %v6402_v49 }
 0x228   : > { %5917 = vst [vmem:[%s8571_s28 + $0x38] sm:$0xff] %v5869_v23  }
 0x229   : > { %5916 = vst [vmem:[%s8571_s28 + $0x30] sm:$0xff] %v5864_v41   ;;  %v4990_v5 = vadd.f32 %v6399_v0, %v4989_v1  ;;  %v5053_v22 = vadd.f32 %v5052_v25, %v5022_v7  ;;  %v6371_v44 = vpop.f32.mrb[16].mxu0 }
 0x22a   : > { %v6235_v3 = vpop.f32.mrb[16].mxu1  ;;  %v4722_v51 = vpop.f32.mrb[17].mxu0 }
 0x22b   : > { %v5054_v28 = vadd.f32 %v5053_v22, %v5023_v61  ;;  %v6403_v45 = vadd.f32 %v6371_v44, %v6235_v3  ;;  %v2694_v27 = vpop.f32.mrb[17].mxu1  ;;  %v4991_v53 = vadd.f32 %v6401_v37, %v4990_v5  ;;  %v6372_v29 = vpop.f32.mrb[18].mxu0 }
 0x22c   : > { %v6404_v21 = vadd.f32 %v4722_v51, %v2694_v27  ;;  %v6236_v47 = vpop.f32.mrb[18].mxu1  ;;  %v4725_v46 = vpop.f32.mrb[19].mxu0 }
 0x22d   : > { %v5055_v15 = vadd.f32 %v5054_v28, %v5024_v55  ;;  %v6405_v60 = vadd.f32 %v6372_v29, %v6236_v47  ;;  %v2697_v20 = vpop.f32.mrb[19].mxu1  ;;  %v5027_v40 = vmul.f32 %v6403_v45, %v6403_v45 }
 0x22e   : > { %v4992_v42 = vadd.f32 %v6404_v21, %v4991_v53  ;;  %v5025_v33 = vmul.f32 %v6404_v21, %v6404_v21  ;;  %v6406_v12 = vadd.f32 %v4725_v46, %v2697_v20 }
 0x22f   : > { %v5879_v31 = vpack.c.bf16 %v6405_v60, %v6403_v45  ;;  %v5028_v43 = vmul.f32 %v6405_v60, %v6405_v60 }
 0x230   : > { %v5056_v57 = vadd.f32 %v5055_v15, %v5025_v33  ;;  %v5874_v8 = vpack.c.bf16 %v6406_v12, %v6404_v21  ;;  %v4993_v48 = vadd.f32 %v6406_v12, %v4992_v42  ;;  %v5026_v62 = vmul.f32 %v6406_v12, %v6406_v12 }
 0x231   : > { %5919 = vst [vmem:[%s8571_s28 + $0x48] sm:$0xff] %v5879_v31   ;;  %v6375_v56 = vpop.f32.mrb[20].mxu0 }
 0x232   : > { %5918 = vst [vmem:[%s8571_s28 + $0x40] sm:$0xff] %v5874_v8   ;;  %v4994_v13 = vadd.f32 %v6403_v45, %v4993_v48  ;;  %v5057_v17 = vadd.f32 %v5056_v57, %v5026_v62  ;;  %v6239_v30 = vpop.f32.mrb[20].mxu1  ;;  %v4738_v9 = vpop.f32.mrb[21].mxu0 }
 0x233   : > { %v6407_v14 = vadd.f32 %v6375_v56, %v6239_v30  ;;  %v2710_v63 = vpop.f32.mrb[21].mxu1  ;;  %v6376_v4 = vpop.f32.mrb[22].mxu0 }
 0x234   : > { %v5058_v16 = vadd.f32 %v5057_v17, %v5027_v40  ;;  %v6408_v58 = vadd.f32 %v4738_v9, %v2710_v63  ;;  %v4995_v50 = vadd.f32 %v6405_v60, %v4994_v13  ;;  %v6240_v54 = vpop.f32.mrb[22].mxu1  ;;  %v4741_v18 = vpop.f32.mrb[23].mxu0 }
 0x235   : > { %v6409_v11 = vadd.f32 %v6376_v4, %v6240_v54  ;;  %v2713_v52 = vpop.f32.mrb[23].mxu1  ;;  %v5031_v37 = vmul.f32 %v6407_v14, %v6407_v14 }
 0x236   : > { %v4996_v2 = vadd.f32 %v6408_v58, %v4995_v50  ;;  %v5029_v32 = vmul.f32 %v6408_v58, %v6408_v58  ;;  %v5059_v39 = vadd.f32 %v5058_v16, %v5028_v43  ;;  %v6410_v0 = vadd.f32 %v4741_v18, %v2713_v52 }
 0x237   : > { %v5889_v24 = vpack.c.bf16 %v6409_v11, %v6407_v14  ;;  %v5032_v41 = vmul.f32 %v6409_v11, %v6409_v11 }
 0x238   : > { %v5060_v36 = vadd.f32 %v5059_v39, %v5029_v32  ;;  %v5884_v10 = vpack.c.bf16 %v6410_v0, %v6408_v58  ;;  %v4997_v59 = vadd.f32 %v6410_v0, %v4996_v2  ;;  %v5030_v19 = vmul.f32 %v6410_v0, %v6410_v0 }
 0x239   : > { %5921 = vst [vmem:[%s8571_s28 + $0x58] sm:$0xff] %v5889_v24   ;;  %v6379_v38 = vpop.f32.mrb[24].mxu0 }
 0x23a   : > { %5920 = vst [vmem:[%s8571_s28 + $0x50] sm:$0xff] %v5884_v10   ;;  %v4998_v26 = vadd.f32 %v6407_v14, %v4997_v59  ;;  %v5061_v35 = vadd.f32 %v5060_v36, %v5030_v19  ;;  %v6243_v34 = vpop.f32.mrb[24].mxu1  ;;  %v4754_v6 = vpop.f32.mrb[25].mxu0 }
 0x23b   : > { %v6411_v49 = vadd.f32 %v6379_v38, %v6243_v34  ;;  %v2726_v23 = vpop.f32.mrb[25].mxu1  ;;  %v6380_v25 = vpop.f32.mrb[26].mxu0 }
 0x23c   : > { %v5062_v1 = vadd.f32 %v5061_v35, %v5031_v37  ;;  %v6412_v7 = vadd.f32 %v4754_v6, %v2726_v23  ;;  %v4999_v61 = vadd.f32 %v6409_v11, %v4998_v26  ;;  %v6244_v5 = vpop.f32.mrb[26].mxu1  ;;  %v4757_v22 = vpop.f32.mrb[27].mxu0 }
 0x23d   : > { %v6413_v44 = vadd.f32 %v6380_v25, %v6244_v5  ;;  %v2729_v3 = vpop.f32.mrb[27].mxu1  ;;  %v5035_v15 = vmul.f32 %v6411_v49, %v6411_v49 }
 0x23e   : > { %v5000_v51 = vadd.f32 %v6412_v7, %v4999_v61  ;;  %v5033_v55 = vmul.f32 %v6412_v7, %v6412_v7  ;;  %v5063_v28 = vadd.f32 %v5062_v1, %v5032_v41  ;;  %v6414_v45 = vadd.f32 %v4757_v22, %v2729_v3 }
 0x23f   : > { %v5899_v27 = vpack.c.bf16 %v6413_v44, %v6411_v49  ;;  %v5036_v8 = vmul.f32 %v6413_v44, %v6413_v44 }
 0x240   : > { %v5064_v53 = vadd.f32 %v5063_v28, %v5033_v55  ;;  %v5894_v29 = vpack.c.bf16 %v6414_v45, %v6412_v7  ;;  %v5001_v21 = vadd.f32 %v6414_v45, %v5000_v51  ;;  %v5034_v47 = vmul.f32 %v6414_v45, %v6414_v45 }
 0x241   : > { %5923 = vst [vmem:[%s8571_s28 + $0x68] sm:$0xff] %v5899_v27   ;;  %v6383_v46 = vpop.f32.mrb[28].mxu0 }
 0x242   : > { %5922 = vst [vmem:[%s8571_s28 + $0x60] sm:$0xff] %v5894_v29   ;;  %v5002_v60 = vadd.f32 %v6411_v49, %v5001_v21  ;;  %v5065_v20 = vadd.f32 %v5064_v53, %v5034_v47  ;;  %v6247_v42 = vpop.f32.mrb[28].mxu1  ;;  %v4770_v33 = vpop.f32.mrb[29].mxu0 }
 0x243   : > { %v6415_v12 = vadd.f32 %v6383_v46, %v6247_v42  ;;  %v2742_v31 = vpop.f32.mrb[29].mxu1  ;;  %v6384_v57 = vpop.f32.mrb[30].mxu0 }
 0x244   : > { %v5066_v48 = vadd.f32 %v5065_v20, %v5035_v15  ;;  %v6416_v62 = vadd.f32 %v4770_v33, %v2742_v31  ;;  %v5003_v56 = vadd.f32 %v6413_v44, %v5002_v60  ;;  %v6248_v40 = vpop.f32.mrb[30].mxu1  ;;  %v4773_v13 = vpop.f32.mrb[31].mxu0 }
 0x245   : > { %v6417_v17 = vadd.f32 %v6384_v57, %v6248_v40  ;;  %v2745_v30 = vpop.f32.mrb[31].mxu1  ;;  %v5039_v18 = vmul.f32 %v6415_v12, %v6415_v12 }
 0x246   : > { %v5004_v9 = vadd.f32 %v6416_v62, %v5003_v56  ;;  %v5037_v14 = vmul.f32 %v6416_v62, %v6416_v62  ;;  %v5067_v63 = vadd.f32 %v5066_v48, %v5036_v8  ;;  %v6418_v4 = vadd.f32 %v4773_v13, %v2745_v30 }
 0x247   : > { %v5909_v43 = vpack.c.bf16 %v6417_v17, %v6415_v12  ;;  %v5040_v2 = vmul.f32 %v6417_v17, %v6417_v17 }
 0x248   : > { %v5068_v16 = vadd.f32 %v5067_v63, %v5037_v14  ;;  %v5904_v58 = vpack.c.bf16 %v6418_v4, %v6416_v62  ;;  %v5005_v50 = vadd.f32 %v6418_v4, %v5004_v9  ;;  %v5038_v54 = vmul.f32 %v6418_v4, %v6418_v4 }
 0x249   : > { %5925 = vst [vmem:[%s8571_s28 + $0x78] sm:$0xff] %v5909_v43  }
 0x24a   : > { %5924 = vst [vmem:[%s8571_s28 + $0x70] sm:$0xff] %v5904_v58   ;;  %v5006_v11 = vadd.f32 %v6415_v12, %v5005_v50  ;;  %v5069_v52 = vadd.f32 %v5068_v16, %v5038_v54 }
 0x24c   : > { %v5007_v32 = vadd.f32 %v6417_v17, %v5006_v11  ;;  %v5070_v39 = vadd.f32 %v5069_v52, %v5039_v18 }
 0x24e   : > { %5008 = vst [vmem:[%s239_s6] sm:$0xff] %v5007_v32  ;;  %v5071_v0 = vadd.f32 %v5070_v39, %v5040_v2 }
 0x250   : > { %5072 = vst [vmem:[%s245_s9] sm:$0xff] %v5071_v0 }
 0x251 PF: > { %s15_s17 = sadd.s32 1, %s6805_s17   ;;  %s8682_s15 = smov %s6801_s16 }
 0x252   : > { %p12_p6 = scmp.ge.s32.totalorder %s15_s17, 4   ;;  %s8683_s16 = smov %s8685_s18 }
 0x254   :  { %14 = sbr.rel (!%p12_p6) target bundleno = 2 (0x2), region = 93 }

// kernel: double_conv_forward.6
= control target key start
LH: loop header
LB: loop body
LE: loop exit
PB: predicated region body
PF: predicated region fallthrough
CT: control target
= control target key end

     0   :  { %s7408_s15 = smov 0   ;;  %s7410_s16 = smov 0   ;;  %s9247_s0 = inlined_call_operand.vmem [shape: bf16[2,18,18,128], index: 0, kind: input, shape index: {}]   ;;  %s9248_s1 = inlined_call_operand.vmem [shape: bf16[3,3,128,128], index: 1, kind: input, shape index: {}]   ;;  %s9249_s2 = inlined_call_operand.vmem [shape: bf16[512,128], index: 2, kind: output, shape index: {0}]   ;;  %s9250_s3 = inlined_call_operand.vmem [shape: f32[2,8,128], index: 3, kind: output, shape index: {1}]   ;;  %s9251_s4 = inlined_call_operand.vmem [shape: f32[2,8,128], index: 4, kind: output, shape index: {2}]  }
   0x1   :  { %s7412_s17 = smov 0  }
   0x2 LB: > { %s27_s18 = sadd.s32 1, %s7377_s16  ;;  %p5473_p0 = scmp.ge.s32.totalorder %s7381_s17, 1  ;;  %s7381_s17 = sphi %s7412_s17, %s15_s17   ;;  %s7377_s16 = sphi %s7410_s16, %s9319_s16   ;;  %s7373_s15 = sphi %s7408_s15, %s9318_s15  }
   0x3   : > { %p29_p1 = scmp.ge.s32.totalorder %s27_s18, 2  ;;  %p185_p2 = scmp.lt.s32.totalorder %s7381_s17, 3 }
   0x5   : > { %s9321_s18 = smov (%p29_p1, %s27_s18), 0  ;;  %p186_p3 = pnand %p5473_p0, %p185_p2 }
   0x7   : > { %189 = sbr.rel (%p186_p3) target bundleno = 593 (0x251), region = 28 }
   0xe   : > { %v7169_v0 = vld [vmem:[%s9248_s1 + $0x40] sm:$0xff]   ;;  %p222_p4 = scmp.lt.s32.totalorder %s7373_s15, 1  ;;  %v7171_v2 = vld [vmem:[%s9248_s1 + $0x48] sm:$0xff]   ;;  %v7173_v4 = vld [vmem:[%s9248_s1 + $0x50] sm:$0xff]   ;;  %vm316_vm0 = vsmask.f32 3328 }
   0xf   : > { %v7170_v1 = vld [vmem:[%s9248_s1 + $0x100] sm:$0xff]   ;;  %6440 = vmatprep.subr.bf16.mxu1 %v7169_v0  ;;  %v7172_v3 = vld [vmem:[%s9248_s1 + $0x108] sm:$0xff]   ;;  %v7174_v5 = vld [vmem:[%s9248_s1 + $0x110] sm:$0xff]   ;;  %vm317_vm1 = vsmask.f32 7440  ;;  %vm1346_vm3 = vcmask 1042432  }
  0x10   : > { %6632 = vmatprep.subr.bf16.mxu0 %v7170_v1  ;;  %6441 = vmatpush3.bf16.msra.mxu1 %v7169_v0  ;;  %s7448_s5 = scalar_select %p222_p4, %s7373_s15, 1  ;;  %v7175_v6 = vld [vmem:[%s9248_s1 + $0x58] sm:$0xff]   ;;  %v7177_v8 = vld [vmem:[%s9248_s1 + $0x60] sm:$0xff]   ;;  %v7179_v10 = vld [vmem:[%s9248_s1 + $0x68] sm:$0xff]   ;;  %vm1347_vm4 = vcmask 1046532  }
  0x11   : > { %6633 = vmatpush3.bf16.msra.mxu0 %v7170_v1  ;;  %6442 = vmatprep.subr.bf16.mxu1 %v7171_v2  ;;  %v7176_v7 = vld [vmem:[%s9248_s1 + $0x118] sm:$0xff]   ;;  %v7178_v9 = vld [vmem:[%s9248_s1 + $0x120] sm:$0xff]   ;;  %v7180_v11 = vld [vmem:[%s9248_s1 + $0x128] sm:$0xff]  }
  0x12   : > { %6634 = vmatprep.subr.bf16.mxu0 %v7172_v3  ;;  %s7144_s10 = smul.u32 216, %s7448_s5  ;;  %v7181_v25 = vld [vmem:[%s9248_s1 + $0x70] sm:$0xff]   ;;  %v7183_v36 = vld [vmem:[%s9248_s1 + $0x78] sm:$0xff]   ;;  %vm7498_vm2 = vmor %vm316_vm0, %vm317_vm1  ;;  %s5477_s25 = sshll.u32 %s7448_s5, 3 }
  0x13   : > { %v7182_v30 = vld [vmem:[%s9248_s1 + $0x130] sm:$0xff]   ;;  %v7184_v51 = vld [vmem:[%s9248_s1 + $0x138] sm:$0xff]   ;;  %vm7744_vm5 = vmor %vm1346_vm3, %vm1347_vm4  ;;  %s239_s28 = scalar_lea.vmem %s9250_s3, %s5477_s25  ;;  %s245_s6 = scalar_lea.vmem %s9251_s4, %s5477_s25 }
  0x14   : > { %6443 = vmatpush3.bf16.msra.mxu1 %v7171_v2  ;;  %s7466_s21 = scalar_lea.vmem %s9247_s0, %s7144_s10 }
  0x15   : > { %6635 = vmatpush3.bf16.msra.mxu0 %v7172_v3  ;;  %6444 = vmatprep.subr.bf16.mxu1 %v7173_v4  ;;  %v252_v12 = vld [vmem:[%s7466_s21] sm:$0xf]  ;;  %v253_v13 = vld [vmem:[%s7466_s21 + $0x4] sm:$0xf]  ;;  %v300_v14 = vld [vmem:[%s7466_s21 + $0x8] sm:$0x1] }
  0x16   : > { %6636 = vmatprep.subr.bf16.mxu0 %v7174_v5  ;;  %v320_v15 = vshrl.u32 %v252_v12, 16  ;;  %v323_v16 = vshll.u32 %v252_v12, 16  ;;  %v329_v17 = vshll.u32 %v253_v13, 16  ;;  %v333_v18 = vshrl.u32 %v253_v13, 16  ;;  %v5671_v20 = vld [vmem:[%s7466_s21 + $0xc] sm:$0xf] }
  0x17   : > { %v339_v19 = vshll.u32 %v300_v14, 16  ;;  %v7479_v23 = vld [vmem:[%s7466_s21 + $0x10] sm:$0xf]  ;;  %v7482_v24 = vld [vmem:[%s7466_s21 + $0x14] sm:$0x1]  ;;  %v2222_v29 = vshrl.u32 %v5671_v20, 16 }
  0x18   : > { %6445 = vmatpush3.bf16.msra.mxu1 %v7173_v4  ;;  %v322_v21 = vrot.slane %v320_v15, 4  ;;  %v325_v22 = vrot.slane %v323_v16, 5  ;;  %v331_v26 = vrot.slane %v329_v17, 5  ;;  %v335_v27 = vrot.slane %v333_v18, 4  ;;  %v254_v35 = vld [vmem:[%s7466_s21 + $0xc] sm:$0xf] }
  0x19   : > { %6637 = vmatpush3.bf16.msra.mxu0 %v7174_v5  ;;  %6446 = vmatprep.subr.bf16.mxu1 %v7175_v6  ;;  %v341_v28 = vrot.slane %v339_v19, 5  ;;  %v2225_v32 = vshll.u32 %v5671_v20, 16  ;;  %v2231_v33 = vshll.u32 %v7479_v23, 16  ;;  %v2235_v34 = vshrl.u32 %v7479_v23, 16  ;;  %v255_v42 = vld [vmem:[%s7466_s21 + $0x10] sm:$0xf] }
  0x1a   : > { %6638 = vmatprep.subr.bf16.mxu0 %v7176_v7  ;;  %v326_v31 = vor.u32 %v325_v22, %v322_v21  ;;  %v336_v38 = vor.u32 %v335_v27, %v331_v26  ;;  %v2224_v39 = vrot.slane %v2222_v29, 4  ;;  %v2241_v40 = vshll.u32 %v7482_v24, 16  ;;  %v301_v55 = vld [vmem:[%s7466_s21 + $0x14] sm:$0x1]  ;;  %v5674_v57 = vld [vmem:[%s7466_s21 + $0x18] sm:$0xf] }
  0x1b   : > { %v2996_v41 = vrot.slane %v7482_v24, 5  ;;  %v2227_v44 = vrot.slane %v2225_v32, 5  ;;  %v2233_v45 = vrot.slane %v2231_v33, 5  ;;  %v2237_v46 = vrot.slane %v2235_v34, 4  ;;  %v7515_v62 = vld [vmem:[%s7466_s21 + $0x1c] sm:$0xf] }
  0x1c   : > { %6447 = vmatpush3.bf16.msra.mxu1 %v7175_v6  ;;  %v327_v43 = vrot.slane %v326_v31, 4  ;;  %v337_v47 = vrot.slane %v336_v38, 4  ;;  %v2243_v48 = vrot.slane %v2241_v40, 5  ;;  %v344_v49 = vshrl.u32 %v254_v35, 16  ;;  %v7185_v3 = vld [vmem:[%s9248_s1] sm:$0xff]  }
  0x1d   : > { %6639 = vmatpush3.bf16.msra.mxu0 %v7176_v7  ;;  %6448 = vmatprep.subr.bf16.mxu1 %v7177_v8  ;;  %v347_v50 = vshll.u32 %v254_v35, 16  ;;  %v2228_v53 = vor.u32 %v2227_v44, %v2224_v39  ;;  %v2238_v54 = vor.u32 %v2237_v46, %v2233_v45  ;;  %v353_v56 = vshll.u32 %v255_v42, 16  ;;  %v7523_v4 = vld [vmem:[%s9248_s1 + $0x140] sm:$0xff]   ;;  %v256_v21 = vld [vmem:[%s7466_s21 + $0x18] sm:$0xf]  ;;  %v7188_v46 = vld [vmem:[%s9248_s1 + $0x8] sm:$0xff]  }
  0x1e   : > { %6640 = vmatprep.subr.bf16.mxu0 %v7178_v9  ;;  %v332_v52 = vsel %vm7498_vm2, %v327_v43, %v331_v26  ;;  %v342_v58 = vsel %vm7498_vm2, %v337_v47, %v341_v28  ;;  %v346_v59 = vrot.slane %v344_v49, 4  ;;  %v357_v61 = vshrl.u32 %v255_v42, 16  ;;  %v257_v28 = vld [vmem:[%s7466_s21 + $0x1c] sm:$0xf]  ;;  %v302_v33 = vld [vmem:[%s7466_s21 + $0x20] sm:$0x1] }
  0x1f   : > { %v349_v60 = vrot.slane %v347_v50, 5  ;;  %v5495_v63 = vcombine.low %v332_v52, %v342_v58  ;;  %v2229_v0 = vrot.slane %v2228_v53, 4  ;;  %v2239_v1 = vrot.slane %v2238_v54, 4  ;;  %v5677_v39 = vld [vmem:[%s7466_s21 + $0x24] sm:$0xf] }
  0x20   : > { %6449 = vmatpush3.bf16.msra.mxu1 %v7177_v8  ;;  %v355_v2 = vrot.slane %v353_v56, 5  ;;  %v359_v6 = vrot.slane %v357_v61, 4  ;;  %v363_v7 = vshll.u32 %v301_v55, 16  ;;  %v7526_v8 = vld [vmem:[%s7466_s21 + $0x20] sm:$0x1]  ;;  %v2249_v12 = vshll.u32 %v5674_v57, 16 }
  0x21   : > { %6641 = vmatpush3.bf16.msra.mxu0 %v7178_v9  ;;  %6450 = vmatprep.subr.bf16.mxu1 %v7179_v10  ;;  %v350_v5 = vor.u32 %v349_v60, %v346_v59  ;;  %v2234_v9 = vsel %vm7498_vm2, %v2229_v0, %v2233_v45  ;;  %v2255_v19 = vshll.u32 %v7515_v62, 16  ;;  %v2259_v20 = vshrl.u32 %v7515_v62, 16  ;;  %v7551_v45 = vld [vmem:[%s7466_s21 + $0x28] sm:$0xf]  ;;  %v258_v52 = vld [vmem:[%s7466_s21 + $0x24] sm:$0xf] }
  0x22   : > { %6642 = vmatprep.subr.bf16.mxu0 %v7180_v11  ;;  %6456 = vmatprep.mubr.bf16.mxu1 %v5495_v63  ;;  %v360_v15 = vor.u32 %v359_v6, %v355_v2  ;;  %v365_v16 = vrot.slane %v363_v7, 5  ;;  %v2251_v18 = vrot.slane %v2249_v12, 5  ;;  %v2265_v26 = vshll.u32 %v7526_v8, 16  ;;  %v7187_v63 = vld [vmem:[%s9248_s1 + $0x148] sm:$0xff]  }
  0x23   : > { %v351_v14 = vrot.slane %v350_v5, 4  ;;  %v3000_v27 = vrot.slane %v7515_v62, 5  ;;  %v2261_v31 = vrot.slane %v2259_v20, 4  ;;  %v3003_v32 = vrot.slane %v7526_v8, 5  ;;  %v259_v5 = vld [vmem:[%s7466_s21 + $0x28] sm:$0xf] }
  0x24   : > { %6451 = vmatpush3.bf16.msra.mxu1 %v7179_v10  ;;  %v2244_v10 = vsel %vm7498_vm2, %v2239_v1, %v2243_v48  ;;  %v2267_v35 = vrot.slane %v2265_v26, 5  ;;  %v368_v38 = vshrl.u32 %v256_v21, 16  ;;  %v371_v44 = vshll.u32 %v256_v21, 16 }
  0x25   : > { %6643 = vmatpush3.bf16.msra.mxu0 %v7180_v11  ;;  %6452 = vmatprep.subr.bf16.mxu1 %v7181_v25  ;;  %v2246_v11 = vshrl.u32 %v5674_v57, 16  ;;  %v5735_v13 = vcombine.low %v2234_v9, %v2244_v10  ;;  %v356_v22 = vsel %vm7498_vm2, %v351_v14, %v355_v2  ;;  %v377_v48 = vshll.u32 %v257_v28, 16 }
  0x26   : > { %6644 = vmatprep.subr.bf16.mxu0 %v7182_v30  ;;  %v370_v47 = vrot.slane %v368_v38, 4  ;;  %v381_v49 = vshrl.u32 %v257_v28, 16  ;;  %v387_v50 = vshll.u32 %v302_v33, 16  ;;  %v373_v55 = vrot.slane %v371_v44, 5  ;;  %v7582_v33 = vld [vmem:[%s7466_s21 + $0x34] sm:$0xf] }
  0x27   : > { %v2248_v17 = vrot.slane %v2246_v11, 4  ;;  %6648 = vmatprep.mubr.bf16.mxu0 %v5735_v13  ;;  %v2270_v56 = vshrl.u32 %v5677_v39, 16  ;;  %v379_v57 = vrot.slane %v377_v48, 5  ;;  %v2273_v60 = vshll.u32 %v5677_v39, 16  ;;  %v303_v11 = vld [vmem:[%s7466_s21 + $0x2c] sm:$0x1] }
  0x28   : > { %6453 = vmatpush3.bf16.msra.mxu1 %v7181_v25  ;;  %v361_v25 = vrot.slane %v360_v15, 4  ;;  %v383_v58 = vrot.slane %v381_v49, 4  ;;  %v389_v59 = vrot.slane %v387_v50, 5  ;;  %v374_v0 = vor.u32 %v373_v55, %v370_v47  ;;  %v7190_v48 = vld [vmem:[%s9248_s1 + $0x158] sm:$0xff]  }
  0x29   : > { %6645 = vmatpush3.bf16.msra.mxu0 %v7182_v30  ;;  %6454 = vmatprep.subr.bf16.mxu1 %v7183_v36  ;;  %v2252_v29 = vor.u32 %v2251_v18, %v2248_v17  ;;  %v2257_v30 = vrot.slane %v2255_v19, 5  ;;  %v2272_v1 = vrot.slane %v2270_v56, 4  ;;  %v2279_v2 = vshll.u32 %v7551_v45, 16 }
  0x2a   : > { %6646 = vmatprep.subr.bf16.mxu0 %v7184_v51  ;;  %v366_v34 = vsel %vm7498_vm2, %v361_v25, %v365_v16  ;;  %v384_v7 = vor.u32 %v383_v58, %v379_v57  ;;  %v2275_v9 = vrot.slane %v2273_v60, 5  ;;  %v2283_v10 = vshrl.u32 %v7551_v45, 16  ;;  %v5680_v16 = vld [vmem:[%s7466_s21 + $0x30] sm:$0xf]  ;;  %v7197_v60 = vld [vmem:[%s9248_s1 + $0x20] sm:$0xff]  }
  0x2b   : > { %v5496_v40 = vcombine.low %v356_v22, %v366_v34  ;;  %v2253_v42 = vrot.slane %v2252_v29, 4  ;;  %v2262_v43 = vor.u32 %v2261_v31, %v2257_v30  ;;  %v375_v12 = vrot.slane %v374_v0, 4  ;;  %v7194_v34 = vld [vmem:[%s9248_s1 + $0x18] sm:$0xff]  }
  0x2c   : > { %6455 = vmatpush3.bf16.msra.mxu1 %v7183_v36  ;;  %v7547_v36 = vrot.slane %v3000_v27, 4  ;;  %v2281_v13 = vrot.slane %v2279_v2, 5  ;;  %v392_v15 = vshrl.u32 %v258_v52, 16  ;;  %v385_v17 = vrot.slane %v384_v7, 4  ;;  %v304_v2 = vld [vmem:[%s7466_s21 + $0x38] sm:$0x1] }
  0x2d   : > { %6647 = vmatpush3.bf16.msra.mxu0 %v7184_v51  ;;  %6488 = vmatprep.subr.bf16.mxu1 %v7185_v3  ;;  %v7557_v51 = vld [vmem:[%s7466_s21 + $0x2c] sm:$0x1]  ;;  %v2258_v53 = vsel %vm7498_vm2, %v2253_v42, %v2257_v30  ;;  %v2263_v54 = vrot.slane %v2262_v43, 4  ;;  %v2276_v18 = vor.u32 %v2275_v9, %v2272_v1  ;;  %v2285_v19 = vrot.slane %v2283_v10, 4  ;;  %v5683_v9 = vld [vmem:[%s7466_s21 + $0x3c] sm:$0xf] }
  0x2e   : > { %6680 = vmatprep.subr.bf16.mxu0 %v7523_v4  ;;  %v2289_v14 = vshll.u32 %v7557_v51, 16  ;;  %v395_v20 = vshll.u32 %v258_v52, 16  ;;  %v380_v21 = vsel %vm7498_vm2, %v375_v12, %v379_v57  ;;  %v394_v25 = vrot.slane %v392_v15, 4 }
  0x2f   : > { %6457 = vmatmul.mubr.bf16.vlgmr.msra.gmra.mrb[0].mxu1 %v5496_v40  ;;  %v2268_v61 = vsel %vm7498_vm2, %v2263_v54, %v2267_v35  ;;  %v401_v26 = vshll.u32 %v259_v5, 16  ;;  %v390_v28 = vsel %vm7498_vm2, %v385_v17, %v389_v59  ;;  %v2277_v29 = vrot.slane %v2276_v18, 4  ;;  %v260_v54 = vld [vmem:[%s7466_s21 + $0x30] sm:$0xf]  ;;  %v261_v59 = vld [vmem:[%s7466_s21 + $0x34] sm:$0xf] }
  0x30   : > { %6489 = vmatpush3.bf16.msra.mxu1 %v7185_v3  ;;  %v7191_v3 = vld [vmem:[%s9248_s1 + $0x10] sm:$0xff]   ;;  %v5736_v6 = vcombine.low %v2258_v53, %v2268_v61  ;;  %v2291_v22 = vrot.slane %v2289_v14, 5  ;;  %v2286_v30 = vor.u32 %v2285_v19, %v2281_v13  ;;  %v397_v31 = vrot.slane %v395_v20, 5  ;;  %v7199_v14 = vld [vmem:[%s9248_s1 + $0x28] sm:$0xff]   ;;  %v7616_v19 = vld [vmem:[%s7466_s21 + $0x40] sm:$0xf] }
  0x31   : > { %6490 = vmatprep.subr.bf16.mxu1 %v7188_v46  ;;  %v5497_v35 = vcombine.low %v380_v21, %v390_v28  ;;  %v403_v38 = vrot.slane %v401_v26, 5  ;;  %v405_v39 = vshrl.u32 %v259_v5, 16  ;;  %v411_v40 = vshll.u32 %v303_v11, 16  ;;  %v7192_v20 = vld [vmem:[%s9248_s1 + $0x160] sm:$0xff]  }
  0x32   : > { %6649 = vmatmul.mubr.bf16.vlgmr.msra.gmra.mrb[0].mxu0 %v5736_v6  ;;  %v2282_v42 = vsel %vm7498_vm2, %v2277_v29, %v2281_v13  ;;  %v2287_v43 = vrot.slane %v2286_v30, 4  ;;  %v398_v44 = vor.u32 %v397_v31, %v394_v25  ;;  %v2294_v47 = vshrl.u32 %v5680_v16, 16  ;;  %v7624_v28 = vld [vmem:[%s7466_s21 + $0x44] sm:$0x1] }
  0x33   : > { %6681 = vmatpush3.bf16.msra.mxu0 %v7523_v4  ;;  %v7189_v4 = vld [vmem:[%s9248_s1 + $0x150] sm:$0xff]   ;;  %6460 = vmatprep.mubr.bf16.mxu1 %v5497_v35  ;;  %v407_v49 = vrot.slane %v405_v39, 4  ;;  %v413_v50 = vrot.slane %v411_v40, 5  ;;  %v2297_v52 = vshll.u32 %v5680_v16, 16  ;;  %v2303_v53 = vshll.u32 %v7582_v33, 16 }
  0x34   : > { %6491 = vmatpush3.bf16.msra.mxu1 %v7188_v46  ;;  %6682 = vmatprep.subr.bf16.mxu0 %v7187_v63  ;;  %v7593_v46 = vld [vmem:[%s7466_s21 + $0x38] sm:$0x1]  ;;  %v2292_v55 = vsel %vm7498_vm2, %v2287_v43, %v2291_v22  ;;  %v399_v56 = vrot.slane %v398_v44, 4  ;;  %v2296_v57 = vrot.slane %v2294_v47, 4  ;;  %v2307_v58 = vshrl.u32 %v7582_v33, 16  ;;  %v7201_v35 = vld [vmem:[%s9248_s1 + $0x30] sm:$0xff]  }
  0x35   : > { %6492 = vmatprep.subr.bf16.mxu1 %v7191_v3  ;;  %v5737_v61 = vcombine.low %v2282_v42, %v2292_v55  ;;  %v2299_v0 = vrot.slane %v2297_v52, 5  ;;  %v2305_v1 = vrot.slane %v2303_v53, 5  ;;  %v2313_v6 = vshll.u32 %v7593_v46, 16  ;;  %v263_v55 = vld [vmem:[%s7466_s21 + $0x40] sm:$0xf] }
  0x36   : > { %v404_v5 = vsel %vm7498_vm2, %v399_v56, %v403_v38  ;;  %v416_v7 = vshrl.u32 %v260_v54, 16  ;;  %v419_v12 = vshll.u32 %v260_v54, 16  ;;  %v425_v13 = vshll.u32 %v261_v59, 16 }
  0x37   : > { %6683 = vmatpush3.bf16.msra.mxu0 %v7187_v63  ;;  %v408_v63 = vor.u32 %v407_v49, %v403_v38  ;;  %6652 = vmatprep.mubr.bf16.mxu0 %v5737_v61  ;;  %v2300_v11 = vor.u32 %v2299_v0, %v2296_v57  ;;  %v2315_v16 = vrot.slane %v2313_v6, 5  ;;  %v429_v18 = vshrl.u32 %v261_v59, 16 }
  0x38   : > { %6493 = vmatpush3.bf16.msra.mxu1 %v7191_v3  ;;  %6684 = vmatprep.subr.bf16.mxu0 %v7189_v4  ;;  %v2309_v3 = vrot.slane %v2307_v58, 4  ;;  %v418_v17 = vrot.slane %v416_v7, 4  ;;  %v421_v25 = vrot.slane %v419_v12, 5  ;;  %v427_v26 = vrot.slane %v425_v13, 5 }
  0x39   : > { %6494 = vmatprep.subr.bf16.mxu1 %v7194_v34  ;;  %v409_v10 = vrot.slane %v408_v63, 4  ;;  %v2301_v22 = vrot.slane %v2300_v11, 4  ;;  %v431_v31 = vrot.slane %v429_v18, 4  ;;  %v2318_v40 = vshrl.u32 %v5683_v9, 16  ;;  %v305_v63 = vld [vmem:[%s7466_s21 + $0x44] sm:$0x1] }
  0x3a   : > { %v2310_v15 = vor.u32 %v2309_v3, %v2305_v1  ;;  %v422_v39 = vor.u32 %v421_v25, %v418_v17  ;;  %v2321_v42 = vshll.u32 %v5683_v9, 16  ;;  %v2327_v49 = vshll.u32 %v7616_v19, 16  ;;  %v5686_v9 = vld [vmem:[%s7466_s21 + $0x48] sm:$0xf] }
  0x3b   : > { %6685 = vmatpush3.bf16.msra.mxu0 %v7189_v4  ;;  %v414_v21 = vsel %vm7498_vm2, %v409_v10, %v413_v50  ;;  %v435_v4 = vshll.u32 %v304_v2, 16  ;;  %v2306_v38 = vsel %vm7498_vm2, %v2301_v22, %v2305_v1  ;;  %v432_v44 = vor.u32 %v431_v31, %v427_v26  ;;  %v7203_v2 = vld [vmem:[%s9248_s1 + $0x38] sm:$0xff]   ;;  %v7657_v22 = vld [vmem:[%s7466_s21 + $0x50] sm:$0x1] }
  0x3c   : > { %6495 = vmatpush3.bf16.msra.mxu1 %v7194_v34  ;;  %6686 = vmatprep.subr.bf16.mxu0 %v7190_v48  ;;  %v5498_v29 = vcombine.low %v404_v5, %v414_v21  ;;  %v2311_v30 = vrot.slane %v2310_v15, 4  ;;  %v262_v34 = vld [vmem:[%s7466_s21 + $0x3c] sm:$0xf]  ;;  %v423_v52 = vrot.slane %v422_v39, 4  ;;  %v2320_v53 = vrot.slane %v2318_v40, 4  ;;  %v7195_v15 = vld [vmem:[%s9248_s1 + $0x170] sm:$0xff]  }
  0x3d   : > { %6496 = vmatprep.subr.bf16.mxu1 %v7197_v60  ;;  %v437_v47 = vrot.slane %v435_v4, 5  ;;  %v2323_v54 = vrot.slane %v2321_v42, 5  ;;  %v433_v56 = vrot.slane %v432_v44, 4  ;;  %v2329_v57 = vrot.slane %v2327_v49, 5  ;;  %v7196_v31 = vld [vmem:[%s9248_s1 + $0x178] sm:$0xff]   ;;  %v7668_v4 = vld [vmem:[%s9248_s1 + $0x80] sm:$0xff]  }
  0x3e   : > { %6461 = vmatmul.mubr.bf16.gmra.mrb[4].mxu1 %v5498_v29  ;;  %v2316_v43 = vsel %vm7498_vm2, %v2311_v30, %v2315_v16  ;;  %v2331_v58 = vshrl.u32 %v7616_v19, 16  ;;  %v2337_v59 = vshll.u32 %v7624_v28, 16  ;;  %v440_v0 = vshrl.u32 %v262_v34, 16  ;;  %v264_v30 = vld [vmem:[%s7466_s21 + $0x48] sm:$0xf] }
  0x3f   : > { %6687 = vmatpush3.bf16.msra.mxu0 %v7190_v48  ;;  %v5738_v50 = vcombine.low %v2306_v38, %v2316_v43  ;;  %v7193_v48 = vld [vmem:[%s9248_s1 + $0x168] sm:$0xff]   ;;  %v2324_v61 = vor.u32 %v2323_v54, %v2320_v53  ;;  %v443_v1 = vshll.u32 %v262_v34, 16  ;;  %v438_v5 = vsel %vm7498_vm2, %v433_v56, %v437_v47  ;;  %v306_v54 = vld [vmem:[%s7466_s21 + $0x50] sm:$0x1] }
  0x40   : > { %6497 = vmatpush3.bf16.msra.mxu1 %v7197_v60  ;;  %6688 = vmatprep.subr.bf16.mxu0 %v7192_v20  ;;  %v428_v60 = vsel %vm7498_vm2, %v423_v52, %v427_v26  ;;  %v2333_v3 = vrot.slane %v2331_v58, 4  ;;  %v2339_v6 = vrot.slane %v2337_v59, 5  ;;  %v449_v7 = vshll.u32 %v263_v55, 16  ;;  %v265_v53 = vld [vmem:[%s7466_s21 + $0x4c] sm:$0xf] }
  0x41   : > { %6498 = vmatprep.subr.bf16.mxu1 %v7199_v14  ;;  %6653 = vmatmul.mubr.bf16.gmra.mrb[4].mxu0 %v5738_v50  ;;  %v5499_v10 = vcombine.low %v428_v60, %v438_v5  ;;  %v2325_v11 = vrot.slane %v2324_v61, 4  ;;  %v442_v12 = vrot.slane %v440_v0, 4  ;;  %v445_v13 = vrot.slane %v443_v1, 5  ;;  %v5689_v58 = vld [vmem:[%s7466_s21 + $0x54] sm:$0xf] }
  0x42   : > { %v2334_v16 = vor.u32 %v2333_v3, %v2329_v57  ;;  %v451_v17 = vrot.slane %v449_v7, 5  ;;  %v453_v18 = vshrl.u32 %v263_v55, 16  ;;  %v459_v21 = vshll.u32 %v305_v63, 16  ;;  %v7682_v0 = vld [vmem:[%s7466_s21 + $0x58] sm:$0xf] }
  0x43   : > { %6689 = vmatpush3.bf16.msra.mxu0 %v7192_v20  ;;  %6464 = vmatprep.mubr.bf16.mxu1 %v5499_v10  ;;  %v2330_v20 = vsel %vm7498_vm2, %v2325_v11, %v2329_v57  ;;  %v446_v25 = vor.u32 %v445_v13, %v442_v12  ;;  %v2342_v26 = vshrl.u32 %v5686_v9, 16  ;;  %v2345_v29 = vshll.u32 %v5686_v9, 16 }
  0x44   : > { %6499 = vmatpush3.bf16.msra.mxu1 %v7199_v14  ;;  %v7651_v14 = vld [vmem:[%s7466_s21 + $0x4c] sm:$0xf]  ;;  %6690 = vmatprep.subr.bf16.mxu0 %v7193_v48  ;;  %v2335_v34 = vrot.slane %v2334_v16, 4  ;;  %v461_v38 = vrot.slane %v459_v21, 5  ;;  %v2361_v52 = vshll.u32 %v7657_v22, 16  ;;  %v464_v61 = vshrl.u32 %v264_v30, 16 }
  0x45   : > { %6500 = vmatprep.subr.bf16.mxu1 %v7201_v35  ;;  %v2351_v39 = vshll.u32 %v7651_v14, 16  ;;  %v447_v40 = vrot.slane %v446_v25, 4  ;;  %v2344_v42 = vrot.slane %v2342_v26, 4  ;;  %v2347_v43 = vrot.slane %v2345_v29, 5 }
  0x46   : > { %v2355_v44 = vshrl.u32 %v7651_v14, 16  ;;  %v2340_v47 = vsel %vm7498_vm2, %v2335_v34, %v2339_v6  ;;  %v2363_v60 = vrot.slane %v2361_v52, 5  ;;  %v467_v63 = vshll.u32 %v264_v30, 16  ;;  %v7687_v6 = vld [vmem:[%s9248_s1 + $0x180] sm:$0xff]  }
  0x47   : > { %6691 = vmatpush3.bf16.msra.mxu0 %v7193_v48  ;;  %v2353_v50 = vrot.slane %v2351_v39, 5  ;;  %v5739_v55 = vcombine.low %v2330_v20, %v2340_v47  ;;  %v452_v48 = vsel %vm7498_vm2, %v447_v40, %v451_v17  ;;  %v2348_v56 = vor.u32 %v2347_v43, %v2344_v42  ;;  %v7694_v20 = vld [vmem:[%s7466_s21 + $0x5c] sm:$0x1]  ;;  %v267_v43 = vld [vmem:[%s7466_s21 + $0x58] sm:$0xf] }
  0x48   : > { %6501 = vmatpush3.bf16.msra.mxu1 %v7201_v35  ;;  %v455_v35 = vrot.slane %v453_v18, 4  ;;  %6692 = vmatprep.subr.bf16.mxu0 %v7195_v15  ;;  %v2357_v57 = vrot.slane %v2355_v44, 4  ;;  %v477_v3 = vshrl.u32 %v265_v53, 16  ;;  %v466_v9 = vrot.slane %v464_v61, 4  ;;  %v5692_v52 = vld [vmem:[%s7466_s21 + $0x60] sm:$0xf] }
  0x49   : > { %6502 = vmatprep.subr.bf16.mxu1 %v7203_v2  ;;  %6656 = vmatprep.mubr.bf16.mxu0 %v5739_v55  ;;  %v2349_v1 = vrot.slane %v2348_v56, 4  ;;  %v469_v10 = vrot.slane %v467_v63, 5  ;;  %v483_v11 = vshll.u32 %v306_v54, 16  ;;  %v2366_v25 = vshrl.u32 %v5689_v58, 16 }
  0x4a   : > { %v456_v49 = vor.u32 %v455_v35, %v451_v17  ;;  %v2358_v5 = vor.u32 %v2357_v57, %v2353_v50  ;;  %v479_v18 = vrot.slane %v477_v3, 4  ;;  %v2369_v29 = vshll.u32 %v5689_v58, 16  ;;  %v266_v35 = vld [vmem:[%s7466_s21 + $0x54] sm:$0xf] }
  0x4b   : > { %6693 = vmatpush3.bf16.msra.mxu0 %v7195_v15  ;;  %v2354_v13 = vsel %vm7498_vm2, %v2349_v1, %v2353_v50  ;;  %v470_v17 = vor.u32 %v469_v10, %v466_v9  ;;  %v485_v21 = vrot.slane %v483_v11, 5  ;;  %v2375_v30 = vshll.u32 %v7682_v0, 16  ;;  %v307_v50 = vld [vmem:[%s7466_s21 + $0x5c] sm:$0x1] }
  0x4c   : > { %6503 = vmatpush3.bf16.msra.mxu1 %v7203_v2  ;;  %v457_v59 = vrot.slane %v456_v49, 4  ;;  %v473_v2 = vshll.u32 %v265_v53, 16  ;;  %6694 = vmatprep.subr.bf16.mxu0 %v7196_v31  ;;  %v2359_v15 = vrot.slane %v2358_v5, 4  ;;  %v2379_v34 = vshrl.u32 %v7682_v0, 16 }
  0x4d   : > { %6536 = vmatprep.subr.bf16.mxu1 %v7668_v4  ;;  %v471_v39 = vrot.slane %v470_v17, 4  ;;  %v2368_v42 = vrot.slane %v2366_v25, 4  ;;  %v2377_v44 = vrot.slane %v2375_v30, 5  ;;  %v2385_v49 = vshll.u32 %v7694_v20, 16  ;;  %v7718_v17 = vld [vmem:[%s7466_s21 + $0x68] sm:$0x1] }
  0x4e   : > { %v462_v7 = vsel %vm7498_vm2, %v457_v59, %v461_v38  ;;  %v475_v16 = vrot.slane %v473_v2, 5  ;;  %v2364_v26 = vsel %vm7498_vm2, %v2359_v15, %v2363_v60  ;;  %v2381_v47 = vrot.slane %v2379_v34, 4  ;;  %v7709_v60 = vld [vmem:[%s7466_s21 + $0x64] sm:$0xf]  ;;  %v7722_v25 = vld [vmem:[%s7466_s21 + $0x60] sm:$0xf] }
  0x4f   : > { %v5500_v12 = vcombine.low %v452_v48, %v462_v7  ;;  %6695 = vmatpush3.bf16.msra.mxu0 %v7196_v31  ;;  %v5740_v38 = vcombine.low %v2354_v13, %v2364_v26  ;;  %v2371_v31 = vrot.slane %v2369_v29, 5  ;;  %v488_v55 = vshrl.u32 %v266_v35, 16 }
  0x50   : > { %6728 = vmatprep.subr.bf16.mxu0 %v7687_v6  ;;  %v480_v40 = vor.u32 %v479_v18, %v475_v16  ;;  %v476_v53 = vsel %vm7498_vm2, %v471_v39, %v475_v16  ;;  %v491_v48 = vshll.u32 %v266_v35, 16  ;;  %v2382_v57 = vor.u32 %v2381_v47, %v2377_v44  ;;  %v7725_v35 = vld [vmem:[%s7466_s21 + $0x64] sm:$0xf] }
  0x51   : > { %6465 = vmatmul.mubr.bf16.gmra.mrb[8].mxu1 %v5500_v12  ;;  %6657 = vmatmul.mubr.bf16.gmra.mrb[8].mxu0 %v5740_v38  ;;  %v2372_v56 = vor.u32 %v2371_v31, %v2368_v42  ;;  %v2387_v58 = vrot.slane %v2385_v49, 5  ;;  %v497_v59 = vshll.u32 %v267_v43, 16  ;;  %v490_v63 = vrot.slane %v488_v55, 4 }
  0x52   : > { %v481_v54 = vrot.slane %v480_v40, 4  ;;  %v493_v1 = vrot.slane %v491_v48, 5  ;;  %v501_v5 = vshrl.u32 %v267_v43, 16  ;;  %v2383_v7 = vrot.slane %v2382_v57, 4  ;;  %v308_v43 = vld [vmem:[%s7466_s21 + $0x68] sm:$0x1] }
  0x53   : > { %v2373_v3 = vrot.slane %v2372_v56, 4  ;;  %v499_v9 = vrot.slane %v497_v59, 5  ;;  %v507_v12 = vshll.u32 %v307_v50, 16  ;;  %v2390_v13 = vshrl.u32 %v5692_v52, 16  ;;  %v5759_v50 = vld [vmem:[%s7466_s21 + $0xc] sm:$0xe] }
  0x54   : > { %v486_v61 = vsel %vm7498_vm2, %v481_v54, %v485_v21  ;;  %v494_v10 = vor.u32 %v493_v1, %v490_v63  ;;  %v503_v11 = vrot.slane %v501_v5, 4  ;;  %v2388_v16 = vsel %vm7498_vm2, %v2383_v7, %v2387_v58  ;;  %v7740_v5 = vld [vmem:[%s7466_s21 + $0x6c] sm:$0xf] }
  0x55   : > { %v5501_v2 = vcombine.low %v476_v53, %v486_v61  ;;  %v2378_v15 = vsel %vm7498_vm2, %v2373_v3, %v2377_v44  ;;  %v2393_v18 = vshll.u32 %v5692_v52, 16  ;;  %v2399_v21 = vshll.u32 %v7709_v60, 16 }
  0x56   : > { %v5741_v26 = vcombine.low %v2378_v15, %v2388_v16  ;;  %v495_v29 = vrot.slane %v494_v10, 4  ;;  %v504_v30 = vor.u32 %v503_v11, %v499_v9  ;;  %v509_v34 = vrot.slane %v507_v12, 5 }
  0x57   : > { %6468 = vmatprep.mubr.bf16.mxu1 %v5501_v2  ;;  %v2392_v38 = vrot.slane %v2390_v13, 4  ;;  %v2395_v39 = vrot.slane %v2393_v18, 5  ;;  %v2401_v40 = vrot.slane %v2399_v21, 5  ;;  %v2403_v42 = vshrl.u32 %v7709_v60, 16  ;;  %v7752_v21 = vld [vmem:[%s7466_s21 + $0x70] sm:$0xf] }
  0x58   : > { %6660 = vmatprep.mubr.bf16.mxu0 %v5741_v26  ;;  %v500_v31 = vsel %vm7498_vm2, %v495_v29, %v499_v9  ;;  %v505_v44 = vrot.slane %v504_v30, 4  ;;  %v2409_v47 = vshll.u32 %v7718_v17, 16  ;;  %v512_v49 = vshrl.u32 %v7722_v25, 16  ;;  %v7287_v9 = vld [vmem:[%s7466_s21 + $0xb4] sm:$0xff]  }
  0x59   : > { %v2396_v52 = vor.u32 %v2395_v39, %v2392_v38  ;;  %v2405_v53 = vrot.slane %v2403_v42, 4  ;;  %v515_v54 = vshll.u32 %v7722_v25, 16  ;;  %v521_v55 = vshll.u32 %v7725_v35, 16 }
  0x5a   : > { %v510_v48 = vsel %vm7498_vm2, %v505_v44, %v509_v34  ;;  %v2411_v56 = vrot.slane %v2409_v47, 5  ;;  %v514_v57 = vrot.slane %v512_v49, 4  ;;  %v525_v58 = vshrl.u32 %v7725_v35, 16  ;;  %v7763_v47 = vld [vmem:[%s7466_s21 + $0x78] sm:$0xf] }
  0x5b   : > { %v5502_v59 = vcombine.low %v500_v31, %v510_v48  ;;  %v2397_v61 = vrot.slane %v2396_v52, 4  ;;  %v2406_v63 = vor.u32 %v2405_v53, %v2401_v40  ;;  %v517_v1 = vrot.slane %v515_v54, 5  ;;  %v7774_v54 = vld [vmem:[%s7466_s21 + $0x7c] sm:$0xf] }
  0x5c   : > { %v523_v2 = vrot.slane %v521_v55, 5  ;;  %v527_v3 = vrot.slane %v525_v58, 4  ;;  %v531_v7 = vshll.u32 %v308_v43, 16  ;;  %v5775_v10 = vrot.slane %v5759_v50, 9  ;;  %v310_v58 = vld [vmem:[%s7466_s21 + $0x80] sm:$0x1] }
  0x5d   : > { %6469 = vmatmul.mubr.bf16.gmra.mrb[12].mxu1 %v5502_v59  ;;  %v2402_v11 = vsel %vm7498_vm2, %v2397_v61, %v2401_v40  ;;  %v2407_v12 = vrot.slane %v2406_v63, 4  ;;  %v518_v13 = vor.u32 %v517_v1, %v514_v57  ;;  %v2993_v15 = vrot.slane %v7479_v23, 5  ;;  %v309_v40 = vld [vmem:[%s7466_s21 + $0x74] sm:$0x1]  ;;  %v5760_v23 = vld [vmem:[%s7466_s21 + $0x18] sm:$0xe] }
  0x5e   : > { %v528_v16 = vor.u32 %v527_v3, %v523_v2  ;;  %v533_v18 = vrot.slane %v531_v7, 5  ;;  %v536_v26 = vshrl.u32 %v7740_v5, 16  ;;  %v539_v29 = vshll.u32 %v7740_v5, 16 }
  0x5f   : > { %v2412_v30 = vsel %vm7498_vm2, %v2407_v12, %v2411_v56  ;;  %v519_v34 = vrot.slane %v518_v13, 4  ;;  %v2994_v38 = vsel %vm7744_vm5, %v5775_v10, %v2993_v15  ;;  %v2995_v39 = vrot.slane %v2993_v15, 4  ;;  %v5761_v13 = vld [vmem:[%s7466_s21 + $0x24] sm:$0xe] }
  0x60   : > { %v5742_v42 = vcombine.low %v2402_v11, %v2412_v30  ;;  %v529_v43 = vrot.slane %v528_v16, 4  ;;  %v538_v31 = vrot.slane %v536_v26, 4  ;;  %v541_v44 = vrot.slane %v539_v29, 5  ;;  %v7796_v16 = vld [vmem:[%s7466_s21 + $0x84] sm:$0xf]  ;;  %v7200_v29 = vld [vmem:[%s9248_s1 + $0x188] sm:$0xff]  }
  0x61   : > { %v524_v49 = vsel %vm7498_vm2, %v519_v34, %v523_v2  ;;  %v2997_v50 = vsel %vm7744_vm5, %v2995_v39, %v2996_v41  ;;  %v545_v52 = vshll.u32 %v7752_v21, 16  ;;  %v549_v53 = vshrl.u32 %v7752_v21, 16 }
  0x62   : > { %6661 = vmatmul.mubr.bf16.gmra.mrb[12].mxu0 %v5742_v42  ;;  %v534_v55 = vsel %vm7498_vm2, %v529_v43, %v533_v18  ;;  %v5807_v48 = vcombine.low %v2994_v38, %v2997_v50  ;;  %v542_v56 = vor.u32 %v541_v44, %v538_v31  ;;  %v555_v57 = vshll.u32 %v309_v40, 16  ;;  %v7804_v40 = vld [vmem:[%s7466_s21 + $0x88] sm:$0xf]  ;;  %v311_v31 = vld [vmem:[%s7466_s21 + $0x8c] sm:$0x1] }
  0x63   : > { %v5503_v59 = vcombine.low %v524_v49, %v534_v55  ;;  %v547_v24 = vrot.slane %v545_v52, 5  ;;  %v551_v61 = vrot.slane %v549_v53, 4  ;;  %v5776_v63 = vrot.slane %v5760_v23, 9 }
  0x64   : > { %6696 = vmatprep.mubr.bf16.mxu0 %v5807_v48  ;;  %v543_v41 = vrot.slane %v542_v56, 4  ;;  %v557_v1 = vrot.slane %v555_v57, 5  ;;  %v3004_v2 = vsel %vm7744_vm5, %v7547_v36, %v3003_v32  ;;  %v560_v3 = vshrl.u32 %v7763_v47, 16 }
  0x65   : > { %6472 = vmatprep.mubr.bf16.mxu1 %v5503_v59  ;;  %v552_v7 = vor.u32 %v551_v61, %v547_v24  ;;  %v3001_v10 = vsel %vm7744_vm5, %v5776_v63, %v3000_v27  ;;  %v563_v11 = vshll.u32 %v7763_v47, 16  ;;  %v569_v12 = vshll.u32 %v7774_v54, 16 }
  0x66   : > { %v548_v8 = vsel %vm7498_vm2, %v543_v41, %v547_v24  ;;  %v5808_v15 = vcombine.low %v3001_v10, %v3004_v2  ;;  %v562_v32 = vrot.slane %v560_v3, 4  ;;  %v573_v36 = vshrl.u32 %v7774_v54, 16  ;;  %v7825_v2 = vld [vmem:[%s7466_s21 + $0x90] sm:$0xf]  ;;  %v7828_v3 = vld [vmem:[%s7466_s21 + $0x94] sm:$0xf] }
  0x67   : > { %v553_v62 = vrot.slane %v552_v7, 4  ;;  %v565_v18 = vrot.slane %v563_v11, 5  ;;  %v571_v26 = vrot.slane %v569_v12, 5  ;;  %v579_v27 = vshll.u32 %v310_v58, 16 }
  0x68   : > { %v575_v30 = vrot.slane %v573_v36, 4  ;;  %v5777_v34 = vrot.slane %v5761_v13, 9  ;;  %v3007_v38 = vrot.slane %v7551_v45, 5  ;;  %v3010_v39 = vrot.slane %v7557_v51, 5  ;;  %v5762_v45 = vld [vmem:[%s7466_s21 + $0x30] sm:$0xe] }
  0x69   : > { %v558_v23 = vsel %vm7498_vm2, %v553_v62, %v557_v1  ;;  %v566_v42 = vor.u32 %v565_v18, %v562_v32  ;;  %v581_v43 = vrot.slane %v579_v27, 5  ;;  %v584_v44 = vshrl.u32 %v7796_v16, 16  ;;  %v312_v62 = vld [vmem:[%s7466_s21 + $0x98] sm:$0x1] }
  0x6a   : > { %v5504_v49 = vcombine.low %v548_v8, %v558_v23  ;;  %6697 = vmatmul.mubr.bf16.vlgmr.msra.gmra.mrb[0].mxu0 %v5808_v15  ;;  %v576_v50 = vor.u32 %v575_v30, %v571_v26  ;;  %v3008_v52 = vsel %vm7744_vm5, %v5777_v34, %v3007_v38  ;;  %v3009_v53 = vrot.slane %v3007_v38, 4  ;;  %v7204_v30 = vld [vmem:[%s9248_s1 + $0x198] sm:$0xff]  }
  0x6b   : > { %6729 = vmatpush3.bf16.msra.mxu0 %v7687_v6  ;;  %v567_v51 = vrot.slane %v566_v42, 4  ;;  %v586_v55 = vrot.slane %v584_v44, 4  ;;  %v587_v48 = vshll.u32 %v7796_v16, 16  ;;  %v593_v56 = vshll.u32 %v7804_v40, 16  ;;  %v7202_v6 = vld [vmem:[%s9248_s1 + $0x190] sm:$0xff]  }
  0x6c   : > { %6473 = vmatmul.mubr.bf16.gmra.mrb[16].mxu1 %v5504_v49  ;;  %v577_v57 = vrot.slane %v576_v50, 4  ;;  %v3011_v58 = vsel %vm7744_vm5, %v3009_v53, %v3010_v39  ;;  %v597_v59 = vshrl.u32 %v7804_v40, 16  ;;  %v603_v24 = vshll.u32 %v311_v31, 16  ;;  %6730 = vmatprep.subr.bf16.mxu0 %v7200_v29  ;;  %v5763_v38 = vld [vmem:[%s7466_s21 + $0x3c] sm:$0xe] }
  0x6d   : > { %v572_v61 = vsel %vm7498_vm2, %v567_v51, %v571_v26  ;;  %v5809_v63 = vcombine.low %v3008_v52, %v3011_v58  ;;  %v589_v41 = vrot.slane %v587_v48, 5  ;;  %v595_v1 = vrot.slane %v593_v56, 5  ;;  %v7846_v31 = vld [vmem:[%s7466_s21 + $0x9c] sm:$0xf]  ;;  %v7855_v48 = vld [vmem:[%s7466_s21 + $0xa0] sm:$0xf] }
  0x6e   : > { %v582_v7 = vsel %vm7498_vm2, %v577_v57, %v581_v43  ;;  %v599_v10 = vrot.slane %v597_v59, 4  ;;  %v605_v11 = vrot.slane %v603_v24, 5  ;;  %v5778_v12 = vrot.slane %v5762_v45, 9  ;;  %v7208_v56 = vld [vmem:[%s9248_s1 + $0x1a0] sm:$0xff]  }
  0x6f   : > { %v5505_v13 = vcombine.low %v572_v61, %v582_v7  ;;  %6700 = vmatprep.mubr.bf16.mxu0 %v5809_v63  ;;  %v590_v8 = vor.u32 %v589_v41, %v586_v55  ;;  %v3014_v15 = vrot.slane %v7582_v33, 5  ;;  %v3017_v32 = vrot.slane %v7593_v46, 5  ;;  %6731 = vmatpush3.bf16.msra.mxu0 %v7200_v29  ;;  %v313_v61 = vld [vmem:[%s7466_s21 + $0xa4] sm:$0x1] }
  0x70   : > { %v600_v36 = vor.u32 %v599_v10, %v595_v1  ;;  %v608_v18 = vshrl.u32 %v7825_v2, 16  ;;  %v611_v26 = vshll.u32 %v7825_v2, 16  ;;  %v617_v27 = vshll.u32 %v7828_v3, 16  ;;  %6732 = vmatprep.subr.bf16.mxu0 %v7202_v6 }
  0x71   : > { %6476 = vmatprep.mubr.bf16.mxu1 %v5505_v13  ;;  %v591_v34 = vrot.slane %v590_v8, 4  ;;  %v3015_v33 = vsel %vm7744_vm5, %v5778_v12, %v3014_v15  ;;  %v3016_v46 = vrot.slane %v3014_v15, 4  ;;  %v621_v29 = vshrl.u32 %v7828_v3, 16  ;;  %v5764_v15 = vld [vmem:[%s7466_s21 + $0x48] sm:$0xe] }
  0x72   : > { %v601_v39 = vrot.slane %v600_v36, 4  ;;  %v610_v23 = vrot.slane %v608_v18, 4  ;;  %v613_v42 = vrot.slane %v611_v26, 5  ;;  %v619_v43 = vrot.slane %v617_v27, 5  ;;  %v7880_v27 = vld [vmem:[%s7466_s21 + $0xa8] sm:$0xf] }
  0x73   : > { %v596_v44 = vsel %vm7498_vm2, %v591_v34, %v595_v1  ;;  %v3018_v49 = vsel %vm7744_vm5, %v3016_v46, %v3017_v32  ;;  %v623_v50 = vrot.slane %v621_v29, 4  ;;  %v627_v52 = vshll.u32 %v312_v62, 16  ;;  %6733 = vmatpush3.bf16.msra.mxu0 %v7202_v6  ;;  %v7212_v32 = vld [vmem:[%s9248_s1 + $0x1a8] sm:$0xff]  }
  0x74   : > { %v606_v53 = vsel %vm7498_vm2, %v601_v39, %v605_v11  ;;  %v5810_v45 = vcombine.low %v3015_v33, %v3018_v49  ;;  %v614_v51 = vor.u32 %v613_v42, %v610_v23  ;;  %v5779_v55 = vrot.slane %v5763_v38, 9  ;;  %6734 = vmatprep.subr.bf16.mxu0 %v7204_v30  ;;  %v7883_v29 = vld [vmem:[%s7466_s21 + $0xac] sm:$0xf] }
  0x75   : > { %v5506_v57 = vcombine.low %v596_v44, %v606_v53  ;;  %v624_v58 = vor.u32 %v623_v50, %v619_v43  ;;  %v629_v59 = vrot.slane %v627_v52, 5  ;;  %v3021_v24 = vrot.slane %v7616_v19, 5  ;;  %v5765_v53 = vld [vmem:[%s7466_s21 + $0x54] sm:$0xe] }
  0x76   : > { %6701 = vmatmul.mubr.bf16.gmra.mrb[4].mxu0 %v5810_v45  ;;  %v615_v6 = vrot.slane %v614_v51, 4  ;;  %v3024_v63 = vrot.slane %v7624_v28, 5  ;;  %v632_v41 = vshrl.u32 %v7846_v31, 16  ;;  %v635_v1 = vshll.u32 %v7846_v31, 16  ;;  %v7216_v45 = vld [vmem:[%s9248_s1 + $0x1b0] sm:$0xff]  }
  0x77   : > { %6477 = vmatmul.mubr.bf16.gmra.mrb[20].mxu1 %v5506_v57  ;;  %v625_v7 = vrot.slane %v624_v58, 4  ;;  %v3022_v10 = vsel %vm7744_vm5, %v5779_v55, %v3021_v24  ;;  %v3023_v11 = vrot.slane %v3021_v24, 4  ;;  %v641_v12 = vshll.u32 %v7855_v48, 16  ;;  %6735 = vmatpush3.bf16.msra.mxu0 %v7204_v30 }
  0x78   : > { %v620_v19 = vsel %vm7498_vm2, %v615_v6, %v619_v43  ;;  %v634_v13 = vrot.slane %v632_v41, 4  ;;  %v637_v28 = vrot.slane %v635_v1, 5  ;;  %v645_v8 = vshrl.u32 %v7855_v48, 16  ;;  %6736 = vmatprep.subr.bf16.mxu0 %v7208_v56  ;;  %v314_v43 = vld [vmem:[%s7466_s21 + $0xb0] sm:$0x1] }
  0x79   : > { %v630_v36 = vsel %vm7498_vm2, %v625_v7, %v629_v59  ;;  %v3025_v62 = vsel %vm7744_vm5, %v3023_v11, %v3024_v63  ;;  %v643_v18 = vrot.slane %v641_v12, 5  ;;  %v651_v26 = vshll.u32 %v313_v61, 16  ;;  %v7903_v41 = vld [vmem:[%s7466_s21 + $0xb4] sm:$0xf]  ;;  %v7908_v12 = vld [vmem:[%s7466_s21 + $0xb8] sm:$0xf] }
  0x7a   : > { %v5507_v30 = vcombine.low %v620_v19, %v630_v36  ;;  %v5811_v34 = vcombine.low %v3022_v10, %v3025_v62  ;;  %v638_v33 = vor.u32 %v637_v28, %v634_v13  ;;  %v647_v46 = vrot.slane %v645_v8, 4  ;;  %v315_v19 = vld [vmem:[%s7466_s21 + $0xbc] sm:$0x1] }
  0x7b   : > { %v653_v38 = vrot.slane %v651_v26, 5  ;;  %v5780_v39 = vrot.slane %v5764_v15, 9  ;;  %v3028_v23 = vrot.slane %v7651_v14, 5  ;;  %v3031_v42 = vrot.slane %v7657_v22, 5  ;;  %6737 = vmatpush3.bf16.msra.mxu0 %v7208_v56  ;;  %v7220_v13 = vld [vmem:[%s9248_s1 + $0x1b8] sm:$0xff]  }
  0x7c   : > { %6480 = vmatprep.mubr.bf16.mxu1 %v5507_v30  ;;  %6704 = vmatprep.mubr.bf16.mxu0 %v5811_v34  ;;  %v639_v44 = vrot.slane %v638_v33, 4  ;;  %v648_v49 = vor.u32 %v647_v46, %v643_v18  ;;  %v656_v50 = vshrl.u32 %v7880_v27, 16  ;;  %v659_v52 = vshll.u32 %v7880_v27, 16  ;;  %v5766_v30 = vld [vmem:[%s7466_s21 + $0x60] sm:$0xe] }
  0x7d   : > { %v3029_v14 = vsel %vm7744_vm5, %v5780_v39, %v3028_v23  ;;  %v3030_v22 = vrot.slane %v3028_v23, 4  ;;  %v665_v51 = vshll.u32 %v7883_v29, 16  ;;  %v669_v55 = vshrl.u32 %v7883_v29, 16  ;;  %6738 = vmatprep.subr.bf16.mxu0 %v7212_v32  ;;  %v5696_v39 = vld [vmem:[%s7466_s21 + $0x70] sm:$0xf] }
  0x7e   : > { %v644_v56 = vsel %vm7498_vm2, %v639_v44, %v643_v18  ;;  %v649_v57 = vrot.slane %v648_v49, 4  ;;  %v658_v58 = vrot.slane %v656_v50, 4  ;;  %v661_v59 = vrot.slane %v659_v52, 5  ;;  %v7930_v44 = vld [vmem:[%s9248_s1 + $0x1c0] sm:$0xff]  }
  0x7f   : > { %v3032_v24 = vsel %vm7744_vm5, %v3030_v22, %v3031_v42  ;;  %v667_v61 = vrot.slane %v665_v51, 5  ;;  %v671_v6 = vrot.slane %v669_v55, 4  ;;  %v675_v63 = vshll.u32 %v314_v43, 16  ;;  %6739 = vmatpush3.bf16.msra.mxu0 %v7212_v32  ;;  %v5767_v43 = vld [vmem:[%s7466_s21 + $0x6c] sm:$0xe] }
  0x80   : > { %v654_v1 = vsel %vm7498_vm2, %v649_v57, %v653_v38  ;;  %v5812_v7 = vcombine.low %v3029_v14, %v3032_v24  ;;  %v662_v10 = vor.u32 %v661_v59, %v658_v58  ;;  %v5781_v11 = vrot.slane %v5765_v53, 9  ;;  %6740 = vmatprep.subr.bf16.mxu0 %v7216_v45  ;;  %v5697_v55 = vld [vmem:[%s7466_s21 + $0x74] sm:$0x1]  ;;  %v5768_v24 = vld [vmem:[%s7466_s21 + $0x78] sm:$0xe] }
  0x81   : > { %v5508_v28 = vcombine.low %v644_v56, %v654_v1  ;;  %v672_v8 = vor.u32 %v671_v6, %v667_v61  ;;  %v677_v15 = vrot.slane %v675_v63, 5  ;;  %v3035_v32 = vrot.slane %v7682_v0, 5 }
  0x82   : > { %6705 = vmatmul.mubr.bf16.gmra.mrb[8].mxu0 %v5812_v7  ;;  %v663_v36 = vrot.slane %v662_v10, 4  ;;  %v3038_v62 = vrot.slane %v7694_v20, 5  ;;  %v680_v18 = vshrl.u32 %v7903_v41, 16  ;;  %v683_v26 = vshll.u32 %v7903_v41, 16 }
  0x83   : > { %6481 = vmatmul.mubr.bf16.gmra.mrb[24].mxu1 %v5508_v28  ;;  %v673_v34 = vrot.slane %v672_v8, 4  ;;  %v3036_v33 = vsel %vm7744_vm5, %v5781_v11, %v3035_v32  ;;  %v3037_v46 = vrot.slane %v3035_v32, 4  ;;  %v689_v38 = vshll.u32 %v7908_v12, 16  ;;  %6741 = vmatpush3.bf16.msra.mxu0 %v7216_v45  ;;  %v7943_v11 = vld [vmem:[%s7466_s21 + $0x7c] sm:$0xf] }
  0x84   : > { %v668_v0 = vsel %vm7498_vm2, %v663_v36, %v667_v61  ;;  %v682_v20 = vrot.slane %v680_v18, 4  ;;  %v685_v23 = vrot.slane %v683_v26, 5  ;;  %v693_v42 = vshrl.u32 %v7908_v12, 16  ;;  %6742 = vmatprep.subr.bf16.mxu0 %v7220_v13  ;;  %v7289_v36 = vld [vmem:[%s7466_s21] sm:$0xf] }
  0x85   : > { %v678_v49 = vsel %vm7498_vm2, %v673_v34, %v677_v15  ;;  %v3039_v50 = vsel %vm7744_vm5, %v3037_v46, %v3038_v62  ;;  %v691_v52 = vrot.slane %v689_v38, 5  ;;  %v699_v53 = vshll.u32 %v315_v19, 16  ;;  %v5702_v15 = vld [vmem:[%s7466_s21 + $0x88] sm:$0xf]  ;;  %v7958_v62 = vld [vmem:[%s7466_s21 + $0x4] sm:$0xf] }
  0x86   : > { %v5509_v45 = vcombine.low %v668_v0, %v678_v49  ;;  %v5813_v14 = vcombine.low %v3036_v33, %v3039_v50  ;;  %v686_v22 = vor.u32 %v685_v23, %v682_v20  ;;  %v695_v51 = vrot.slane %v693_v42, 4  ;;  %v5703_v26 = vld [vmem:[%s7466_s21 + $0x8c] sm:$0x1]  ;;  %v5706_v23 = vld [vmem:[%s7466_s21 + $0x98] sm:$0x1] }
  0x87   : > { %v701_v56 = vrot.slane %v699_v53, 5  ;;  %v5782_v57 = vrot.slane %v5766_v30, 9  ;;  %v3042_v58 = vrot.slane %v7709_v60, 5  ;;  %v3045_v59 = vrot.slane %v7718_v17, 5  ;;  %6743 = vmatpush3.bf16.msra.mxu0 %v7220_v13  ;;  %v7946_v17 = vld [vmem:[%s7466_s21 + $0x80] sm:$0x1] }
  0x88   : > { %6484 = vmatprep.mubr.bf16.mxu1 %v5509_v45  ;;  %6708 = vmatprep.mubr.bf16.mxu0 %v5813_v14  ;;  %v687_v61 = vrot.slane %v686_v22, 4  ;;  %v696_v6 = vor.u32 %v695_v51, %v691_v52  ;;  %v5783_v63 = vrot.slane %v5767_v43, 9  ;;  %v3049_v1 = vrot.slane %v5696_v39, 5  ;;  %v5769_v30 = vld [vmem:[%s7466_s21 + $0x84] sm:$0xe] }
  0x89   : > { %v3043_v7 = vsel %vm7744_vm5, %v5782_v57, %v3042_v58  ;;  %v3044_v10 = vrot.slane %v3042_v58, 4  ;;  %v3052_v60 = vrot.slane %v5697_v55, 5  ;;  %6776 = vmatprep.subr.bf16.mxu0 %v7930_v44  ;;  %v5519_v18 = vcombine.low %v7289_v36, %v7958_v62  ;;  %v5705_v39 = vld [vmem:[%s7466_s21 + $0x94] sm:$0xf]  ;;  %v5770_v42 = vld [vmem:[%s7466_s21 + $0x90] sm:$0xe] }
  0x8a   : > { %v692_v19 = vsel %vm7498_vm2, %v687_v61, %v691_v52  ;;  %v697_v13 = vrot.slane %v696_v6, 4  ;;  %v3050_v28 = vsel %vm7744_vm5, %v5783_v63, %v3049_v1  ;;  %v3051_v8 = vrot.slane %v3049_v1, 4  ;;  %v5771_v50 = vld [vmem:[%s7466_s21 + $0x9c] sm:$0xe]  ;;  %v5708_v14 = vld [vmem:[%s7466_s21 + $0xa0] sm:$0xf] }
  0x8b   : > { %v3046_v32 = vsel %vm7744_vm5, %v3044_v10, %v3045_v59  ;;  %v5784_v38 = vrot.slane %v5768_v24, 9  ;;  %v3056_v43 = vrot.slane %v7943_v11, 5  ;;  %v3059_v49 = vrot.slane %v7946_v17, 5  ;;  %v5709_v22 = vld [vmem:[%s7466_s21 + $0xa4] sm:$0x1] }
  0x8c   : > { %v702_v34 = vsel %vm7498_vm2, %v697_v13, %v701_v56  ;;  %v5814_v33 = vcombine.low %v3043_v7, %v3046_v32  ;;  %v3053_v46 = vsel %vm7744_vm5, %v3051_v8, %v3052_v60  ;;  %v5785_v52 = vrot.slane %v5769_v30, 9  ;;  %v5711_v59 = vld [vmem:[%s7466_s21 + $0xac] sm:$0xf]  ;;  %v7982_v61 = vld [vmem:[%s7466_s21 + $0x10] sm:$0xf] }
  0x8d   : > { %v5510_v0 = vcombine.low %v692_v19, %v702_v34  ;;  %v5815_v20 = vcombine.low %v3050_v28, %v3053_v46  ;;  %v3063_v53 = vrot.slane %v5702_v15, 5  ;;  %v3066_v45 = vrot.slane %v5703_v26, 5  ;;  %v7291_v24 = vld [vmem:[%s7466_s21 + $0xc] sm:$0xf]  ;;  %v7293_v8 = vld [vmem:[%s7466_s21 + $0x18] sm:$0xf] }
  0x8e   : > { %6709 = vmatmul.mubr.bf16.gmra.mrb[12].mxu0 %v5814_v33  ;;  %v3057_v51 = vsel %vm7744_vm5, %v5784_v38, %v3056_v43  ;;  %v3058_v55 = vrot.slane %v3056_v43, 4  ;;  %v3070_v58 = vrot.slane %v5705_v39, 5  ;;  %v5520_v6 = vcombine.low %v7291_v24, %v7982_v61  ;;  %v7211_v19 = vld [vmem:[%s9248_s1 + $0x88] sm:$0xff]   ;;  %v7994_v15 = vld [vmem:[%s7466_s21 + $0x1c] sm:$0xf] }
  0x8f   : > { %6485 = vmatmul.mubr.bf16.gmra.mrb[28].mxu1 %v5510_v0  ;;  %6712 = vmatprep.mubr.bf16.mxu0 %v5815_v20  ;;  %v3064_v56 = vsel %vm7744_vm5, %v5785_v52, %v3063_v53  ;;  %v3065_v57 = vrot.slane %v3063_v53, 4  ;;  %v5786_v1 = vrot.slane %v5770_v42, 9  ;;  %v3073_v7 = vrot.slane %v5706_v23, 5  ;;  %v5712_v30 = vld [vmem:[%s7466_s21 + $0xb0] sm:$0x1] }
  0x90   : > { %6504 = vmatprep.mubr.bf16.mxu1 %v5519_v18  ;;  %v3060_v63 = vsel %vm7744_vm5, %v3058_v55, %v3059_v49  ;;  %v3072_v13 = vrot.slane %v3070_v58, 4  ;;  %v5787_v28 = vrot.slane %v5771_v50, 9  ;;  %v5521_v32 = vcombine.low %v7293_v8, %v7994_v15  ;;  %v5772_v34 = vld [vmem:[%s7466_s21 + $0xa8] sm:$0xe]  ;;  %v5714_v33 = vld [vmem:[%s7466_s21 + $0xb8] sm:$0xf] }
  0x91   : > { %v5816_v10 = vcombine.low %v3057_v51, %v3060_v63  ;;  %v3067_v60 = vsel %vm7744_vm5, %v3065_v57, %v3066_v45  ;;  %v3077_v18 = vrot.slane %v5708_v14, 5  ;;  %v3080_v26 = vrot.slane %v5709_v22, 5  ;;  %v5715_v20 = vld [vmem:[%s7466_s21 + $0xbc] sm:$0x1]  ;;  %v5773_v23 = vld [vmem:[%s7466_s21 + $0xb4] sm:$0xe] }
  0x92   : > { %v5817_v36 = vcombine.low %v3064_v56, %v3067_v60  ;;  %v3084_v38 = vrot.slane %v5711_v59, 5  ;;  %v3071_v39 = vsel %vm7744_vm5, %v5786_v1, %v3070_v58  ;;  %v3074_v0 = vsel %vm7744_vm5, %v3072_v13, %v3073_v7  ;;  %v7215_v50 = vld [vmem:[%s9248_s1 + $0x90] sm:$0xff]   ;;  %v5717_v53 = vld [vmem:[%s7466_s21 + $0xc4] sm:$0xf]  ;;  %v8017_v51 = vld [vmem:[%s7466_s21 + $0x28] sm:$0xf] }
  0x93   : > { %v3079_v46 = vrot.slane %v3077_v18, 4  ;;  %v3078_v42 = vsel %vm7744_vm5, %v5787_v28, %v3077_v18  ;;  %v3091_v49 = vrot.slane %v5714_v33, 5  ;;  %v5788_v52 = vrot.slane %v5772_v34, 9  ;;  %v7295_v22 = vld [vmem:[%s7466_s21 + $0x24] sm:$0xf]  ;;  %v7219_v1 = vld [vmem:[%s9248_s1 + $0x98] sm:$0xff]  }
  0x94   : > { %v5818_v45 = vcombine.low %v3071_v39, %v3074_v0  ;;  %v3086_v14 = vrot.slane %v3084_v38, 4  ;;  %v5522_v55 = vcombine.low %v7295_v22, %v8017_v51  ;;  %v7297_v57 = vld [vmem:[%s7466_s21 + $0x30] sm:$0xf]  ;;  %v8022_v58 = vld [vmem:[%s7466_s21 + $0x34] sm:$0xf]  ;;  %v5789_v24 = vrot.slane %v5773_v23, 9 }
  0x95   : > { %v3081_v43 = vsel %vm7744_vm5, %v3079_v46, %v3080_v26  ;;  %v5523_v59 = vcombine.low %v7297_v57, %v8022_v58  ;;  %v3094_v63 = vrot.slane %v5715_v20, 5  ;;  %v5774_v7 = vld [vmem:[%s7466_s21 + $0xc0] sm:$0xe]  ;;  %v3085_v60 = vsel %vm7744_vm5, %v5788_v52, %v3084_v38  ;;  %v5718_v8 = vld [vmem:[%s7466_s21 + $0xc8] sm:$0x1]  ;;  %v7222_v22 = vld [vmem:[%s7466_s21 + $0x18] sm:$0xff]  }
  0x96   : > { %6713 = vmatmul.mubr.bf16.gmra.mrb[16].mxu0 %v5816_v10  ;;  %v5819_v56 = vcombine.low %v3078_v42, %v3081_v43  ;;  %v3098_v10 = vrot.slane %v5717_v53, 5  ;;  %v3092_v13 = vsel %vm7744_vm5, %v5789_v24, %v3091_v49  ;;  %v5790_v18 = vrot.slane %v5774_v7, 9  ;;  %v7299_v26 = vld [vmem:[%s7466_s21 + $0x3c] sm:$0xf]  ;;  %v7301_v39 = vld [vmem:[%s7466_s21 + $0x48] sm:$0xf] }
  0x97   : > { %6505 = vmatmul.mubr.bf16.vlgmr.msra.gmra.mrb[0].mxu1 %v5520_v6  ;;  %6716 = vmatprep.mubr.bf16.mxu0 %v5817_v36  ;;  %v3093_v6 = vrot.slane %v3091_v49, 4  ;;  %v3101_v38 = vrot.slane %v5718_v8, 5  ;;  %v8048_v0 = vld [vmem:[%s7466_s21 + $0x4c] sm:$0xf]  ;;  %v7236_v49 = vld [vmem:[%s9248_s1 + $0xb0] sm:$0xff]   ;;  %v2451_v52 = vshrl.u32 %v7943_v11, 16 }
  0x98   : > { %6537 = vmatpush3.bf16.msra.mxu1 %v7668_v4  ;;  %6508 = vmatprep.mubr.bf16.mxu1 %v5521_v32  ;;  %v3087_v4 = vrot.slane %v5712_v30, 5  ;;  %v7224_v32 = vld [vmem:[%s9248_s1 + $0xa0] sm:$0xff]   ;;  %v3100_v46 = vrot.slane %v3098_v10, 4  ;;  %v5525_v20 = vcombine.low %v7301_v39, %v8048_v0  ;;  %v7230_v23 = vld [vmem:[%s9248_s1 + $0xa8] sm:$0xff]   ;;  %v3099_v42 = vsel %vm7744_vm5, %v5790_v18, %v3098_v10  ;;  %v7228_v18 = vld [vmem:[%s7466_s21 + $0x30] sm:$0xff]  }
  0x99   : > { %6538 = vmatprep.subr.bf16.mxu1 %v7211_v19  ;;  %v3095_v28 = vsel %vm7744_vm5, %v3093_v6, %v3094_v63  ;;  %v8043_v30 = vld [vmem:[%s7466_s21 + $0x40] sm:$0xf]  ;;  %v8076_v57 = vrot.slane %v2451_v52, 4  ;;  %v7225_v6 = vld [vmem:[%s7466_s21 + $0x24] sm:$0xff]   ;;  %v1358_v7 = vrot.slane %v7982_v61, 5  ;;  %v2457_v8 = vshll.u32 %v7946_v17, 16 }
  0x9a   : > { %v5524_v34 = vcombine.low %v7299_v26, %v8043_v30  ;;  %v5821_v33 = vcombine.low %v3092_v13, %v3095_v28  ;;  %v3102_v43 = vsel %vm7744_vm5, %v3100_v46, %v3101_v38  ;;  %v1298_v63 = vld [vmem:[%s7466_s21] sm:$0xe]  ;;  %v1299_v10 = vld [vmem:[%s7466_s21 + $0xc] sm:$0xe]  ;;  %v1365_v13 = vrot.slane %v7994_v15, 5 }
  0x9b   : > { %v5822_v53 = vcombine.low %v3099_v42, %v3102_v43  ;;  %v1301_v61 = vld [vmem:[%s7466_s21 + $0x24] sm:$0xe]  ;;  %v5530_v15 = vcombine.low %v7796_v16, %v7804_v40  ;;  %v5531_v26 = vcombine.low %v7825_v2, %v7828_v3  ;;  %v5543_v17 = vrot.slane %v1298_v63, 9  ;;  %v7307_v38 = vld [vmem:[%s7466_s21 + $0x20] sm:$0x1]  ;;  %v7237_v2 = vld [vmem:[%s7466_s21 + $0x54] sm:$0xff]  }
  0x9c   : > { %6539 = vmatpush3.bf16.msra.mxu1 %v7211_v19  ;;  %v3088_v19 = vsel %vm7744_vm5, %v3086_v14, %v3087_v4  ;;  %v8065_v14 = vld [vmem:[%s7466_s21 + $0x58] sm:$0xf]  ;;  %v1367_v46 = vrot.slane %v1365_v13, 4  ;;  %v1368_v39 = vrot.slane %v7307_v38, 5  ;;  %v7308_v43 = vld [vmem:[%s7466_s21 + $0x2c] sm:$0x1] }
  0x9d   : > { %6540 = vmatprep.subr.bf16.mxu1 %v7215_v50  ;;  %v5820_v36 = vcombine.low %v3085_v60, %v3088_v19  ;;  %v8091_v60 = vld [vmem:[%s9248_s1 + $0xc0] sm:$0xff]   ;;  %v1300_v19 = vld [vmem:[%s7466_s21 + $0x18] sm:$0xe]  ;;  %v7311_v38 = vld [vmem:[%s7466_s21 + $0x50] sm:$0x1]  ;;  %v1400_v16 = vrot.slane %v8065_v14, 5 }
  0x9e   : > { %6717 = vmatmul.mubr.bf16.gmra.mrb[20].mxu0 %v5818_v45  ;;  %v7303_v45 = vld [vmem:[%s7466_s21 + $0x54] sm:$0xf]  ;;  %v8214_v40 = vld [vmem:[%s7466_s21 + $0x64] sm:$0xf] }
  0x9f   : > { %6509 = vmatmul.mubr.bf16.gmra.mrb[4].mxu1 %v5522_v55  ;;  %6720 = vmatprep.mubr.bf16.mxu0 %v5819_v56  ;;  %v5526_v4 = vcombine.low %v7303_v45, %v8065_v14  ;;  %v5527_v55 = vcombine.low %v7722_v25, %v7725_v35  ;;  %v7242_v56 = vld [vmem:[%s9248_s1 + $0xb8] sm:$0xff]   ;;  %v7306_v25 = vld [vmem:[%s7466_s21 + $0x14] sm:$0x1]  ;;  %v7240_v3 = vld [vmem:[%s7466_s21 + $0x60] sm:$0xff]  }
  0xa0   : > { %6512 = vmatprep.mubr.bf16.mxu1 %v5523_v59  ;;  %6541 = vmatpush3.bf16.msra.mxu1 %v7215_v50  ;;  %v2447_v50 = vshll.u32 %v7943_v11, 16  ;;  %v8079_v59 = vld [vmem:[%s7466_s21 + $0x8] sm:$0x1]  ;;  %v1361_v35 = vrot.slane %v7306_v25, 5 }
  0xa1   : > { %6542 = vmatprep.subr.bf16.mxu1 %v7219_v1  ;;  %v1354_v24 = vrot.slane %v8079_v59, 5 }
  0xa2   : > { %v8074_v11 = vrot.slane %v2447_v50, 5 }
  0xa4   : > { %6543 = vmatpush3.bf16.msra.mxu1 %v7219_v1  ;;  %v1351_v1 = vrot.slane %v7958_v62, 5  ;;  %v5528_v62 = vcombine.low %v7740_v5, %v7752_v21  ;;  %v5544_v21 = vrot.slane %v1299_v10, 9  ;;  %v5903_v10 = vld [vmem:[%s7466_s21 + $0x18] sm:$0xf] }
  0xa5   : > { %6544 = vmatprep.subr.bf16.mxu1 %v7224_v32 }
  0xa6   : > { %6721 = vmatmul.mubr.bf16.gmra.mrb[24].mxu0 %v5820_v36  ;;  %v5529_v36 = vcombine.low %v7763_v47, %v7774_v54  ;;  %v1353_v5 = vrot.slane %v1351_v1, 4  ;;  %v7232_v47 = vld [vmem:[%s9248_s1 + $0x1c8] sm:$0xff]   ;;  %v5545_v54 = vrot.slane %v1300_v19, 9  ;;  %v8134_v59 = vsel %vm7744_vm5, %v5543_v17, %v1351_v1  ;;  %v5904_v19 = vld [vmem:[%s7466_s21 + $0x1c] sm:$0xf] }
  0xa7   : > { %6513 = vmatmul.mubr.bf16.gmra.mrb[8].mxu1 %v5524_v34  ;;  %6724 = vmatprep.mubr.bf16.mxu0 %v5821_v33  ;;  %v1379_v34 = vrot.slane %v8022_v58, 5  ;;  %v1360_v33 = vrot.slane %v1358_v7, 4  ;;  %v5546_v58 = vrot.slane %v1301_v61, 9  ;;  %v1393_v1 = vrot.slane %v8048_v0, 5  ;;  %v7234_v0 = vld [vmem:[%s7466_s21 + $0x48] sm:$0xff]  }
  0xa8   : > { %6516 = vmatprep.mubr.bf16.mxu1 %v5525_v20  ;;  %6545 = vmatpush3.bf16.msra.mxu1 %v7224_v32  ;;  %v1372_v32 = vrot.slane %v8017_v51, 5  ;;  %v1302_v51 = vld [vmem:[%s7466_s21 + $0x30] sm:$0xe]  ;;  %v5532_v20 = vcombine.low %v7846_v31, %v7855_v48  ;;  %v8142_v25 = vsel %vm7744_vm5, %v1353_v5, %v1354_v24  ;;  %v8150_v63 = vsel %vm7744_vm5, %v5545_v54, %v1365_v13  ;;  %v1304_v13 = vld [vmem:[%s7466_s21 + $0x48] sm:$0xe] }
  0xa9   : > { %6546 = vmatprep.subr.bf16.mxu1 %v7230_v23  ;;  %v5547_v50 = vrot.slane %v1302_v51, 9  ;;  %v1381_v52 = vrot.slane %v1379_v34, 4  ;;  %v3864_v5 = vshrl.u32 %v5903_v10, 16  ;;  %v3877_v51 = vshrl.u32 %v5904_v19, 16  ;;  %v7243_v48 = vld [vmem:[%s7466_s21 + $0x6c] sm:$0xff]  }
  0xaa   : > { %v1374_v42 = vrot.slane %v1372_v32, 4  ;;  %v8162_v24 = vsel %vm7744_vm5, %v5546_v58, %v1372_v32  ;;  %v7310_v32 = vld [vmem:[%s7466_s21 + $0x44] sm:$0x1]  ;;  %v5549_v54 = vrot.slane %v1304_v13, 9  ;;  %v5907_v13 = vld [vmem:[%s7466_s21 + $0x28] sm:$0xf] }
  0xab   : > { %v8172_v61 = vsel %vm7744_vm5, %v5547_v50, %v1379_v34  ;;  %v1389_v17 = vrot.slane %v7310_v32, 5  ;;  %v5905_v50 = vld [vmem:[%s7466_s21 + $0x20] sm:$0x1]  ;;  %v1306_v32 = vld [vmem:[%s7466_s21 + $0x60] sm:$0xe] }
  0xac   : > { %6547 = vmatpush3.bf16.msra.mxu1 %v7230_v23  ;;  %v5533_v23 = vcombine.low %v7880_v27, %v7883_v29 }
  0xad   : > { %6548 = vmatprep.subr.bf16.mxu1 %v7236_v49 }
  0xae   : > { %6725 = vmatmul.mubr.bf16.gmra.mrb[28].mxu0 %v5822_v53  ;;  %v7309_v53 = vld [vmem:[%s7466_s21 + $0x38] sm:$0x1] }
  0xaf   : > { %6517 = vmatmul.mubr.bf16.gmra.mrb[12].mxu1 %v5526_v4  ;;  %6744 = vmatprep.mubr.bf16.mxu0 %v7222_v22  ;;  %v1382_v45 = vrot.slane %v7309_v53, 5  ;;  %v1303_v4 = vld [vmem:[%s7466_s21 + $0x3c] sm:$0xe]  ;;  %v1386_v22 = vrot.slane %v8043_v30, 5  ;;  %v8138_v30 = vsel %vm7744_vm5, %v5544_v21, %v1358_v7  ;;  %v3867_v21 = vshll.u32 %v5903_v10, 16  ;;  %v7248_v53 = vld [vmem:[%s9248_s1 + $0x1e0] sm:$0xff]  }
  0xb0   : > { %6520 = vmatprep.mubr.bf16.mxu1 %v5527_v55  ;;  %6549 = vmatpush3.bf16.msra.mxu1 %v7236_v49  ;;  %v1375_v49 = vrot.slane %v7308_v43, 5  ;;  %v8125_v55 = vrot.slane %v2457_v8, 5  ;;  %v7231_v7 = vld [vmem:[%s7466_s21 + $0x3c] sm:$0xff]   ;;  %v8158_v8 = vsel %vm7744_vm5, %v1367_v46, %v1368_v39  ;;  %v1395_v46 = vrot.slane %v1393_v1, 4  ;;  %v5909_v43 = vld [vmem:[%s7466_s21 + $0x30] sm:$0xf] }
  0xb1   : > { %6550 = vmatprep.subr.bf16.mxu1 %v7242_v56  ;;  %v1396_v39 = vrot.slane %v7311_v38, 5  ;;  %v3866_v10 = vrot.slane %v3864_v5, 4 }
  0xb2   : > { %9270 = vst [vmem:[#allocation2_spill] sm:$0xff] %v8125_v55 }
  0xb4   : > { %6551 = vmatpush3.bf16.msra.mxu1 %v7242_v56  ;;  %v7238_v56 = vld [vmem:[%s9248_s1 + $0x1d0] sm:$0xff]  }
  0xb5   : > { %6584 = vmatprep.subr.bf16.mxu1 %v8091_v60 }
  0xb6   : > { %6745 = vmatmul.mubr.bf16.vlgmr.msra.gmra.mrb[0].mxu0 %v7225_v6  ;;  %v8146_v6 = vsel %vm7744_vm5, %v1360_v33, %v1361_v35  ;;  %v8166_v35 = vsel %vm7744_vm5, %v1374_v42, %v1375_v49  ;;  %v3873_v33 = vshll.u32 %v5904_v19, 16  ;;  %v3869_v19 = vrot.slane %v3867_v21, 5  ;;  %v1307_v21 = vld [vmem:[%s7466_s21 + $0x6c] sm:$0xe] }
  0xb7   : > { %6521 = vmatmul.mubr.bf16.gmra.mrb[16].mxu1 %v5528_v62  ;;  %6777 = vmatpush3.bf16.msra.mxu0 %v7930_v44  ;;  %v5548_v62 = vrot.slane %v1303_v4, 9  ;;  %v5552_v58 = vrot.slane %v1307_v21, 9 }
  0xb8   : > { %6524 = vmatprep.mubr.bf16.mxu1 %v5529_v36  ;;  %6748 = vmatprep.mubr.bf16.mxu0 %v7228_v18  ;;  %v8176_v36 = vsel %vm7744_vm5, %v1381_v52, %v1382_v45  ;;  %v1388_v18 = vrot.slane %v1386_v22, 4  ;;  %v5906_v52 = vld [vmem:[%s7466_s21 + $0x24] sm:$0xf]  ;;  %v3901_v45 = vshrl.u32 %v5907_v13, 16 }
  0xb9   : > { %6778 = vmatprep.subr.bf16.mxu0 %v7232_v47  ;;  %v8193_v49 = vsel %vm7744_vm5, %v5548_v62, %v1386_v22  ;;  %v8210_v22 = vld [vmem:[%s7466_s21 + $0x54] sm:$0xe]  ;;  %v3879_v62 = vrot.slane %v3877_v51, 4  ;;  %v3888_v38 = vshrl.u32 %v5906_v52, 16  ;;  %v3891_v28 = vshll.u32 %v5906_v52, 16 }
  0xba   : > { %v8207_v4 = vsel %vm7744_vm5, %v1388_v18, %v1389_v17  ;;  %v3883_v17 = vshll.u32 %v5905_v50, 16  ;;  %v5550_v5 = vrot.slane %v8210_v22, 9  ;;  %v7252_v50 = vld [vmem:[%s9248_s1 + $0x1e8] sm:$0xff]   ;;  %v1402_v52 = vrot.slane %v1400_v16, 4 }
  0xbb   : > { %6779 = vmatpush3.bf16.msra.mxu0 %v7232_v47  ;;  %v7244_v47 = vld [vmem:[%s9248_s1 + $0x1d8] sm:$0xff]   ;;  %v3870_v22 = vor.u32 %v3869_v19, %v3866_v10  ;;  %v3890_v34 = vrot.slane %v3888_v38, 4  ;;  %v3893_v44 = vrot.slane %v3891_v28, 5  ;;  %v7316_v10 = vld [vmem:[%s7466_s21 + $0x74] sm:$0x1]  ;;  %v3903_v28 = vrot.slane %v3901_v45, 4 }
  0xbc   : > { %6780 = vmatprep.subr.bf16.mxu0 %v7238_v56  ;;  %v8248_v42 = vrot.slane %v3883_v17, 5  ;;  %v1417_v19 = vrot.slane %v7316_v10, 5  ;;  %v3912_v38 = vshrl.u32 %v5909_v43, 16  ;;  %v8273_v27 = vsel %vm7744_vm5, %v5550_v5, %v1400_v16 }
  0xbd   : > { %v3871_v21 = vrot.slane %v3870_v22, 4 }
  0xbe   : > { %6749 = vmatmul.mubr.bf16.gmra.mrb[4].mxu0 %v7231_v7  ;;  %v8220_v7 = vrot.slane %v3873_v33, 5  ;;  %v7314_v33 = vld [vmem:[%s7466_s21 + $0x70] sm:$0xf] }
  0xbf   : > { %6525 = vmatmul.mubr.bf16.gmra.mrb[20].mxu1 %v5530_v15  ;;  %6752 = vmatprep.mubr.bf16.mxu0 %v7234_v0  ;;  %v1407_v15 = vrot.slane %v8214_v40, 5  ;;  %v7313_v0 = vld [vmem:[%s7466_s21 + $0x5c] sm:$0x1]  ;;  %v1414_v51 = vrot.slane %v7314_v33, 5 }
  0xc0   : > { %6528 = vmatprep.mubr.bf16.mxu1 %v5531_v26  ;;  %6781 = vmatpush3.bf16.msra.mxu0 %v7238_v56  ;;  %v1403_v18 = vrot.slane %v7313_v0, 5  ;;  %v8229_v26 = vsel %vm7744_vm5, %v5549_v54, %v1393_v1  ;;  %v8233_v56 = vsel %vm7744_vm5, %v1395_v46, %v1396_v39  ;;  %v7315_v1 = vld [vmem:[%s7466_s21 + $0x68] sm:$0x1]  ;;  %v3897_v0 = vshll.u32 %v5907_v13, 16  ;;  %v7260_v40 = vld [vmem:[%s9248_s1 + $0x1f8] sm:$0xff]  }
  0xc1   : > { %6782 = vmatprep.subr.bf16.mxu0 %v7244_v47  ;;  %v1410_v54 = vrot.slane %v7315_v1, 5  ;;  %v5551_v46 = vrot.slane %v1306_v32, 9  ;;  %v1409_v39 = vrot.slane %v1407_v15, 4  ;;  %v3880_v33 = vor.u32 %v3879_v62, %v8220_v7  ;;  %v5910_v1 = vld [vmem:[%s7466_s21 + $0x34] sm:$0xf] }
  0xc2   : > { %v1416_v32 = vrot.slane %v1414_v51, 4  ;;  %v5908_v62 = vld [vmem:[%s7466_s21 + $0x2c] sm:$0x1]  ;;  %v8260_v17 = vrot.slane %v3897_v0, 5  ;;  %v3921_v13 = vshll.u32 %v5910_v1, 16  ;;  %v3925_v31 = vshrl.u32 %v5910_v1, 16 }
  0xc3   : > { %v3881_v10 = vrot.slane %v3880_v33, 4  ;;  %v8277_v29 = vsel %vm7744_vm5, %v1402_v52, %v1403_v18  ;;  %v8284_v45 = vsel %vm7744_vm5, %v5551_v46, %v1407_v15  ;;  %v8288_v14 = vsel %vm7744_vm5, %v1409_v39, %v1410_v54  ;;  %v1308_v18 = vld [vmem:[%s7466_s21 + $0x78] sm:$0xe] }
  0xc4   : > { %6783 = vmatpush3.bf16.msra.mxu0 %v7244_v47  ;;  %v8292_v16 = vsel %vm7744_vm5, %v5552_v58, %v1414_v51  ;;  %v8302_v15 = vsel %vm7744_vm5, %v1416_v32, %v1417_v19  ;;  %v3904_v5 = vor.u32 %v3903_v28, %v8260_v17  ;;  %v3914_v52 = vrot.slane %v3912_v38, 4  ;;  %v5912_v58 = vld [vmem:[%s7466_s21 + $0x3c] sm:$0xf]  ;;  %v5913_v51 = vld [vmem:[%s7466_s21 + $0x40] sm:$0xf] }
  0xc5   : > { %6784 = vmatprep.subr.bf16.mxu0 %v7248_v53  ;;  %v3876_v0 = vsel %vm7498_vm2, %v3871_v21, %v8220_v7  ;;  %v3886_v46 = vsel %vm7498_vm2, %v3881_v10, %v8248_v42  ;;  %v8313_v39 = vrot.slane %v3921_v13, 5  ;;  %v3927_v22 = vrot.slane %v3925_v31, 4  ;;  %v7318_v19 = vld [vmem:[%s7466_s21 + $0x80] sm:$0x1]  ;;  %v8472_v47 = vld [vmem:[%s7466_s21 + $0x68] sm:$0x1] }
  0xc6   : > { %6753 = vmatmul.mubr.bf16.gmra.mrb[8].mxu0 %v7237_v2  ;;  %v3915_v2 = vshll.u32 %v5909_v43, 16  ;;  %v3907_v43 = vshll.u32 %v5908_v62, 16  ;;  %v5553_v32 = vrot.slane %v1308_v18, 9  ;;  %v1309_v62 = vld [vmem:[%s7466_s21 + $0x84] sm:$0xe]  ;;  %v3936_v28 = vshrl.u32 %v5912_v58, 16 }
  0xc7   : > { %6529 = vmatmul.mubr.bf16.gmra.mrb[24].mxu1 %v5532_v20  ;;  %6756 = vmatprep.mubr.bf16.mxu0 %v7240_v3  ;;  %v7256_v20 = vld [vmem:[%s9248_s1 + $0x1f0] sm:$0xff]   ;;  %v7317_v3 = vld [vmem:[%s7466_s21 + $0x7c] sm:$0xf]  ;;  %v3939_v7 = vshll.u32 %v5912_v58, 16  ;;  %v3945_v38 = vshll.u32 %v5913_v51, 16  ;;  %v9271_v42 = vcombine.low %v7903_v41, %v7908_v12  ;;  %v8324_v13 = vrot.slane %v3904_v5, 4 }
  0xc8   : > { %6532 = vmatprep.mubr.bf16.mxu1 %v5533_v23  ;;  %6785 = vmatpush3.bf16.msra.mxu0 %v7248_v53  ;;  %v3894_v23 = vor.u32 %v3893_v44, %v3890_v34  ;;  %v7245_v53 = vld [vmem:[%s7466_s21 + $0x78] sm:$0xff]   ;;  %v1421_v44 = vrot.slane %v7317_v3, 5  ;;  %v3917_v54 = vrot.slane %v3915_v2, 5  ;;  %v8317_v1 = vrot.slane %v3907_v43, 5  ;;  %v8329_v21 = vld [vmem:[%s9248_s1 + $0x200] sm:$0xff]   ;;  %9279 = vst [vmem:[#allocation5_spill] sm:$0xff] %v8472_v47 }
  0xc9   : > { %6786 = vmatprep.subr.bf16.mxu0 %v7252_v50  ;;  %v5911_v34 = vld [vmem:[%s7466_s21 + $0x38] sm:$0x1]  ;;  %v3949_v2 = vshrl.u32 %v5913_v51, 16  ;;  %v7247_v43 = vld [vmem:[%s7466_s21 + $0x84] sm:$0xff]   ;;  %v3928_v12 = vor.u32 %v3927_v22, %v8313_v39  ;;  %v3941_v58 = vrot.slane %v3939_v7, 5  ;;  %v8351_v51 = vrot.slane %v3945_v38, 5 }
  0xca   : > { %v8315_v33 = vrot.slane %v3894_v23, 4  ;;  %v1423_v10 = vrot.slane %v1421_v44, 4  ;;  %v3918_v31 = vor.u32 %v3917_v54, %v3914_v52  ;;  %v9272_v23 = vcombine.low %v8134_v59, %v8142_v25  ;;  %v7319_v18 = vld [vmem:[%s7466_s21 + $0x88] sm:$0xf]  ;;  %v5914_v5 = vld [vmem:[%s7466_s21 + $0x44] sm:$0x1] }
  0xcb   : > { %v1428_v3 = vrot.slane %v7319_v18, 5  ;;  %v8342_v59 = vcombine.low %v3876_v0, %v3886_v46  ;;  %v5915_v52 = vld [vmem:[%s7466_s21 + $0x48] sm:$0xf]  ;;  %v3938_v54 = vrot.slane %v3936_v28, 4  ;;  %v3951_v22 = vrot.slane %v3949_v2, 4 }
  0xcc   : > { %6787 = vmatpush3.bf16.msra.mxu0 %v7252_v50  ;;  %v1424_v50 = vrot.slane %v7318_v19, 5  ;;  %v7249_v19 = vld [vmem:[%s7466_s21 + $0x90] sm:$0xff]   ;;  %v3900_v0 = vsel %vm7498_vm2, %v8315_v33, %v8260_v17  ;;  %v3919_v46 = vrot.slane %v3918_v31, 4  ;;  %v3910_v28 = vsel %vm7498_vm2, %v8324_v13, %v8317_v1  ;;  %v8373_v33 = vld [vmem:[%s7466_s21 + $0x58] sm:$0xf]  ;;  %v7250_v31 = vld [vmem:[%s9248_s1 + $0xc8] sm:$0xff]  }
  0xcd   : > { %6788 = vmatprep.subr.bf16.mxu0 %v7256_v20  ;;  %v3929_v38 = vrot.slane %v3928_v12, 4  ;;  %v1430_v2 = vrot.slane %v1428_v3, 4  ;;  %v5918_v17 = vld [vmem:[%s7466_s21 + $0x54] sm:$0xf]  ;;  %v3955_v1 = vshll.u32 %v5914_v5, 16  ;;  %v3960_v13 = vshrl.u32 %v5915_v52, 16 }
  0xce   : > { %6757 = vmatmul.mubr.bf16.gmra.mrb[12].mxu0 %v7243_v48  ;;  %v3931_v48 = vshll.u32 %v5911_v34, 16  ;;  %v8369_v7 = vsel %vm7744_vm5, %v1423_v10, %v1424_v50  ;;  %v3963_v50 = vshll.u32 %v5915_v52, 16  ;;  %v3942_v10 = vor.u32 %v3941_v58, %v3938_v54  ;;  %v7251_v54 = vld [vmem:[%s7466_s21 + $0x9c] sm:$0xff]   ;;  %v7325_v41 = vld [vmem:[%s7466_s21 + $0xac] sm:$0xf] }
  0xcf   : > { %6533 = vmatmul.mubr.bf16.gmra.mrb[28].mxu1 %v9271_v42  ;;  %6760 = vmatprep.mubr.bf16.mxu0 %v7245_v53  ;;  %v5554_v53 = vrot.slane %v1309_v62, 9  ;;  %v7320_v42 = vld [vmem:[%s7466_s21 + $0x8c] sm:$0x1]  ;;  %v3993_v5 = vshll.u32 %v8373_v33, 16  ;;  %v9274_v52 = vcombine.low %v8150_v63, %v8158_v8  ;;  %v8409_v63 = vld [vmem:[%s7466_s21 + $0x50] sm:$0x1] }
  0xd0   : > { %6552 = vmatprep.mubr.bf16.mxu1 %v9272_v23  ;;  %6789 = vmatpush3.bf16.msra.mxu0 %v7256_v20  ;;  %v8348_v20 = vsel %vm7744_vm5, %v5553_v32, %v1421_v44  ;;  %v3933_v62 = vrot.slane %v3931_v48, 5  ;;  %v1431_v23 = vrot.slane %v7320_v42, 5  ;;  %v1310_v44 = vld [vmem:[%s7466_s21 + $0x90] sm:$0xe]  ;;  %v8361_v32 = vld [vmem:[%s7466_s21 + $0x4c] sm:$0xf]  ;;  %v3952_v48 = vor.u32 %v3951_v22, %v8351_v51 }
  0xd1   : > { %6790 = vmatprep.subr.bf16.mxu0 %v7260_v40  ;;  %v3969_v12 = vshll.u32 %v8361_v32, 16  ;;  %v3973_v18 = vshrl.u32 %v8361_v32, 16  ;;  %v9273_v42 = vcombine.low %v8138_v30, %v8146_v6  ;;  %v7254_v30 = vld [vmem:[%s9248_s1 + $0xd0] sm:$0xff]   ;;  %v3924_v6 = vsel %vm7498_vm2, %v3919_v46, %v8313_v39  ;;  %v7253_v8 = vld [vmem:[%s7466_s21 + $0xa8] sm:$0xff]   ;;  %v8416_v39 = vld [vmem:[%s7466_s21 + $0x5c] sm:$0x1] }
  0xd2   : > { %v3934_v58 = vsel %vm7498_vm2, %v3929_v38, %v3933_v62  ;;  %v5555_v22 = vrot.slane %v1310_v44, 9  ;;  %v3965_v25 = vrot.slane %v3963_v50, 5  ;;  %9275 = vst [vmem:[#allocation3_spill] sm:$0xff] %v8416_v39  ;;  %v3943_v46 = vrot.slane %v3942_v10, 4 }
  0xd3   : > { %v3953_v62 = vrot.slane %v3952_v48, 4  ;;  %v8418_v38 = vrot.slane %v3969_v12, 5  ;;  %v8420_v34 = vrot.slane %v3993_v5, 5  ;;  %v8425_v50 = vcombine.low %v3900_v0, %v3910_v28  ;;  %v5921_v28 = vld [vmem:[%s7466_s21 + $0x60] sm:$0xf] }
  0xd4   : > { %6791 = vmatpush3.bf16.msra.mxu0 %v7260_v40  ;;  %v8381_v40 = vsel %vm7744_vm5, %v5554_v53, %v1428_v3  ;;  %v3984_v53 = vshrl.u32 %v5918_v17, 16  ;;  %v3987_v3 = vshll.u32 %v5918_v17, 16  ;;  %v7321_v17 = vld [vmem:[%s7466_s21 + $0x94] sm:$0xf]  ;;  %v8429_v48 = vcombine.low %v3924_v6, %v3934_v58 }
  0xd5   : > { %6824 = vmatprep.subr.bf16.mxu0 %v8329_v21  ;;  %v3979_v0 = vshll.u32 %v8409_v63, 16  ;;  %v3948_v6 = vsel %vm7498_vm2, %v3943_v46, %v8351_v51  ;;  %v9278_v46 = vcombine.low %v8172_v61, %v8176_v36 }
  0xd6   : > { %6761 = vmatmul.mubr.bf16.gmra.mrb[16].mxu0 %v7247_v43  ;;  %v3997_v43 = vshrl.u32 %v8373_v33, 16  ;;  %v3986_v44 = vrot.slane %v3984_v53, 4  ;;  %v7322_v53 = vld [vmem:[%s7466_s21 + $0x98] sm:$0x1] }
  0xd7   : > { %6553 = vmatmul.mubr.bf16.vlgmr.msra.gmra.mrb[0].mxu1 %v9273_v42  ;;  %6764 = vmatprep.mubr.bf16.mxu0 %v7249_v19  ;;  %v8412_v19 = vrot.slane %v3955_v1, 5  ;;  %v1435_v42 = vrot.slane %v7321_v17, 5  ;;  %v7323_v17 = vld [vmem:[%s7466_s21 + $0xa0] sm:$0xf]  ;;  %v3981_v36 = vrot.slane %v3979_v0, 5 }
  0xd8   : > { %6585 = vmatpush3.bf16.msra.mxu1 %v8091_v60  ;;  %6556 = vmatprep.mubr.bf16.mxu1 %v9274_v52  ;;  %v8406_v60 = vsel %vm7744_vm5, %v1430_v2, %v1431_v23  ;;  %v3962_v52 = vrot.slane %v3960_v13, 4  ;;  %v3975_v23 = vrot.slane %v3973_v18, 4  ;;  %v3989_v2 = vrot.slane %v3987_v3, 5  ;;  %v7258_v13 = vld [vmem:[%s9248_s1 + $0xd8] sm:$0xff]  }
  0xd9   : > { %6586 = vmatprep.subr.bf16.mxu1 %v7250_v31  ;;  %v3999_v1 = vrot.slane %v3997_v43, 4  ;;  %v1311_v18 = vld [vmem:[%s7466_s21 + $0x9c] sm:$0xe]  ;;  %v1438_v3 = vrot.slane %v7322_v53, 5  ;;  %v8442_v43 = vld [vmem:[%s7466_s21 + $0x64] sm:$0xf] }
  0xda   : > { %v3966_v5 = vor.u32 %v3965_v25, %v3962_v52  ;;  %9276 = vst [vmem:[#allocation4_spill] sm:$0xff] %v8442_v43  ;;  %v3976_v58 = vor.u32 %v3975_v23, %v8418_v38  ;;  %v1442_v12 = vrot.slane %v7323_v17, 5  ;;  %v9277_v25 = vcombine.low %v8162_v24, %v8166_v35  ;;  %v7255_v23 = vld [vmem:[%s7466_s21 + $0xb4] sm:$0xff]   ;;  %v7261_v24 = vld [vmem:[%s9248_s1 + $0xe0] sm:$0xff]   ;;  %v5924_v17 = vld [vmem:[%s7466_s21 + $0x6c] sm:$0xf] }
  0xdb   : > { %v1437_v52 = vrot.slane %v1435_v42, 4  ;;  %v3990_v53 = vor.u32 %v3989_v2, %v3986_v44  ;;  %v4000_v51 = vor.u32 %v3999_v1, %v8420_v34  ;;  %v4008_v35 = vshrl.u32 %v5921_v28, 16  ;;  %v7324_v2 = vld [vmem:[%s7466_s21 + $0xa4] sm:$0x1] }
  0xdc   : > { %6587 = vmatpush3.bf16.msra.mxu1 %v7250_v31  ;;  %v8436_v31 = vsel %vm7744_vm5, %v5555_v22, %v1435_v42  ;;  %v4003_v22 = vshll.u32 %v8416_v39, 16  ;;  %v4021_v42 = vshrl.u32 %v8442_v43, 16  ;;  %v3967_v61 = vrot.slane %v3966_v5, 4  ;;  %v8611_v39 = vld [vmem:[%s7466_s21 + $0x98] sm:$0x1] }
  0xdd   : > { %6588 = vmatprep.subr.bf16.mxu1 %v7254_v30  ;;  %v5556_v44 = vrot.slane %v1311_v18, 9  ;;  %v1445_v1 = vrot.slane %v7324_v2, 5  ;;  %v3991_v5 = vrot.slane %v3990_v53, 4  ;;  %v4001_v18 = vrot.slane %v4000_v51, 4  ;;  %9292 = vst [vmem:[#allocation14_spill] sm:$0xff] %v8611_v39 }
  0xde   : > { %6765 = vmatmul.mubr.bf16.gmra.mrb[20].mxu0 %v7251_v54  ;;  %v3958_v54 = vsel %vm7498_vm2, %v3953_v62, %v8412_v19  ;;  %v4017_v19 = vshll.u32 %v8442_v43, 16  ;;  %v7257_v62 = vld [vmem:[%s7466_s21 + $0xc0] sm:$0xff]   ;;  %v4005_v10 = vrot.slane %v4003_v22, 5  ;;  %v8478_v43 = vsel %vm7744_vm5, %v1437_v52, %v1438_v3 }
  0xdf   : > { %6557 = vmatmul.mubr.bf16.gmra.mrb[4].mxu1 %v9277_v25  ;;  %6768 = vmatprep.mubr.bf16.mxu0 %v7253_v8  ;;  %v4011_v8 = vshll.u32 %v5921_v28, 16  ;;  %v3977_v25 = vrot.slane %v3976_v58, 4  ;;  %v1449_v28 = vrot.slane %v7325_v41, 5  ;;  %v8474_v55 = vcombine.low %v3948_v6, %v3958_v54  ;;  %v7263_v41 = vld [vmem:[%s9248_s1 + $0xe8] sm:$0xff]  }
  0xe0   : > { %6560 = vmatprep.mubr.bf16.mxu1 %v9278_v46  ;;  %6589 = vmatpush3.bf16.msra.mxu1 %v7254_v30  ;;  %v1312_v30 = vld [vmem:[%s7466_s21 + $0xa8] sm:$0xe]  ;;  %v1444_v46 = vrot.slane %v1442_v12, 4  ;;  %v4010_v0 = vrot.slane %v4008_v35, 4  ;;  %v8480_v58 = vrot.slane %v4017_v19, 5  ;;  %v4023_v22 = vrot.slane %v4021_v42, 4 }
  0xe1   : > { %6590 = vmatprep.subr.bf16.mxu1 %v7258_v13  ;;  %v4013_v2 = vrot.slane %v4011_v8, 5  ;;  %v3972_v3 = vsel %vm7498_vm2, %v3967_v61, %v8418_v38  ;;  %v8490_v6 = vsel %vm7744_vm5, %v5556_v44, %v1442_v12  ;;  %v4032_v54 = vshrl.u32 %v5924_v17, 16  ;;  %v7326_v38 = vld [vmem:[%s7466_s21 + $0xb0] sm:$0x1]  ;;  %v1313_v19 = vld [vmem:[%s7466_s21 + $0xb4] sm:$0xe] }
  0xe2   : > { %v4035_v52 = vshll.u32 %v5924_v17, 16  ;;  %v3982_v53 = vsel %vm7498_vm2, %v3977_v25, %v3981_v36  ;;  %v8499_v51 = vsel %vm7744_vm5, %v1444_v46, %v1445_v1  ;;  %v5557_v35 = vrot.slane %v1312_v30, 9  ;;  %v8521_v30 = vld [vmem:[%s7466_s21 + $0x74] sm:$0x1]  ;;  %v7327_v25 = vld [vmem:[%s7466_s21 + $0xb8] sm:$0xf] }
  0xe3   : > { %v1452_v8 = vrot.slane %v7326_v38, 5  ;;  %v9281_v12 = vcombine.low %v8193_v49, %v8207_v4  ;;  %v3996_v42 = vsel %vm7498_vm2, %v3991_v5, %v8420_v34  ;;  %v4006_v61 = vsel %vm7498_vm2, %v4001_v18, %v4005_v10  ;;  %v7259_v4 = vld [vmem:[%s7466_s21 + $0xcc] sm:$0xff]   ;;  %9283 = vst [vmem:[#allocation7_spill] sm:$0xff] %v8521_v30  ;;  %v5930_v38 = vld [vmem:[%s7466_s21 + $0x84] sm:$0xf] }
  0xe4   : > { %6591 = vmatpush3.bf16.msra.mxu1 %v7258_v13  ;;  %v8493_v13 = vld [vmem:[%s7466_s21 + $0x70] sm:$0xf]  ;;  %v1451_v36 = vrot.slane %v1449_v28, 4  ;;  %v4027_v44 = vshll.u32 %v8472_v47, 16  ;;  %v9282_v49 = vcombine.low %v8229_v26, %v8233_v56  ;;  %v4024_v1 = vor.u32 %v4023_v22, %v8480_v58  ;;  %v8538_v22 = vld [vmem:[%s7466_s21 + $0x7c] sm:$0xf] }
  0xe5   : > { %6592 = vmatprep.subr.bf16.mxu1 %v7261_v24  ;;  %9280 = vst [vmem:[#allocation6_spill] sm:$0xff] %v8493_v13  ;;  %v4041_v34 = vshll.u32 %v8493_v13, 16  ;;  %v4045_v10 = vshrl.u32 %v8493_v13, 16  ;;  %v5558_v17 = vrot.slane %v1313_v19, 9  ;;  %v1456_v46 = vrot.slane %v7327_v25, 5  ;;  %9284 = vst [vmem:[#allocation8_spill] sm:$0xff] %v8538_v22 }
  0xe6   : > { %6769 = vmatmul.mubr.bf16.gmra.mrb[24].mxu0 %v7255_v23  ;;  %v7265_v23 = vld [vmem:[%s9248_s1 + $0xf0] sm:$0xff]   ;;  %v4034_v26 = vrot.slane %v4032_v54, 4  ;;  %v4037_v56 = vrot.slane %v4035_v52, 5  ;;  %v8529_v18 = vcombine.low %v3972_v3, %v3982_v53  ;;  %v8541_v19 = vcombine.low %v3996_v42, %v4006_v61  ;;  %v7328_v3 = vld [vmem:[%s7466_s21 + $0xbc] sm:$0x1] }
  0xe7   : > { %6561 = vmatmul.mubr.bf16.gmra.mrb[8].mxu1 %v9281_v12  ;;  %6772 = vmatprep.mubr.bf16.mxu0 %v7257_v62  ;;  %v4014_v62 = vor.u32 %v4013_v2, %v4010_v0  ;;  %v8535_v2 = vsel %vm7744_vm5, %v5557_v35, %v1449_v28  ;;  %v8545_v54 = vsel %vm7744_vm5, %v1451_v36, %v1452_v8  ;;  %v8547_v52 = vrot.slane %v4027_v44, 5  ;;  %v7267_v12 = vld [vmem:[%s9248_s1 + $0xf8] sm:$0xff]   ;;  %v8554_v28 = vld [vmem:[%s7466_s21 + $0x88] sm:$0xf] }
  0xe8   : > { %6564 = vmatprep.mubr.bf16.mxu1 %v9282_v49  ;;  %6593 = vmatpush3.bf16.msra.mxu1 %v7261_v24  ;;  %v5927_v24 = vld [vmem:[%s7466_s21 + $0x78] sm:$0xf]  ;;  %v1459_v53 = vrot.slane %v7328_v3, 5  ;;  %9285 = vst [vmem:[#allocation9_spill] sm:$0xff] %v8554_v28  ;;  %v8558_v42 = vrot.slane %v4024_v1, 4  ;;  %v8560_v61 = vrot.slane %v4041_v34, 5  ;;  %v8564_v36 = vsel %vm7744_vm5, %v5558_v17, %v1456_v46 }
  0xe9   : > { %6594 = vmatprep.subr.bf16.mxu1 %v7263_v41  ;;  %v8556_v35 = vrot.slane %v4014_v62, 4  ;;  %v4047_v8 = vrot.slane %v4045_v10, 4  ;;  %v1458_v44 = vrot.slane %v1456_v46, 4  ;;  %v4038_v49 = vor.u32 %v4037_v56, %v4034_v26  ;;  %v5933_v3 = vld [vmem:[%s7466_s21 + $0x90] sm:$0xf] }
  0xea   : > { %v4051_v25 = vshll.u32 %v8521_v30, 16  ;;  %v4059_v0 = vshll.u32 %v5927_v24, 16  ;;  %v4065_v62 = vshll.u32 %v8538_v22, 16  ;;  %v4069_v1 = vshrl.u32 %v8538_v22, 16  ;;  %v8571_v34 = vld [vmem:[%s7466_s21 + $0x94] sm:$0xf] }
  0xeb   : > { %9286 = vst [vmem:[#allocation10_spill] sm:$0xff] %v8571_v34  ;;  %v9287_v10 = vcombine.low %v8273_v27, %v8277_v29  ;;  %v4080_v17 = vshrl.u32 %v5930_v38, 16  ;;  %v4083_v46 = vshll.u32 %v5930_v38, 16  ;;  %v4093_v26 = vshrl.u32 %v8554_v28, 16  ;;  %v5936_v38 = vld [vmem:[%s7466_s21 + $0x9c] sm:$0xf] }
  0xec   : > { %6595 = vmatpush3.bf16.msra.mxu1 %v7263_v41  ;;  %v4056_v41 = vshrl.u32 %v5927_v24, 16  ;;  %v9288_v56 = vcombine.low %v8284_v45, %v8288_v14  ;;  %v4048_v29 = vor.u32 %v4047_v8, %v8560_v61  ;;  %v4107_v24 = vshll.u32 %v5933_v3, 16  ;;  %v8593_v45 = vld [vmem:[%s7466_s21 + $0x80] sm:$0x1] }
  0xed   : > { %6596 = vmatprep.subr.bf16.mxu1 %v7265_v23  ;;  %v8590_v5 = vrot.slane %v4051_v25, 5  ;;  %9289 = vst [vmem:[#allocation11_spill] sm:$0xff] %v8593_v45  ;;  %v4113_v14 = vshll.u32 %v8571_v34, 16  ;;  %v4061_v27 = vrot.slane %v4059_v0, 5  ;;  %v4071_v8 = vrot.slane %v4069_v1, 4 }
  0xee   : > { %6773 = vmatmul.mubr.bf16.gmra.mrb[28].mxu0 %v7259_v4  ;;  %v4089_v4 = vshll.u32 %v8554_v28, 16  ;;  %v8597_v28 = vrot.slane %v4065_v62, 5  ;;  %v8603_v22 = vld [vmem:[%s7466_s21 + $0xa0] sm:$0xf]  ;;  %v4082_v25 = vrot.slane %v4080_v17, 4  ;;  %v4085_v30 = vrot.slane %v4083_v46, 5 }
  0xef   : > { %6565 = vmatmul.mubr.bf16.gmra.mrb[12].mxu1 %v9287_v10  ;;  %6792 = vmatprep.mubr.bf16.mxu0 %v8342_v59  ;;  %v4104_v59 = vshrl.u32 %v5933_v3, 16  ;;  %v8588_v10 = vrot.slane %v4038_v49, 4  ;;  %v8600_v3 = vld [vmem:[%s7466_s21 + $0x8c] sm:$0x1]  ;;  %9291 = vst [vmem:[#allocation13_spill] sm:$0xff] %v8603_v22  ;;  %v4095_v47 = vrot.slane %v4093_v26, 4  ;;  %v8620_v62 = vsel %vm7744_vm5, %v1458_v44, %v1459_v53 }
  0xf0   : > { %6568 = vmatprep.mubr.bf16.mxu1 %v9288_v56  ;;  %6597 = vmatpush3.bf16.msra.mxu1 %v7265_v23  ;;  %v4117_v23 = vshrl.u32 %v8571_v34, 16  ;;  %v4058_v56 = vrot.slane %v4056_v41, 4  ;;  %9290 = vst [vmem:[#allocation12_spill] sm:$0xff] %v8600_v3  ;;  %v7264_v49 = vld [vmem:[%s9248_s1 + $0x208] sm:$0xff]   ;;  %v8608_v13 = vrot.slane %v4089_v4, 5  ;;  %v4109_v34 = vrot.slane %v4107_v24, 5 }
  0xf1   : > { %6598 = vmatprep.subr.bf16.mxu1 %v7267_v12  ;;  %v5939_v41 = vld [vmem:[%s7466_s21 + $0xa8] sm:$0xf]  ;;  %v4106_v1 = vrot.slane %v4104_v59, 4  ;;  %v8625_v17 = vld [vmem:[%s9248_s1 + $0x100] sm:$0xff]   ;;  %v8628_v46 = vrot.slane %v4113_v14, 5  ;;  %v4128_v26 = vshrl.u32 %v5936_v38, 16  ;;  %v9294_v24 = vcombine.low %v8292_v16, %v8302_v15 }
  0xf2   : > { %9293 = vst [vmem:[#allocation15_spill] sm:$0xff] %v8625_v17  ;;  %v4119_v4 = vrot.slane %v4117_v23, 4  ;;  %v4131_v0 = vshll.u32 %v5936_v38, 16  ;;  %v8631_v53 = vrot.slane %v4048_v29, 4  ;;  %v4137_v44 = vshll.u32 %v8603_v22, 16  ;;  %v7266_v16 = vld [vmem:[%s9248_s1 + $0x210] sm:$0xff]  }
  0xf3   : > { %v4141_v59 = vshrl.u32 %v8603_v22, 16  ;;  %v4062_v14 = vor.u32 %v4061_v27, %v4058_v56  ;;  %v4072_v38 = vor.u32 %v4071_v8, %v8597_v28  ;;  %v4086_v23 = vor.u32 %v4085_v30, %v4082_v25  ;;  %v8643_v29 = vld [vmem:[%s7466_s21 + $0xac] sm:$0xf]  ;;  %v8656_v25 = vld [vmem:[%s7466_s21 + $0xa4] sm:$0x1] }
  0xf4   : > { %6599 = vmatpush3.bf16.msra.mxu1 %v7267_v12  ;;  %v4075_v12 = vshll.u32 %v8593_v45, 16  ;;  %9295 = vst [vmem:[#allocation16_spill] sm:$0xff] %v8643_v29  ;;  %v4096_v15 = vor.u32 %v4095_v47, %v8608_v13  ;;  %v4152_v27 = vshrl.u32 %v5939_v41, 16  ;;  %v4155_v30 = vshll.u32 %v5939_v41, 16 }
  0xf5   : > { %6872 = vmatprep.subr.bf16.mxu1 %v8625_v17  ;;  %v9296_v17 = vcombine.low %v8348_v20, %v8369_v7  ;;  %v4110_v56 = vor.u32 %v4109_v34, %v4106_v1  ;;  %v4120_v8 = vor.u32 %v4119_v4, %v8628_v46  ;;  %v4130_v20 = vrot.slane %v4128_v26, 4 }
  0xf6   : > { %6793 = vmatmul.mubr.bf16.vlgmr.msra.gmra.mrb[0].mxu0 %v8425_v50  ;;  %v4099_v50 = vshll.u32 %v8600_v3, 16  ;;  %v4133_v7 = vrot.slane %v4131_v0, 5  ;;  %v4165_v22 = vshrl.u32 %v8643_v29, 16  ;;  %v4063_v47 = vrot.slane %v4062_v14, 4  ;;  %v7268_v0 = vld [vmem:[%s9248_s1 + $0x218] sm:$0xff]  }
  0xf7   : > { %6569 = vmatmul.mubr.bf16.gmra.mrb[16].mxu1 %v9294_v24  ;;  %6825 = vmatpush3.bf16.msra.mxu0 %v8329_v21  ;;  %v4123_v21 = vshll.u32 %v8611_v39, 16  ;;  %v4161_v24 = vshll.u32 %v8643_v29, 16  ;;  %v4073_v39 = vrot.slane %v4072_v38, 4  ;;  %v4077_v3 = vrot.slane %v4075_v12, 5 }
  0xf8   : > { %6572 = vmatprep.mubr.bf16.mxu1 %v9296_v17  ;;  %6796 = vmatprep.mubr.bf16.mxu0 %v8429_v48  ;;  %v8658_v17 = vrot.slane %v4137_v44, 5  ;;  %v4143_v48 = vrot.slane %v4141_v59, 4  ;;  %v4101_v41 = vrot.slane %v4099_v50, 5  ;;  %v4087_v34 = vrot.slane %v4086_v23, 4 }
  0xf9   : > { %6826 = vmatprep.subr.bf16.mxu0 %v7264_v49  ;;  %v4097_v1 = vrot.slane %v4096_v15, 4  ;;  %v4154_v4 = vrot.slane %v4152_v27, 4  ;;  %v4157_v45 = vrot.slane %v4155_v30, 5  ;;  %v4111_v26 = vrot.slane %v4110_v56, 4  ;;  %v8724_v27 = vld [vmem:[%s7466_s21 + $0xbc] sm:$0x1] }
  0xfa   : > { %v4125_v44 = vrot.slane %v4123_v21, 5  ;;  %v4134_v59 = vor.u32 %v4133_v7, %v4130_v20  ;;  %v4147_v29 = vshll.u32 %v8656_v25, 16  ;;  %v4144_v12 = vor.u32 %v4143_v48, %v8658_v17  ;;  %v8691_v21 = vld [vmem:[%s7466_s21 + $0xb0] sm:$0x1] }
  0xfb   : > { %6827 = vmatpush3.bf16.msra.mxu0 %v7264_v49  ;;  %v4121_v49 = vrot.slane %v4120_v8, 4  ;;  %v8668_v14 = vrot.slane %v4161_v24, 5  ;;  %v4167_v38 = vrot.slane %v4165_v22, 4  ;;  %v9297_v23 = vor.u32 %v8076_v57, %v8074_v11 }
  0xfc   : > { %6828 = vmatprep.subr.bf16.mxu0 %v7266_v16  ;;  %v9298_v15 = vcombine.low %v8381_v40, %v8406_v60  ;;  %v4054_v22 = vsel %vm7498_vm2, %v8631_v53, %v8590_v5  ;;  %v4068_v57 = vsel %vm7498_vm2, %v4063_v47, %v8597_v28  ;;  %v9299_v40 = vcombine.low %v8436_v31, %v8478_v43  ;;  %v7271_v31 = vld [vmem:[%s9248_s1 + $0x220] sm:$0xff]  }
  0xfd   : > { %v8673_v50 = vrot.slane %v9297_v23, 4  ;;  %v4078_v60 = vsel %vm7498_vm2, %v4073_v39, %v4077_v3  ;;  %v4158_v5 = vor.u32 %v4157_v45, %v4154_v4  ;;  %v4102_v28 = vsel %vm7498_vm2, %v4097_v1, %v4101_v41  ;;  %v5995_v41 = vld [vmem:[%s7466_s21 + $0x48] sm:$0xe] }
  0xfe   : > { %6797 = vmatmul.mubr.bf16.gmra.mrb[4].mxu0 %v8474_v55  ;;  %v4044_v55 = vsel %vm7498_vm2, %v8588_v10, %v8560_v61  ;;  %v5942_v61 = vld [vmem:[%s7466_s21 + $0xb4] sm:$0xf]  ;;  %v8703_v10 = vld [vmem:[%s7466_s21 + $0xb8] sm:$0xf]  ;;  %v4116_v39 = vsel %vm7498_vm2, %v4111_v26, %v8628_v46  ;;  %v8713_v43 = vrot.slane %v4134_v59, 4  ;;  %v8715_v3 = vrot.slane %v4147_v29, 5 }
  0xff   : > { %6573 = vmatmul.mubr.bf16.gmra.mrb[20].mxu1 %v9298_v15  ;;  %6800 = vmatprep.mubr.bf16.mxu0 %v8529_v18  ;;  %v4092_v18 = vsel %vm7498_vm2, %v4087_v34, %v8608_v13  ;;  %v4126_v13 = vsel %vm7498_vm2, %v4121_v49, %v4125_v44  ;;  %v8719_v45 = vrot.slane %v4144_v12, 4  ;;  %v4168_v53 = vor.u32 %v4167_v38, %v8668_v14  ;;  %v5996_v26 = vld [vmem:[%s7466_s21 + $0x54] sm:$0xe] }
 0x100   : > { %6576 = vmatprep.mubr.bf16.mxu1 %v9299_v40  ;;  %6829 = vmatpush3.bf16.msra.mxu0 %v7266_v16  ;;  %v4171_v16 = vshll.u32 %v8691_v21, 16  ;;  %v9300_v46 = vsel %vm7498_vm2, %v8558_v42, %v8547_v52  ;;  %v9301_v29 = vsel %vm7498_vm2, %v8556_v35, %v8480_v58  ;;  %v4176_v56 = vshrl.u32 %v5942_v61, 16 }
 0x101   : > { %6830 = vmatprep.subr.bf16.mxu0 %v7268_v0  ;;  %v5973_v30 = vcombine.low %v9301_v29, %v9300_v46  ;;  %v4179_v8 = vshll.u32 %v5942_v61, 16  ;;  %v4185_v20 = vshll.u32 %v8703_v10, 16  ;;  %v5589_v7 = vcombine.low %v8535_v2, %v8545_v54  ;;  %v7274_v2 = vld [vmem:[%s9248_s1 + $0x228] sm:$0xff]   ;;  %v5945_v54 = vld [vmem:[%s7466_s21 + $0xc0] sm:$0xf]  ;;  %v9305_v29 = vld [vmem:[#allocation5_spill] sm:$0xff] }
 0x102   : > { %v5590_v48 = vcombine.low %v8564_v36, %v8620_v62  ;;  %v5974_v24 = vcombine.low %v4044_v55, %v4054_v22  ;;  %v8741_v52 = vrot.slane %v4158_v5, 4  ;;  %v5975_v42 = vcombine.low %v4068_v57, %v4078_v60 }
 0x103   : > { %v8743_v58 = vcombine.low %v4092_v18, %v4102_v28  ;;  %v8745_v35 = vcombine.low %v4116_v39, %v4126_v13  ;;  %v4140_v47 = vsel %vm7498_vm2, %v8713_v43, %v8658_v17  ;;  %v4150_v34 = vsel %vm7498_vm2, %v8719_v45, %v8715_v3  ;;  %v5998_v28 = vld [vmem:[%s7466_s21 + $0x6c] sm:$0xe] }
 0x104   : > { %6831 = vmatpush3.bf16.msra.mxu0 %v7268_v0  ;;  %v8761_v1 = vrot.slane %v4168_v53, 4  ;;  %v8763_v4 = vrot.slane %v4171_v16, 5  ;;  %v4189_v0 = vshrl.u32 %v8703_v10, 16  ;;  %v9302_v44 = vcombine.low %v8490_v6, %v8499_v51  ;;  %v7277_v6 = vld [vmem:[%s9248_s1 + $0x230] sm:$0xff]   ;;  %v8785_v51 = vld [vmem:[%s7466_s21 + $0xc4] sm:$0xf] }
 0x105   : > { %6832 = vmatprep.subr.bf16.mxu0 %v7271_v31  ;;  %v8770_v59 = vrot.slane %v4176_v56, 4  ;;  %v8774_v49 = vrot.slane %v4185_v20, 5  ;;  %v4195_v12 = vshll.u32 %v8724_v27, 16  ;;  %v4164_v38 = vsel %vm7498_vm2, %v8741_v52, %v8668_v14  ;;  %v5997_v14 = vld [vmem:[%s7466_s21 + $0x60] sm:$0xe]  ;;  %v9303_v39 = vld [vmem:[#allocation3_spill] sm:$0xff] }
 0x106   : > { %6801 = vmatmul.mubr.bf16.gmra.mrb[8].mxu0 %v8541_v19  ;;  %v8772_v19 = vrot.slane %v4179_v8, 5  ;;  %v4200_v23 = vshrl.u32 %v5945_v54, 16  ;;  %v6011_v15 = vrot.slane %v5995_v41, 9  ;;  %v4663_v55 = vrot.slane %v8361_v32, 5  ;;  %v7269_v13 = vld [vmem:[%s7466_s21 + $0xc] sm:$0xff]   ;;  %v7280_v56 = vld [vmem:[%s9248_s1 + $0x238] sm:$0xff]  }
 0x107   : > { %6577 = vmatmul.mubr.bf16.gmra.mrb[24].mxu1 %v9302_v44  ;;  %6804 = vmatprep.mubr.bf16.mxu0 %v5973_v30  ;;  %v4203_v22 = vshll.u32 %v5945_v54, 16  ;;  %v4666_v57 = vrot.slane %v8409_v63, 5  ;;  %v6012_v40 = vrot.slane %v5996_v26, 9  ;;  %v4670_v60 = vrot.slane %v8373_v33, 5  ;;  %v9304_v16 = vld [vmem:[#allocation4_spill] sm:$0xff]  ;;  %v9306_v52 = vld [vmem:[#allocation6_spill] sm:$0xff] }
 0x108   : > { %6580 = vmatprep.mubr.bf16.mxu1 %v5589_v7  ;;  %6833 = vmatpush3.bf16.msra.mxu0 %v7271_v31  ;;  %v4174_v18 = vsel %vm7498_vm2, %v8761_v1, %v8763_v4  ;;  %v8795_v5 = vrot.slane %v4189_v0, 4  ;;  %v8799_v61 = vsel %vm7744_vm5, %v6011_v15, %v4663_v55  ;;  %v4665_v32 = vrot.slane %v4663_v55, 4  ;;  %v9307_v4 = vld [vmem:[#allocation7_spill] sm:$0xff] }
 0x109   : > { %6834 = vmatprep.subr.bf16.mxu0 %v7274_v2  ;;  %v4209_v31 = vshll.u32 %v8785_v51, 16  ;;  %v8805_v63 = vsel %vm7744_vm5, %v6012_v40, %v4670_v60  ;;  %v4672_v33 = vrot.slane %v4670_v60, 4  ;;  %v4673_v3 = vrot.slane %v9303_v39, 5  ;;  %v8836_v26 = vld [vmem:[%s7466_s21 + $0xc8] sm:$0x1]  ;;  %v7270_v40 = vld [vmem:[%s7466_s21 + $0x18] sm:$0xff]  }
 0x10a   : > { %v8811_v45 = vsel %vm7744_vm5, %v4665_v32, %v4666_v57  ;;  %v6013_v53 = vrot.slane %v5997_v14, 9  ;;  %v4677_v46 = vrot.slane %v9304_v16, 5  ;;  %v4680_v30 = vrot.slane %v9305_v29, 5  ;;  %v7272_v39 = vld [vmem:[%s7466_s21 + $0x24] sm:$0xff]  }
 0x10b   : > { %v6043_v8 = vcombine.low %v8799_v61, %v8811_v45  ;;  %v8822_v20 = vsel %vm7744_vm5, %v4672_v33, %v4673_v3  ;;  %v6014_v7 = vrot.slane %v5998_v28, 9  ;;  %v4687_v0 = vrot.slane %v9307_v4, 5  ;;  %v9309_v28 = vld [vmem:[#allocation11_spill] sm:$0xff]  ;;  %v5704_v61 = vld [vmem:[%s7466_s21 + $0x90] sm:$0xf] }
 0x10c   : > { %6835 = vmatpush3.bf16.msra.mxu0 %v7274_v2  ;;  %v4684_v2 = vrot.slane %v9306_v52, 5  ;;  %v6044_v54 = vcombine.low %v8805_v63, %v8822_v20  ;;  %v8829_v41 = vsel %vm7744_vm5, %v6013_v53, %v4677_v46  ;;  %v4679_v1 = vrot.slane %v4677_v46, 4  ;;  %v9310_v53 = vld [vmem:[#allocation2_spill] sm:$0xff]  ;;  %v7286_v45 = vld [vmem:[%s7466_s21 + $0xa8] sm:$0xff]  }
 0x10d   : > { %6836 = vmatprep.subr.bf16.mxu0 %v7277_v6  ;;  %v8838_v44 = vrot.slane %v4200_v23, 4  ;;  %v8851_v36 = vcombine.low %v4140_v47, %v4150_v34  ;;  %v4182_v62 = vor.u32 %v8772_v19, %v8770_v59  ;;  %v5999_v23 = vld [vmem:[%s7466_s21 + $0x78] sm:$0xe]  ;;  %v8863_v57 = vrot.slane %v4195_v12, 5  ;;  %v5948_v12 = vld [vmem:[%s7466_s21 + $0xcc] sm:$0xf] }
 0x10e   : > { %6805 = vmatmul.mubr.bf16.gmra.mrb[12].mxu0 %v5974_v24  ;;  %v8840_v24 = vrot.slane %v4203_v22, 5  ;;  %v8844_v15 = vsel %vm7744_vm5, %v6014_v7, %v4684_v2  ;;  %v4686_v55 = vrot.slane %v4684_v2, 4  ;;  %v8861_v22 = vcombine.low %v4164_v38, %v4174_v18  ;;  %v5698_v47 = vld [vmem:[%s7466_s21 + $0x78] sm:$0xf]  ;;  %v9308_v18 = vld [vmem:[#allocation8_spill] sm:$0xff] }
 0x10f   : > { %6581 = vmatmul.mubr.bf16.gmra.mrb[28].mxu1 %v5590_v48  ;;  %6808 = vmatprep.mubr.bf16.mxu0 %v5975_v42  ;;  %v4213_v48 = vshrl.u32 %v8785_v51, 16  ;;  %v8858_v42 = vsel %vm7744_vm5, %v4679_v1, %v4680_v30  ;;  %v4192_v34 = vor.u32 %v8795_v5, %v8774_v49  ;;  %v8874_v59 = vrot.slane %v4209_v31, 5  ;;  %v8888_v31 = vld [vmem:[%s7466_s21 + $0xd0] sm:$0xf]  ;;  %v9311_v1 = vld [vmem:[#allocation9_spill] sm:$0xff] }
 0x110   : > { %6600 = vmatprep.mubr.bf16.mxu1 %v7269_v13  ;;  %6837 = vmatpush3.bf16.msra.mxu0 %v7277_v6  ;;  %v6045_v17 = vcombine.low %v8829_v41, %v8858_v42  ;;  %v8869_v43 = vsel %vm7744_vm5, %v4686_v55, %v4687_v0  ;;  %v4219_v19 = vshll.u32 %v8836_v26, 16  ;;  %v6000_v6 = vld [vmem:[%s7466_s21 + $0x84] sm:$0xe]  ;;  %v4206_v60 = vor.u32 %v8840_v24, %v8838_v44  ;;  %v9312_v24 = vld [vmem:[#allocation12_spill] sm:$0xff]  ;;  %v7350_v63 = vld [vmem:[%s7466_s21 + $0x8c] sm:$0x1] }
 0x111   : > { %6838 = vmatprep.subr.bf16.mxu0 %v7280_v56  ;;  %v6046_v38 = vcombine.low %v8844_v15, %v8869_v43  ;;  %v6015_v14 = vrot.slane %v5999_v23, 9  ;;  %v4691_v32 = vrot.slane %v9308_v18, 5  ;;  %v4694_v33 = vrot.slane %v9309_v28, 5 }
 0x112   : > { %v4215_v5 = vrot.slane %v4213_v48, 4  ;;  %v2438_v3 = vshrl.u32 %v5698_v47, 16  ;;  %v2441_v13 = vshll.u32 %v5698_v47, 16  ;;  %v2460_v16 = vsel %vm7498_vm2, %v8673_v50, %v9310_v53 }
 0x113   : > { %v4224_v46 = vshrl.u32 %v5948_v12, 16  ;;  %v8896_v29 = vsel %vm7744_vm5, %v6015_v14, %v4691_v32  ;;  %v4693_v30 = vrot.slane %v4691_v32, 4  ;;  %v6016_v7 = vrot.slane %v6000_v6, 9  ;;  %v7330_v6 = vld [vmem:[%s9248_s1 + $0x108] sm:$0xff]  }
 0x114   : > { %6839 = vmatpush3.bf16.msra.mxu0 %v7280_v56  ;;  %v4227_v52 = vshll.u32 %v5948_v12, 16  ;;  %v2440_v2 = vrot.slane %v2438_v3, 4  ;;  %v2443_v56 = vrot.slane %v2441_v13, 5  ;;  %v4698_v4 = vrot.slane %v9311_v1, 5  ;;  %v6001_v12 = vld [vmem:[%s7466_s21 + $0x90] sm:$0xe] }
 0x115   : > { %v4233_v50 = vshll.u32 %v8888_v31, 16  ;;  %v4237_v0 = vshrl.u32 %v8888_v31, 16  ;;  %v8905_v44 = vsel %vm7744_vm5, %v4693_v30, %v4694_v33  ;;  %v4701_v55 = vrot.slane %v9312_v24, 5  ;;  %v7273_v3 = vld [vmem:[%s7466_s21 + $0x30] sm:$0xff]  }
 0x116   : > { %6809 = vmatmul.mubr.bf16.gmra.mrb[16].mxu0 %v8743_v58  ;;  %v9313_v58 = vld [vmem:[#allocation15_spill] sm:$0xff]  ;;  %v4216_v48 = vor.u32 %v4215_v5, %v8874_v59  ;;  %v2444_v23 = vor.u32 %v2443_v56, %v2440_v2  ;;  %v4700_v47 = vrot.slane %v4698_v4, 4  ;;  %v4193_v14 = vrot.slane %v4192_v34, 4  ;;  %v8926_v13 = vld [vmem:[%s7466_s21 + $0xd4] sm:$0x1]  ;;  %v9314_v2 = vld [vmem:[#allocation10_spill] sm:$0xff] }
 0x117   : > { %6601 = vmatmul.mubr.bf16.vlgmr.msra.gmra.mrb[0].mxu1 %v7270_v40  ;;  %6812 = vmatprep.mubr.bf16.mxu0 %v8745_v35  ;;  %v6047_v35 = vcombine.low %v8896_v29, %v8905_v44  ;;  %v4183_v40 = vrot.slane %v4182_v62, 4  ;;  %v4221_v18 = vrot.slane %v4219_v19, 5  ;;  %v8918_v32 = vsel %vm7744_vm5, %v6016_v7, %v4698_v4  ;;  %v7275_v19 = vld [vmem:[%s7466_s21 + $0x3c] sm:$0xff]   ;;  %v7331_v1 = vld [vmem:[%s9248_s1 + $0x110] sm:$0xff]  }
 0x118   : > { %6880 = vmatpush3.bf16.msra.mxu1 %v9313_v58  ;;  %6604 = vmatprep.mubr.bf16.mxu1 %v7272_v39  ;;  %v4226_v28 = vrot.slane %v4224_v46, 4  ;;  %v4229_v33 = vrot.slane %v4227_v52, 5  ;;  %v2445_v39 = vrot.slane %v2444_v23, 4  ;;  %v8922_v5 = vsel %vm7744_vm5, %v4700_v47, %v4701_v55  ;;  %v7332_v47 = vld [vmem:[%s7466_s21 + $0x1c] sm:$0xf] }
 0x119   : > { %6873 = vmatprep.subr.bf16.mxu1 %v7330_v6  ;;  %v8928_v53 = vrot.slane %v4233_v50, 5  ;;  %v4239_v30 = vrot.slane %v4237_v0, 4  ;;  %v6048_v62 = vcombine.low %v8918_v32, %v8922_v5  ;;  %v6017_v34 = vrot.slane %v6001_v12, 9 }
 0x11a   : > { %v4207_v7 = vrot.slane %v4206_v60, 4  ;;  %v4217_v46 = vrot.slane %v4216_v48, 4  ;;  %v2450_v52 = vsel %vm7498_vm2, %v2445_v39, %v8074_v11  ;;  %v4705_v56 = vrot.slane %v9314_v2, 5  ;;  %v9315_v11 = vld [vmem:[#allocation14_spill] sm:$0xff]  ;;  %v7276_v39 = vld [vmem:[%s7466_s21 + $0x48] sm:$0xff]  }
 0x11b   : > { %v4188_v4 = vsel %vm7498_vm2, %v4183_v40, %v8774_v49  ;;  %v4198_v60 = vsel %vm7498_vm2, %v4193_v14, %v8863_v57  ;;  %v8946_v50 = vcombine.low %v2450_v52, %v2460_v16  ;;  %v4708_v0 = vrot.slane %v9315_v11, 5  ;;  %v5991_v57 = vld [vmem:[%s7466_s21 + $0x18] sm:$0xe]  ;;  %v6002_v16 = vld [vmem:[%s7466_s21 + $0x9c] sm:$0xe] }
 0x11c   : > { %6881 = vmatpush3.bf16.msra.mxu1 %v7330_v6  ;;  %v4230_v24 = vor.u32 %v4229_v33, %v4226_v28  ;;  %v4243_v55 = vshll.u32 %v8926_v13, 16  ;;  %v8953_v58 = vsel %vm7744_vm5, %v6017_v34, %v4705_v56  ;;  %v4707_v48 = vrot.slane %v4705_v56, 4  ;;  %v7333_v40 = vld [vmem:[%s9248_s1 + $0x118] sm:$0xff]   ;;  %v7334_v2 = vld [vmem:[%s7466_s21 + $0x20] sm:$0x1] }
 0x11d   : > { %6874 = vmatprep.subr.bf16.mxu1 %v7331_v1  ;;  %v4240_v49 = vor.u32 %v4239_v30, %v8928_v53  ;;  %v4222_v23 = vsel %vm7498_vm2, %v4217_v46, %v4221_v18  ;;  %v4635_v12 = vrot.slane %v7332_v47, 5  ;;  %v5980_v6 = vcombine.low %v4188_v4, %v4198_v60  ;;  %v9316_v34 = vld [vmem:[#allocation13_spill] sm:$0xff]  ;;  %v6003_v11 = vld [vmem:[%s7466_s21 + $0xa8] sm:$0xe] }
 0x11e   : > { %6813 = vmatmul.mubr.bf16.gmra.mrb[20].mxu0 %v8851_v36  ;;  %v4212_v36 = vsel %vm7498_vm2, %v4207_v7, %v8874_v59  ;;  %v4231_v14 = vrot.slane %v4230_v24, 4  ;;  %v4245_v28 = vrot.slane %v4243_v55, 5  ;;  %v6007_v18 = vrot.slane %v5991_v57, 9  ;;  %v7278_v46 = vld [vmem:[%s7466_s21 + $0x54] sm:$0xff]   ;;  %v5992_v55 = vld [vmem:[%s7466_s21 + $0x24] sm:$0xe] }
 0x11f   : > { %6605 = vmatmul.mubr.bf16.gmra.mrb[4].mxu1 %v7273_v3  ;;  %6816 = vmatprep.mubr.bf16.mxu0 %v8861_v22  ;;  %v8967_v22 = vsel %vm7744_vm5, %v4707_v48, %v4708_v0  ;;  %v6018_v33 = vrot.slane %v6002_v16, 9  ;;  %v5981_v3 = vcombine.low %v4212_v36, %v4222_v23  ;;  %v4241_v30 = vrot.slane %v4240_v49, 4  ;;  %v7336_v48 = vld [vmem:[%s7466_s21 + $0x28] sm:$0xf]  ;;  %v7337_v36 = vld [vmem:[%s7466_s21 + $0x34] sm:$0xf] }
 0x120   : > { %6608 = vmatprep.mubr.bf16.mxu1 %v7275_v19  ;;  %6882 = vmatpush3.bf16.msra.mxu1 %v7331_v1  ;;  %v6049_v59 = vcombine.low %v8953_v58, %v8967_v22  ;;  %v4712_v19 = vrot.slane %v9316_v34, 5  ;;  %v4715_v7 = vrot.slane %v8656_v25, 5  ;;  %v4637_v52 = vrot.slane %v4635_v12, 4  ;;  %v7335_v1 = vld [vmem:[%s9248_s1 + $0x120] sm:$0xff]  }
 0x121   : > { %6875 = vmatprep.subr.bf16.mxu1 %v7333_v40  ;;  %v4638_v56 = vrot.slane %v7334_v2, 5  ;;  %v4636_v25 = vsel %vm7744_vm5, %v6007_v18, %v4635_v12  ;;  %v4236_v0 = vsel %vm7498_vm2, %v4231_v14, %v8928_v53  ;;  %v4246_v24 = vsel %vm7498_vm2, %v4241_v30, %v4245_v28  ;;  %v5993_v12 = vld [vmem:[%s7466_s21 + $0x30] sm:$0xe]  ;;  %v7279_v30 = vld [vmem:[%s7466_s21 + $0x60] sm:$0xff]  }
 0x122   : > { %v8984_v4 = vsel %vm7744_vm5, %v6018_v33, %v4712_v19  ;;  %v4714_v60 = vrot.slane %v4712_v19, 4  ;;  %v4642_v49 = vrot.slane %v7336_v48, 5  ;;  %v4649_v23 = vrot.slane %v7337_v36, 5  ;;  %v7339_v33 = vld [vmem:[%s7466_s21 + $0x2c] sm:$0x1] }
 0x123   : > { %v4639_v16 = vsel %vm7744_vm5, %v4637_v52, %v4638_v56  ;;  %v6019_v47 = vrot.slane %v6003_v11, 9  ;;  %v5982_v28 = vcombine.low %v4236_v0, %v4246_v24  ;;  %v6008_v18 = vrot.slane %v5992_v55, 9  ;;  %v7281_v52 = vld [vmem:[%s7466_s21 + $0x6c] sm:$0xff]   ;;  %v6004_v11 = vld [vmem:[%s7466_s21 + $0xb4] sm:$0xe] }
 0x124   : > { %6883 = vmatpush3.bf16.msra.mxu1 %v7333_v40  ;;  %v8998_v57 = vsel %vm7744_vm5, %v4714_v60, %v4715_v7  ;;  %v9317_v40 = vld [vmem:[#allocation16_spill] sm:$0xff]  ;;  %v6039_v34 = vcombine.low %v4636_v25, %v4639_v16  ;;  %v4644_v19 = vrot.slane %v4642_v49, 4  ;;  %v6009_v2 = vrot.slane %v5993_v12, 9  ;;  %v5994_v0 = vld [vmem:[%s7466_s21 + $0x3c] sm:$0xe] }
 0x125   : > { %6876 = vmatprep.subr.bf16.mxu1 %v7335_v1  ;;  %v6050_v53 = vcombine.low %v8984_v4, %v8998_v57  ;;  %v4719_v14 = vrot.slane %v9317_v40, 5  ;;  %v4651_v56 = vrot.slane %v4649_v23, 4  ;;  %v7341_v24 = vld [vmem:[%s7466_s21 + $0x40] sm:$0xf]  ;;  %v4643_v48 = vsel %vm7744_vm5, %v6008_v18, %v4642_v49  ;;  %v7343_v18 = vld [vmem:[%s7466_s21 + $0x44] sm:$0x1] }
 0x126   : > { %6817 = vmatmul.mubr.bf16.gmra.mrb[24].mxu0 %v5980_v6  ;;  %v7338_v6 = vld [vmem:[%s9248_s1 + $0x128] sm:$0xff]   ;;  %v4656_v55 = vrot.slane %v7341_v24, 5  ;;  %v4726_v12 = vrot.slane %v8703_v10, 5  ;;  %v4650_v49 = vsel %vm7744_vm5, %v6009_v2, %v4649_v23  ;;  %v7344_v10 = vld [vmem:[%s9248_s1 + $0x138] sm:$0xff]   ;;  %v6005_v23 = vld [vmem:[%s7466_s21 + $0xc0] sm:$0xe] }
 0x127   : > { %6609 = vmatmul.mubr.bf16.gmra.mrb[8].mxu1 %v7276_v39  ;;  %6820 = vmatprep.mubr.bf16.mxu0 %v5981_v3  ;;  %v4645_v39 = vrot.slane %v7339_v33, 5  ;;  %v4722_v3 = vrot.slane %v8691_v21, 5  ;;  %v9015_v7 = vsel %vm7744_vm5, %v6019_v47, %v4719_v14  ;;  %v7342_v21 = vld [vmem:[%s9248_s1 + $0x130] sm:$0xff]   ;;  %v6020_v47 = vrot.slane %v6004_v11, 9 }
 0x128   : > { %6612 = vmatprep.mubr.bf16.mxu1 %v7278_v46  ;;  %6884 = vmatpush3.bf16.msra.mxu1 %v7335_v1  ;;  %v4721_v46 = vrot.slane %v4719_v14, 4  ;;  %v7340_v1 = vld [vmem:[%s7466_s21 + $0x38] sm:$0x1]  ;;  %v6010_v14 = vrot.slane %v5994_v0, 9  ;;  %v4659_v33 = vrot.slane %v7343_v18, 5  ;;  %v4733_v11 = vrot.slane %v8785_v51, 5 }
 0x129   : > { %6877 = vmatprep.subr.bf16.mxu1 %v7338_v6  ;;  %v4652_v60 = vrot.slane %v7340_v1, 5  ;;  %v4646_v36 = vsel %vm7744_vm5, %v4644_v19, %v4645_v39  ;;  %v4728_v39 = vrot.slane %v4726_v12, 4  ;;  %v5695_v19 = vld [vmem:[%s7466_s21 + $0x6c] sm:$0xf]  ;;  %v7284_v18 = vld [vmem:[%s7466_s21 + $0x90] sm:$0xff]   ;;  %v2481_v20 = vshll.u32 %v7350_v63, 16 }
 0x12a   : > { %v9027_v25 = vsel %vm7744_vm5, %v4721_v46, %v4722_v3  ;;  %v6040_v3 = vcombine.low %v4643_v48, %v4646_v36  ;;  %v4657_v1 = vsel %vm7744_vm5, %v6010_v14, %v4656_v55  ;;  %v2414_v0 = vshrl.u32 %v5695_v19, 16  ;;  %v6006_v51 = vld [vmem:[%s7466_s21 + $0xcc] sm:$0xe] }
 0x12b   : > { %v6051_v16 = vcombine.low %v9015_v7, %v9027_v25  ;;  %v4653_v40 = vsel %vm7744_vm5, %v4651_v56, %v4652_v60  ;;  %v6021_v56 = vrot.slane %v6005_v23, 9  ;;  %v2417_v24 = vshll.u32 %v5695_v19, 16 }
 0x12c   : > { %6885 = vmatpush3.bf16.msra.mxu1 %v7338_v6  ;;  %v4729_v6 = vrot.slane %v8724_v27, 5  ;;  %v9047_v27 = vsel %vm7744_vm5, %v6020_v47, %v4726_v12  ;;  %v4736_v36 = vrot.slane %v8836_v26, 5  ;;  %v4735_v12 = vrot.slane %v4733_v11, 4 }
 0x12d   : > { %6878 = vmatprep.subr.bf16.mxu1 %v7342_v21  ;;  %v2419_v26 = vrot.slane %v2417_v24, 5  ;;  %v4743_v23 = vrot.slane %v8926_v13, 5 }
 0x12e   : > { %6821 = vmatmul.mubr.bf16.gmra.mrb[28].mxu0 %v5982_v28  ;;  %v4658_v28 = vrot.slane %v4656_v55, 4  ;;  %v9054_v46 = vsel %vm7744_vm5, %v4728_v39, %v4729_v6  ;;  %v9068_v55 = vsel %vm7744_vm5, %v6021_v56, %v4733_v11  ;;  %v4740_v39 = vrot.slane %v8888_v31, 5  ;;  %v7346_v56 = vld [vmem:[%s7466_s21 + $0x74] sm:$0x1] }
 0x12f   : > { %6613 = vmatmul.mubr.bf16.gmra.mrb[12].mxu1 %v7279_v30  ;;  %6840 = vmatprep.mubr.bf16.mxu0 %v6039_v34  ;;  %v7282_v30 = vld [vmem:[%s7466_s21 + $0x78] sm:$0xff]   ;;  %v6041_v34 = vcombine.low %v4650_v49, %v4653_v40  ;;  %v6052_v2 = vcombine.low %v9047_v27, %v9054_v46  ;;  %v9073_v49 = vsel %vm7744_vm5, %v4735_v12, %v4736_v36  ;;  %v2416_v40 = vrot.slane %v2414_v0, 4  ;;  %v7347_v0 = vld [vmem:[%s7466_s21 + $0x88] sm:$0xf] }
 0x130   : > { %6616 = vmatprep.mubr.bf16.mxu1 %v7281_v52  ;;  %6886 = vmatpush3.bf16.msra.mxu1 %v7342_v21  ;;  %v7283_v52 = vld [vmem:[%s7466_s21 + $0x84] sm:$0xff]   ;;  %v4660_v60 = vsel %vm7744_vm5, %v4658_v28, %v4659_v33  ;;  %v7345_v21 = vld [vmem:[%s7466_s21 + $0x70] sm:$0xf]  ;;  %v6053_v28 = vcombine.low %v9068_v55, %v9073_v49  ;;  %v4742_v19 = vrot.slane %v4740_v39, 4  ;;  %v2471_v24 = vshll.u32 %v7347_v0, 16 }
 0x131   : > { %6879 = vmatprep.subr.bf16.mxu1 %v7344_v10  ;;  %v2423_v48 = vshll.u32 %v7345_v21, 16  ;;  %v2427_v47 = vshrl.u32 %v7345_v21, 16  ;;  %v6042_v6 = vcombine.low %v4657_v1, %v4660_v60  ;;  %v2433_v1 = vshll.u32 %v7346_v56, 16 }
 0x132   : > { %v9095_v11 = vsel %vm7744_vm5, %v4742_v19, %v4743_v23  ;;  %v2475_v21 = vshrl.u32 %v7347_v0, 16  ;;  %v7349_v19 = vld [vmem:[%s7466_s21 + $0xa0] sm:$0xf] }
 0x133   : > { %v9075_v14 = vrot.slane %v2423_v48, 5  ;;  %v2429_v33 = vrot.slane %v2427_v47, 4  ;;  %v2523_v56 = vshrl.u32 %v7349_v19, 16 }
 0x134   : > { %6887 = vmatpush3.bf16.msra.mxu1 %v7344_v10  ;;  %v6022_v10 = vrot.slane %v6006_v51, 9 }
 0x135   : > { %v2430_v31 = vor.u32 %v2429_v33, %v9075_v14  ;;  %v2489_v33 = vshll.u32 %v5704_v61, 16 }
 0x136   : > { %6841 = vmatmul.mubr.bf16.vlgmr.msra.gmra.mrb[0].mxu0 %v6040_v3  ;;  %v7285_v3 = vld [vmem:[%s7466_s21 + $0x9c] sm:$0xff]  }
 0x137   : > { %6617 = vmatmul.mubr.bf16.gmra.mrb[16].mxu1 %v7282_v30  ;;  %6844 = vmatprep.mubr.bf16.mxu0 %v6041_v34  ;;  %v5701_v30 = vld [vmem:[%s7466_s21 + $0x84] sm:$0xf]  ;;  %v9086_v34 = vsel %vm7744_vm5, %v6022_v10, %v4740_v39  ;;  %v2431_v47 = vrot.slane %v2430_v31, 4  ;;  %v7348_v10 = vld [vmem:[%s7466_s21 + $0x94] sm:$0xf]  ;;  %v2491_v0 = vrot.slane %v2489_v33, 5 }
 0x138   : > { %6620 = vmatprep.mubr.bf16.mxu1 %v7283_v52  ;;  %v2420_v52 = vor.u32 %v2419_v26, %v2416_v40  ;;  %v2462_v13 = vshrl.u32 %v5701_v30, 16  ;;  %v2465_v60 = vshll.u32 %v5701_v30, 16  ;;  %v6054_v48 = vcombine.low %v9086_v34, %v9095_v11 }
 0x139   : > { %v9104_v40 = vrot.slane %v2471_v24, 5  ;;  %v2477_v26 = vrot.slane %v2475_v21, 4  ;;  %v2495_v39 = vshll.u32 %v7348_v10, 16  ;;  %v2499_v23 = vshrl.u32 %v7348_v10, 16  ;;  %v7352_v10 = vld [vmem:[%s7466_s21 + $0xa4] sm:$0x1] }
 0x13a   : > { %v2421_v36 = vrot.slane %v2420_v52, 4  ;;  %v2464_v12 = vrot.slane %v2462_v13, 4  ;;  %v2467_v51 = vrot.slane %v2465_v60, 5  ;;  %v2519_v52 = vshll.u32 %v7349_v19, 16  ;;  %v7353_v19 = vld [vmem:[%s7466_s21 + $0xac] sm:$0xf] }
 0x13b   : > { %v2478_v13 = vor.u32 %v2477_v26, %v9104_v40  ;;  %v9121_v41 = vrot.slane %v2495_v39, 5  ;;  %v2501_v42 = vrot.slane %v2499_v23, 4  ;;  %v2525_v21 = vrot.slane %v2523_v56, 4  ;;  %v5713_v23 = vld [vmem:[%s7466_s21 + $0xb4] sm:$0xf] }
 0x13c   : > { %v2529_v39 = vshll.u32 %v7352_v10, 16  ;;  %v2547_v15 = vshrl.u32 %v7353_v19, 16  ;;  %v2561_v63 = vshll.u32 %v5713_v23, 16 }
 0x13d   : > { %v2502_v26 = vor.u32 %v2501_v42, %v9121_v41 }
 0x13e   : > { %6845 = vmatmul.mubr.bf16.gmra.mrb[4].mxu0 %v6042_v6  ;;  %v5707_v6 = vld [vmem:[%s7466_s21 + $0x9c] sm:$0xf] }
 0x13f   : > { %6621 = vmatmul.mubr.bf16.gmra.mrb[20].mxu1 %v7284_v18  ;;  %6848 = vmatprep.mubr.bf16.mxu0 %v6043_v8  ;;  %v2435_v8 = vrot.slane %v2433_v1, 5  ;;  %v2486_v18 = vshrl.u32 %v5704_v61, 16  ;;  %v2513_v30 = vshll.u32 %v5707_v6, 16  ;;  %v2426_v1 = vsel %vm7498_vm2, %v2421_v36, %v9075_v14  ;;  %v7288_v61 = vld [vmem:[%s7466_s21 + $0xc0] sm:$0xff]  }
 0x140   : > { %6624 = vmatprep.mubr.bf16.mxu1 %v7285_v3  ;;  %v2510_v3 = vshrl.u32 %v5707_v6, 16  ;;  %v9123_v14 = vrot.slane %v2519_v52, 5  ;;  %v2543_v52 = vshll.u32 %v7353_v19, 16 }
 0x141   : > { %v2436_v31 = vsel %vm7498_vm2, %v2431_v47, %v2435_v8  ;;  %v2488_v60 = vrot.slane %v2486_v18, 4  ;;  %v2515_v24 = vrot.slane %v2513_v30, 5  ;;  %v2483_v8 = vrot.slane %v2481_v20, 5  ;;  %v7354_v20 = vld [vmem:[%s7466_s21 + $0xb8] sm:$0xf] }
 0x142   : > { %v2479_v47 = vrot.slane %v2478_v13, 4  ;;  %v2526_v33 = vor.u32 %v2525_v21, %v9123_v14  ;;  %v2567_v29 = vshll.u32 %v7354_v20, 16  ;;  %v2571_v44 = vshrl.u32 %v7354_v20, 16 }
 0x144   : > { %v2527_v13 = vrot.slane %v2526_v33, 4 }
 0x146   : > { %6849 = vmatmul.mubr.bf16.gmra.mrb[8].mxu0 %v6044_v54  ;;  %v2468_v54 = vor.u32 %v2467_v51, %v2464_v12  ;;  %v2492_v12 = vor.u32 %v2491_v0, %v2488_v60  ;;  %v7351_v51 = vld [vmem:[%s7466_s21 + $0x98] sm:$0x1]  ;;  %v2531_v60 = vrot.slane %v2529_v39, 5 }
 0x147   : > { %6625 = vmatmul.mubr.bf16.gmra.mrb[24].mxu1 %v7286_v45  ;;  %6852 = vmatprep.mubr.bf16.mxu0 %v6045_v17  ;;  %v2512_v17 = vrot.slane %v2510_v3, 4  ;;  %v5743_v45 = vcombine.low %v2426_v1, %v2436_v31  ;;  %v2505_v6 = vshll.u32 %v7351_v51, 16  ;;  %v2558_v31 = vshrl.u32 %v5713_v23, 16 }
 0x148   : > { %6628 = vmatprep.mubr.bf16.mxu1 %v7287_v9  ;;  %v2469_v36 = vrot.slane %v2468_v54, 4  ;;  %v5710_v9 = vld [vmem:[%s7466_s21 + $0xa8] sm:$0xf]  ;;  %v2493_v56 = vrot.slane %v2492_v12, 4  ;;  %v2532_v32 = vsel %vm7498_vm2, %v2527_v13, %v2531_v60 }
 0x149   : > { %v2516_v18 = vor.u32 %v2515_v24, %v2512_v17  ;;  %v2534_v3 = vshrl.u32 %v5710_v9, 16  ;;  %v2537_v30 = vshll.u32 %v5710_v9, 16  ;;  %v2507_v1 = vrot.slane %v2505_v6, 5 }
 0x14a   : > { %v2474_v43 = vsel %vm7498_vm2, %v2469_v36, %v9104_v40  ;;  %v2545_v17 = vrot.slane %v2543_v52, 5  ;;  %v2549_v24 = vrot.slane %v2547_v15, 4  ;;  %v2560_v21 = vrot.slane %v2558_v31, 4  ;;  %v5716_v36 = vld [vmem:[%s7466_s21 + $0xc0] sm:$0xf] }
 0x14b   : > { %v2517_v54 = vrot.slane %v2516_v18, 4  ;;  %v2536_v0 = vrot.slane %v2534_v3, 4  ;;  %v2539_v42 = vrot.slane %v2537_v30, 5  ;;  %v2582_v9 = vshrl.u32 %v5716_v36, 16  ;;  %v7356_v18 = vld [vmem:[%s7466_s21 + $0xc4] sm:$0xf] }
 0x14c   : > { %v2591_v33 = vshll.u32 %v7356_v18, 16 }
 0x14d   : > { %v2522_v51 = vsel %vm7498_vm2, %v2517_v54, %v9123_v14  ;;  %v2540_v5 = vor.u32 %v2539_v42, %v2536_v0  ;;  %v2595_v14 = vshrl.u32 %v7356_v18, 16  ;;  %v2584_v19 = vrot.slane %v2582_v9, 4 }
 0x14e   : > { %6853 = vmatmul.mubr.bf16.gmra.mrb[12].mxu0 %v6046_v38  ;;  %v2484_v38 = vsel %vm7498_vm2, %v2479_v47, %v2483_v8  ;;  %v2573_v8 = vrot.slane %v2571_v44, 4  ;;  %v2498_v47 = vsel %vm7498_vm2, %v2493_v56, %v9121_v41  ;;  %v7355_v41 = vld [vmem:[%s7466_s21 + $0xb0] sm:$0x1]  ;;  %v5747_v58 = vcombine.low %v2522_v51, %v2532_v32  ;;  %v7358_v44 = vld [vmem:[%s7466_s21 + $0xc8] sm:$0x1] }
 0x14f   : > { %6629 = vmatmul.mubr.bf16.gmra.mrb[28].mxu1 %v7288_v61  ;;  %6856 = vmatprep.mubr.bf16.mxu0 %v6047_v35  ;;  %v2503_v35 = vrot.slane %v2502_v26, 4  ;;  %v5745_v40 = vcombine.low %v2474_v43, %v2484_v38  ;;  %v2563_v61 = vrot.slane %v2561_v63, 5  ;;  %v2553_v6 = vshll.u32 %v7355_v41, 16 }
 0x150   : > { %6664 = vmatprep.mubr.bf16.mxu1 %v5743_v45  ;;  %v2569_v45 = vrot.slane %v2567_v29, 5  ;;  %v2585_v26 = vshll.u32 %v5716_v36, 16  ;;  %v2541_v22 = vrot.slane %v2540_v5, 4  ;;  %v2593_v15 = vrot.slane %v2591_v33, 5 }
 0x151   : > { %v2508_v12 = vsel %vm7498_vm2, %v2503_v35, %v2507_v1  ;;  %v2564_v10 = vor.u32 %v2563_v61, %v2560_v21  ;;  %v2555_v30 = vrot.slane %v2553_v6, 5  ;;  %v2597_v43 = vrot.slane %v2595_v14, 4 }
 0x152   : > { %v2574_v39 = vor.u32 %v2573_v8, %v2569_v45  ;;  %v5746_v3 = vcombine.low %v2498_v47, %v2508_v12  ;;  %v2587_v52 = vrot.slane %v2585_v26, 5  ;;  %v2546_v31 = vsel %vm7498_vm2, %v2541_v22, %v2545_v17 }
 0x153   : > { %v2565_v38 = vrot.slane %v2564_v10, 4  ;;  %v2598_v29 = vor.u32 %v2597_v43, %v2593_v15  ;;  %v2601_v35 = vshll.u32 %v7358_v44, 16 }
 0x154   : > { %v2575_v56 = vrot.slane %v2574_v39, 4  ;;  %v2588_v20 = vor.u32 %v2587_v52, %v2584_v19 }
 0x155   : > { %v2570_v4 = vsel %vm7498_vm2, %v2565_v38, %v2569_v45  ;;  %v2603_v54 = vrot.slane %v2601_v35, 5 }
 0x156   : > { %6857 = vmatmul.mubr.bf16.gmra.mrb[16].mxu0 %v6048_v62  ;;  %v2550_v62 = vor.u32 %v2549_v24, %v2545_v17  ;;  %v2589_v25 = vrot.slane %v2588_v20, 4 }
 0x157   : > { %6665 = vmatmul.mubr.bf16.vlgmr.msra.gmra.mrb[16].mxu1 %v8946_v50  ;;  %6860 = vmatprep.mubr.bf16.mxu0 %v6049_v59  ;;  %v7357_v50 = vld [vmem:[%s7466_s21 + $0xbc] sm:$0x1]  ;;  %s5475_s21 = sshll.u32 %s7373_s15, 5 }
 0x158   : > { %6668 = vmatprep.mubr.bf16.mxu1 %v5745_v40  ;;  %v2577_v23 = vshll.u32 %v7357_v50, 16  ;;  %v2551_v59 = vrot.slane %v2550_v62, 4  ;;  %v2594_v13 = vsel %vm7498_vm2, %v2589_v25, %v2593_v15  ;;  %p229_p5 = scmp.lt.s32.totalorder %s5475_s21, 63 }
 0x15a   : > { %v2579_v1 = vrot.slane %v2577_v23, 5  ;;  %v2556_v63 = vsel %vm7498_vm2, %v2551_v59, %v2555_v30  ;;  %s9323_s21 = smov (!%p229_p5, %s5475_s21), 63 }
 0x15b   : > { %s5476_s22 = sshll.u32 %s9323_s21, 2 }
 0x15c   : > { %v2580_v57 = vsel %vm7498_vm2, %v2575_v56, %v2579_v1  ;;  %s9208_s24 = scalar_lea.vmem %s9249_s2, %s5476_s22 }
 0x15d   : > { %v5749_v7 = vcombine.low %v2570_v4, %v2580_v57 }
 0x15e   : > { %6861 = vmatmul.mubr.bf16.gmra.mrb[20].mxu0 %v6050_v53  ;;  %v5748_v53 = vcombine.low %v2546_v31, %v2556_v63 }
 0x15f   : > { %6669 = vmatmul.mubr.bf16.gmra.mrb[20].mxu1 %v5746_v3  ;;  %6864 = vmatprep.mubr.bf16.mxu0 %v6051_v16  ;;  %v2599_v16 = vrot.slane %v2598_v29, 4 }
 0x160   : > { %6672 = vmatprep.mubr.bf16.mxu1 %v5747_v58 }
 0x161   : > { %v2604_v60 = vsel %vm7498_vm2, %v2599_v16, %v2603_v54 }
 0x162   : > { %v5750_v0 = vcombine.low %v2594_v13, %v2604_v60 }
 0x166   : > { %6865 = vmatmul.mubr.bf16.gmra.mrb[24].mxu0 %v6052_v2 }
 0x167   : > { %6673 = vmatmul.mubr.bf16.gmra.mrb[24].mxu1 %v5748_v53  ;;  %6868 = vmatprep.mubr.bf16.mxu0 %v6053_v28 }
 0x168   : > { %6676 = vmatprep.mubr.bf16.mxu1 %v5749_v7 }
 0x16e   : > { %6869 = vmatmul.mubr.bf16.gmra.mrb[28].mxu0 %v6054_v48 }
 0x16f   : > { %6677 = vmatmul.mubr.bf16.gmra.mrb[28].mxu1 %v5750_v0 }
 0x1ea   : > { %v6602_v27 = vpop.f32.mrb[0].mxu1 }
 0x1eb   : > { %v2014_v46 = vpop.f32.mrb[1].mxu1 }
 0x1ec   : > { %v6603_v2 = vpop.f32.mrb[2].mxu1 }
 0x1ed   : > { %v2017_v42 = vpop.f32.mrb[3].mxu1 }
 0x1f2   : > { %v6606_v55 = vpop.f32.mrb[4].mxu1 }
 0x1f3   : > { %v2030_v49 = vpop.f32.mrb[5].mxu1 }
 0x1f4   : > { %v6607_v28 = vpop.f32.mrb[6].mxu1 }
 0x1f5   : > { %v2033_v17 = vpop.f32.mrb[7].mxu1 }
 0x1fa   : > { %v6610_v24 = vpop.f32.mrb[8].mxu1 }
 0x1fb   : > { %v2046_v40 = vpop.f32.mrb[9].mxu1 }
 0x1fc   : > { %v6611_v21 = vpop.f32.mrb[10].mxu1 }
 0x1fd   : > { %v9194_v37 = vpop.f32.mrb[11].mxu1 }
 0x202   : > { %v9197_v61 = vpop.f32.mrb[12].mxu1 }
 0x203   : > { %v9199_v34 = vpop.f32.mrb[13].mxu1 }
 0x204   : > { %v9201_v11 = vpop.f32.mrb[14].mxu1 }
 0x205   : > { %v9203_v48 = vpop.f32.mrb[15].mxu1 }
 0x209   : > { %v6842_v45 = vpop.f32.mrb[0].mxu0 }
 0x20a   : > { %v6888_v8 = vadd.f32 %v6842_v45, %v6602_v27  ;;  %v4908_v36 = vpop.f32.mrb[1].mxu0 }
 0x20b   : > { %v6889_v47 = vadd.f32 %v4908_v36, %v2014_v46  ;;  %v6843_v12 = vpop.f32.mrb[2].mxu0 }
 0x20c   : > { %v6890_v51 = vadd.f32 %v6843_v12, %v6603_v2  ;;  %v4911_v32 = vpop.f32.mrb[3].mxu0  ;;  %v5261_v18 = vmul.f32 %v6888_v8, %v6888_v8 }
 0x20d   : > { %v6891_v5 = vadd.f32 %v4911_v32, %v2017_v42  ;;  %v5259_v41 = vmul.f32 %v6889_v47, %v6889_v47 }
 0x20e   : > { %v6137_v62 = vpack.c.bf16 %v6890_v51, %v6888_v8  ;;  %v5262_v23 = vmul.f32 %v6890_v51, %v6890_v51 }
 0x20f   : > { %v6132_v6 = vpack.c.bf16 %v6891_v5, %v6889_v47  ;;  %v5227_v9 = vadd.f32 %v6891_v5, %v6889_v47  ;;  %v5260_v26 = vmul.f32 %v6891_v5, %v6891_v5 }
 0x210   : > { %6209 = vst [vmem:[%s9208_s24 + $0x8] sm:$0xff] %v6137_v62  }
 0x211   : > { %6133 = vst [vmem:[%s9208_s24] sm:$0xff] %v6132_v6   ;;  %v5228_v33 = vadd.f32 %v6888_v8, %v5227_v9  ;;  %v5291_v14 = vadd.f32 %v5260_v26, %v5259_v41  ;;  %v6846_v10 = vpop.f32.mrb[4].mxu0 }
 0x212   : > { %v6892_v39 = vadd.f32 %v6846_v10, %v6606_v55  ;;  %v4924_v50 = vpop.f32.mrb[5].mxu0 }
 0x213   : > { %v5292_v3 = vadd.f32 %v5291_v14, %v5261_v18  ;;  %v6893_v58 = vadd.f32 %v4924_v50, %v2030_v49  ;;  %v5229_v22 = vadd.f32 %v6890_v51, %v5228_v33  ;;  %v6847_v59 = vpop.f32.mrb[6].mxu0 }
 0x214   : > { %v6894_v30 = vadd.f32 %v6847_v59, %v6607_v28  ;;  %v4927_v19 = vpop.f32.mrb[7].mxu0  ;;  %v5265_v29 = vmul.f32 %v6892_v39, %v6892_v39 }
 0x215   : > { %v5230_v52 = vadd.f32 %v6893_v58, %v5229_v22  ;;  %v5263_v15 = vmul.f32 %v6893_v58, %v6893_v58  ;;  %v5293_v43 = vadd.f32 %v5292_v3, %v5262_v23  ;;  %v6895_v38 = vadd.f32 %v4927_v19, %v2033_v17 }
 0x216   : > { %v6147_v56 = vpack.c.bf16 %v6894_v30, %v6892_v39  ;;  %v5266_v7 = vmul.f32 %v6894_v30, %v6894_v30 }
 0x217   : > { %v5294_v1 = vadd.f32 %v5293_v43, %v5263_v15  ;;  %v6142_v31 = vpack.c.bf16 %v6895_v38, %v6893_v58  ;;  %v5231_v63 = vadd.f32 %v6895_v38, %v5230_v52  ;;  %v5264_v20 = vmul.f32 %v6895_v38, %v6895_v38 }
 0x218   : > { %6211 = vst [vmem:[%s9208_s24 + $0x18] sm:$0xff] %v6147_v56  }
 0x219   : > { %6210 = vst [vmem:[%s9208_s24 + $0x10] sm:$0xff] %v6142_v31   ;;  %v5232_v44 = vadd.f32 %v6892_v39, %v5231_v63  ;;  %v5295_v35 = vadd.f32 %v5294_v1, %v5264_v20  ;;  %v6850_v4 = vpop.f32.mrb[8].mxu0 }
 0x21a   : > { %v6896_v57 = vadd.f32 %v6850_v4, %v6610_v24  ;;  %v4940_v53 = vpop.f32.mrb[9].mxu0 }
 0x21b   : > { %v5296_v25 = vadd.f32 %v5295_v35, %v5265_v29  ;;  %v6897_v16 = vadd.f32 %v4940_v53, %v2046_v40  ;;  %v5233_v54 = vadd.f32 %v6894_v30, %v5232_v44  ;;  %v6851_v13 = vpop.f32.mrb[10].mxu0 }
 0x21c   : > { %v6898_v60 = vadd.f32 %v6851_v13, %v6611_v21  ;;  %v4943_v0 = vpop.f32.mrb[11].mxu0  ;;  %v5269_v45 = vmul.f32 %v6896_v57, %v6896_v57 }
 0x21d   : > { %v5234_v27 = vadd.f32 %v6897_v16, %v5233_v54  ;;  %v5267_v46 = vmul.f32 %v6897_v16, %v6897_v16  ;;  %v5297_v2 = vadd.f32 %v5296_v25, %v5266_v7  ;;  %v6899_v42 = vadd.f32 %v4943_v0, %v9194_v37 }
 0x21e   : > { %v6157_v55 = vpack.c.bf16 %v6898_v60, %v6896_v57  ;;  %v5270_v12 = vmul.f32 %v6898_v60, %v6898_v60 }
 0x21f   : > { %v5298_v49 = vadd.f32 %v5297_v2, %v5267_v46  ;;  %v6152_v28 = vpack.c.bf16 %v6899_v42, %v6897_v16  ;;  %v5235_v17 = vadd.f32 %v6899_v42, %v5234_v27  ;;  %v5268_v24 = vmul.f32 %v6899_v42, %v6899_v42 }
 0x220   : > { %6213 = vst [vmem:[%s9208_s24 + $0x28] sm:$0xff] %v6157_v55  }
 0x221   : > { %6212 = vst [vmem:[%s9208_s24 + $0x20] sm:$0xff] %v6152_v28   ;;  %v5236_v8 = vadd.f32 %v6896_v57, %v5235_v17  ;;  %v5299_v40 = vadd.f32 %v5298_v49, %v5268_v24  ;;  %v6854_v36 = vpop.f32.mrb[12].mxu0 }
 0x222   : > { %v6900_v47 = vadd.f32 %v6854_v36, %v9197_v61  ;;  %v4956_v21 = vpop.f32.mrb[13].mxu0 }
 0x223   : > { %v5300_v51 = vadd.f32 %v5299_v40, %v5269_v45  ;;  %v6901_v32 = vadd.f32 %v4956_v21, %v9199_v34  ;;  %v5237_v37 = vadd.f32 %v6898_v60, %v5236_v8  ;;  %v6855_v5 = vpop.f32.mrb[14].mxu0 }
 0x224   : > { %v6902_v62 = vadd.f32 %v6855_v5, %v9201_v11  ;;  %v4959_v41 = vpop.f32.mrb[15].mxu0  ;;  %v5273_v50 = vmul.f32 %v6900_v47, %v6900_v47 }
 0x225   : > { %v5238_v6 = vadd.f32 %v6901_v32, %v5237_v37  ;;  %v5271_v9 = vmul.f32 %v6901_v32, %v6901_v32  ;;  %v5301_v26 = vadd.f32 %v5300_v51, %v5270_v12  ;;  %v6903_v18 = vadd.f32 %v4959_v41, %v9203_v48 }
 0x226   : > { %v6167_v33 = vpack.c.bf16 %v6902_v62, %v6900_v47  ;;  %v5274_v11 = vmul.f32 %v6902_v62, %v6902_v62 }
 0x227   : > { %v5302_v14 = vadd.f32 %v5301_v26, %v5271_v9  ;;  %v6162_v61 = vpack.c.bf16 %v6903_v18, %v6901_v32  ;;  %v5239_v10 = vadd.f32 %v6903_v18, %v5238_v6  ;;  %v5272_v39 = vmul.f32 %v6903_v18, %v6903_v18 }
 0x228   : > { %6215 = vst [vmem:[%s9208_s24 + $0x38] sm:$0xff] %v6167_v33  }
 0x229   : > { %6214 = vst [vmem:[%s9208_s24 + $0x30] sm:$0xff] %v6162_v61   ;;  %v5240_v34 = vadd.f32 %v6900_v47, %v5239_v10  ;;  %v5303_v23 = vadd.f32 %v5302_v14, %v5272_v39  ;;  %v6858_v3 = vpop.f32.mrb[16].mxu0 }
 0x22a   : > { %v6666_v58 = vpop.f32.mrb[16].mxu1  ;;  %v4972_v22 = vpop.f32.mrb[17].mxu0 }
 0x22b   : > { %v5304_v59 = vadd.f32 %v5303_v23, %v5273_v50  ;;  %v6904_v30 = vadd.f32 %v6858_v3, %v6666_v58  ;;  %v2832_v19 = vpop.f32.mrb[17].mxu1  ;;  %v5241_v52 = vadd.f32 %v6902_v62, %v5240_v34  ;;  %v6859_v48 = vpop.f32.mrb[18].mxu0 }
 0x22c   : > { %v6905_v15 = vadd.f32 %v4972_v22, %v2832_v19  ;;  %v6667_v43 = vpop.f32.mrb[18].mxu1  ;;  %v4975_v38 = vpop.f32.mrb[19].mxu0 }
 0x22d   : > { %v5305_v56 = vadd.f32 %v5304_v59, %v5274_v11  ;;  %v6906_v1 = vadd.f32 %v6859_v48, %v6667_v43  ;;  %v2835_v31 = vpop.f32.mrb[19].mxu1  ;;  %v5277_v25 = vmul.f32 %v6904_v30, %v6904_v30 }
 0x22e   : > { %v5242_v63 = vadd.f32 %v6905_v15, %v5241_v52  ;;  %v5275_v20 = vmul.f32 %v6905_v15, %v6905_v15  ;;  %v6907_v29 = vadd.f32 %v4975_v38, %v2835_v31 }
 0x22f   : > { %v6177_v44 = vpack.c.bf16 %v6906_v1, %v6904_v30  ;;  %v5278_v2 = vmul.f32 %v6906_v1, %v6906_v1 }
 0x230   : > { %v5306_v35 = vadd.f32 %v5305_v56, %v5275_v20  ;;  %v6172_v4 = vpack.c.bf16 %v6907_v29, %v6905_v15  ;;  %v5243_v57 = vadd.f32 %v6907_v29, %v5242_v63  ;;  %v5276_v53 = vmul.f32 %v6907_v29, %v6907_v29 }
 0x231   : > { %6217 = vst [vmem:[%s9208_s24 + $0x48] sm:$0xff] %v6177_v44   ;;  %v6862_v7 = vpop.f32.mrb[20].mxu0 }
 0x232   : > { %6216 = vst [vmem:[%s9208_s24 + $0x40] sm:$0xff] %v6172_v4   ;;  %v5244_v16 = vadd.f32 %v6904_v30, %v5243_v57  ;;  %v5307_v54 = vadd.f32 %v5306_v35, %v5276_v53  ;;  %v6670_v13 = vpop.f32.mrb[20].mxu1  ;;  %v4988_v60 = vpop.f32.mrb[21].mxu0 }
 0x233   : > { %v6908_v0 = vadd.f32 %v6862_v7, %v6670_v13  ;;  %v2848_v27 = vpop.f32.mrb[21].mxu1  ;;  %v6863_v46 = vpop.f32.mrb[22].mxu0 }
 0x234   : > { %v5308_v42 = vadd.f32 %v5307_v54, %v5277_v25  ;;  %v6909_v55 = vadd.f32 %v4988_v60, %v2848_v27  ;;  %v5245_v49 = vadd.f32 %v6906_v1, %v5244_v16  ;;  %v6671_v28 = vpop.f32.mrb[22].mxu1  ;;  %v4991_v17 = vpop.f32.mrb[23].mxu0 }
 0x235   : > { %v6910_v24 = vadd.f32 %v6863_v46, %v6671_v28  ;;  %v2851_v45 = vpop.f32.mrb[23].mxu1  ;;  %v5281_v62 = vmul.f32 %v6908_v0, %v6908_v0 }
 0x236   : > { %v5246_v8 = vadd.f32 %v6909_v55, %v5245_v49  ;;  %v5279_v40 = vmul.f32 %v6909_v55, %v6909_v55  ;;  %v5309_v36 = vadd.f32 %v5308_v42, %v5278_v2  ;;  %v6911_v47 = vadd.f32 %v4991_v17, %v2851_v45 }
 0x237   : > { %v6187_v21 = vpack.c.bf16 %v6910_v24, %v6908_v0  ;;  %v5282_v61 = vmul.f32 %v6910_v24, %v6910_v24 }
 0x238   : > { %v5310_v12 = vadd.f32 %v5309_v36, %v5279_v40  ;;  %v6182_v51 = vpack.c.bf16 %v6911_v47, %v6909_v55  ;;  %v5247_v32 = vadd.f32 %v6911_v47, %v5246_v8  ;;  %v5280_v37 = vmul.f32 %v6911_v47, %v6911_v47 }
 0x239   : > { %6219 = vst [vmem:[%s9208_s24 + $0x58] sm:$0xff] %v6187_v21   ;;  %v6866_v5 = vpop.f32.mrb[24].mxu0 }
 0x23a   : > { %6218 = vst [vmem:[%s9208_s24 + $0x50] sm:$0xff] %v6182_v51   ;;  %v5248_v41 = vadd.f32 %v6908_v0, %v5247_v32  ;;  %v5311_v6 = vadd.f32 %v5310_v12, %v5280_v37  ;;  %v6674_v9 = vpop.f32.mrb[24].mxu1  ;;  %v5004_v26 = vpop.f32.mrb[25].mxu0 }
 0x23b   : > { %v6912_v18 = vadd.f32 %v6866_v5, %v6674_v9  ;;  %v2864_v33 = vpop.f32.mrb[25].mxu1  ;;  %v6867_v14 = vpop.f32.mrb[26].mxu0 }
 0x23c   : > { %v5312_v10 = vadd.f32 %v5311_v6, %v5281_v62  ;;  %v6913_v39 = vadd.f32 %v5004_v26, %v2864_v33  ;;  %v5249_v50 = vadd.f32 %v6910_v24, %v5248_v41  ;;  %v6675_v34 = vpop.f32.mrb[26].mxu1  ;;  %v5007_v23 = vpop.f32.mrb[27].mxu0 }
 0x23d   : > { %v6914_v3 = vadd.f32 %v6867_v14, %v6675_v34  ;;  %v2867_v58 = vpop.f32.mrb[27].mxu1  ;;  %v5285_v56 = vmul.f32 %v6912_v18, %v6912_v18 }
 0x23e   : > { %v5250_v22 = vadd.f32 %v6913_v39, %v5249_v50  ;;  %v5283_v11 = vmul.f32 %v6913_v39, %v6913_v39  ;;  %v5313_v59 = vadd.f32 %v5312_v10, %v5282_v61  ;;  %v6915_v30 = vadd.f32 %v5007_v23, %v2867_v58 }
 0x23f   : > { %v6197_v19 = vpack.c.bf16 %v6914_v3, %v6912_v18  ;;  %v5286_v4 = vmul.f32 %v6914_v3, %v6914_v3 }
 0x240   : > { %v5314_v52 = vadd.f32 %v5313_v59, %v5283_v11  ;;  %v6192_v48 = vpack.c.bf16 %v6915_v30, %v6913_v39  ;;  %v5251_v15 = vadd.f32 %v6915_v30, %v5250_v22  ;;  %v5284_v43 = vmul.f32 %v6915_v30, %v6915_v30 }
 0x241   : > { %6221 = vst [vmem:[%s9208_s24 + $0x68] sm:$0xff] %v6197_v19   ;;  %v6870_v38 = vpop.f32.mrb[28].mxu0 }
 0x242   : > { %6220 = vst [vmem:[%s9208_s24 + $0x60] sm:$0xff] %v6192_v48   ;;  %v5252_v1 = vadd.f32 %v6912_v18, %v5251_v15  ;;  %v5315_v31 = vadd.f32 %v5314_v52, %v5284_v43  ;;  %v6678_v63 = vpop.f32.mrb[28].mxu1  ;;  %v5020_v20 = vpop.f32.mrb[29].mxu0 }
 0x243   : > { %v6916_v29 = vadd.f32 %v6870_v38, %v6678_v63  ;;  %v2880_v44 = vpop.f32.mrb[29].mxu1  ;;  %v6871_v35 = vpop.f32.mrb[30].mxu0 }
 0x244   : > { %v5316_v57 = vadd.f32 %v5315_v31, %v5285_v56  ;;  %v6917_v53 = vadd.f32 %v5020_v20, %v2880_v44  ;;  %v5253_v7 = vadd.f32 %v6914_v3, %v5252_v1  ;;  %v6679_v25 = vpop.f32.mrb[30].mxu1  ;;  %v5023_v16 = vpop.f32.mrb[31].mxu0 }
 0x245   : > { %v6918_v54 = vadd.f32 %v6871_v35, %v6679_v25  ;;  %v2883_v13 = vpop.f32.mrb[31].mxu1  ;;  %v5289_v17 = vmul.f32 %v6916_v29, %v6916_v29 }
 0x246   : > { %v5254_v60 = vadd.f32 %v6917_v53, %v5253_v7  ;;  %v5287_v0 = vmul.f32 %v6917_v53, %v6917_v53  ;;  %v5317_v27 = vadd.f32 %v5316_v57, %v5286_v4  ;;  %v6919_v46 = vadd.f32 %v5023_v16, %v2883_v13 }
 0x247   : > { %v6207_v2 = vpack.c.bf16 %v6918_v54, %v6916_v29  ;;  %v5290_v8 = vmul.f32 %v6918_v54, %v6918_v54 }
 0x248   : > { %v5318_v42 = vadd.f32 %v5317_v27, %v5287_v0  ;;  %v6202_v55 = vpack.c.bf16 %v6919_v46, %v6917_v53  ;;  %v5255_v49 = vadd.f32 %v6919_v46, %v5254_v60  ;;  %v5288_v28 = vmul.f32 %v6919_v46, %v6919_v46 }
 0x249   : > { %6223 = vst [vmem:[%s9208_s24 + $0x78] sm:$0xff] %v6207_v2  }
 0x24a   : > { %6222 = vst [vmem:[%s9208_s24 + $0x70] sm:$0xff] %v6202_v55   ;;  %v5256_v24 = vadd.f32 %v6916_v29, %v5255_v49  ;;  %v5319_v45 = vadd.f32 %v5318_v42, %v5288_v28 }
 0x24c   : > { %v5257_v40 = vadd.f32 %v6918_v54, %v5256_v24  ;;  %v5320_v36 = vadd.f32 %v5319_v45, %v5289_v17 }
 0x24e   : > { %5258 = vst [vmem:[%s239_s28] sm:$0xff] %v5257_v40  ;;  %v5321_v47 = vadd.f32 %v5320_v36, %v5290_v8 }
 0x250   : > { %5322 = vst [vmem:[%s245_s6] sm:$0xff] %v5321_v47 }
 0x251 PF: > { %s15_s17 = sadd.s32 1, %s7381_s17   ;;  %s9318_s15 = smov %s7377_s16 }
 0x252   : > { %p12_p6 = scmp.ge.s32.totalorder %s15_s17, 4   ;;  %s9319_s16 = smov %s9321_s18 }
 0x254   :  { %14 = sbr.rel (!%p12_p6) target bundleno = 2 (0x2), region = 93 }

</bundles_post_ra>
